<compile_context>
chip_gen: v6e
topology: v6e:2x2x1
jax: 0.10.0
libtpu: 0.0.40
codegen_flags: <defaults>
</compile_context>

<pallas_src>
import functools

import jax
import jax.numpy as jnp
from jax import lax
from jax.experimental import pallas as pl
from jax.experimental.pallas import tpu as pltpu


LANE = 128  # per-gate padded width (one full vreg lane group)

# PyTorch LSTM gate order is (i, f, g, o); we pack as (i, f, o, g) so the three
# sigmoid gates are contiguous -> a single pipelined EUP push per step.
_GATE_SRC_ORDER = (0, 1, 3, 2)   # dst gate block g takes source block _GATE_SRC_ORDER[g]


# ---------------------------------------------------------------------------
# Fused kernel: embedding gather + n_layers fused-bidirectional LSTM + fc +
# softmax, with manual DMA overlap for layer>=1 weights.
# ---------------------------------------------------------------------------
def _make_fused_kernel(T, B, Vp, Hp, n_layers, num_manual):
    n_in = 2 + 5 * n_layers + 2

    def kernel(*refs):
        in_refs = refs[:n_in]
        out_ref = refs[n_in]
        scratch = refs[n_in + 1:]

        ids_ref, emb_ref = in_refs[0], in_refs[1]
        layer_refs = [in_refs[2 + 5 * l: 2 + 5 * l + 5] for l in range(n_layers)]
        fc_w_ref = in_refs[2 + 5 * n_layers]
        fc_b_ref = in_refs[2 + 5 * n_layers + 1]

        vmem_w = scratch[:num_manual]
        dma_sem = scratch[num_manual] if num_manual else None

        f32 = jnp.float32
        TB = T * B
        Hp3 = 3 * Hp

        # --- Kick off layer>=1 weight DMAs (HBM -> VMEM scratch); they are
        # --- hidden behind the embedding matmul + layer-0 recurrence.
        copies = []                      # copies[l-1] = 3 descriptors for layer l
        si = 0
        for l in range(1, n_layers):
            layer_copies = []
            for j in range(3):           # wih_fwd, wih_bwd, whh_stacked
                cp = pltpu.make_async_copy(layer_refs[l][j], vmem_w[si],
                                           dma_sem.at[si])
                cp.start()
                layer_copies.append(cp)
                si += 1
            copies.append(layer_copies)

        # --- Embedding gather as a one-hot matmul on the MXU (exact) --------
        ids = ids_ref[...]                                          # [TB, 1] i32
        vocab_iota = lax.broadcasted_iota(jnp.int32, (TB, Vp), 1)   # [TB, Vp]
        one_hot = (vocab_iota == ids).astype(f32)
        x = jnp.dot(one_hot, emb_ref[...], preferred_element_type=f32)  # [TB, E]

        # --- direction-split masks for re-expanding h into [2B, 2Hp] --------
        row = lax.broadcasted_iota(jnp.int32, (2 * B, Hp), 0)
        m_f = (row < B).astype(f32)          # 1 on fwd rows, 0 on bwd rows
        m_b = 1.0 - m_f

        h_exp = None
        for l in range(n_layers):
            if l == 0:
                wih_f = layer_refs[l][0][...]
                wih_b = layer_refs[l][1][...]
                whh_s = layer_refs[l][2][...]
            else:
                for cp in copies[l - 1]:
                    cp.wait()
                base = 3 * (l - 1)
                wih_f = vmem_w[base + 0][...]
                wih_b = vmem_w[base + 1][...]
                whh_s = vmem_w[base + 2][...]
            b_f = layer_refs[l][3][...]       # [1, 4Hp]
            b_b = layer_refs[l][4][...]

            # Hoisted, time-independent input projection (off the serial chain)
            gx_f = jnp.dot(x, wih_f, preferred_element_type=f32) + b_f   # [TB,4Hp]
            gx_b = jnp.dot(x, wih_b, preferred_element_type=f32) + b_b

            # Per-step fused operands: rows 0:B = fwd at time t,
            # rows B:2B = bwd at time T-1-t.  Assembled up front, off-chain.
            gx_steps = [
                jnp.concatenate(
                    [gx_f[t * B:(t + 1) * B, :],
                     gx_b[(T - 1 - t) * B:(T - t) * B, :]], axis=0)
                for t in range(T)
            ]

            # --- fused bidirectional recurrence (block-diagonal whh) --------
            h_exp = jnp.zeros((2 * B, 2 * Hp), f32)
            c = jnp.zeros((2 * B, Hp), f32)
            h_hist = [None] * T
            for t in range(T):
                g = gx_steps[t] + jnp.dot(h_exp, whh_s,
                                          preferred_element_type=f32)  # [2B,4Hp]
                s3 = jax.nn.sigmoid(g[:, :Hp3])      # gates i, f, o in one push
                g_g = jnp.tanh(g[:, Hp3:])
                c = s3[:, Hp:2 * Hp] * c + s3[:, 0:Hp] * g_g
                h = s3[:, 2 * Hp:Hp3] * jnp.tanh(c)                     # [2B,Hp]
                h_exp = jnp.concatenate([h * m_f, h * m_b], axis=-1)    # [2B,2Hp]
                h_hist[t] = h_exp

            if l + 1 < n_layers:
                # Next-layer input, time-major [TB, 2Hp]: row t*B+b =
                # [fwd h(t,b) | bwd h(t,b)].  One-time build, off the chain.
                # TODO(synk): for long T, store h directly into a VMEM scratch
                # instead of this concatenate (vst slot is idle).
                x = jnp.concatenate(
                    [h_hist[s][0:B, :] + h_hist[T - 1 - s][B:2 * B, :]
                     for s in range(T)], axis=0)

        # --- fc + softmax ----------------------------------------------------
        # After the last fused step, h_exp holds [last fwd | 0] on fwd rows and
        # [0 | last bwd] on bwd rows -> hidden = concat(last fwd, last bwd).
        hidden = h_exp[0:B, :] + h_exp[B:2 * B, :]                    # [B, 2Hp]
        logits = jnp.dot(hidden, fc_w_ref[...],
                         preferred_element_type=f32) + fc_b_ref[...]  # [B, O]
        m = jnp.max(logits, axis=1, keepdims=True)
        e = jnp.exp(logits - m)
        out_ref[...] = e / jnp.sum(e, axis=1, keepdims=True)          # exact divide

    return kernel


# ---------------------------------------------------------------------------
# Forward wrapper: one pallas_call; small operands VMEM-resident, layer>=1 big
# weights left in HBM and DMA'd manually inside the kernel.
# ---------------------------------------------------------------------------
def email_classification_forward(kp, input_ids, attention_mask):
    del attention_mask  # unused, exactly as in the PyTorch forward()
    B, T = input_ids.shape
    Vp, _ = kp["embedding"].shape
    Hp = kp["Hp"]
    n_layers = kp["n_layers"]
    O = kp["fc_b"].shape[1]

    # Time-major flattening: row k = t*B + b.
    ids_tm = jnp.transpose(input_ids).reshape(T * B, 1).astype(jnp.int32)

    operands = [ids_tm, kp["embedding"]]
    in_specs = [
        pl.BlockSpec((T * B, 1), lambda i: (0, 0)),
        pl.BlockSpec(kp["embedding"].shape, lambda i: (0, 0)),
    ]
    manual_shapes = []
    for l in range(n_layers):
        lw = kp["layers"][l]
        wih_f, wih_b = lw["fwd"]["wih"], lw["bwd"]["wih"]
        whh_s = lw["whh_stacked"]
        b_f, b_b = lw["fwd"]["b"], lw["bwd"]["b"]
        operands += [wih_f, wih_b, whh_s, b_f, b_b]
        if l == 0:
            in_specs += [
                pl.BlockSpec(wih_f.shape, lambda i: (0, 0)),
                pl.BlockSpec(wih_b.shape, lambda i: (0, 0)),
                pl.BlockSpec(whh_s.shape, lambda i: (0, 0)),
                pl.BlockSpec(b_f.shape, lambda i: (0, 0)),
                pl.BlockSpec(b_b.shape, lambda i: (0, 0)),
            ]
        else:
            # Big weights stay in HBM; DMA'd manually (overlapped with layer 0).
            in_specs += [
                pl.BlockSpec(memory_space=pl.ANY),
                pl.BlockSpec(memory_space=pl.ANY),
                pl.BlockSpec(memory_space=pl.ANY),
                pl.BlockSpec(b_f.shape, lambda i: (0, 0)),
                pl.BlockSpec(b_b.shape, lambda i: (0, 0)),
            ]
            manual_shapes += [wih_f.shape, wih_b.shape, whh_s.shape]
    operands += [kp["fc_w"], kp["fc_b"]]
    in_specs += [
        pl.BlockSpec(kp["fc_w"].shape, lambda i: (0, 0)),
        pl.BlockSpec(kp["fc_b"].shape, lambda i: (0, 0)),
    ]

    scratch_shapes = [pltpu.VMEM(s, jnp.float32) for s in manual_shapes]
    num_manual = len(manual_shapes)
    if num_manual:
        scratch_shapes.append(pltpu.SemaphoreType.DMA((num_manual,)))

    kernel = _make_fused_kernel(T, B, Vp, Hp, n_layers, num_manual)
    return pl.pallas_call(
        kernel,
        out_shape=jax.ShapeDtypeStruct((B, O), jnp.float32),
        grid_spec=pltpu.PrefetchScalarGridSpec(
            num_scalar_prefetch=0,
            grid=(1,),
            in_specs=in_specs,
            out_specs=pl.BlockSpec((B, O), lambda i: (0, 0)),
            scratch_shapes=scratch_shapes,
        ),
        compiler_params=pltpu.CompilerParams(
            dimension_semantics=("arbitrary",)),
    )(*operands)


# ---------------------------------------------------------------------------
# Parameters: natural (PyTorch-layout) params + packing into padded operands.
# ---------------------------------------------------------------------------
def make_params(key, vocab_size, embedding_dim, hidden_dim, output_dim,
                n_layers, bidirectional):
    assert bidirectional, "this implementation mirrors the bidirectional path"
    H = hidden_dim
    k = 1.0 / (H ** 0.5)

    def split(kk):
        return jax.random.split(kk)

    key, sub = split(key)
    params = {"embedding":
              jax.random.normal(sub, (vocab_size, embedding_dim), jnp.float32) * 0.1}

    layers = []
    in_dim = embedding_dim
    for _ in range(n_layers):
        layer = {}
        for dname in ("fwd", "bwd"):
            key, k1 = split(key)
            key, k2 = split(key)
            key, k3 = split(key)
            key, k4 = split(key)
            layer[dname] = {
                "wih": jax.random.uniform(k1, (4 * H, in_dim), jnp.float32, -k, k),
                "whh": jax.random.uniform(k2, (4 * H, H), jnp.float32, -k, k),
                "b_ih": jax.random.uniform(k3, (4 * H,), jnp.float32, -k, k),
                "b_hh": jax.random.uniform(k4, (4 * H,), jnp.float32, -k, k),
            }
        layers.append(layer)
        in_dim = 2 * H
    params["lstm_layers"] = layers

    fc_in = 2 * H
    kf = 1.0 / (fc_in ** 0.5)
    key, k1 = split(key)
    key, k2 = split(key)
    params["fc_w"] = jax.random.uniform(k1, (output_dim, fc_in), jnp.float32, -kf, kf)
    params["fc_b"] = jax.random.uniform(k2, (output_dim,), jnp.float32, -kf, kf)
    return params


def pack_params(params, hidden_dim):
    """Transpose + pad weights so every gate sits on a 128-lane boundary,
    reorder gates to (i, f, o, g), and stack fwd/bwd whh block-diagonally."""
    H = hidden_dim
    Hp = ((H + LANE - 1) // LANE) * LANE

    def pad_gate_cols(w_t):  # [D, 4H] -> [D, 4Hp], gate order (i, f, o, g)
        D = w_t.shape[0]
        out = jnp.zeros((D, 4 * Hp), jnp.float32)
        for dst, src in enumerate(_GATE_SRC_ORDER):
            out = out.at[:, dst * Hp:dst * Hp + H].set(w_t[:, src * H:(src + 1) * H])
        return out

    def pad_rows(w, n_blocks):  # [n_blocks*H, C] -> [n_blocks*Hp, C]
        C = w.shape[1]
        out = jnp.zeros((n_blocks * Hp, C), jnp.float32)
        for b in range(n_blocks):
            out = out.at[b * Hp:b * Hp + H, :].set(w[b * H:(b + 1) * H, :])
        return out

    emb = params["embedding"]
    V, E = emb.shape
    Vp = ((V + LANE - 1) // LANE) * LANE
    emb_p = jnp.zeros((Vp, E), jnp.float32).at[:V, :].set(emb)

    layers = []
    for l, layer in enumerate(params["lstm_layers"]):
        packed_layer = {}
        whh_blocks = []
        for dname in ("fwd", "bwd"):
            p = layer[dname]
            wih_t = pad_gate_cols(p["wih"].T)                 # [in, 4Hp]
            if l > 0:
                wih_t = pad_rows(wih_t, 2)                    # [2Hp, 4Hp]
            whh_t = pad_rows(pad_gate_cols(p["whh"].T), 1)    # [Hp, 4Hp]
            b = pad_gate_cols((p["b_ih"] + p["b_hh"]).reshape(1, 4 * H))  # [1,4Hp]
            packed_layer[dname] = {"wih": wih_t, "b": b}
            whh_blocks.append(whh_t)
        # Block-diagonal hidden weights for the fused fwd+bwd recurrence:
        # rows 0:Hp act on fwd lanes, rows Hp:2Hp on bwd lanes of h_exp.
        packed_layer["whh_stacked"] = jnp.concatenate(whh_blocks, axis=0)  # [2Hp,4Hp]
        layers.append(packed_layer)

    fc_w = pad_rows(params["fc_w"].T, 2)                      # [2Hp, O]
    fc_b = params["fc_b"].reshape(1, -1)                      # [1, O]

    return {"embedding": emb_p, "layers": layers, "fc_w": fc_w, "fc_b": fc_b,
            "Hp": Hp, "n_layers": len(layers)}


# ---------------------------------------------------------------------------
# Pure-JAX reference (no Pallas) for correctness checking.
# ---------------------------------------------------------------------------
def _reference_forward(params, input_ids):
    hi = jax.lax.Precision.HIGHEST
    emb = jnp.take(params["embedding"], input_ids, axis=0)       # [B, T, E]
    x = jnp.transpose(emb, (1, 0, 2)).astype(jnp.float32)        # [T, B, E]
    T, B, _ = x.shape
    H = params["lstm_layers"][0]["fwd"]["whh"].shape[1]

    def run(x_seq, p, reverse):
        wih_t, whh_t = p["wih"].T, p["whh"].T
        b = (p["b_ih"] + p["b_hh"])[None, :]
        h = jnp.zeros((B, H), jnp.float32)
        c = jnp.zeros((B, H), jnp.float32)
        hs = [None] * T
        order = range(T - 1, -1, -1) if reverse else range(T)
        for t in order:
            g = (jnp.dot(x_seq[t], wih_t, precision=hi)
                 + jnp.dot(h, whh_t, precision=hi) + b)
            i = jax.nn.sigmoid(g[:, 0 * H:1 * H])
            f = jax.nn.sigmoid(g[:, 1 * H:2 * H])
            gg = jnp.tanh(g[:, 2 * H:3 * H])
            o = jax.nn.sigmoid(g[:, 3 * H:4 * H])
            c = f * c + i * gg
            h = o * jnp.tanh(c)
            hs[t] = h
        return hs, h

    last_f = last_b = None
    for layer in params["lstm_layers"]:
        hs_f, last_f = run(x, layer["fwd"], False)
        hs_b, last_b = run(x, layer["bwd"], True)
        x = jnp.stack([jnp.concatenate([hs_f[t], hs_b[t]], axis=-1)
                       for t in range(T)])
    hidden = jnp.concatenate([last_f, last_b], axis=1)
    logits = jnp.dot(hidden, params["fc_w"].T, precision=hi) + params["fc_b"][None, :]
    return jax.nn.softmax(logits, axis=1)


if __name__ == "__main__":
    # Small, module-consistent sizes.
    VOCAB, EMB, HID, OUT = 50, 32, 32, 4
    N_LAYERS, BIDIR, DROPOUT = 2, True, 0.0   # dropout: eval-mode no-op
    B, T = 2, 8

    params = make_params(jax.random.PRNGKey(0), VOCAB, EMB, HID, OUT,
                         N_LAYERS, BIDIR)
    packed = pack_params(params, HID)

    key = jax.random.PRNGKey(0)
    k_ids, k_mask = jax.random.split(key)
    input_ids = jax.random.randint(k_ids, (B, T), 0, VOCAB, dtype=jnp.int32)
    attention_mask = jnp.ones((B, T), dtype=jnp.int32)

    fwd = jax.jit(functools.partial(email_classification_forward, packed))
    probs = fwd(input_ids, attention_mask)
    jax.block_until_ready(probs)

    ref = _reference_forward(params, input_ids)

    assert probs.shape == (B, OUT)
    assert bool(jnp.all(jnp.isfinite(probs)))
    # exact softmax divide -> probabilities normalize to f32 rounding error
    assert bool(jnp.allclose(jnp.sum(probs, axis=1), 1.0, atol=1e-5))
    # kernel matmuls run at default MXU precision vs HIGHEST in the reference
    assert bool(jnp.allclose(probs, ref, atol=5e-3)), "mismatch vs pure-JAX reference"
    print("KERNEL_OK")
</pallas_src>

<mosaic_0001>
module attributes {stable_mosaic.version = 11 : i64} {
  func.func @kernel(%arg0: i32, %arg1: memref<16x1xi32, #tpu.memory_space<vmem>>, %arg2: memref<128x32xf32, #tpu.memory_space<vmem>>, %arg3: memref<32x512xf32, #tpu.memory_space<vmem>>, %arg4: memref<32x512xf32, #tpu.memory_space<vmem>>, %arg5: memref<256x512xf32, #tpu.memory_space<vmem>>, %arg6: memref<1x512xf32, #tpu.memory_space<vmem>>, %arg7: memref<1x512xf32, #tpu.memory_space<vmem>>, %arg8: memref<256x512xf32, #tpu.memory_space<any>>, %arg9: memref<256x512xf32, #tpu.memory_space<any>>, %arg10: memref<256x512xf32, #tpu.memory_space<any>>, %arg11: memref<1x512xf32, #tpu.memory_space<vmem>>, %arg12: memref<1x512xf32, #tpu.memory_space<vmem>>, %arg13: memref<256x4xf32, #tpu.memory_space<vmem>>, %arg14: memref<1x4xf32, #tpu.memory_space<vmem>>, %arg15: memref<2x4xf32, #tpu.memory_space<vmem>>, %arg16: memref<256x512xf32, #tpu.memory_space<vmem>>, %arg17: memref<256x512xf32, #tpu.memory_space<vmem>>, %arg18: memref<256x512xf32, #tpu.memory_space<vmem>>, %arg19: memref<3x!tpu.dma_semaphore, #tpu.memory_space<semaphore_mem>>) attributes {dimension_semantics = [#tpu.dimension_semantics<arbitrary>], iteration_bounds = array<i64: 1>, scalar_prefetch = 0 : i64, scratch_operands = 4 : i64, tpu.core_type = #tpu.core_type<tc>, window_params = [{pipeline_mode = #tpu.pipeline_mode<synchronous>, transform_indices = @transform_0, window_bounds = array<i64: 16, 1>}, {pipeline_mode = #tpu.pipeline_mode<synchronous>, transform_indices = @transform_1, window_bounds = array<i64: 128, 32>}, {pipeline_mode = #tpu.pipeline_mode<synchronous>, transform_indices = @transform_2, window_bounds = array<i64: 32, 512>}, {pipeline_mode = #tpu.pipeline_mode<synchronous>, transform_indices = @transform_3, window_bounds = array<i64: 32, 512>}, {pipeline_mode = #tpu.pipeline_mode<synchronous>, transform_indices = @transform_4, window_bounds = array<i64: 256, 512>}, {pipeline_mode = #tpu.pipeline_mode<synchronous>, transform_indices = @transform_5, window_bounds = array<i64: 1, 512>}, {pipeline_mode = #tpu.pipeline_mode<synchronous>, transform_indices = @transform_6, window_bounds = array<i64: 1, 512>}, {}, {}, {}, {pipeline_mode = #tpu.pipeline_mode<synchronous>, transform_indices = @transform_10, window_bounds = array<i64: 1, 512>}, {pipeline_mode = #tpu.pipeline_mode<synchronous>, transform_indices = @transform_11, window_bounds = array<i64: 1, 512>}, {pipeline_mode = #tpu.pipeline_mode<synchronous>, transform_indices = @transform_12, window_bounds = array<i64: 256, 4>}, {pipeline_mode = #tpu.pipeline_mode<synchronous>, transform_indices = @transform_13, window_bounds = array<i64: 1, 4>}, {pipeline_mode = #tpu.pipeline_mode<synchronous>, transform_indices = @transform_14, window_bounds = array<i64: 2, 4>}]} {
    %c0_i32 = arith.constant 0 : i32
    %0 = tpu.memref_slice %arg19[%c0_i32] : memref<3x!tpu.dma_semaphore, #tpu.memory_space<semaphore_mem>> -> memref<1x!tpu.dma_semaphore, #tpu.memory_space<semaphore_mem>>
    %1 = tpu.memref_squeeze %0 : memref<1x!tpu.dma_semaphore, #tpu.memory_space<semaphore_mem>> -> memref<!tpu.dma_semaphore, #tpu.memory_space<semaphore_mem>>
    tpu.enqueue_dma source(%arg8 : memref<256x512xf32, #tpu.memory_space<any>>) target(%arg16 : memref<256x512xf32, #tpu.memory_space<vmem>>) target_semaphore(%1 : memref<!tpu.dma_semaphore, #tpu.memory_space<semaphore_mem>>)
    %c1_i32 = arith.constant 1 : i32
    %2 = tpu.memref_slice %arg19[%c1_i32] : memref<3x!tpu.dma_semaphore, #tpu.memory_space<semaphore_mem>> -> memref<1x!tpu.dma_semaphore, #tpu.memory_space<semaphore_mem>>
    %3 = tpu.memref_squeeze %2 : memref<1x!tpu.dma_semaphore, #tpu.memory_space<semaphore_mem>> -> memref<!tpu.dma_semaphore, #tpu.memory_space<semaphore_mem>>
    tpu.enqueue_dma source(%arg9 : memref<256x512xf32, #tpu.memory_space<any>>) target(%arg17 : memref<256x512xf32, #tpu.memory_space<vmem>>) target_semaphore(%3 : memref<!tpu.dma_semaphore, #tpu.memory_space<semaphore_mem>>)
    %c2_i32 = arith.constant 2 : i32
    %4 = tpu.memref_slice %arg19[%c2_i32] : memref<3x!tpu.dma_semaphore, #tpu.memory_space<semaphore_mem>> -> memref<1x!tpu.dma_semaphore, #tpu.memory_space<semaphore_mem>>
    %5 = tpu.memref_squeeze %4 : memref<1x!tpu.dma_semaphore, #tpu.memory_space<semaphore_mem>> -> memref<!tpu.dma_semaphore, #tpu.memory_space<semaphore_mem>>
    tpu.enqueue_dma source(%arg10 : memref<256x512xf32, #tpu.memory_space<any>>) target(%arg18 : memref<256x512xf32, #tpu.memory_space<vmem>>) target_semaphore(%5 : memref<!tpu.dma_semaphore, #tpu.memory_space<semaphore_mem>>)
    %c0 = arith.constant 0 : index
    %c0_0 = arith.constant 0 : index
    %6 = vector.load %arg1[%c0, %c0_0] : memref<16x1xi32, #tpu.memory_space<vmem>>, vector<16x1xi32>
    %7 = tpu.iota {dimensions = array<i32: 1>} : vector<16x128xi32>
    %8 = vector.broadcast %6 : vector<16x1xi32> to vector<16x128xi32>
    %9 = arith.cmpi eq, %7, %8 : vector<16x128xi32>
    %10 = arith.extui %9 : vector<16x128xi1> to vector<16x128xi32>
    %11 = arith.sitofp %10 : vector<16x128xi32> to vector<16x128xf32>
    %c0_1 = arith.constant 0 : index
    %c0_2 = arith.constant 0 : index
    %12 = vector.load %arg2[%c0_1, %c0_2] : memref<128x32xf32, #tpu.memory_space<vmem>>, vector<128x32xf32>
    %cst = arith.constant dense<0.000000e+00> : vector<16x32xf32>
    %13 = tpu.matmul %11, %12, %cst {dimension_numbers = #tpu.dot_dimension_numbers<[1], [0], [0], [1], [0, 0, 1, 1], [], []>} : vector<16x128xf32>, vector<128x32xf32>, vector<16x32xf32> -> vector<16x32xf32>
    %14 = tpu.iota {dimensions = array<i32: 0>} : vector<4x128xi32>
    %c2_i32_3 = arith.constant 2 : i32
    %15 = vector.broadcast %c2_i32_3 : i32 to vector<4x128xi32>
    %16 = arith.cmpi slt, %14, %15 : vector<4x128xi32>
    %17 = arith.extui %16 : vector<4x128xi1> to vector<4x128xi32>
    %18 = arith.sitofp %17 : vector<4x128xi32> to vector<4x128xf32>
    %cst_4 = arith.constant 1.000000e+00 : f32
    %19 = vector.broadcast %cst_4 : f32 to vector<4x128xf32>
    %20 = arith.subf %19, %18 : vector<4x128xf32>
    %c0_5 = arith.constant 0 : index
    %c0_6 = arith.constant 0 : index
    %21 = vector.load %arg3[%c0_5, %c0_6] : memref<32x512xf32, #tpu.memory_space<vmem>>, vector<32x512xf32>
    %c0_7 = arith.constant 0 : index
    %c0_8 = arith.constant 0 : index
    %22 = vector.load %arg4[%c0_7, %c0_8] : memref<32x512xf32, #tpu.memory_space<vmem>>, vector<32x512xf32>
    %c0_9 = arith.constant 0 : index
    %c0_10 = arith.constant 0 : index
    %23 = vector.load %arg5[%c0_9, %c0_10] : memref<256x512xf32, #tpu.memory_space<vmem>>, vector<256x512xf32>
    %c0_11 = arith.constant 0 : index
    %c0_12 = arith.constant 0 : index
    %24 = vector.load %arg6[%c0_11, %c0_12] : memref<1x512xf32, #tpu.memory_space<vmem>>, vector<1x512xf32>
    %c0_13 = arith.constant 0 : index
    %c0_14 = arith.constant 0 : index
    %25 = vector.load %arg7[%c0_13, %c0_14] : memref<1x512xf32, #tpu.memory_space<vmem>>, vector<1x512xf32>
    %cst_15 = arith.constant dense<0.000000e+00> : vector<16x512xf32>
    %26 = tpu.matmul %13, %21, %cst_15 {dimension_numbers = #tpu.dot_dimension_numbers<[1], [0], [0], [1], [0, 0, 1, 1], [], []>} : vector<16x32xf32>, vector<32x512xf32>, vector<16x512xf32> -> vector<16x512xf32>
    %27 = vector.broadcast %24 : vector<1x512xf32> to vector<16x512xf32>
    %28 = arith.addf %26, %27 : vector<16x512xf32>
    %cst_16 = arith.constant dense<0.000000e+00> : vector<16x512xf32>
    %29 = tpu.matmul %13, %22, %cst_16 {dimension_numbers = #tpu.dot_dimension_numbers<[1], [0], [0], [1], [0, 0, 1, 1], [], []>} : vector<16x32xf32>, vector<32x512xf32>, vector<16x512xf32> -> vector<16x512xf32>
    %30 = vector.broadcast %25 : vector<1x512xf32> to vector<16x512xf32>
    %31 = arith.addf %29, %30 : vector<16x512xf32>
    %32 = vector.extract_strided_slice %28 {offsets = [0, 0], sizes = [2, 512], strides = [1, 1]} : vector<16x512xf32> to vector<2x512xf32>
    %33 = vector.extract_strided_slice %31 {offsets = [14, 0], sizes = [2, 512], strides = [1, 1]} : vector<16x512xf32> to vector<2x512xf32>
    %34 = tpu.concatenate %32, %33 in 0 : vector<2x512xf32>, vector<2x512xf32> -> vector<4x512xf32>
    %35 = vector.extract_strided_slice %28 {offsets = [2, 0], sizes = [2, 512], strides = [1, 1]} : vector<16x512xf32> to vector<2x512xf32>
    %36 = vector.extract_strided_slice %31 {offsets = [12, 0], sizes = [2, 512], strides = [1, 1]} : vector<16x512xf32> to vector<2x512xf32>
    %37 = tpu.concatenate %35, %36 in 0 : vector<2x512xf32>, vector<2x512xf32> -> vector<4x512xf32>
    %38 = vector.extract_strided_slice %28 {offsets = [4, 0], sizes = [2, 512], strides = [1, 1]} : vector<16x512xf32> to vector<2x512xf32>
    %39 = vector.extract_strided_slice %31 {offsets = [10, 0], sizes = [2, 512], strides = [1, 1]} : vector<16x512xf32> to vector<2x512xf32>
    %40 = tpu.concatenate %38, %39 in 0 : vector<2x512xf32>, vector<2x512xf32> -> vector<4x512xf32>
    %41 = vector.extract_strided_slice %28 {offsets = [6, 0], sizes = [2, 512], strides = [1, 1]} : vector<16x512xf32> to vector<2x512xf32>
    %42 = vector.extract_strided_slice %31 {offsets = [8, 0], sizes = [2, 512], strides = [1, 1]} : vector<16x512xf32> to vector<2x512xf32>
    %43 = tpu.concatenate %41, %42 in 0 : vector<2x512xf32>, vector<2x512xf32> -> vector<4x512xf32>
    %44 = vector.extract_strided_slice %28 {offsets = [8, 0], sizes = [2, 512], strides = [1, 1]} : vector<16x512xf32> to vector<2x512xf32>
    %45 = vector.extract_strided_slice %31 {offsets = [6, 0], sizes = [2, 512], strides = [1, 1]} : vector<16x512xf32> to vector<2x512xf32>
    %46 = tpu.concatenate %44, %45 in 0 : vector<2x512xf32>, vector<2x512xf32> -> vector<4x512xf32>
    %47 = vector.extract_strided_slice %28 {offsets = [10, 0], sizes = [2, 512], strides = [1, 1]} : vector<16x512xf32> to vector<2x512xf32>
    %48 = vector.extract_strided_slice %31 {offsets = [4, 0], sizes = [2, 512], strides = [1, 1]} : vector<16x512xf32> to vector<2x512xf32>
    %49 = tpu.concatenate %47, %48 in 0 : vector<2x512xf32>, vector<2x512xf32> -> vector<4x512xf32>
    %50 = vector.extract_strided_slice %28 {offsets = [12, 0], sizes = [2, 512], strides = [1, 1]} : vector<16x512xf32> to vector<2x512xf32>
    %51 = vector.extract_strided_slice %31 {offsets = [2, 0], sizes = [2, 512], strides = [1, 1]} : vector<16x512xf32> to vector<2x512xf32>
    %52 = tpu.concatenate %50, %51 in 0 : vector<2x512xf32>, vector<2x512xf32> -> vector<4x512xf32>
    %53 = vector.extract_strided_slice %28 {offsets = [14, 0], sizes = [2, 512], strides = [1, 1]} : vector<16x512xf32> to vector<2x512xf32>
    %54 = vector.extract_strided_slice %31 {offsets = [0, 0], sizes = [2, 512], strides = [1, 1]} : vector<16x512xf32> to vector<2x512xf32>
    %55 = tpu.concatenate %53, %54 in 0 : vector<2x512xf32>, vector<2x512xf32> -> vector<4x512xf32>
    %cst_17 = arith.constant 0.000000e+00 : f32
    %56 = vector.broadcast %cst_17 : f32 to vector<4x256xf32>
    %cst_18 = arith.constant 0.000000e+00 : f32
    %57 = vector.broadcast %cst_18 : f32 to vector<4x128xf32>
    %cst_19 = arith.constant dense<0.000000e+00> : vector<4x512xf32>
    %58 = tpu.matmul %56, %23, %cst_19 {dimension_numbers = #tpu.dot_dimension_numbers<[1], [0], [0], [1], [0, 0, 1, 1], [], []>} : vector<4x256xf32>, vector<256x512xf32>, vector<4x512xf32> -> vector<4x512xf32>
    %59 = arith.addf %34, %58 : vector<4x512xf32>
    %60 = vector.extract_strided_slice %59 {offsets = [0, 0], sizes = [4, 384], strides = [1, 1]} : vector<4x512xf32> to vector<4x384xf32>
    %61 = arith.negf %60 : vector<4x384xf32>
    %62 = math.exp %61 : vector<4x384xf32>
    %cst_20 = arith.constant 1.000000e+00 : f32
    %63 = vector.broadcast %cst_20 : f32 to vector<4x384xf32>
    %64 = arith.addf %63, %62 : vector<4x384xf32>
    %65 = arith.divf %63, %64 : vector<4x384xf32>
    %66 = vector.extract_strided_slice %59 {offsets = [0, 384], sizes = [4, 128], strides = [1, 1]} : vector<4x512xf32> to vector<4x128xf32>
    %67 = math.tanh %66 : vector<4x128xf32>
    %68 = vector.extract_strided_slice %65 {offsets = [0, 128], sizes = [4, 128], strides = [1, 1]} : vector<4x384xf32> to vector<4x128xf32>
    %69 = arith.mulf %68, %57 : vector<4x128xf32>
    %70 = vector.extract_strided_slice %65 {offsets = [0, 0], sizes = [4, 128], strides = [1, 1]} : vector<4x384xf32> to vector<4x128xf32>
    %71 = arith.mulf %70, %67 : vector<4x128xf32>
    %72 = arith.addf %69, %71 : vector<4x128xf32>
    %73 = vector.extract_strided_slice %65 {offsets = [0, 256], sizes = [4, 128], strides = [1, 1]} : vector<4x384xf32> to vector<4x128xf32>
    %74 = math.tanh %72 : vector<4x128xf32>
    %75 = arith.mulf %73, %74 : vector<4x128xf32>
    %76 = arith.mulf %75, %18 : vector<4x128xf32>
    %77 = arith.mulf %75, %20 : vector<4x128xf32>
    %78 = tpu.concatenate %76, %77 in 1 : vector<4x128xf32>, vector<4x128xf32> -> vector<4x256xf32>
    %cst_21 = arith.constant dense<0.000000e+00> : vector<4x512xf32>
    %79 = tpu.matmul %78, %23, %cst_21 {dimension_numbers = #tpu.dot_dimension_numbers<[1], [0], [0], [1], [0, 0, 1, 1], [], []>} : vector<4x256xf32>, vector<256x512xf32>, vector<4x512xf32> -> vector<4x512xf32>
    %80 = arith.addf %37, %79 : vector<4x512xf32>
    %81 = vector.extract_strided_slice %80 {offsets = [0, 0], sizes = [4, 384], strides = [1, 1]} : vector<4x512xf32> to vector<4x384xf32>
    %82 = arith.negf %81 : vector<4x384xf32>
    %83 = math.exp %82 : vector<4x384xf32>
    %cst_22 = arith.constant 1.000000e+00 : f32
    %84 = vector.broadcast %cst_22 : f32 to vector<4x384xf32>
    %85 = arith.addf %84, %83 : vector<4x384xf32>
    %86 = arith.divf %84, %85 : vector<4x384xf32>
    %87 = vector.extract_strided_slice %80 {offsets = [0, 384], sizes = [4, 128], strides = [1, 1]} : vector<4x512xf32> to vector<4x128xf32>
    %88 = math.tanh %87 : vector<4x128xf32>
    %89 = vector.extract_strided_slice %86 {offsets = [0, 128], sizes = [4, 128], strides = [1, 1]} : vector<4x384xf32> to vector<4x128xf32>
    %90 = arith.mulf %89, %72 : vector<4x128xf32>
    %91 = vector.extract_strided_slice %86 {offsets = [0, 0], sizes = [4, 128], strides = [1, 1]} : vector<4x384xf32> to vector<4x128xf32>
    %92 = arith.mulf %91, %88 : vector<4x128xf32>
    %93 = arith.addf %90, %92 : vector<4x128xf32>
    %94 = vector.extract_strided_slice %86 {offsets = [0, 256], sizes = [4, 128], strides = [1, 1]} : vector<4x384xf32> to vector<4x128xf32>
    %95 = math.tanh %93 : vector<4x128xf32>
    %96 = arith.mulf %94, %95 : vector<4x128xf32>
    %97 = arith.mulf %96, %18 : vector<4x128xf32>
    %98 = arith.mulf %96, %20 : vector<4x128xf32>
    %99 = tpu.concatenate %97, %98 in 1 : vector<4x128xf32>, vector<4x128xf32> -> vector<4x256xf32>
    %cst_23 = arith.constant dense<0.000000e+00> : vector<4x512xf32>
    %100 = tpu.matmul %99, %23, %cst_23 {dimension_numbers = #tpu.dot_dimension_numbers<[1], [0], [0], [1], [0, 0, 1, 1], [], []>} : vector<4x256xf32>, vector<256x512xf32>, vector<4x512xf32> -> vector<4x512xf32>
    %101 = arith.addf %40, %100 : vector<4x512xf32>
    %102 = vector.extract_strided_slice %101 {offsets = [0, 0], sizes = [4, 384], strides = [1, 1]} : vector<4x512xf32> to vector<4x384xf32>
    %103 = arith.negf %102 : vector<4x384xf32>
    %104 = math.exp %103 : vector<4x384xf32>
    %cst_24 = arith.constant 1.000000e+00 : f32
    %105 = vector.broadcast %cst_24 : f32 to vector<4x384xf32>
    %106 = arith.addf %105, %104 : vector<4x384xf32>
    %107 = arith.divf %105, %106 : vector<4x384xf32>
    %108 = vector.extract_strided_slice %101 {offsets = [0, 384], sizes = [4, 128], strides = [1, 1]} : vector<4x512xf32> to vector<4x128xf32>
    %109 = math.tanh %108 : vector<4x128xf32>
    %110 = vector.extract_strided_slice %107 {offsets = [0, 128], sizes = [4, 128], strides = [1, 1]} : vector<4x384xf32> to vector<4x128xf32>
    %111 = arith.mulf %110, %93 : vector<4x128xf32>
    %112 = vector.extract_strided_slice %107 {offsets = [0, 0], sizes = [4, 128], strides = [1, 1]} : vector<4x384xf32> to vector<4x128xf32>
    %113 = arith.mulf %112, %109 : vector<4x128xf32>
    %114 = arith.addf %111, %113 : vector<4x128xf32>
    %115 = vector.extract_strided_slice %107 {offsets = [0, 256], sizes = [4, 128], strides = [1, 1]} : vector<4x384xf32> to vector<4x128xf32>
    %116 = math.tanh %114 : vector<4x128xf32>
    %117 = arith.mulf %115, %116 : vector<4x128xf32>
    %118 = arith.mulf %117, %18 : vector<4x128xf32>
    %119 = arith.mulf %117, %20 : vector<4x128xf32>
    %120 = tpu.concatenate %118, %119 in 1 : vector<4x128xf32>, vector<4x128xf32> -> vector<4x256xf32>
    %cst_25 = arith.constant dense<0.000000e+00> : vector<4x512xf32>
    %121 = tpu.matmul %120, %23, %cst_25 {dimension_numbers = #tpu.dot_dimension_numbers<[1], [0], [0], [1], [0, 0, 1, 1], [], []>} : vector<4x256xf32>, vector<256x512xf32>, vector<4x512xf32> -> vector<4x512xf32>
    %122 = arith.addf %43, %121 : vector<4x512xf32>
    %123 = vector.extract_strided_slice %122 {offsets = [0, 0], sizes = [4, 384], strides = [1, 1]} : vector<4x512xf32> to vector<4x384xf32>
    %124 = arith.negf %123 : vector<4x384xf32>
    %125 = math.exp %124 : vector<4x384xf32>
    %cst_26 = arith.constant 1.000000e+00 : f32
    %126 = vector.broadcast %cst_26 : f32 to vector<4x384xf32>
    %127 = arith.addf %126, %125 : vector<4x384xf32>
    %128 = arith.divf %126, %127 : vector<4x384xf32>
    %129 = vector.extract_strided_slice %122 {offsets = [0, 384], sizes = [4, 128], strides = [1, 1]} : vector<4x512xf32> to vector<4x128xf32>
    %130 = math.tanh %129 : vector<4x128xf32>
    %131 = vector.extract_strided_slice %128 {offsets = [0, 128], sizes = [4, 128], strides = [1, 1]} : vector<4x384xf32> to vector<4x128xf32>
    %132 = arith.mulf %131, %114 : vector<4x128xf32>
    %133 = vector.extract_strided_slice %128 {offsets = [0, 0], sizes = [4, 128], strides = [1, 1]} : vector<4x384xf32> to vector<4x128xf32>
    %134 = arith.mulf %133, %130 : vector<4x128xf32>
    %135 = arith.addf %132, %134 : vector<4x128xf32>
    %136 = vector.extract_strided_slice %128 {offsets = [0, 256], sizes = [4, 128], strides = [1, 1]} : vector<4x384xf32> to vector<4x128xf32>
    %137 = math.tanh %135 : vector<4x128xf32>
    %138 = arith.mulf %136, %137 : vector<4x128xf32>
    %139 = arith.mulf %138, %18 : vector<4x128xf32>
    %140 = arith.mulf %138, %20 : vector<4x128xf32>
    %141 = tpu.concatenate %139, %140 in 1 : vector<4x128xf32>, vector<4x128xf32> -> vector<4x256xf32>
    %cst_27 = arith.constant dense<0.000000e+00> : vector<4x512xf32>
    %142 = tpu.matmul %141, %23, %cst_27 {dimension_numbers = #tpu.dot_dimension_numbers<[1], [0], [0], [1], [0, 0, 1, 1], [], []>} : vector<4x256xf32>, vector<256x512xf32>, vector<4x512xf32> -> vector<4x512xf32>
    %143 = arith.addf %46, %142 : vector<4x512xf32>
    %144 = vector.extract_strided_slice %143 {offsets = [0, 0], sizes = [4, 384], strides = [1, 1]} : vector<4x512xf32> to vector<4x384xf32>
    %145 = arith.negf %144 : vector<4x384xf32>
    %146 = math.exp %145 : vector<4x384xf32>
    %cst_28 = arith.constant 1.000000e+00 : f32
    %147 = vector.broadcast %cst_28 : f32 to vector<4x384xf32>
    %148 = arith.addf %147, %146 : vector<4x384xf32>
    %149 = arith.divf %147, %148 : vector<4x384xf32>
    %150 = vector.extract_strided_slice %143 {offsets = [0, 384], sizes = [4, 128], strides = [1, 1]} : vector<4x512xf32> to vector<4x128xf32>
    %151 = math.tanh %150 : vector<4x128xf32>
    %152 = vector.extract_strided_slice %149 {offsets = [0, 128], sizes = [4, 128], strides = [1, 1]} : vector<4x384xf32> to vector<4x128xf32>
    %153 = arith.mulf %152, %135 : vector<4x128xf32>
    %154 = vector.extract_strided_slice %149 {offsets = [0, 0], sizes = [4, 128], strides = [1, 1]} : vector<4x384xf32> to vector<4x128xf32>
    %155 = arith.mulf %154, %151 : vector<4x128xf32>
    %156 = arith.addf %153, %155 : vector<4x128xf32>
    %157 = vector.extract_strided_slice %149 {offsets = [0, 256], sizes = [4, 128], strides = [1, 1]} : vector<4x384xf32> to vector<4x128xf32>
    %158 = math.tanh %156 : vector<4x128xf32>
    %159 = arith.mulf %157, %158 : vector<4x128xf32>
    %160 = arith.mulf %159, %18 : vector<4x128xf32>
    %161 = arith.mulf %159, %20 : vector<4x128xf32>
    %162 = tpu.concatenate %160, %161 in 1 : vector<4x128xf32>, vector<4x128xf32> -> vector<4x256xf32>
    %cst_29 = arith.constant dense<0.000000e+00> : vector<4x512xf32>
    %163 = tpu.matmul %162, %23, %cst_29 {dimension_numbers = #tpu.dot_dimension_numbers<[1], [0], [0], [1], [0, 0, 1, 1], [], []>} : vector<4x256xf32>, vector<256x512xf32>, vector<4x512xf32> -> vector<4x512xf32>
    %164 = arith.addf %49, %163 : vector<4x512xf32>
    %165 = vector.extract_strided_slice %164 {offsets = [0, 0], sizes = [4, 384], strides = [1, 1]} : vector<4x512xf32> to vector<4x384xf32>
    %166 = arith.negf %165 : vector<4x384xf32>
    %167 = math.exp %166 : vector<4x384xf32>
    %cst_30 = arith.constant 1.000000e+00 : f32
    %168 = vector.broadcast %cst_30 : f32 to vector<4x384xf32>
    %169 = arith.addf %168, %167 : vector<4x384xf32>
    %170 = arith.divf %168, %169 : vector<4x384xf32>
    %171 = vector.extract_strided_slice %164 {offsets = [0, 384], sizes = [4, 128], strides = [1, 1]} : vector<4x512xf32> to vector<4x128xf32>
    %172 = math.tanh %171 : vector<4x128xf32>
    %173 = vector.extract_strided_slice %170 {offsets = [0, 128], sizes = [4, 128], strides = [1, 1]} : vector<4x384xf32> to vector<4x128xf32>
    %174 = arith.mulf %173, %156 : vector<4x128xf32>
    %175 = vector.extract_strided_slice %170 {offsets = [0, 0], sizes = [4, 128], strides = [1, 1]} : vector<4x384xf32> to vector<4x128xf32>
    %176 = arith.mulf %175, %172 : vector<4x128xf32>
    %177 = arith.addf %174, %176 : vector<4x128xf32>
    %178 = vector.extract_strided_slice %170 {offsets = [0, 256], sizes = [4, 128], strides = [1, 1]} : vector<4x384xf32> to vector<4x128xf32>
    %179 = math.tanh %177 : vector<4x128xf32>
    %180 = arith.mulf %178, %179 : vector<4x128xf32>
    %181 = arith.mulf %180, %18 : vector<4x128xf32>
    %182 = arith.mulf %180, %20 : vector<4x128xf32>
    %183 = tpu.concatenate %181, %182 in 1 : vector<4x128xf32>, vector<4x128xf32> -> vector<4x256xf32>
    %cst_31 = arith.constant dense<0.000000e+00> : vector<4x512xf32>
    %184 = tpu.matmul %183, %23, %cst_31 {dimension_numbers = #tpu.dot_dimension_numbers<[1], [0], [0], [1], [0, 0, 1, 1], [], []>} : vector<4x256xf32>, vector<256x512xf32>, vector<4x512xf32> -> vector<4x512xf32>
    %185 = arith.addf %52, %184 : vector<4x512xf32>
    %186 = vector.extract_strided_slice %185 {offsets = [0, 0], sizes = [4, 384], strides = [1, 1]} : vector<4x512xf32> to vector<4x384xf32>
    %187 = arith.negf %186 : vector<4x384xf32>
    %188 = math.exp %187 : vector<4x384xf32>
    %cst_32 = arith.constant 1.000000e+00 : f32
    %189 = vector.broadcast %cst_32 : f32 to vector<4x384xf32>
    %190 = arith.addf %189, %188 : vector<4x384xf32>
    %191 = arith.divf %189, %190 : vector<4x384xf32>
    %192 = vector.extract_strided_slice %185 {offsets = [0, 384], sizes = [4, 128], strides = [1, 1]} : vector<4x512xf32> to vector<4x128xf32>
    %193 = math.tanh %192 : vector<4x128xf32>
    %194 = vector.extract_strided_slice %191 {offsets = [0, 128], sizes = [4, 128], strides = [1, 1]} : vector<4x384xf32> to vector<4x128xf32>
    %195 = arith.mulf %194, %177 : vector<4x128xf32>
    %196 = vector.extract_strided_slice %191 {offsets = [0, 0], sizes = [4, 128], strides = [1, 1]} : vector<4x384xf32> to vector<4x128xf32>
    %197 = arith.mulf %196, %193 : vector<4x128xf32>
    %198 = arith.addf %195, %197 : vector<4x128xf32>
    %199 = vector.extract_strided_slice %191 {offsets = [0, 256], sizes = [4, 128], strides = [1, 1]} : vector<4x384xf32> to vector<4x128xf32>
    %200 = math.tanh %198 : vector<4x128xf32>
    %201 = arith.mulf %199, %200 : vector<4x128xf32>
    %202 = arith.mulf %201, %18 : vector<4x128xf32>
    %203 = arith.mulf %201, %20 : vector<4x128xf32>
    %204 = tpu.concatenate %202, %203 in 1 : vector<4x128xf32>, vector<4x128xf32> -> vector<4x256xf32>
    %cst_33 = arith.constant dense<0.000000e+00> : vector<4x512xf32>
    %205 = tpu.matmul %204, %23, %cst_33 {dimension_numbers = #tpu.dot_dimension_numbers<[1], [0], [0], [1], [0, 0, 1, 1], [], []>} : vector<4x256xf32>, vector<256x512xf32>, vector<4x512xf32> -> vector<4x512xf32>
    %206 = arith.addf %55, %205 : vector<4x512xf32>
    %207 = vector.extract_strided_slice %206 {offsets = [0, 0], sizes = [4, 384], strides = [1, 1]} : vector<4x512xf32> to vector<4x384xf32>
    %208 = arith.negf %207 : vector<4x384xf32>
    %209 = math.exp %208 : vector<4x384xf32>
    %cst_34 = arith.constant 1.000000e+00 : f32
    %210 = vector.broadcast %cst_34 : f32 to vector<4x384xf32>
    %211 = arith.addf %210, %209 : vector<4x384xf32>
    %212 = arith.divf %210, %211 : vector<4x384xf32>
    %213 = vector.extract_strided_slice %206 {offsets = [0, 384], sizes = [4, 128], strides = [1, 1]} : vector<4x512xf32> to vector<4x128xf32>
    %214 = math.tanh %213 : vector<4x128xf32>
    %215 = vector.extract_strided_slice %212 {offsets = [0, 128], sizes = [4, 128], strides = [1, 1]} : vector<4x384xf32> to vector<4x128xf32>
    %216 = arith.mulf %215, %198 : vector<4x128xf32>
    %217 = vector.extract_strided_slice %212 {offsets = [0, 0], sizes = [4, 128], strides = [1, 1]} : vector<4x384xf32> to vector<4x128xf32>
    %218 = arith.mulf %217, %214 : vector<4x128xf32>
    %219 = arith.addf %216, %218 : vector<4x128xf32>
    %220 = vector.extract_strided_slice %212 {offsets = [0, 256], sizes = [4, 128], strides = [1, 1]} : vector<4x384xf32> to vector<4x128xf32>
    %221 = math.tanh %219 : vector<4x128xf32>
    %222 = arith.mulf %220, %221 : vector<4x128xf32>
    %223 = arith.mulf %222, %18 : vector<4x128xf32>
    %224 = arith.mulf %222, %20 : vector<4x128xf32>
    %225 = tpu.concatenate %223, %224 in 1 : vector<4x128xf32>, vector<4x128xf32> -> vector<4x256xf32>
    %226 = vector.extract_strided_slice %78 {offsets = [0, 0], sizes = [2, 256], strides = [1, 1]} : vector<4x256xf32> to vector<2x256xf32>
    %227 = vector.extract_strided_slice %225 {offsets = [2, 0], sizes = [2, 256], strides = [1, 1]} : vector<4x256xf32> to vector<2x256xf32>
    %228 = arith.addf %226, %227 : vector<2x256xf32>
    %229 = vector.extract_strided_slice %99 {offsets = [0, 0], sizes = [2, 256], strides = [1, 1]} : vector<4x256xf32> to vector<2x256xf32>
    %230 = vector.extract_strided_slice %204 {offsets = [2, 0], sizes = [2, 256], strides = [1, 1]} : vector<4x256xf32> to vector<2x256xf32>
    %231 = arith.addf %229, %230 : vector<2x256xf32>
    %232 = vector.extract_strided_slice %120 {offsets = [0, 0], sizes = [2, 256], strides = [1, 1]} : vector<4x256xf32> to vector<2x256xf32>
    %233 = vector.extract_strided_slice %183 {offsets = [2, 0], sizes = [2, 256], strides = [1, 1]} : vector<4x256xf32> to vector<2x256xf32>
    %234 = arith.addf %232, %233 : vector<2x256xf32>
    %235 = vector.extract_strided_slice %141 {offsets = [0, 0], sizes = [2, 256], strides = [1, 1]} : vector<4x256xf32> to vector<2x256xf32>
    %236 = vector.extract_strided_slice %162 {offsets = [2, 0], sizes = [2, 256], strides = [1, 1]} : vector<4x256xf32> to vector<2x256xf32>
    %237 = arith.addf %235, %236 : vector<2x256xf32>
    %238 = vector.extract_strided_slice %162 {offsets = [0, 0], sizes = [2, 256], strides = [1, 1]} : vector<4x256xf32> to vector<2x256xf32>
    %239 = vector.extract_strided_slice %141 {offsets = [2, 0], sizes = [2, 256], strides = [1, 1]} : vector<4x256xf32> to vector<2x256xf32>
    %240 = arith.addf %238, %239 : vector<2x256xf32>
    %241 = vector.extract_strided_slice %183 {offsets = [0, 0], sizes = [2, 256], strides = [1, 1]} : vector<4x256xf32> to vector<2x256xf32>
    %242 = vector.extract_strided_slice %120 {offsets = [2, 0], sizes = [2, 256], strides = [1, 1]} : vector<4x256xf32> to vector<2x256xf32>
    %243 = arith.addf %241, %242 : vector<2x256xf32>
    %244 = vector.extract_strided_slice %204 {offsets = [0, 0], sizes = [2, 256], strides = [1, 1]} : vector<4x256xf32> to vector<2x256xf32>
    %245 = vector.extract_strided_slice %99 {offsets = [2, 0], sizes = [2, 256], strides = [1, 1]} : vector<4x256xf32> to vector<2x256xf32>
    %246 = arith.addf %244, %245 : vector<2x256xf32>
    %247 = vector.extract_strided_slice %225 {offsets = [0, 0], sizes = [2, 256], strides = [1, 1]} : vector<4x256xf32> to vector<2x256xf32>
    %248 = vector.extract_strided_slice %78 {offsets = [2, 0], sizes = [2, 256], strides = [1, 1]} : vector<4x256xf32> to vector<2x256xf32>
    %249 = arith.addf %247, %248 : vector<2x256xf32>
    %250 = tpu.concatenate %228, %231, %234, %237, %240, %243, %246, %249 in 0 : vector<2x256xf32>, vector<2x256xf32>, vector<2x256xf32>, vector<2x256xf32>, vector<2x256xf32>, vector<2x256xf32>, vector<2x256xf32>, vector<2x256xf32> -> vector<16x256xf32>
    %c0_i32_35 = arith.constant 0 : i32
    %251 = tpu.memref_slice %arg19[%c0_i32_35] : memref<3x!tpu.dma_semaphore, #tpu.memory_space<semaphore_mem>> -> memref<1x!tpu.dma_semaphore, #tpu.memory_space<semaphore_mem>>
    %252 = tpu.memref_squeeze %251 : memref<1x!tpu.dma_semaphore, #tpu.memory_space<semaphore_mem>> -> memref<!tpu.dma_semaphore, #tpu.memory_space<semaphore_mem>>
    tpu.wait_dma2 semaphore(%252 : memref<!tpu.dma_semaphore, #tpu.memory_space<semaphore_mem>>) src(%arg8 : memref<256x512xf32, #tpu.memory_space<any>>) dst(%arg16 : memref<256x512xf32, #tpu.memory_space<vmem>>)
    %c1_i32_36 = arith.constant 1 : i32
    %253 = tpu.memref_slice %arg19[%c1_i32_36] : memref<3x!tpu.dma_semaphore, #tpu.memory_space<semaphore_mem>> -> memref<1x!tpu.dma_semaphore, #tpu.memory_space<semaphore_mem>>
    %254 = tpu.memref_squeeze %253 : memref<1x!tpu.dma_semaphore, #tpu.memory_space<semaphore_mem>> -> memref<!tpu.dma_semaphore, #tpu.memory_space<semaphore_mem>>
    tpu.wait_dma2 semaphore(%254 : memref<!tpu.dma_semaphore, #tpu.memory_space<semaphore_mem>>) src(%arg9 : memref<256x512xf32, #tpu.memory_space<any>>) dst(%arg17 : memref<256x512xf32, #tpu.memory_space<vmem>>)
    %c2_i32_37 = arith.constant 2 : i32
    %255 = tpu.memref_slice %arg19[%c2_i32_37] : memref<3x!tpu.dma_semaphore, #tpu.memory_space<semaphore_mem>> -> memref<1x!tpu.dma_semaphore, #tpu.memory_space<semaphore_mem>>
    %256 = tpu.memref_squeeze %255 : memref<1x!tpu.dma_semaphore, #tpu.memory_space<semaphore_mem>> -> memref<!tpu.dma_semaphore, #tpu.memory_space<semaphore_mem>>
    tpu.wait_dma2 semaphore(%256 : memref<!tpu.dma_semaphore, #tpu.memory_space<semaphore_mem>>) src(%arg10 : memref<256x512xf32, #tpu.memory_space<any>>) dst(%arg18 : memref<256x512xf32, #tpu.memory_space<vmem>>)
    %c0_38 = arith.constant 0 : index
    %c0_39 = arith.constant 0 : index
    %257 = vector.load %arg16[%c0_38, %c0_39] : memref<256x512xf32, #tpu.memory_space<vmem>>, vector<256x512xf32>
    %c0_40 = arith.constant 0 : index
    %c0_41 = arith.constant 0 : index
    %258 = vector.load %arg17[%c0_40, %c0_41] : memref<256x512xf32, #tpu.memory_space<vmem>>, vector<256x512xf32>
    %c0_42 = arith.constant 0 : index
    %c0_43 = arith.constant 0 : index
    %259 = vector.load %arg18[%c0_42, %c0_43] : memref<256x512xf32, #tpu.memory_space<vmem>>, vector<256x512xf32>
    %c0_44 = arith.constant 0 : index
    %c0_45 = arith.constant 0 : index
    %260 = vector.load %arg11[%c0_44, %c0_45] : memref<1x512xf32, #tpu.memory_space<vmem>>, vector<1x512xf32>
    %c0_46 = arith.constant 0 : index
    %c0_47 = arith.constant 0 : index
    %261 = vector.load %arg12[%c0_46, %c0_47] : memref<1x512xf32, #tpu.memory_space<vmem>>, vector<1x512xf32>
    %cst_48 = arith.constant dense<0.000000e+00> : vector<16x512xf32>
    %262 = tpu.matmul %250, %257, %cst_48 {dimension_numbers = #tpu.dot_dimension_numbers<[1], [0], [0], [1], [0, 0, 1, 1], [], []>} : vector<16x256xf32>, vector<256x512xf32>, vector<16x512xf32> -> vector<16x512xf32>
    %263 = vector.broadcast %260 : vector<1x512xf32> to vector<16x512xf32>
    %264 = arith.addf %262, %263 : vector<16x512xf32>
    %cst_49 = arith.constant dense<0.000000e+00> : vector<16x512xf32>
    %265 = tpu.matmul %250, %258, %cst_49 {dimension_numbers = #tpu.dot_dimension_numbers<[1], [0], [0], [1], [0, 0, 1, 1], [], []>} : vector<16x256xf32>, vector<256x512xf32>, vector<16x512xf32> -> vector<16x512xf32>
    %266 = vector.broadcast %261 : vector<1x512xf32> to vector<16x512xf32>
    %267 = arith.addf %265, %266 : vector<16x512xf32>
    %268 = vector.extract_strided_slice %264 {offsets = [0, 0], sizes = [2, 512], strides = [1, 1]} : vector<16x512xf32> to vector<2x512xf32>
    %269 = vector.extract_strided_slice %267 {offsets = [14, 0], sizes = [2, 512], strides = [1, 1]} : vector<16x512xf32> to vector<2x512xf32>
    %270 = tpu.concatenate %268, %269 in 0 : vector<2x512xf32>, vector<2x512xf32> -> vector<4x512xf32>
    %271 = vector.extract_strided_slice %264 {offsets = [2, 0], sizes = [2, 512], strides = [1, 1]} : vector<16x512xf32> to vector<2x512xf32>
    %272 = vector.extract_strided_slice %267 {offsets = [12, 0], sizes = [2, 512], strides = [1, 1]} : vector<16x512xf32> to vector<2x512xf32>
    %273 = tpu.concatenate %271, %272 in 0 : vector<2x512xf32>, vector<2x512xf32> -> vector<4x512xf32>
    %274 = vector.extract_strided_slice %264 {offsets = [4, 0], sizes = [2, 512], strides = [1, 1]} : vector<16x512xf32> to vector<2x512xf32>
    %275 = vector.extract_strided_slice %267 {offsets = [10, 0], sizes = [2, 512], strides = [1, 1]} : vector<16x512xf32> to vector<2x512xf32>
    %276 = tpu.concatenate %274, %275 in 0 : vector<2x512xf32>, vector<2x512xf32> -> vector<4x512xf32>
    %277 = vector.extract_strided_slice %264 {offsets = [6, 0], sizes = [2, 512], strides = [1, 1]} : vector<16x512xf32> to vector<2x512xf32>
    %278 = vector.extract_strided_slice %267 {offsets = [8, 0], sizes = [2, 512], strides = [1, 1]} : vector<16x512xf32> to vector<2x512xf32>
    %279 = tpu.concatenate %277, %278 in 0 : vector<2x512xf32>, vector<2x512xf32> -> vector<4x512xf32>
    %280 = vector.extract_strided_slice %264 {offsets = [8, 0], sizes = [2, 512], strides = [1, 1]} : vector<16x512xf32> to vector<2x512xf32>
    %281 = vector.extract_strided_slice %267 {offsets = [6, 0], sizes = [2, 512], strides = [1, 1]} : vector<16x512xf32> to vector<2x512xf32>
    %282 = tpu.concatenate %280, %281 in 0 : vector<2x512xf32>, vector<2x512xf32> -> vector<4x512xf32>
    %283 = vector.extract_strided_slice %264 {offsets = [10, 0], sizes = [2, 512], strides = [1, 1]} : vector<16x512xf32> to vector<2x512xf32>
    %284 = vector.extract_strided_slice %267 {offsets = [4, 0], sizes = [2, 512], strides = [1, 1]} : vector<16x512xf32> to vector<2x512xf32>
    %285 = tpu.concatenate %283, %284 in 0 : vector<2x512xf32>, vector<2x512xf32> -> vector<4x512xf32>
    %286 = vector.extract_strided_slice %264 {offsets = [12, 0], sizes = [2, 512], strides = [1, 1]} : vector<16x512xf32> to vector<2x512xf32>
    %287 = vector.extract_strided_slice %267 {offsets = [2, 0], sizes = [2, 512], strides = [1, 1]} : vector<16x512xf32> to vector<2x512xf32>
    %288 = tpu.concatenate %286, %287 in 0 : vector<2x512xf32>, vector<2x512xf32> -> vector<4x512xf32>
    %289 = vector.extract_strided_slice %264 {offsets = [14, 0], sizes = [2, 512], strides = [1, 1]} : vector<16x512xf32> to vector<2x512xf32>
    %290 = vector.extract_strided_slice %267 {offsets = [0, 0], sizes = [2, 512], strides = [1, 1]} : vector<16x512xf32> to vector<2x512xf32>
    %291 = tpu.concatenate %289, %290 in 0 : vector<2x512xf32>, vector<2x512xf32> -> vector<4x512xf32>
    %cst_50 = arith.constant 0.000000e+00 : f32
    %292 = vector.broadcast %cst_50 : f32 to vector<4x256xf32>
    %cst_51 = arith.constant 0.000000e+00 : f32
    %293 = vector.broadcast %cst_51 : f32 to vector<4x128xf32>
    %cst_52 = arith.constant dense<0.000000e+00> : vector<4x512xf32>
    %294 = tpu.matmul %292, %259, %cst_52 {dimension_numbers = #tpu.dot_dimension_numbers<[1], [0], [0], [1], [0, 0, 1, 1], [], []>} : vector<4x256xf32>, vector<256x512xf32>, vector<4x512xf32> -> vector<4x512xf32>
    %295 = arith.addf %270, %294 : vector<4x512xf32>
    %296 = vector.extract_strided_slice %295 {offsets = [0, 0], sizes = [4, 384], strides = [1, 1]} : vector<4x512xf32> to vector<4x384xf32>
    %297 = arith.negf %296 : vector<4x384xf32>
    %298 = math.exp %297 : vector<4x384xf32>
    %cst_53 = arith.constant 1.000000e+00 : f32
    %299 = vector.broadcast %cst_53 : f32 to vector<4x384xf32>
    %300 = arith.addf %299, %298 : vector<4x384xf32>
    %301 = arith.divf %299, %300 : vector<4x384xf32>
    %302 = vector.extract_strided_slice %295 {offsets = [0, 384], sizes = [4, 128], strides = [1, 1]} : vector<4x512xf32> to vector<4x128xf32>
    %303 = math.tanh %302 : vector<4x128xf32>
    %304 = vector.extract_strided_slice %301 {offsets = [0, 128], sizes = [4, 128], strides = [1, 1]} : vector<4x384xf32> to vector<4x128xf32>
    %305 = arith.mulf %304, %293 : vector<4x128xf32>
    %306 = vector.extract_strided_slice %301 {offsets = [0, 0], sizes = [4, 128], strides = [1, 1]} : vector<4x384xf32> to vector<4x128xf32>
    %307 = arith.mulf %306, %303 : vector<4x128xf32>
    %308 = arith.addf %305, %307 : vector<4x128xf32>
    %309 = vector.extract_strided_slice %301 {offsets = [0, 256], sizes = [4, 128], strides = [1, 1]} : vector<4x384xf32> to vector<4x128xf32>
    %310 = math.tanh %308 : vector<4x128xf32>
    %311 = arith.mulf %309, %310 : vector<4x128xf32>
    %312 = arith.mulf %311, %18 : vector<4x128xf32>
    %313 = arith.mulf %311, %20 : vector<4x128xf32>
    %314 = tpu.concatenate %312, %313 in 1 : vector<4x128xf32>, vector<4x128xf32> -> vector<4x256xf32>
    %cst_54 = arith.constant dense<0.000000e+00> : vector<4x512xf32>
    %315 = tpu.matmul %314, %259, %cst_54 {dimension_numbers = #tpu.dot_dimension_numbers<[1], [0], [0], [1], [0, 0, 1, 1], [], []>} : vector<4x256xf32>, vector<256x512xf32>, vector<4x512xf32> -> vector<4x512xf32>
    %316 = arith.addf %273, %315 : vector<4x512xf32>
    %317 = vector.extract_strided_slice %316 {offsets = [0, 0], sizes = [4, 384], strides = [1, 1]} : vector<4x512xf32> to vector<4x384xf32>
    %318 = arith.negf %317 : vector<4x384xf32>
    %319 = math.exp %318 : vector<4x384xf32>
    %cst_55 = arith.constant 1.000000e+00 : f32
    %320 = vector.broadcast %cst_55 : f32 to vector<4x384xf32>
    %321 = arith.addf %320, %319 : vector<4x384xf32>
    %322 = arith.divf %320, %321 : vector<4x384xf32>
    %323 = vector.extract_strided_slice %316 {offsets = [0, 384], sizes = [4, 128], strides = [1, 1]} : vector<4x512xf32> to vector<4x128xf32>
    %324 = math.tanh %323 : vector<4x128xf32>
    %325 = vector.extract_strided_slice %322 {offsets = [0, 128], sizes = [4, 128], strides = [1, 1]} : vector<4x384xf32> to vector<4x128xf32>
    %326 = arith.mulf %325, %308 : vector<4x128xf32>
    %327 = vector.extract_strided_slice %322 {offsets = [0, 0], sizes = [4, 128], strides = [1, 1]} : vector<4x384xf32> to vector<4x128xf32>
    %328 = arith.mulf %327, %324 : vector<4x128xf32>
    %329 = arith.addf %326, %328 : vector<4x128xf32>
    %330 = vector.extract_strided_slice %322 {offsets = [0, 256], sizes = [4, 128], strides = [1, 1]} : vector<4x384xf32> to vector<4x128xf32>
    %331 = math.tanh %329 : vector<4x128xf32>
    %332 = arith.mulf %330, %331 : vector<4x128xf32>
    %333 = arith.mulf %332, %18 : vector<4x128xf32>
    %334 = arith.mulf %332, %20 : vector<4x128xf32>
    %335 = tpu.concatenate %333, %334 in 1 : vector<4x128xf32>, vector<4x128xf32> -> vector<4x256xf32>
    %cst_56 = arith.constant dense<0.000000e+00> : vector<4x512xf32>
    %336 = tpu.matmul %335, %259, %cst_56 {dimension_numbers = #tpu.dot_dimension_numbers<[1], [0], [0], [1], [0, 0, 1, 1], [], []>} : vector<4x256xf32>, vector<256x512xf32>, vector<4x512xf32> -> vector<4x512xf32>
    %337 = arith.addf %276, %336 : vector<4x512xf32>
    %338 = vector.extract_strided_slice %337 {offsets = [0, 0], sizes = [4, 384], strides = [1, 1]} : vector<4x512xf32> to vector<4x384xf32>
    %339 = arith.negf %338 : vector<4x384xf32>
    %340 = math.exp %339 : vector<4x384xf32>
    %cst_57 = arith.constant 1.000000e+00 : f32
    %341 = vector.broadcast %cst_57 : f32 to vector<4x384xf32>
    %342 = arith.addf %341, %340 : vector<4x384xf32>
    %343 = arith.divf %341, %342 : vector<4x384xf32>
    %344 = vector.extract_strided_slice %337 {offsets = [0, 384], sizes = [4, 128], strides = [1, 1]} : vector<4x512xf32> to vector<4x128xf32>
    %345 = math.tanh %344 : vector<4x128xf32>
    %346 = vector.extract_strided_slice %343 {offsets = [0, 128], sizes = [4, 128], strides = [1, 1]} : vector<4x384xf32> to vector<4x128xf32>
    %347 = arith.mulf %346, %329 : vector<4x128xf32>
    %348 = vector.extract_strided_slice %343 {offsets = [0, 0], sizes = [4, 128], strides = [1, 1]} : vector<4x384xf32> to vector<4x128xf32>
    %349 = arith.mulf %348, %345 : vector<4x128xf32>
    %350 = arith.addf %347, %349 : vector<4x128xf32>
    %351 = vector.extract_strided_slice %343 {offsets = [0, 256], sizes = [4, 128], strides = [1, 1]} : vector<4x384xf32> to vector<4x128xf32>
    %352 = math.tanh %350 : vector<4x128xf32>
    %353 = arith.mulf %351, %352 : vector<4x128xf32>
    %354 = arith.mulf %353, %18 : vector<4x128xf32>
    %355 = arith.mulf %353, %20 : vector<4x128xf32>
    %356 = tpu.concatenate %354, %355 in 1 : vector<4x128xf32>, vector<4x128xf32> -> vector<4x256xf32>
    %cst_58 = arith.constant dense<0.000000e+00> : vector<4x512xf32>
    %357 = tpu.matmul %356, %259, %cst_58 {dimension_numbers = #tpu.dot_dimension_numbers<[1], [0], [0], [1], [0, 0, 1, 1], [], []>} : vector<4x256xf32>, vector<256x512xf32>, vector<4x512xf32> -> vector<4x512xf32>
    %358 = arith.addf %279, %357 : vector<4x512xf32>
    %359 = vector.extract_strided_slice %358 {offsets = [0, 0], sizes = [4, 384], strides = [1, 1]} : vector<4x512xf32> to vector<4x384xf32>
    %360 = arith.negf %359 : vector<4x384xf32>
    %361 = math.exp %360 : vector<4x384xf32>
    %cst_59 = arith.constant 1.000000e+00 : f32
    %362 = vector.broadcast %cst_59 : f32 to vector<4x384xf32>
    %363 = arith.addf %362, %361 : vector<4x384xf32>
    %364 = arith.divf %362, %363 : vector<4x384xf32>
    %365 = vector.extract_strided_slice %358 {offsets = [0, 384], sizes = [4, 128], strides = [1, 1]} : vector<4x512xf32> to vector<4x128xf32>
    %366 = math.tanh %365 : vector<4x128xf32>
    %367 = vector.extract_strided_slice %364 {offsets = [0, 128], sizes = [4, 128], strides = [1, 1]} : vector<4x384xf32> to vector<4x128xf32>
    %368 = arith.mulf %367, %350 : vector<4x128xf32>
    %369 = vector.extract_strided_slice %364 {offsets = [0, 0], sizes = [4, 128], strides = [1, 1]} : vector<4x384xf32> to vector<4x128xf32>
    %370 = arith.mulf %369, %366 : vector<4x128xf32>
    %371 = arith.addf %368, %370 : vector<4x128xf32>
    %372 = vector.extract_strided_slice %364 {offsets = [0, 256], sizes = [4, 128], strides = [1, 1]} : vector<4x384xf32> to vector<4x128xf32>
    %373 = math.tanh %371 : vector<4x128xf32>
    %374 = arith.mulf %372, %373 : vector<4x128xf32>
    %375 = arith.mulf %374, %18 : vector<4x128xf32>
    %376 = arith.mulf %374, %20 : vector<4x128xf32>
    %377 = tpu.concatenate %375, %376 in 1 : vector<4x128xf32>, vector<4x128xf32> -> vector<4x256xf32>
    %cst_60 = arith.constant dense<0.000000e+00> : vector<4x512xf32>
    %378 = tpu.matmul %377, %259, %cst_60 {dimension_numbers = #tpu.dot_dimension_numbers<[1], [0], [0], [1], [0, 0, 1, 1], [], []>} : vector<4x256xf32>, vector<256x512xf32>, vector<4x512xf32> -> vector<4x512xf32>
    %379 = arith.addf %282, %378 : vector<4x512xf32>
    %380 = vector.extract_strided_slice %379 {offsets = [0, 0], sizes = [4, 384], strides = [1, 1]} : vector<4x512xf32> to vector<4x384xf32>
    %381 = arith.negf %380 : vector<4x384xf32>
    %382 = math.exp %381 : vector<4x384xf32>
    %cst_61 = arith.constant 1.000000e+00 : f32
    %383 = vector.broadcast %cst_61 : f32 to vector<4x384xf32>
    %384 = arith.addf %383, %382 : vector<4x384xf32>
    %385 = arith.divf %383, %384 : vector<4x384xf32>
    %386 = vector.extract_strided_slice %379 {offsets = [0, 384], sizes = [4, 128], strides = [1, 1]} : vector<4x512xf32> to vector<4x128xf32>
    %387 = math.tanh %386 : vector<4x128xf32>
    %388 = vector.extract_strided_slice %385 {offsets = [0, 128], sizes = [4, 128], strides = [1, 1]} : vector<4x384xf32> to vector<4x128xf32>
    %389 = arith.mulf %388, %371 : vector<4x128xf32>
    %390 = vector.extract_strided_slice %385 {offsets = [0, 0], sizes = [4, 128], strides = [1, 1]} : vector<4x384xf32> to vector<4x128xf32>
    %391 = arith.mulf %390, %387 : vector<4x128xf32>
    %392 = arith.addf %389, %391 : vector<4x128xf32>
    %393 = vector.extract_strided_slice %385 {offsets = [0, 256], sizes = [4, 128], strides = [1, 1]} : vector<4x384xf32> to vector<4x128xf32>
    %394 = math.tanh %392 : vector<4x128xf32>
    %395 = arith.mulf %393, %394 : vector<4x128xf32>
    %396 = arith.mulf %395, %18 : vector<4x128xf32>
    %397 = arith.mulf %395, %20 : vector<4x128xf32>
    %398 = tpu.concatenate %396, %397 in 1 : vector<4x128xf32>, vector<4x128xf32> -> vector<4x256xf32>
    %cst_62 = arith.constant dense<0.000000e+00> : vector<4x512xf32>
    %399 = tpu.matmul %398, %259, %cst_62 {dimension_numbers = #tpu.dot_dimension_numbers<[1], [0], [0], [1], [0, 0, 1, 1], [], []>} : vector<4x256xf32>, vector<256x512xf32>, vector<4x512xf32> -> vector<4x512xf32>
    %400 = arith.addf %285, %399 : vector<4x512xf32>
    %401 = vector.extract_strided_slice %400 {offsets = [0, 0], sizes = [4, 384], strides = [1, 1]} : vector<4x512xf32> to vector<4x384xf32>
    %402 = arith.negf %401 : vector<4x384xf32>
    %403 = math.exp %402 : vector<4x384xf32>
    %cst_63 = arith.constant 1.000000e+00 : f32
    %404 = vector.broadcast %cst_63 : f32 to vector<4x384xf32>
    %405 = arith.addf %404, %403 : vector<4x384xf32>
    %406 = arith.divf %404, %405 : vector<4x384xf32>
    %407 = vector.extract_strided_slice %400 {offsets = [0, 384], sizes = [4, 128], strides = [1, 1]} : vector<4x512xf32> to vector<4x128xf32>
    %408 = math.tanh %407 : vector<4x128xf32>
    %409 = vector.extract_strided_slice %406 {offsets = [0, 128], sizes = [4, 128], strides = [1, 1]} : vector<4x384xf32> to vector<4x128xf32>
    %410 = arith.mulf %409, %392 : vector<4x128xf32>
    %411 = vector.extract_strided_slice %406 {offsets = [0, 0], sizes = [4, 128], strides = [1, 1]} : vector<4x384xf32> to vector<4x128xf32>
    %412 = arith.mulf %411, %408 : vector<4x128xf32>
    %413 = arith.addf %410, %412 : vector<4x128xf32>
    %414 = vector.extract_strided_slice %406 {offsets = [0, 256], sizes = [4, 128], strides = [1, 1]} : vector<4x384xf32> to vector<4x128xf32>
    %415 = math.tanh %413 : vector<4x128xf32>
    %416 = arith.mulf %414, %415 : vector<4x128xf32>
    %417 = arith.mulf %416, %18 : vector<4x128xf32>
    %418 = arith.mulf %416, %20 : vector<4x128xf32>
    %419 = tpu.concatenate %417, %418 in 1 : vector<4x128xf32>, vector<4x128xf32> -> vector<4x256xf32>
    %cst_64 = arith.constant dense<0.000000e+00> : vector<4x512xf32>
    %420 = tpu.matmul %419, %259, %cst_64 {dimension_numbers = #tpu.dot_dimension_numbers<[1], [0], [0], [1], [0, 0, 1, 1], [], []>} : vector<4x256xf32>, vector<256x512xf32>, vector<4x512xf32> -> vector<4x512xf32>
    %421 = arith.addf %288, %420 : vector<4x512xf32>
    %422 = vector.extract_strided_slice %421 {offsets = [0, 0], sizes = [4, 384], strides = [1, 1]} : vector<4x512xf32> to vector<4x384xf32>
    %423 = arith.negf %422 : vector<4x384xf32>
    %424 = math.exp %423 : vector<4x384xf32>
    %cst_65 = arith.constant 1.000000e+00 : f32
    %425 = vector.broadcast %cst_65 : f32 to vector<4x384xf32>
    %426 = arith.addf %425, %424 : vector<4x384xf32>
    %427 = arith.divf %425, %426 : vector<4x384xf32>
    %428 = vector.extract_strided_slice %421 {offsets = [0, 384], sizes = [4, 128], strides = [1, 1]} : vector<4x512xf32> to vector<4x128xf32>
    %429 = math.tanh %428 : vector<4x128xf32>
    %430 = vector.extract_strided_slice %427 {offsets = [0, 128], sizes = [4, 128], strides = [1, 1]} : vector<4x384xf32> to vector<4x128xf32>
    %431 = arith.mulf %430, %413 : vector<4x128xf32>
    %432 = vector.extract_strided_slice %427 {offsets = [0, 0], sizes = [4, 128], strides = [1, 1]} : vector<4x384xf32> to vector<4x128xf32>
    %433 = arith.mulf %432, %429 : vector<4x128xf32>
    %434 = arith.addf %431, %433 : vector<4x128xf32>
    %435 = vector.extract_strided_slice %427 {offsets = [0, 256], sizes = [4, 128], strides = [1, 1]} : vector<4x384xf32> to vector<4x128xf32>
    %436 = math.tanh %434 : vector<4x128xf32>
    %437 = arith.mulf %435, %436 : vector<4x128xf32>
    %438 = arith.mulf %437, %18 : vector<4x128xf32>
    %439 = arith.mulf %437, %20 : vector<4x128xf32>
    %440 = tpu.concatenate %438, %439 in 1 : vector<4x128xf32>, vector<4x128xf32> -> vector<4x256xf32>
    %cst_66 = arith.constant dense<0.000000e+00> : vector<4x512xf32>
    %441 = tpu.matmul %440, %259, %cst_66 {dimension_numbers = #tpu.dot_dimension_numbers<[1], [0], [0], [1], [0, 0, 1, 1], [], []>} : vector<4x256xf32>, vector<256x512xf32>, vector<4x512xf32> -> vector<4x512xf32>
    %442 = arith.addf %291, %441 : vector<4x512xf32>
    %443 = vector.extract_strided_slice %442 {offsets = [0, 0], sizes = [4, 384], strides = [1, 1]} : vector<4x512xf32> to vector<4x384xf32>
    %444 = arith.negf %443 : vector<4x384xf32>
    %445 = math.exp %444 : vector<4x384xf32>
    %cst_67 = arith.constant 1.000000e+00 : f32
    %446 = vector.broadcast %cst_67 : f32 to vector<4x384xf32>
    %447 = arith.addf %446, %445 : vector<4x384xf32>
    %448 = arith.divf %446, %447 : vector<4x384xf32>
    %449 = vector.extract_strided_slice %442 {offsets = [0, 384], sizes = [4, 128], strides = [1, 1]} : vector<4x512xf32> to vector<4x128xf32>
    %450 = math.tanh %449 : vector<4x128xf32>
    %451 = vector.extract_strided_slice %448 {offsets = [0, 128], sizes = [4, 128], strides = [1, 1]} : vector<4x384xf32> to vector<4x128xf32>
    %452 = arith.mulf %451, %434 : vector<4x128xf32>
    %453 = vector.extract_strided_slice %448 {offsets = [0, 0], sizes = [4, 128], strides = [1, 1]} : vector<4x384xf32> to vector<4x128xf32>
    %454 = arith.mulf %453, %450 : vector<4x128xf32>
    %455 = arith.addf %452, %454 : vector<4x128xf32>
    %456 = vector.extract_strided_slice %448 {offsets = [0, 256], sizes = [4, 128], strides = [1, 1]} : vector<4x384xf32> to vector<4x128xf32>
    %457 = math.tanh %455 : vector<4x128xf32>
    %458 = arith.mulf %456, %457 : vector<4x128xf32>
    %459 = arith.mulf %458, %18 : vector<4x128xf32>
    %460 = arith.mulf %458, %20 : vector<4x128xf32>
    %461 = tpu.concatenate %459, %460 in 1 : vector<4x128xf32>, vector<4x128xf32> -> vector<4x256xf32>
    %462 = vector.extract_strided_slice %461 {offsets = [0, 0], sizes = [2, 256], strides = [1, 1]} : vector<4x256xf32> to vector<2x256xf32>
    %463 = vector.extract_strided_slice %461 {offsets = [2, 0], sizes = [2, 256], strides = [1, 1]} : vector<4x256xf32> to vector<2x256xf32>
    %464 = arith.addf %462, %463 : vector<2x256xf32>
    %c0_68 = arith.constant 0 : index
    %c0_69 = arith.constant 0 : index
    %465 = vector.load %arg13[%c0_68, %c0_69] : memref<256x4xf32, #tpu.memory_space<vmem>>, vector<256x4xf32>
    %cst_70 = arith.constant dense<0.000000e+00> : vector<2x4xf32>
    %466 = tpu.matmul %464, %465, %cst_70 {dimension_numbers = #tpu.dot_dimension_numbers<[1], [0], [0], [1], [0, 0, 1, 1], [], []>} : vector<2x256xf32>, vector<256x4xf32>, vector<2x4xf32> -> vector<2x4xf32>
    %c0_71 = arith.constant 0 : index
    %c0_72 = arith.constant 0 : index
    %467 = vector.load %arg14[%c0_71, %c0_72] : memref<1x4xf32, #tpu.memory_space<vmem>>, vector<1x4xf32>
    %468 = vector.broadcast %467 : vector<1x4xf32> to vector<2x4xf32>
    %469 = arith.addf %466, %468 : vector<2x4xf32>
    %cst_73 = arith.constant dense<0xFF800000> : vector<2xf32>
    %470 = vector.multi_reduction <maximumf>, %469, %cst_73 [1] : vector<2x4xf32> to vector<2xf32>
    %471 = vector.shape_cast %470 : vector<2xf32> to vector<2x1xf32>
    %472 = vector.broadcast %471 : vector<2x1xf32> to vector<2x4xf32>
    %473 = arith.subf %469, %472 : vector<2x4xf32>
    %474 = math.exp %473 : vector<2x4xf32>
    %cst_74 = arith.constant dense<0.000000e+00> : vector<2xf32>
    %475 = vector.multi_reduction <add>, %474, %cst_74 [1] : vector<2x4xf32> to vector<2xf32>
    %476 = vector.shape_cast %475 : vector<2xf32> to vector<2x1xf32>
    %477 = vector.broadcast %476 : vector<2x1xf32> to vector<2x4xf32>
    %478 = arith.divf %474, %477 : vector<2x4xf32>
    %c0_75 = arith.constant 0 : index
    %c0_76 = arith.constant 0 : index
    %479 = vector.load %arg15[%c0_75, %c0_76] : memref<2x4xf32, #tpu.memory_space<vmem>>, vector<2x4xf32>
    tpu.vector_store %arg15[%c0_75, %c0_76], %478 {strides = array<i32>} : memref<2x4xf32, #tpu.memory_space<vmem>>, vector<2x4xf32>,
    return
  }
  func.func @transform_0(%arg0: i32) -> (i32, i32) {
    %c0_i32 = arith.constant 0 : i32
    %c0_i32_0 = arith.constant 0 : i32
    %c0_i32_1 = arith.constant 0 : i32
    return %c0_i32, %c0_i32_0 : i32, i32
  }
  func.func @transform_1(%arg0: i32) -> (i32, i32) {
    %c0_i32 = arith.constant 0 : i32
    %c0_i32_0 = arith.constant 0 : i32
    %c0_i32_1 = arith.constant 0 : i32
    return %c0_i32, %c0_i32_0 : i32, i32
  }
  func.func @transform_2(%arg0: i32) -> (i32, i32) {
    %c0_i32 = arith.constant 0 : i32
    %c0_i32_0 = arith.constant 0 : i32
    %c0_i32_1 = arith.constant 0 : i32
    return %c0_i32, %c0_i32_0 : i32, i32
  }
  func.func @transform_3(%arg0: i32) -> (i32, i32) {
    %c0_i32 = arith.constant 0 : i32
    %c0_i32_0 = arith.constant 0 : i32
    %c0_i32_1 = arith.constant 0 : i32
    return %c0_i32, %c0_i32_0 : i32, i32
  }
  func.func @transform_4(%arg0: i32) -> (i32, i32) {
    %c0_i32 = arith.constant 0 : i32
    %c0_i32_0 = arith.constant 0 : i32
    %c0_i32_1 = arith.constant 0 : i32
    return %c0_i32, %c0_i32_0 : i32, i32
  }
  func.func @transform_5(%arg0: i32) -> (i32, i32) {
    %c0_i32 = arith.constant 0 : i32
    %c0_i32_0 = arith.constant 0 : i32
    %c0_i32_1 = arith.constant 0 : i32
    return %c0_i32, %c0_i32_0 : i32, i32
  }
  func.func @transform_6(%arg0: i32) -> (i32, i32) {
    %c0_i32 = arith.constant 0 : i32
    %c0_i32_0 = arith.constant 0 : i32
    %c0_i32_1 = arith.constant 0 : i32
    return %c0_i32, %c0_i32_0 : i32, i32
  }
  func.func @transform_10(%arg0: i32) -> (i32, i32) {
    %c0_i32 = arith.constant 0 : i32
    %c0_i32_0 = arith.constant 0 : i32
    %c0_i32_1 = arith.constant 0 : i32
    return %c0_i32, %c0_i32_0 : i32, i32
  }
  func.func @transform_11(%arg0: i32) -> (i32, i32) {
    %c0_i32 = arith.constant 0 : i32
    %c0_i32_0 = arith.constant 0 : i32
    %c0_i32_1 = arith.constant 0 : i32
    return %c0_i32, %c0_i32_0 : i32, i32
  }
  func.func @transform_12(%arg0: i32) -> (i32, i32) {
    %c0_i32 = arith.constant 0 : i32
    %c0_i32_0 = arith.constant 0 : i32
    %c0_i32_1 = arith.constant 0 : i32
    return %c0_i32, %c0_i32_0 : i32, i32
  }
  func.func @transform_13(%arg0: i32) -> (i32, i32) {
    %c0_i32 = arith.constant 0 : i32
    %c0_i32_0 = arith.constant 0 : i32
    %c0_i32_1 = arith.constant 0 : i32
    return %c0_i32, %c0_i32_0 : i32, i32
  }
  func.func @transform_14(%arg0: i32) -> (i32, i32) {
    %c0_i32 = arith.constant 0 : i32
    %c0_i32_0 = arith.constant 0 : i32
    %c0_i32_1 = arith.constant 0 : i32
    return %c0_i32, %c0_i32_0 : i32, i32
  }
}

</mosaic_0001>

<bundles_post_ra>
// kernel: email_classification_forward.1
= control target key start
LH: loop header
LB: loop body
LE: loop exit
PB: predicated region body
PF: predicated region fallthrough
CT: control target
= control target key end

     0   :  { %19 = vsyncpa [#allocation7], 0  ;;  %s10140_s0 = inlined_call_operand.vmem [shape: s32[16,1], index: 0, kind: input, shape index: {}]   ;;  %s10141_s1 = inlined_call_operand.hbm [shape: f32[128,32], index: 1, kind: input, shape index: {}]   ;;  %s10142_s2 = inlined_call_operand.hbm [shape: f32[32,512], index: 2, kind: input, shape index: {}]   ;;  %s10143_s3 = inlined_call_operand.hbm [shape: f32[32,512], index: 3, kind: input, shape index: {}]   ;;  %s10144_s4 = inlined_call_operand.hbm [shape: f32[256,512], index: 4, kind: input, shape index: {}]   ;;  %s10145_s5 = inlined_call_operand.vmem [shape: f32[1,512], index: 5, kind: input, shape index: {}]   ;;  %s10146_s6 = inlined_call_operand.vmem [shape: f32[1,512], index: 6, kind: input, shape index: {}]   ;;  %s10147_s7 = inlined_call_operand.hbm [shape: f32[256,512], index: 7, kind: input, shape index: {}]   ;;  %s10148_s8 = inlined_call_operand.hbm [shape: f32[256,512], index: 8, kind: input, shape index: {}]   ;;  %s10149_s9 = inlined_call_operand.hbm [shape: f32[256,512], index: 9, kind: input, shape index: {}]   ;;  %s10150_s10 = inlined_call_operand.vmem [shape: f32[1,512], index: 10, kind: input, shape index: {}]   ;;  %s10151_s11 = inlined_call_operand.vmem [shape: f32[1,512], index: 11, kind: input, shape index: {}]   ;;  %s10152_s12 = inlined_call_operand.hbm [shape: f32[256,4], index: 12, kind: input, shape index: {}]   ;;  %s10153_s13 = inlined_call_operand.vmem [shape: f32[1,4], index: 13, kind: input, shape index: {}]   ;;  %s10154_s14 = inlined_call_operand.hbm [shape: f32[2,4], index: 14, kind: output, shape index: {}]  }
   0x1   :  { %20 = vsyncpa [#allocation10], 0 }
   0x2   :  { %21 = vsyncpa [#allocation13], 0 }
   0x3   :  { %22 = vsyncpa [#allocation8], 0  ;;  %s5978_s29 = smov [#allocation9]  }
   0x4   :  { %s42_s30 = sshll.u32 %s5978_s29, 4  ;;  %s43_s30 = int_to_ptr.vmem [resolvable:$true] %s42_s30 }
   0x5   :  { %s5792_s15 = scalar_lea.vmem %s43_s30, 2048  ;;  %p5797_p1 = scmp.lt.s32.totalorder %s43_s30, %s43_s30 }
   0x6   :  { %p5793_p0 = scmp.ne.s32.totalorder %s43_s30, %s5792_s15  ;;  %p5798_p2 = scmp.lt.s32.totalorder %s5792_s15, %s5792_s15 }
   0x8   :  { %p5799_p3 = por %p5798_p2, %p5797_p1 }
   0xa   :  { %p5800_p4 = pnand %p5799_p3, %p5793_p0 }
   0xc   :  { %5803 = shalt.err (!%p5800_p4)
}
   0xd   :  { %s5979_s16 = smov 512   ;;  %s5980_s17 = smov 32  }
   0xe   :  { %48 = dma.hbm_to_vmem [thread:$0]  %s10142_s2, 2048, %s43_s30, [#allocation10], %s5979_s16, %s5979_s16, %s5980_s17  }
   0xf   :  { %s5981_s20 = smov [#allocation12]   ;;  %s5982_s22 = smov [#allocation6]  }
  0x10   :  { %s66_s21 = sshll.u32 %s5981_s20, 4  ;;  %s30_s23 = sshll.u32 %s5982_s22, 4  ;;  %s67_s21 = int_to_ptr.vmem [resolvable:$true] %s66_s21  ;;  %s31_s23 = int_to_ptr.vmem [resolvable:$true] %s30_s23 }
  0x11   :  { %s5812_s24 = scalar_lea.vmem %s67_s21, 16384  ;;  %p5817_p6 = scmp.lt.s32.totalorder %s67_s21, %s67_s21 }
  0x12   :  { %p5813_p5 = scmp.ne.s32.totalorder %s67_s21, %s5812_s24  ;;  %p5818_p7 = scmp.lt.s32.totalorder %s5812_s24, %s5812_s24 }
  0x14   :  { %p5819_p8 = por %p5818_p7, %p5817_p6 }
  0x16   :  { %p5820_p9 = pnand %p5819_p8, %p5813_p5 }
  0x18   :  { %5823 = shalt.err (!%p5820_p9)
}
  0x19   :  { %72 = dma.hbm_to_vmem [thread:$0]  %s10144_s4, 16384, %s67_s21, [#allocation13], %s5979_s16, %s5979_s16, %s5980_s17  }
  0x1a   :  { %s5832_s2 = scalar_lea.vmem %s31_s23, 2048  ;;  %p5837_p11 = scmp.lt.s32.totalorder %s31_s23, %s31_s23 }
  0x1b   :  { %p5833_p10 = scmp.ne.s32.totalorder %s31_s23, %s5832_s2  ;;  %p5838_p12 = scmp.lt.s32.totalorder %s5832_s2, %s5832_s2 }
  0x1d   :  { %p5839_p13 = por %p5838_p12, %p5837_p11 }
  0x1f   :  { %p5840_p0 = pnand %p5839_p13, %p5833_p10 }
  0x21   :  { %5843 = shalt.err (!%p5840_p0)
}
  0x22   :  { %s5983_s27 = smov 128   ;;  %s5984_s28 = smov 8  }
  0x23   :  { %36 = dma.hbm_to_vmem [thread:$0]  %s10141_s1, 2048, %s31_s23, [#allocation7], %s5983_s27, %s5983_s27, %s5984_s28  }
  0x24   :  { %s5985_s15 = smov [#allocation11]   ;;  %s5986_s19 = smov [#allocation14]  }
  0x25   :  { %s54_s18 = sshll.u32 %s5985_s15, 4  ;;  %s86_s20 = sshll.u32 %s5986_s19, 4  ;;  %s55_s18 = int_to_ptr.vmem [resolvable:$true] %s54_s18  ;;  %s87_s20 = int_to_ptr.vmem [resolvable:$true] %s86_s20 }
  0x26   :  { %s5852_s4 = scalar_lea.vmem %s55_s18, 2048  ;;  %p5857_p2 = scmp.lt.s32.totalorder %s55_s18, %s55_s18 }
  0x27   :  { %p5853_p1 = scmp.ne.s32.totalorder %s55_s18, %s5852_s4  ;;  %p5858_p3 = scmp.lt.s32.totalorder %s5852_s4, %s5852_s4 }
  0x29   :  { %p5859_p4 = por %p5858_p3, %p5857_p2 }
  0x2b   :  { %p5860_p5 = pnand %p5859_p4, %p5853_p1 }
  0x2d   :  { %5863 = shalt.err (!%p5860_p5)
}
  0x2e   :  { %60 = dma.hbm_to_vmem [thread:$0]  %s10143_s3, 2048, %s55_s18, [#allocation10], %s5979_s16, %s5979_s16, %s5980_s17  }
  0x2f   :  { %s5872_s1 = scalar_lea.vmem %s87_s20, 4096  ;;  %p5877_p7 = scmp.lt.s32.totalorder %s87_s20, %s87_s20 }
  0x30   :  { %p5873_p6 = scmp.ne.s32.totalorder %s87_s20, %s5872_s1  ;;  %p5878_p8 = scmp.lt.s32.totalorder %s5872_s1, %s5872_s1 }
  0x32   :  { %p5879_p9 = por %p5878_p8, %p5877_p7 }
  0x34   :  { %p5880_p10 = pnand %p5879_p9, %p5873_p6 }
  0x36   :  { %5883 = shalt.err (!%p5880_p10)
}
  0x37   :  { %92 = dma.hbm_to_vmem [thread:$0]  %s10152_s12, 4096, %s87_s20, [#allocation13], %s5983_s27, %s5983_s27, %s5984_s28  }
  0x38   :  { %5964 = dma.done.wait [#allocation7], 2048  }
  0x39   :  { %5965 = vsyncadd [#allocation7], 4294965248 }
  0x3a   :  { %5966 = dma.done.wait [#allocation10], 4096  }
  0x3b   :  { %5967 = vsyncadd [#allocation10], 4294963200 }
  0x3c   :  { %5968 = dma.done.wait [#allocation13], 20480  }
  0x3d   :  { %5969 = vsyncadd [#allocation13], 4294946816  ;;  %v5987_v0 = vmov 0   ;;  %v10156_v1 = vmov 0.0   ;;  %v145_v2 = vld [vmem:[%s10140_s0] sm:$0xff]  ;;  %v176_v3 = vld [vmem:[#allocation6 + $0x78] sm:$0xff]  ;;  %v10155_v27 = vlaneseq }
  0x3e   :  { %5012 = vset.pattern.permute.xlu0 %v5987_v0  ;;  %512 = vmatprep.mubr.f32.mxu1 %v10156_v1  ;;  %v175_v4 = vld [vmem:[#allocation6 + $0x70] sm:$0xff]  ;;  %v146_v5 = vld [vmem:[%s10140_s0 + $0x8] sm:$0xff]  ;;  %v173_v7 = vld [vmem:[#allocation6 + $0x60] sm:$0xff]  ;;  %v5989_v30 = vmov 1.0   ;;  %vm441_vm2 = vcmask 261120   ;;  %vm789_vm3 = vcmask 1041408  }
  0x3f   :  { %150 = vperm.xlu0 %5012, %v145_v2   ;;  %4961 = vmatprep.subr.mxu0 %v176_v3  ;;  %v174_v6 = vld [vmem:[#allocation6 + $0x68] sm:$0xff]  ;;  %v172_v8 = vld [vmem:[#allocation6 + $0x58] sm:$0xff]  ;;  %v171_v9 = vld [vmem:[#allocation6 + $0x50] sm:$0xff]  ;;  %v148_v28 = vand.u32 127, %v10155_v27  ;;  %vm2400_vm5 = vcmask 1043456   ;;  %s5991_s27 = smov [#allocation3]  }
  0x40   :  { %4962 = vmatpush3.msra.mxu0 %v176_v3  ;;  %v170_v10 = vld [vmem:[#allocation6 + $0x48] sm:$0xff]  ;;  %v169_v11 = vld [vmem:[#allocation6 + $0x40] sm:$0xff]  ;;  %v168_v12 = vld [vmem:[#allocation6 + $0x38] sm:$0xff]  ;;  %s129_s28 = sshll.u32 %s5991_s27, 4  ;;  %s130_s28 = int_to_ptr.vmem [resolvable:$true] %s129_s28 }
  0x41   :  { %4963 = vmatprep.subr.mxu0 %v175_v4  ;;  %v167_v13 = vld [vmem:[#allocation6 + $0x30] sm:$0xff]  ;;  %v166_v14 = vld [vmem:[#allocation6 + $0x28] sm:$0xff]  ;;  %v165_v15 = vld [vmem:[#allocation6 + $0x20] sm:$0xff] }
  0x42   :  { %4964 = vmatpush3.msra.mxu0 %v175_v4  ;;  %v164_v16 = vld [vmem:[#allocation6 + $0x18] sm:$0xff]  ;;  %v163_v17 = vld [vmem:[#allocation6 + $0x10] sm:$0xff]  ;;  %v162_v18 = vld [vmem:[#allocation6 + $0x8] sm:$0xff] }
  0x43   :  { %153 = vperm.xlu0 %5012, %v146_v5   ;;  %4965 = vmatprep.subr.mxu0 %v174_v6  ;;  %v161_v19 = vld [vmem:[#allocation6] sm:$0xff]  ;;  %v6100_v20 = vld [vmem:[#allocation12 + $0x1e8] sm:$0xff] }
  0x44   :  { %4966 = vmatpush3.msra.mxu0 %v174_v6  ;;  %v271_v21 = vld [vmem:[#allocation9 + $0x68] sm:$0xff]  ;;  %v270_v22 = vld [vmem:[#allocation9 + $0x60] sm:$0xff] }
  0x45   :  { %4967 = vmatprep.subr.mxu0 %v173_v7  ;;  %472 = vmatprep.subr.mxu1 %v271_v21  ;;  %v267_v23 = vld [vmem:[#allocation9 + $0x48] sm:$0xff]  ;;  %v266_v24 = vld [vmem:[#allocation9 + $0x40] sm:$0xff] }
  0x46   :  { %4968 = vmatpush3.msra.mxu0 %v173_v7  ;;  %473 = vmatpush1.msra.mxu1 %v270_v22  ;;  %v263_v25 = vld [vmem:[#allocation9 + $0x28] sm:$0xff]  ;;  %v262_v26 = vld [vmem:[#allocation9 + $0x20] sm:$0xff] }
  0x47   :  { %4969 = vmatprep.subr.mxu0 %v172_v8  ;;  %474 = vmatprep.subr.mxu1 %v267_v23  ;;  %v6104_v32 = vld [vmem:[#allocation12 + $0x1e0] sm:$0xff]  ;;  %v6106_v33 = vld [vmem:[#allocation12 + $0x1c8] sm:$0xff] }
  0x48   :  { %4970 = vmatpush3.msra.mxu0 %v172_v8  ;;  %475 = vmatpush1.msra.mxu1 %v266_v24  ;;  %v6108_v34 = vld [vmem:[#allocation12 + $0x1c0] sm:$0xff]  ;;  %v6111_v35 = vld [vmem:[#allocation12 + $0x1a8] sm:$0xff]  ;;  %v273_v8 = vld [vmem:[#allocation9 + $0x78] sm:$0xff] }
  0x49   :  { %4971 = vmatprep.subr.mxu0 %v171_v9  ;;  %476 = vmatprep.subr.mxu1 %v263_v25  ;;  %v6115_v36 = vld [vmem:[#allocation12 + $0x1a0] sm:$0xff]  ;;  %v6118_v37 = vld [vmem:[#allocation12 + $0x188] sm:$0xff] }
  0x4a   :  { %4972 = vmatpush3.msra.mxu0 %v171_v9  ;;  %477 = vmatpush1.msra.mxu1 %v262_v26  ;;  %v6121_v38 = vld [vmem:[#allocation12 + $0x180] sm:$0xff]  ;;  %v6124_v39 = vld [vmem:[#allocation12 + $0x168] sm:$0xff] }
  0x4b   :  { %4973 = vmatprep.subr.mxu0 %v170_v10  ;;  %v6127_v40 = vld [vmem:[#allocation12 + $0x160] sm:$0xff]  ;;  %v6130_v41 = vld [vmem:[#allocation12 + $0x148] sm:$0xff] }
  0x4c   :  { %4974 = vmatpush3.msra.mxu0 %v170_v10  ;;  %v6133_v42 = vld [vmem:[#allocation12 + $0x140] sm:$0xff]  ;;  %v6136_v43 = vld [vmem:[#allocation12 + $0x128] sm:$0xff] }
  0x4d   :  { %4975 = vmatprep.subr.mxu0 %v169_v11  ;;  %v6139_v44 = vld [vmem:[#allocation12 + $0x120] sm:$0xff]  ;;  %v6142_v45 = vld [vmem:[#allocation12 + $0x108] sm:$0xff] }
  0x4e   :  { %4976 = vmatpush3.msra.mxu0 %v169_v11  ;;  %v6145_v46 = vld [vmem:[#allocation12 + $0x100] sm:$0xff]  ;;  %v6148_v47 = vld [vmem:[#allocation12 + $0xe8] sm:$0xff] }
  0x4f   :  { %4977 = vmatprep.subr.mxu0 %v168_v12  ;;  %v6151_v48 = vld [vmem:[#allocation12 + $0xe0] sm:$0xff]  ;;  %v6154_v49 = vld [vmem:[#allocation12 + $0xc8] sm:$0xff] }
  0x50   :  { %4978 = vmatpush3.msra.mxu0 %v168_v12  ;;  %v6157_v50 = vld [vmem:[#allocation12 + $0xc0] sm:$0xff]  ;;  %v6160_v51 = vld [vmem:[#allocation12 + $0xa8] sm:$0xff] }
  0x51   :  { %4979 = vmatprep.subr.mxu0 %v167_v13  ;;  %v6163_v52 = vld [vmem:[#allocation12 + $0xa0] sm:$0xff]  ;;  %v6166_v53 = vld [vmem:[#allocation12 + $0x88] sm:$0xff] }
  0x52   :  { %4980 = vmatpush3.msra.mxu0 %v167_v13  ;;  %v6169_v54 = vld [vmem:[#allocation12 + $0x80] sm:$0xff]  ;;  %v6172_v55 = vld [vmem:[#allocation12 + $0x68] sm:$0xff] }
  0x53   :  { %4981 = vmatprep.subr.mxu0 %v166_v14  ;;  %v6175_v56 = vld [vmem:[#allocation12 + $0x60] sm:$0xff]  ;;  %v6178_v57 = vld [vmem:[#allocation12 + $0x48] sm:$0xff] }
  0x54   :  { %4982 = vmatpush3.msra.mxu0 %v166_v14  ;;  %v6181_v58 = vld [vmem:[#allocation12 + $0x40] sm:$0xff]  ;;  %v6184_v59 = vld [vmem:[#allocation12 + $0x28] sm:$0xff] }
  0x55   :  { %4983 = vmatprep.subr.mxu0 %v165_v15  ;;  %v6187_v60 = vld [vmem:[#allocation12 + $0x20] sm:$0xff]  ;;  %v6190_v61 = vld [vmem:[#allocation12 + $0x8] sm:$0xff] }
  0x56   :  { %4984 = vmatpush3.msra.mxu0 %v165_v15  ;;  %v6193_v62 = vld [vmem:[#allocation12] sm:$0xff]  ;;  %v6196_v63 = vld [vmem:[#allocation12 + $0x3e8] sm:$0xff] }
  0x57   :  { %4985 = vmatprep.subr.mxu0 %v164_v16  ;;  %v6199_v0 = vld [vmem:[#allocation12 + $0x3e0] sm:$0xff]  ;;  %v6202_v2 = vld [vmem:[#allocation12 + $0x3c8] sm:$0xff] }
  0x58   :  { %4986 = vmatpush3.msra.mxu0 %v164_v16  ;;  %v6205_v3 = vld [vmem:[#allocation12 + $0x3c0] sm:$0xff]  ;;  %v259_v4 = vld [vmem:[#allocation9 + $0x8] sm:$0xff] }
  0x59   :  { %4987 = vmatprep.subr.mxu0 %v163_v17  ;;  %v6210_v5 = vld [vmem:[#allocation12 + $0x3a8] sm:$0xff]  ;;  %478 = vmatprep.subr.mxu1 %v259_v4  ;;  %v258_v6 = vld [vmem:[#allocation9] sm:$0xff] }
  0x5a   :  { %4988 = vmatpush3.msra.mxu0 %v163_v17  ;;  %v6213_v7 = vld [vmem:[#allocation12 + $0x3a0] sm:$0xff]  ;;  %479 = vmatpush1.msra.mxu1 %v258_v6  ;;  %v6216_v9 = vld [vmem:[#allocation12 + $0x388] sm:$0xff] }
  0x5b   :  { %4989 = vmatprep.subr.mxu0 %v162_v18  ;;  %549 = vmatprep.subr.mxu1 %v273_v8  ;;  %v6219_v10 = vld [vmem:[#allocation12 + $0x380] sm:$0xff]  ;;  %v6222_v11 = vld [vmem:[#allocation12 + $0x368] sm:$0xff] }
  0x5c   :  { %4990 = vmatpush3.msra.mxu0 %v162_v18  ;;  %v6225_v12 = vld [vmem:[#allocation12 + $0x360] sm:$0xff]  ;;  %v6228_v13 = vld [vmem:[#allocation12 + $0x348] sm:$0xff] }
  0x5d   :  { %4991 = vmatprep.subr.mxu0 %v161_v19  ;;  %v6231_v14 = vld [vmem:[#allocation12 + $0x340] sm:$0xff]  ;;  %v6234_v15 = vld [vmem:[#allocation12 + $0x328] sm:$0xff] }
  0x5e   :  { %4992 = vmatpush3.msra.mxu0 %v161_v19  ;;  %v6237_v16 = vld [vmem:[#allocation12 + $0x320] sm:$0xff]  ;;  %v6240_v17 = vld [vmem:[#allocation12 + $0x308] sm:$0xff] }
  0x5f   :  { %922 = vmatprep.subr.mxu0 %v6100_v20  ;;  %v6243_v18 = vld [vmem:[#allocation12 + $0x300] sm:$0xff]  ;;  %v6246_v19 = vld [vmem:[#allocation12 + $0x2e8] sm:$0xff] }
  0x60   :  { %v6249_v21 = vld [vmem:[#allocation12 + $0x2e0] sm:$0xff]  ;;  %v6252_v22 = vld [vmem:[#allocation12 + $0x2c8] sm:$0xff] }
  0x61   :  { %v6255_v23 = vld [vmem:[#allocation12 + $0x2c0] sm:$0xff]  ;;  %v6258_v24 = vld [vmem:[#allocation12 + $0x2a8] sm:$0xff] }
  0x62   :  { %v6261_v25 = vld [vmem:[#allocation12 + $0x2a0] sm:$0xff]  ;;  %v6264_v26 = vld [vmem:[#allocation12 + $0x288] sm:$0xff] }
  0x63   :  { %v6279_v4 = vld [vmem:[#allocation12 + $0x240] sm:$0xff]  ;;  %v6282_v6 = vld [vmem:[#allocation12 + $0x228] sm:$0xff] }
  0x64   :  { %v6285_v8 = vld [vmem:[#allocation12 + $0x220] sm:$0xff]  ;;  %v6288_v27 = vld [vmem:[#allocation12 + $0x208] sm:$0xff] }
  0xba   :  { %v151_v29 = vpop.permute.xlu0 %150 }
  0xbb   :  { %vm155_vm0 = vcmp.eq.s32.totalorder %v148_v28, %v151_v29  ;;  %v6270_v29 = vld [vmem:[#allocation12 + $0x268] sm:$0xff] }
  0xbc   :  { %4993 = vmatprep.mubr.msk.f32.mxu0 %vm155_vm0, %v5989_v30 }
  0xbe   :  { %v154_v31 = vpop.permute.xlu0 %153 }
  0xbf   :  { %vm156_vm1 = vcmp.eq.s32.totalorder %v148_v28, %v154_v31  ;;  %v6267_v28 = vld [vmem:[#allocation12 + $0x280] sm:$0xff]  ;;  %v6276_v31 = vld [vmem:[#allocation12 + $0x248] sm:$0xff] }
  0xc0   :  { %4994 = vmatmul.mubr.msk.f32.vlgmr.msra.gmra.mxu0 %vm156_vm1, %v5989_v30  ;;  %v6273_v30 = vld [vmem:[#allocation12 + $0x260] sm:$0xff]  ;;  %10845 = vst [vmem:[#allocation31_spill] sm:$0xff] %v6276_v31 }
  0xc1   :  { %923 = vmatpush1.msra.mxu0 %v6104_v32  ;;  %986 = vmatprep.mubr.f32.mxu0 %v10156_v1  ;;  %v6291_v1 = vld [vmem:[#allocation12 + $0x200] sm:$0xff] }
  0xc2   :  { %924 = vmatprep.subr.mxu0 %v6106_v33 }
  0xc3   :  { %925 = vmatpush1.msra.mxu0 %v6108_v34 }
  0xc4   :  { %926 = vmatprep.subr.mxu0 %v6111_v35 }
  0xc5   :  { %927 = vmatpush1.msra.mxu0 %v6115_v36 }
  0xc6   :  { %928 = vmatprep.subr.mxu0 %v6118_v37 }
  0xc7   :  { %929 = vmatpush1.msra.mxu0 %v6121_v38 }
  0xc8   :  { %930 = vmatprep.subr.mxu0 %v6124_v39 }
  0xc9   :  { %931 = vmatpush1.msra.mxu0 %v6127_v40 }
  0xca   :  { %932 = vmatprep.subr.mxu0 %v6130_v41 }
  0xcb   :  { %933 = vmatpush1.msra.mxu0 %v6133_v42 }
  0xcc   :  { %934 = vmatprep.subr.mxu0 %v6136_v43 }
  0xcd   :  { %935 = vmatpush1.msra.mxu0 %v6139_v44 }
  0xce   :  { %936 = vmatprep.subr.mxu0 %v6142_v45 }
  0xcf   :  { %937 = vmatpush1.msra.mxu0 %v6145_v46 }
  0xd0   :  { %938 = vmatprep.subr.mxu0 %v6148_v47 }
  0xd1   :  { %939 = vmatpush1.msra.mxu0 %v6151_v48 }
  0xd2   :  { %940 = vmatprep.subr.mxu0 %v6154_v49 }
  0xd3   :  { %941 = vmatpush1.msra.mxu0 %v6157_v50 }
  0xd4   :  { %942 = vmatprep.subr.mxu0 %v6160_v51 }
  0xd5   :  { %943 = vmatpush1.msra.mxu0 %v6163_v52 }
  0xd6   :  { %944 = vmatprep.subr.mxu0 %v6166_v53 }
  0xd7   :  { %945 = vmatpush1.msra.mxu0 %v6169_v54 }
  0xd8   :  { %946 = vmatprep.subr.mxu0 %v6172_v55 }
  0xd9   :  { %947 = vmatpush1.msra.mxu0 %v6175_v56 }
  0xda   :  { %948 = vmatprep.subr.mxu0 %v6178_v57 }
  0xdb   :  { %949 = vmatpush1.msra.mxu0 %v6181_v58 }
  0xdc   :  { %950 = vmatprep.subr.mxu0 %v6184_v59 }
  0xdd   :  { %951 = vmatpush1.msra.mxu0 %v6187_v60 }
  0xde   :  { %952 = vmatprep.subr.mxu0 %v6190_v61 }
  0xdf   :  { %953 = vmatpush1.msra.mxu0 %v6193_v62 }
  0xe0   :  { %954 = vmatprep.subr.mxu0 %v6196_v63 }
  0xe1   :  { %955 = vmatpush2.msra.mxu0 %v6199_v0 }
  0xe2   :  { %956 = vmatprep.subr.mxu0 %v6202_v2 }
  0xe3   :  { %957 = vmatpush2.msra.mxu0 %v6205_v3 }
  0xe4   :  { %958 = vmatprep.subr.mxu0 %v6210_v5 }
  0xe5   :  { %959 = vmatpush2.msra.mxu0 %v6213_v7 }
  0xe6   :  { %960 = vmatprep.subr.mxu0 %v6216_v9 }
  0xe7   :  { %961 = vmatpush2.msra.mxu0 %v6219_v10 }
  0xe8   :  { %962 = vmatprep.subr.mxu0 %v6222_v11 }
  0xe9   :  { %963 = vmatpush2.msra.mxu0 %v6225_v12 }
  0xea   :  { %964 = vmatprep.subr.mxu0 %v6228_v13 }
  0xeb   :  { %965 = vmatpush2.msra.mxu0 %v6231_v14 }
  0xec   :  { %966 = vmatprep.subr.mxu0 %v6234_v15 }
  0xed   :  { %967 = vmatpush2.msra.mxu0 %v6237_v16 }
  0xee   :  { %968 = vmatprep.subr.mxu0 %v6240_v17 }
  0xef   :  { %969 = vmatpush2.msra.mxu0 %v6243_v18 }
  0xf0   :  { %970 = vmatprep.subr.mxu0 %v6246_v19 }
  0xf1   :  { %971 = vmatpush2.msra.mxu0 %v6249_v21 }
  0xf2   :  { %972 = vmatprep.subr.mxu0 %v6252_v22 }
  0xf3   :  { %973 = vmatpush2.msra.mxu0 %v6255_v23 }
  0xf4   :  { %974 = vmatprep.subr.mxu0 %v6258_v24 }
  0xf5   :  { %975 = vmatpush2.msra.mxu0 %v6261_v25 }
  0xf6   :  { %976 = vmatprep.subr.mxu0 %v6264_v26 }
  0xf7   :  { %977 = vmatpush2.msra.mxu0 %v6267_v28 }
  0xf8   :  { %978 = vmatprep.subr.mxu0 %v6270_v29 }
  0xf9   :  { %979 = vmatpush2.msra.mxu0 %v6273_v30 }
  0xfa   :  { %980 = vmatprep.subr.mxu0 %v6276_v31  ;;  %v10846_v31 = vmov 0.0  }
  0xfb   :  { %981 = vmatpush2.msra.mxu0 %v6279_v4 }
  0xfc   :  { %982 = vmatprep.subr.mxu0 %v6282_v6 }
  0xfd   :  { %983 = vmatpush2.msra.mxu0 %v6285_v8 }
  0xfe   :  { %984 = vmatprep.subr.mxu0 %v6288_v27 }
  0xff   :  { %985 = vmatpush2.msra.mxu0 %v6291_v1 }
 0x100   :  { %987 = vmatmul.mubr.f32.vlgmr.msra.gmra.mxu0 %v10846_v31  ;;  %1094 = vmatprep.subr.mxu0 %v6100_v20 }
 0x101   :  { %1095 = vmatpush1.msra.mxu0 %v6104_v32  ;;  %v10847_v32 = vld [vmem:[#allocation31_spill] sm:$0xff] }
 0x102   :  { %1096 = vmatprep.subr.mxu0 %v6106_v33 }
 0x103   :  { %1097 = vmatpush1.msra.mxu0 %v6108_v34  ;;  %v272_v34 = vld [vmem:[#allocation9 + $0x70] sm:$0xff] }
 0x104   :  { %1098 = vmatprep.subr.mxu0 %v6111_v35 }
 0x105   :  { %1099 = vmatpush1.msra.mxu0 %v6115_v36  ;;  %v269_v36 = vld [vmem:[#allocation9 + $0x58] sm:$0xff] }
 0x106   :  { %1100 = vmatprep.subr.mxu0 %v6118_v37  ;;  %v268_v37 = vld [vmem:[#allocation9 + $0x50] sm:$0xff] }
 0x107   :  { %1101 = vmatpush1.msra.mxu0 %v6121_v38  ;;  %v265_v38 = vld [vmem:[#allocation9 + $0x38] sm:$0xff] }
 0x108   :  { %1102 = vmatprep.subr.mxu0 %v6124_v39  ;;  %v264_v39 = vld [vmem:[#allocation9 + $0x30] sm:$0xff] }
 0x109   :  { %1103 = vmatpush1.msra.mxu0 %v6127_v40  ;;  %v286_v40 = vld [vmem:[#allocation11 + $0x60] sm:$0xff] }
 0x10a   :  { %1104 = vmatprep.subr.mxu0 %v6130_v41  ;;  %v283_v41 = vld [vmem:[#allocation11 + $0x48] sm:$0xff] }
 0x10b   :  { %1105 = vmatpush1.msra.mxu0 %v6133_v42  ;;  %v282_v42 = vld [vmem:[#allocation11 + $0x40] sm:$0xff] }
 0x10c   :  { %1106 = vmatprep.subr.mxu0 %v6136_v43  ;;  %v279_v43 = vld [vmem:[#allocation11 + $0x28] sm:$0xff] }
 0x10d   :  { %1107 = vmatpush1.msra.mxu0 %v6139_v44  ;;  %v278_v44 = vld [vmem:[#allocation11 + $0x20] sm:$0xff] }
 0x10e   :  { %1108 = vmatprep.subr.mxu0 %v6142_v45  ;;  %v275_v45 = vld [vmem:[#allocation11 + $0x8] sm:$0xff] }
 0x10f   :  { %1109 = vmatpush1.msra.mxu0 %v6145_v46  ;;  %v274_v46 = vld [vmem:[#allocation11] sm:$0xff] }
 0x110   :  { %1110 = vmatprep.subr.mxu0 %v6148_v47  ;;  %v289_v47 = vld [vmem:[#allocation11 + $0x78] sm:$0xff] }
 0x111   :  { %1111 = vmatpush1.msra.mxu0 %v6151_v48  ;;  %v288_v48 = vld [vmem:[#allocation11 + $0x70] sm:$0xff] }
 0x112   :  { %1112 = vmatprep.subr.mxu0 %v6154_v49  ;;  %v285_v49 = vld [vmem:[#allocation11 + $0x58] sm:$0xff] }
 0x113   :  { %1113 = vmatpush1.msra.mxu0 %v6157_v50  ;;  %v284_v50 = vld [vmem:[#allocation11 + $0x50] sm:$0xff] }
 0x114   :  { %1114 = vmatprep.subr.mxu0 %v6160_v51  ;;  %v281_v51 = vld [vmem:[#allocation11 + $0x38] sm:$0xff] }
 0x115   :  { %1115 = vmatpush1.msra.mxu0 %v6163_v52  ;;  %v280_v52 = vld [vmem:[#allocation11 + $0x30] sm:$0xff] }
 0x116   :  { %1116 = vmatprep.subr.mxu0 %v6166_v53  ;;  %v277_v53 = vld [vmem:[#allocation11 + $0x18] sm:$0xff] }
 0x117   :  { %1117 = vmatpush1.msra.mxu0 %v6169_v54  ;;  %v276_v54 = vld [vmem:[#allocation11 + $0x10] sm:$0xff] }
 0x118   :  { %1118 = vmatprep.subr.mxu0 %v6172_v55  ;;  %v6377_v55 = vld [vmem:[#allocation12 + $0x1f8] sm:$0xff] }
 0x119   :  { %1119 = vmatpush1.msra.mxu0 %v6175_v56  ;;  %10848 = vst [vmem:[#allocation31_spill] sm:$0xff] %v6377_v55  ;;  %v6379_v56 = vld [vmem:[#allocation12 + $0x1f0] sm:$0xff] }
 0x11a   :  { %1120 = vmatprep.subr.mxu0 %v6178_v57  ;;  %v6381_v57 = vld [vmem:[#allocation12 + $0x1d8] sm:$0xff] }
 0x11b   :  { %1121 = vmatpush1.msra.mxu0 %v6181_v58  ;;  %v6385_v58 = vld [vmem:[#allocation12 + $0x1d0] sm:$0xff] }
 0x11c   :  { %1122 = vmatprep.subr.mxu0 %v6184_v59  ;;  %v6389_v59 = vld [vmem:[#allocation12 + $0x1b8] sm:$0xff] }
 0x11d   :  { %1123 = vmatpush1.msra.mxu0 %v6187_v60  ;;  %v6392_v60 = vld [vmem:[#allocation12 + $0x1b0] sm:$0xff] }
 0x11e   :  { %1124 = vmatprep.subr.mxu0 %v6190_v61  ;;  %v6395_v61 = vld [vmem:[#allocation12 + $0x198] sm:$0xff] }
 0x11f   :  { %1125 = vmatpush1.msra.mxu0 %v6193_v62  ;;  %v6400_v62 = vld [vmem:[#allocation12 + $0x190] sm:$0xff] }
 0x120   :  { %1126 = vmatprep.subr.mxu0 %v6196_v63  ;;  %v6403_v63 = vld [vmem:[#allocation12 + $0x178] sm:$0xff] }
 0x121   :  { %1127 = vmatpush2.msra.mxu0 %v6199_v0  ;;  %v6407_v0 = vld [vmem:[#allocation12 + $0x170] sm:$0xff] }
 0x122   :  { %1128 = vmatprep.subr.mxu0 %v6202_v2  ;;  %v6410_v2 = vld [vmem:[#allocation12 + $0x158] sm:$0xff] }
 0x123   :  { %1129 = vmatpush2.msra.mxu0 %v6205_v3  ;;  %v6413_v3 = vld [vmem:[#allocation12 + $0x150] sm:$0xff] }
 0x124   :  { %1130 = vmatprep.subr.mxu0 %v6210_v5  ;;  %v6416_v5 = vld [vmem:[#allocation12 + $0x138] sm:$0xff] }
 0x125   :  { %1131 = vmatpush2.msra.mxu0 %v6213_v7  ;;  %v6419_v7 = vld [vmem:[#allocation12 + $0x130] sm:$0xff] }
 0x126   :  { %1132 = vmatprep.subr.mxu0 %v6216_v9  ;;  %v6422_v9 = vld [vmem:[#allocation12 + $0x118] sm:$0xff] }
 0x127   :  { %1133 = vmatpush2.msra.mxu0 %v6219_v10  ;;  %v6425_v10 = vld [vmem:[#allocation12 + $0x110] sm:$0xff] }
 0x128   :  { %1134 = vmatprep.subr.mxu0 %v6222_v11  ;;  %v6428_v11 = vld [vmem:[#allocation12 + $0xf8] sm:$0xff] }
 0x129   :  { %1135 = vmatpush2.msra.mxu0 %v6225_v12  ;;  %v6431_v12 = vld [vmem:[#allocation12 + $0xf0] sm:$0xff] }
 0x12a   :  { %1136 = vmatprep.subr.mxu0 %v6228_v13  ;;  %v6434_v13 = vld [vmem:[#allocation12 + $0xd8] sm:$0xff] }
 0x12b   :  { %1137 = vmatpush2.msra.mxu0 %v6231_v14  ;;  %v6437_v14 = vld [vmem:[#allocation12 + $0xd0] sm:$0xff] }
 0x12c   :  { %1138 = vmatprep.subr.mxu0 %v6234_v15  ;;  %v6440_v15 = vld [vmem:[#allocation12 + $0xb8] sm:$0xff] }
 0x12d   :  { %1139 = vmatpush2.msra.mxu0 %v6237_v16  ;;  %v6443_v16 = vld [vmem:[#allocation12 + $0xb0] sm:$0xff] }
 0x12e   :  { %1140 = vmatprep.subr.mxu0 %v6240_v17  ;;  %v6446_v17 = vld [vmem:[#allocation12 + $0x98] sm:$0xff] }
 0x12f   :  { %1141 = vmatpush2.msra.mxu0 %v6243_v18  ;;  %v6449_v18 = vld [vmem:[#allocation12 + $0x90] sm:$0xff] }
 0x130   :  { %1142 = vmatprep.subr.mxu0 %v6246_v19  ;;  %v6452_v19 = vld [vmem:[#allocation12 + $0x78] sm:$0xff] }
 0x131   :  { %1143 = vmatpush2.msra.mxu0 %v6249_v21  ;;  %v6455_v21 = vld [vmem:[#allocation12 + $0x70] sm:$0xff] }
 0x132   :  { %1144 = vmatprep.subr.mxu0 %v6252_v22  ;;  %v6458_v22 = vld [vmem:[#allocation12 + $0x58] sm:$0xff] }
 0x133   :  { %1145 = vmatpush2.msra.mxu0 %v6255_v23  ;;  %10849 = vst [vmem:[#allocation32_spill] sm:$0xff] %v6458_v22  ;;  %v6461_v23 = vld [vmem:[#allocation12 + $0x50] sm:$0xff] }
 0x134   :  { %1146 = vmatprep.subr.mxu0 %v6258_v24  ;;  %10850 = vst [vmem:[#allocation33_spill] sm:$0xff] %v6461_v23  ;;  %v6464_v24 = vld [vmem:[#allocation12 + $0x38] sm:$0xff] }
 0x135   :  { %1147 = vmatpush2.msra.mxu0 %v6261_v25  ;;  %10851 = vst [vmem:[#allocation34_spill] sm:$0xff] %v6464_v24  ;;  %v6467_v25 = vld [vmem:[#allocation12 + $0x30] sm:$0xff] }
 0x136   :  { %1148 = vmatprep.subr.mxu0 %v6264_v26  ;;  %10852 = vst [vmem:[#allocation35_spill] sm:$0xff] %v6467_v25  ;;  %v6470_v26 = vld [vmem:[#allocation12 + $0x18] sm:$0xff] }
 0x137   :  { %1149 = vmatpush2.msra.mxu0 %v6267_v28  ;;  %10853 = vst [vmem:[#allocation36_spill] sm:$0xff] %v6470_v26  ;;  %v6473_v28 = vld [vmem:[#allocation12 + $0x10] sm:$0xff] }
 0x138   :  { %1150 = vmatprep.subr.mxu0 %v6270_v29  ;;  %10854 = vst [vmem:[#allocation37_spill] sm:$0xff] %v6473_v28  ;;  %v6476_v29 = vld [vmem:[#allocation12 + $0x3f8] sm:$0xff] }
 0x139   :  { %1151 = vmatpush2.msra.mxu0 %v6273_v30  ;;  %10855 = vst [vmem:[#allocation38_spill] sm:$0xff] %v6476_v29  ;;  %v6479_v30 = vld [vmem:[#allocation12 + $0x3f0] sm:$0xff] }
 0x13a   :  { %1152 = vmatprep.subr.mxu0 %v10847_v32  ;;  %10856 = vst [vmem:[#allocation39_spill] sm:$0xff] %v6479_v30  ;;  %v6491_v32 = vld [vmem:[#allocation12 + $0x3b0] sm:$0xff] }
 0x13b   :  { %1153 = vmatpush2.msra.mxu0 %v6279_v4  ;;  %v6482_v4 = vld [vmem:[#allocation12 + $0x3d8] sm:$0xff]  ;;  %10860 = vst [vmem:[#allocation43_spill] sm:$0xff] %v6491_v32 }
 0x13c   :  { %1154 = vmatprep.subr.mxu0 %v6282_v6  ;;  %10857 = vst [vmem:[#allocation40_spill] sm:$0xff] %v6482_v4  ;;  %v6485_v6 = vld [vmem:[#allocation12 + $0x3d0] sm:$0xff] }
 0x13d   :  { %1155 = vmatpush2.msra.mxu0 %v6285_v8  ;;  %10858 = vst [vmem:[#allocation41_spill] sm:$0xff] %v6485_v6  ;;  %v6488_v8 = vld [vmem:[#allocation12 + $0x3b8] sm:$0xff] }
 0x13e   :  { %1156 = vmatprep.subr.mxu0 %v6288_v27  ;;  %v261_v27 = vld [vmem:[#allocation9 + $0x18] sm:$0xff]  ;;  %10859 = vst [vmem:[#allocation42_spill] sm:$0xff] %v6488_v8 }
 0x13f   :  { %1157 = vmatpush2.msra.mxu0 %v6291_v1  ;;  %v260_v1 = vld [vmem:[#allocation9 + $0x10] sm:$0xff] }
 0x140   :  { %1266 = vmatprep.subr.mxu0 %v6100_v20  ;;  %v287_v20 = vld [vmem:[#allocation11 + $0x68] sm:$0xff] }
 0x180   :  { %v6360_v33 = vpop.f32.mrf.mxu0 }
 0x182   :  { %v243_v35 = vpop.f32.mrf.mxu0 }
 0x183   :  { %4848 = vmatmul.mubr.msk.f32.vlgmr.msra.gmra.mxu1 %vm441_vm2, %v243_v35 }
 0x184   :  { %550 = vmatpush1.msra.mxu1 %v272_v34  ;;  %518 = vmatprep.mubr.f32.mxu1 %v10846_v31  ;;  %v6497_v34 = vld [vmem:[#allocation12 + $0x390] sm:$0xff] }
 0x185   :  { %551 = vmatprep.subr.mxu1 %v269_v36  ;;  %10862 = vst [vmem:[#allocation45_spill] sm:$0xff] %v6497_v34  ;;  %v6503_v36 = vld [vmem:[#allocation12 + $0x370] sm:$0xff] }
 0x186   :  { %552 = vmatpush1.msra.mxu1 %v268_v37  ;;  %10864 = vst [vmem:[#allocation47_spill] sm:$0xff] %v6503_v36  ;;  %v6506_v37 = vld [vmem:[#allocation12 + $0x358] sm:$0xff] }
 0x187   :  { %553 = vmatprep.subr.mxu1 %v265_v38  ;;  %4849 = vmatmul.mubr.msk.f32.gmra.mxu1 %vm441_vm2, %v6360_v33  ;;  %10865 = vst [vmem:[#allocation48_spill] sm:$0xff] %v6506_v37  ;;  %v6509_v38 = vld [vmem:[#allocation12 + $0x350] sm:$0xff] }
 0x188   :  { %554 = vmatpush1.msra.mxu1 %v264_v39  ;;  %589 = vmatprep.mubr.f32.mxu1 %v10846_v31  ;;  %10866 = vst [vmem:[#allocation49_spill] sm:$0xff] %v6509_v38  ;;  %v6512_v39 = vld [vmem:[#allocation12 + $0x338] sm:$0xff] }
 0x189   :  { %555 = vmatprep.subr.mxu1 %v261_v27  ;;  %10867 = vst [vmem:[#allocation50_spill] sm:$0xff] %v6512_v39  ;;  %v6515_v27 = vld [vmem:[#allocation12 + $0x330] sm:$0xff] }
 0x18a   :  { %556 = vmatpush1.msra.mxu1 %v260_v1  ;;  %10868 = vst [vmem:[#allocation51_spill] sm:$0xff] %v6515_v27  ;;  %v6518_v1 = vld [vmem:[#allocation12 + $0x318] sm:$0xff] }
 0x18b   :  { %647 = vmatprep.subr.mxu1 %v287_v20  ;;  %4850 = vmatmul.mubr.msk.f32.vlgmr.msra.gmra.mxu1 %vm441_vm2, %v243_v35  ;;  %10869 = vst [vmem:[#allocation52_spill] sm:$0xff] %v6518_v1  ;;  %v6521_v20 = vld [vmem:[#allocation12 + $0x310] sm:$0xff] }
 0x18c   :  { %648 = vmatpush1.msra.mxu1 %v286_v40  ;;  %595 = vmatprep.mubr.f32.mxu1 %v10846_v31  ;;  %10870 = vst [vmem:[#allocation53_spill] sm:$0xff] %v6521_v20  ;;  %v6524_v40 = vld [vmem:[#allocation12 + $0x2f8] sm:$0xff] }
 0x18d   :  { %649 = vmatprep.subr.mxu1 %v283_v41  ;;  %10871 = vst [vmem:[#allocation54_spill] sm:$0xff] %v6524_v40  ;;  %v6527_v41 = vld [vmem:[#allocation12 + $0x2f0] sm:$0xff] }
 0x18e   :  { %650 = vmatpush1.msra.mxu1 %v282_v42  ;;  %10872 = vst [vmem:[#allocation55_spill] sm:$0xff] %v6527_v41  ;;  %v6530_v42 = vld [vmem:[#allocation12 + $0x2d8] sm:$0xff] }
 0x18f   :  { %651 = vmatprep.subr.mxu1 %v279_v43  ;;  %4851 = vmatmul.mubr.msk.f32.gmra.mxu1 %vm441_vm2, %v6360_v33  ;;  %10873 = vst [vmem:[#allocation56_spill] sm:$0xff] %v6530_v42  ;;  %v6533_v43 = vld [vmem:[#allocation12 + $0x2d0] sm:$0xff] }
 0x190   :  { %652 = vmatpush1.msra.mxu1 %v278_v44  ;;  %687 = vmatprep.mubr.f32.mxu1 %v10846_v31  ;;  %10874 = vst [vmem:[#allocation57_spill] sm:$0xff] %v6533_v43  ;;  %v6536_v44 = vld [vmem:[#allocation12 + $0x2b8] sm:$0xff] }
 0x191   :  { %653 = vmatprep.subr.mxu1 %v275_v45  ;;  %10875 = vst [vmem:[#allocation58_spill] sm:$0xff] %v6536_v44  ;;  %v6539_v45 = vld [vmem:[#allocation12 + $0x2b0] sm:$0xff] }
 0x192   :  { %654 = vmatpush1.msra.mxu1 %v274_v46  ;;  %10876 = vst [vmem:[#allocation59_spill] sm:$0xff] %v6539_v45  ;;  %v6542_v46 = vld [vmem:[#allocation12 + $0x298] sm:$0xff] }
 0x193   :  { %724 = vmatprep.subr.mxu1 %v289_v47  ;;  %4852 = vmatmul.mubr.msk.f32.vlgmr.msra.gmra.mxu1 %vm441_vm2, %v243_v35  ;;  %10877 = vst [vmem:[#allocation60_spill] sm:$0xff] %v6542_v46  ;;  %v6545_v47 = vld [vmem:[#allocation12 + $0x290] sm:$0xff] }
 0x194   :  { %725 = vmatpush1.msra.mxu1 %v288_v48  ;;  %693 = vmatprep.mubr.f32.mxu1 %v10846_v31  ;;  %10878 = vst [vmem:[#allocation61_spill] sm:$0xff] %v6545_v47  ;;  %v6548_v48 = vld [vmem:[#allocation12 + $0x278] sm:$0xff] }
 0x195   :  { %726 = vmatprep.subr.mxu1 %v285_v49  ;;  %10879 = vst [vmem:[#allocation62_spill] sm:$0xff] %v6548_v48  ;;  %v6551_v49 = vld [vmem:[#allocation12 + $0x270] sm:$0xff] }
 0x196   :  { %727 = vmatpush1.msra.mxu1 %v284_v50  ;;  %10880 = vst [vmem:[#allocation63_spill] sm:$0xff] %v6551_v49  ;;  %v6554_v50 = vld [vmem:[#allocation12 + $0x258] sm:$0xff] }
 0x197   :  { %728 = vmatprep.subr.mxu1 %v281_v51  ;;  %4853 = vmatmul.mubr.msk.f32.gmra.mxu1 %vm441_vm2, %v6360_v33  ;;  %10881 = vst [vmem:[#allocation64_spill] sm:$0xff] %v6554_v50  ;;  %v6557_v51 = vld [vmem:[#allocation12 + $0x250] sm:$0xff] }
 0x198   :  { %729 = vmatpush1.msra.mxu1 %v280_v52  ;;  %764 = vmatprep.mubr.f32.mxu1 %v10846_v31  ;;  %10882 = vst [vmem:[#allocation65_spill] sm:$0xff] %v6557_v51  ;;  %v6560_v52 = vld [vmem:[#allocation12 + $0x238] sm:$0xff] }
 0x199   :  { %730 = vmatprep.subr.mxu1 %v277_v53  ;;  %10883 = vst [vmem:[#allocation66_spill] sm:$0xff] %v6560_v52  ;;  %v6563_v53 = vld [vmem:[#allocation12 + $0x230] sm:$0xff] }
 0x19a   :  { %731 = vmatpush1.msra.mxu1 %v276_v54  ;;  %10884 = vst [vmem:[#allocation67_spill] sm:$0xff] %v6563_v53  ;;  %v6566_v54 = vld [vmem:[#allocation12 + $0x218] sm:$0xff] }
 0x19b   :  { %993 = vmatprep.subr.mxu1 %v6377_v55  ;;  %4854 = vmatmul.mubr.msk.f32.vlgmr.msra.gmra.mxu1 %vm441_vm2, %v243_v35  ;;  %v6500_v35 = vld [vmem:[#allocation12 + $0x378] sm:$0xff]  ;;  %10885 = vst [vmem:[#allocation68_spill] sm:$0xff] %v6566_v54 }
 0x19c   :  { %994 = vmatpush1.msra.mxu1 %v6379_v56  ;;  %770 = vmatprep.mubr.f32.mxu1 %v10846_v31  ;;  %10863 = vst [vmem:[#allocation46_spill] sm:$0xff] %v6500_v35 }
 0x19d   :  { %995 = vmatprep.subr.mxu1 %v6381_v57 }
 0x19e   :  { %996 = vmatpush1.msra.mxu1 %v6385_v58 }
 0x19f   :  { %997 = vmatprep.subr.mxu1 %v6389_v59  ;;  %4855 = vmatmul.mubr.msk.f32.gmra.mxu1 %vm441_vm2, %v6360_v33  ;;  %v6494_v33 = vld [vmem:[#allocation12 + $0x398] sm:$0xff] }
 0x1a0   :  { %998 = vmatpush1.msra.mxu1 %v6392_v60  ;;  %1057 = vmatprep.mubr.f32.mxu1 %v10846_v31  ;;  %10861 = vst [vmem:[#allocation44_spill] sm:$0xff] %v6494_v33 }
 0x1a1   :  { %999 = vmatprep.subr.mxu1 %v6395_v61 }
 0x1a2   :  { %1000 = vmatpush1.msra.mxu1 %v6400_v62 }
 0x1a3   :  { %1001 = vmatprep.subr.mxu1 %v6403_v63 }
 0x1a4   :  { %1002 = vmatpush1.msra.mxu1 %v6407_v0 }
 0x1a5   :  { %1003 = vmatprep.subr.mxu1 %v6410_v2 }
 0x1a6   :  { %1004 = vmatpush1.msra.mxu1 %v6413_v3 }
 0x1a7   :  { %1005 = vmatprep.subr.mxu1 %v6416_v5 }
 0x1a8   :  { %1006 = vmatpush1.msra.mxu1 %v6419_v7 }
 0x1a9   :  { %1007 = vmatprep.subr.mxu1 %v6422_v9 }
 0x1aa   :  { %1008 = vmatpush1.msra.mxu1 %v6425_v10 }
 0x1ab   :  { %1009 = vmatprep.subr.mxu1 %v6428_v11 }
 0x1ac   :  { %1010 = vmatpush1.msra.mxu1 %v6431_v12 }
 0x1ad   :  { %1011 = vmatprep.subr.mxu1 %v6434_v13 }
 0x1ae   :  { %1012 = vmatpush1.msra.mxu1 %v6437_v14 }
 0x1af   :  { %1013 = vmatprep.subr.mxu1 %v6440_v15 }
 0x1b0   :  { %1014 = vmatpush1.msra.mxu1 %v6443_v16 }
 0x1b1   :  { %1015 = vmatprep.subr.mxu1 %v6446_v17 }
 0x1b2   :  { %1016 = vmatpush1.msra.mxu1 %v6449_v18 }
 0x1b3   :  { %1017 = vmatprep.subr.mxu1 %v6452_v19 }
 0x1b4   :  { %1018 = vmatpush1.msra.mxu1 %v6455_v21 }
 0x1b5   :  { %1019 = vmatprep.subr.mxu1 %v6458_v22 }
 0x1b6   :  { %1020 = vmatpush1.msra.mxu1 %v6461_v23 }
 0x1b7   :  { %1021 = vmatprep.subr.mxu1 %v6464_v24 }
 0x1b8   :  { %1022 = vmatpush1.msra.mxu1 %v6467_v25 }
 0x1b9   :  { %1023 = vmatprep.subr.mxu1 %v6470_v26 }
 0x1ba   :  { %1024 = vmatpush1.msra.mxu1 %v6473_v28 }
 0x1bb   :  { %1025 = vmatprep.subr.mxu1 %v6476_v29 }
 0x1bc   :  { %1026 = vmatpush2.msra.mxu1 %v6479_v30 }
 0x1bd   :  { %1027 = vmatprep.subr.mxu1 %v6482_v4 }
 0x1be   :  { %1028 = vmatpush2.msra.mxu1 %v6485_v6 }
 0x1bf   :  { %1029 = vmatprep.subr.mxu1 %v6488_v8 }
 0x1c0   :  { %1030 = vmatpush2.msra.mxu1 %v6491_v32 }
 0x1c1   :  { %1031 = vmatprep.subr.mxu1 %v6494_v33 }
 0x1c2   :  { %1032 = vmatpush2.msra.mxu1 %v6497_v34 }
 0x1c3   :  { %1033 = vmatprep.subr.mxu1 %v6500_v35 }
 0x1c4   :  { %1034 = vmatpush2.msra.mxu1 %v6503_v36 }
 0x1c5   :  { %1035 = vmatprep.subr.mxu1 %v6506_v37 }
 0x1c6   :  { %1036 = vmatpush2.msra.mxu1 %v6509_v38 }
 0x1c7   :  { %1037 = vmatprep.subr.mxu1 %v6512_v39 }
 0x1c8   :  { %1038 = vmatpush2.msra.mxu1 %v6515_v27 }
 0x1c9   :  { %1039 = vmatprep.subr.mxu1 %v6518_v1 }
 0x1ca   :  { %1040 = vmatpush2.msra.mxu1 %v6521_v20 }
 0x1cb   :  { %1041 = vmatprep.subr.mxu1 %v6524_v40 }
 0x1cc   :  { %1042 = vmatpush2.msra.mxu1 %v6527_v41 }
 0x1cd   :  { %1043 = vmatprep.subr.mxu1 %v6530_v42 }
 0x1ce   :  { %1044 = vmatpush2.msra.mxu1 %v6533_v43 }
 0x1cf   :  { %1045 = vmatprep.subr.mxu1 %v6536_v44 }
 0x1d0   :  { %1046 = vmatpush2.msra.mxu1 %v6539_v45 }
 0x1d1   :  { %1047 = vmatprep.subr.mxu1 %v6542_v46 }
 0x1d2   :  { %1048 = vmatpush2.msra.mxu1 %v6545_v47  ;;  %v6569_v47 = vld [vmem:[#allocation12 + $0x210] sm:$0xff] }
 0x1d3   :  { %1049 = vmatprep.subr.mxu1 %v6548_v48  ;;  %10886 = vst [vmem:[#allocation69_spill] sm:$0xff] %v6569_v47 }
 0x1d4   :  { %1050 = vmatpush2.msra.mxu1 %v6551_v49 }
 0x1d5   :  { %1051 = vmatprep.subr.mxu1 %v6554_v50 }
 0x1d6   :  { %1052 = vmatpush2.msra.mxu1 %v6557_v51 }
 0x1d7   :  { %1053 = vmatprep.subr.mxu1 %v6560_v52 }
 0x1d8   :  { %1054 = vmatpush2.msra.mxu1 %v6563_v53 }
 0x1d9   :  { %1055 = vmatprep.subr.mxu1 %v6566_v54 }
 0x1da   :  { %1056 = vmatpush2.msra.mxu1 %v6569_v47 }
 0x1db   :  { %1058 = vmatmul.mubr.f32.vlgmr.msra.gmra.mxu1 %v10846_v31  ;;  %1165 = vmatprep.subr.mxu1 %v6377_v55 }
 0x1dc   :  { %1166 = vmatpush1.msra.mxu1 %v6379_v56 }
 0x1dd   :  { %1167 = vmatprep.subr.mxu1 %v6381_v57 }
 0x1de   :  { %1168 = vmatpush1.msra.mxu1 %v6385_v58 }
 0x1df   :  { %1169 = vmatprep.subr.mxu1 %v6389_v59 }
 0x1e0   :  { %1170 = vmatpush1.msra.mxu1 %v6392_v60 }
 0x1e1   :  { %1171 = vmatprep.subr.mxu1 %v6395_v61 }
 0x1e2   :  { %1172 = vmatpush1.msra.mxu1 %v6400_v62 }
 0x1e3   :  { %1173 = vmatprep.subr.mxu1 %v6403_v63 }
 0x1e4   :  { %1174 = vmatpush1.msra.mxu1 %v6407_v0 }
 0x1e5   :  { %1175 = vmatprep.subr.mxu1 %v6410_v2 }
 0x1e6   :  { %1176 = vmatpush1.msra.mxu1 %v6413_v3 }
 0x1e7   :  { %1177 = vmatprep.subr.mxu1 %v6416_v5 }
 0x1e8   :  { %1178 = vmatpush1.msra.mxu1 %v6419_v7 }
 0x1e9   :  { %1179 = vmatprep.subr.mxu1 %v6422_v9 }
 0x1ea   :  { %1180 = vmatpush1.msra.mxu1 %v6425_v10 }
 0x1eb   :  { %1181 = vmatprep.subr.mxu1 %v6428_v11 }
 0x1ec   :  { %1182 = vmatpush1.msra.mxu1 %v6431_v12 }
 0x1ed   :  { %1183 = vmatprep.subr.mxu1 %v6434_v13 }
 0x1ee   :  { %1184 = vmatpush1.msra.mxu1 %v6437_v14 }
 0x1ef   :  { %1185 = vmatprep.subr.mxu1 %v6440_v15 }
 0x1f0   :  { %1186 = vmatpush1.msra.mxu1 %v6443_v16 }
 0x1f1   :  { %1187 = vmatprep.subr.mxu1 %v6446_v17 }
 0x1f2   :  { %1188 = vmatpush1.msra.mxu1 %v6449_v18 }
 0x1f3   :  { %1189 = vmatprep.subr.mxu1 %v6452_v19 }
 0x1f4   :  { %1190 = vmatpush1.msra.mxu1 %v6455_v21 }
 0x1f5   :  { %1191 = vmatprep.subr.mxu1 %v6458_v22 }
 0x1f6   :  { %1192 = vmatpush1.msra.mxu1 %v6461_v23 }
 0x1f7   :  { %1193 = vmatprep.subr.mxu1 %v6464_v24 }
 0x1f8   :  { %1194 = vmatpush1.msra.mxu1 %v6467_v25 }
 0x1f9   :  { %1195 = vmatprep.subr.mxu1 %v6470_v26 }
 0x1fa   :  { %1196 = vmatpush1.msra.mxu1 %v6473_v28 }
 0x1fb   :  { %1197 = vmatprep.subr.mxu1 %v6476_v29 }
 0x1fc   :  { %1198 = vmatpush2.msra.mxu1 %v6479_v30 }
 0x1fd   :  { %1199 = vmatprep.subr.mxu1 %v6482_v4 }
 0x1fe   :  { %1200 = vmatpush2.msra.mxu1 %v6485_v6 }
 0x1ff   :  { %1201 = vmatprep.subr.mxu1 %v6488_v8 }
 0x200   :  { %1202 = vmatpush2.msra.mxu1 %v6491_v32 }
 0x201   :  { %1203 = vmatprep.subr.mxu1 %v6494_v33 }
 0x202   :  { %1204 = vmatpush2.msra.mxu1 %v6497_v34 }
 0x203   :  { %1205 = vmatprep.subr.mxu1 %v6500_v35 }
 0x204   :  { %1206 = vmatpush2.msra.mxu1 %v6503_v36 }
 0x205   :  { %1207 = vmatprep.subr.mxu1 %v6506_v37 }
 0x206   :  { %1208 = vmatpush2.msra.mxu1 %v6509_v38 }
 0x207   :  { %1209 = vmatprep.subr.mxu1 %v6512_v39  ;;  %v10887_v39 = vld [vmem:[#allocation61_spill] sm:$0xff] }
 0x208   :  { %1210 = vmatpush2.msra.mxu1 %v6515_v27 }
 0x209   :  { %1211 = vmatprep.subr.mxu1 %v6518_v1 }
 0x20a   :  { %1212 = vmatpush2.msra.mxu1 %v6521_v20 }
 0x20b   :  { %1213 = vmatprep.subr.mxu1 %v6524_v40  ;;  %v419_v40 = vld [vmem:[%s10146_s6] sm:$0xf]  ;;  %s5990_s6 = smov [#allocation2]  }
 0x20c   :  { %1214 = vmatpush2.msra.mxu1 %v6527_v41  ;;  %s117_s2 = sshll.u32 %s5990_s6, 4  ;;  %s118_s2 = int_to_ptr.vmem [resolvable:$true] %s117_s2 }
 0x20d   :  { %1215 = vmatprep.subr.mxu1 %v6530_v42  ;;  %s5892_s29 = scalar_lea.vmem %s118_s2, 16384  ;;  %p5897_p12 = scmp.lt.s32.totalorder %s118_s2, %s118_s2 }
 0x20e   :  { %1216 = vmatpush2.msra.mxu1 %v6533_v43  ;;  %p5893_p11 = scmp.ne.s32.totalorder %s118_s2, %s5892_s29  ;;  %p5898_p13 = scmp.lt.s32.totalorder %s5892_s29, %s5892_s29 }
 0x20f   :  { %1217 = vmatprep.subr.mxu1 %v6536_v44 }
 0x210   :  { %1218 = vmatpush2.msra.mxu1 %v6539_v45  ;;  %p5899_p0 = por %p5898_p13, %p5897_p12 }
 0x211   :  { %1219 = vmatprep.subr.mxu1 %v6542_v46  ;;  %v10888_v46 = vlaneseq }
 0x212   :  { %1220 = vmatpush2.msra.mxu1 %v10887_v39  ;;  %p5900_p1 = pnand %p5899_p0, %p5893_p11 }
 0x213   :  { %1221 = vmatprep.subr.mxu1 %v6548_v48  ;;  %v6641_v39 = vshrl.u32 %v10888_v46, 7 }
 0x214   :  { %1222 = vmatpush2.msra.mxu1 %v6551_v49 }
 0x215   :  { %1223 = vmatprep.subr.mxu1 %v6554_v50  ;;  %v6644_v48 = vsub.s32 0, %v6641_v39  ;;  %v6655_v44 = vsub.s32 2, %v6641_v39  ;;  %v6658_v42 = vsub.s32 3, %v6641_v39  ;;  %vm254_vm4 = vcmp.lt.s32.totalorder %v6641_v39, 2 }
 0x216   :  { %1224 = vmatpush2.msra.mxu1 %v6557_v51  ;;  %v418_v51 = vld [vmem:[%s10145_s5] sm:$0xf] }
 0x217   :  { %1225 = vmatprep.subr.mxu1 %v6560_v52  ;;  %10889 = vst [vmem:[#allocation70_spill] sm:$0xff] %v6644_v48  ;;  %v6650_v52 = vsub.s32 1, %v6641_v39  ;;  %10891 = vst [vmem:[#allocation72_spill] sm:$0xff] %v6655_v44  ;;  %v432_v20 = vrot.slane %v418_v51, %v6655_v44  ;;  %v606_v38 = vrot.slane %v419_v40, %v6644_v48  ;;  %v6829_v39 = vld [vmem:[#allocation12 + $0x1e0] sm:$0xff] }
 0x218   :  { %1226 = vmatpush2.msra.mxu1 %v6563_v53  ;;  %10892 = vst [vmem:[#allocation73_spill] sm:$0xff] %v6658_v42  ;;  %v614_v32 = vrot.slane %v419_v40, %v6655_v44 }
 0x219   :  { %1227 = vmatprep.subr.mxu1 %v6566_v54  ;;  %10890 = vst [vmem:[#allocation71_spill] sm:$0xff] %v6650_v52  ;;  %v424_v54 = vrot.slane %v418_v51, %v6644_v48  ;;  %v610_v34 = vrot.slane %v419_v40, %v6650_v52 }
 0x21a   :  { %1228 = vmatpush2.msra.mxu1 %v6569_v47 }
 0x21b   :  { %1337 = vmatprep.subr.mxu1 %v6377_v55  ;;  %v428_v55 = vrot.slane %v418_v51, %v6650_v52 }
 0x243   :  { %v514_v50 = vpop.f32.mrf.mxu1 }
 0x244   :  { %v6664_v1 = vadd.f32 %v514_v50, %v424_v54  ;;  %v6677_v50 = vrot.slane %v419_v40, %v6658_v42 }
 0x245   :  { %v516_v53 = vpop.f32.mrf.mxu1 }
 0x246   :  { %v6670_v37 = vadd.f32 %v516_v53, %v428_v55 }
 0x247   :  { %v520_v47 = vpop.f32.mrf.mxu1 }
 0x248   :  { %v521_v49 = vadd.f32 %v520_v47, %v424_v54  ;;  %v436_v47 = vrot.slane %v418_v51, %v6658_v42  ;;  %v798_v51 = vrot.slane %v6664_v1, 2  ;;  %v818_v54 = vrot.slane %v6664_v1, 4 }
 0x249   :  { %v522_v46 = vpop.f32.mrf.mxu1  ;;  %v799_v52 = vrot.slane %v6670_v37, 2 }
 0x24a   :  { %v523_v45 = vadd.f32 %v522_v46, %v428_v55  ;;  %v830_v55 = vrot.slane %v6664_v1, 6  ;;  %v890_v53 = vrot.slane %v521_v49, 4  ;;  %v870_v8 = vrot.slane %v521_v49, 2 }
 0x24b   :  { %v591_v43 = vpop.f32.mrf.mxu1  ;;  %v902_v6 = vrot.slane %v521_v49, 6 }
 0x24c   :  { %v6682_v48 = vadd.f32 %v591_v43, %v432_v20  ;;  %v891_v29 = vrot.slane %v523_v45, 4  ;;  %v903_v26 = vrot.slane %v523_v45, 6 }
 0x24d   :  { %v593_v41 = vpop.f32.mrf.mxu1 }
 0x24f   :  { %v597_v27 = vpop.f32.mrf.mxu1 }
 0x250   :  { %v6667_v46 = vadd.f32 %v597_v27, %v432_v20 }
 0x251   :  { %v599_v36 = vpop.f32.mrf.mxu1 }
 0x252   :  { %v6672_v35 = vadd.f32 %v599_v36, %v436_v47 }
 0x253   :  { %v689_v33 = vpop.f32.mrf.mxu1 }
 0x254   :  { %v690_v27 = vadd.f32 %v689_v33, %v606_v38  ;;  %v871_v33 = vrot.slane %v523_v45, 2 }
 0x255   :  { %v691_v36 = vpop.f32.mrf.mxu1 }
 0x256   :  { %v692_v44 = vadd.f32 %v691_v36, %v610_v34  ;;  %v854_v4 = vrot.slane %v690_v27, 4  ;;  %v878_v30 = vrot.slane %v690_v27, 2  ;;  %v6686_v40 = vsel %vm789_vm3, %v890_v53, %v690_v27 }
 0x257   :  { %10893 = vst [vmem:[#allocation74_spill] sm:$0xff] %v6686_v40  ;;  %v695_v42 = vpop.f32.mrf.mxu1  ;;  %v910_v28 = vrot.slane %v690_v27, 6 }
 0x258   :  { %v6688_v25 = vadd.f32 %v695_v42, %v606_v38  ;;  %v6691_v20 = vsel %vm789_vm3, %v521_v49, %v854_v4  ;;  %v855_v43 = vrot.slane %v692_v44, 4  ;;  %v6694_v24 = vsel %vm789_vm3, %v870_v8, %v878_v30 }
 0x259   :  { %10894 = vst [vmem:[#allocation75_spill] sm:$0xff] %v6691_v20  ;;  %10895 = vst [vmem:[#allocation76_spill] sm:$0xff] %v6694_v24  ;;  %v697_v36 = vpop.f32.mrf.mxu1  ;;  %v879_v23 = vrot.slane %v692_v44, 2  ;;  %v6697_v22 = vsel %vm789_vm3, %v891_v29, %v692_v44  ;;  %v6700_v53 = vsel %vm789_vm3, %v902_v6, %v910_v28  ;;  %v911_v40 = vrot.slane %v692_v44, 6 }
 0x25a   :  { %10896 = vst [vmem:[#allocation77_spill] sm:$0xff] %v6697_v22  ;;  %10897 = vst [vmem:[#allocation78_spill] sm:$0xff] %v6700_v53  ;;  %v6702_v27 = vadd.f32 %v697_v36, %v610_v34  ;;  %v806_v38 = vrot.slane %v6688_v25, 2  ;;  %v6707_v4 = vsel %vm789_vm3, %v818_v54, %v6688_v25  ;;  %v819_v30 = vrot.slane %v6670_v37, 4 }
 0x25b   :  { %10898 = vst [vmem:[#allocation79_spill] sm:$0xff] %v6707_v4  ;;  %v766_v8 = vpop.f32.mrf.mxu1  ;;  %v838_v42 = vrot.slane %v6688_v25, 6  ;;  %v6712_v29 = vsel %vm789_vm3, %v523_v45, %v855_v43  ;;  %v6715_v28 = vsel %vm789_vm3, %v871_v33, %v879_v23  ;;  %v6718_v6 = vsel %vm789_vm3, %v903_v26, %v911_v40  ;;  %v7037_v4 = vld [vmem:[#allocation12 + $0x2a0] sm:$0xff] }
 0x25c   :  { %10899 = vst [vmem:[#allocation80_spill] sm:$0xff] %v6712_v29  ;;  %10900 = vst [vmem:[#allocation81_spill] sm:$0xff] %v6715_v28  ;;  %v6720_v34 = vadd.f32 %v593_v41, %v436_v47  ;;  %v767_v44 = vadd.f32 %v766_v8, %v614_v32  ;;  %v6723_v49 = vsel %vm789_vm3, %v798_v51, %v806_v38  ;;  %v831_v54 = vrot.slane %v6670_v37, 6 }
 0x25d   :  { %10901 = vst [vmem:[#allocation82_spill] sm:$0xff] %v6718_v6  ;;  %v768_v36 = vpop.f32.mrf.mxu1  ;;  %v800_v53 = vrot.slane %v6682_v48, 2  ;;  %v807_v45 = vrot.slane %v6702_v27, 2  ;;  %v6730_v23 = vsel %vm789_vm3, %v819_v30, %v6702_v27  ;;  %v6733_v26 = vsel %vm789_vm3, %v830_v55, %v838_v42 }
 0x25e   :  { %10902 = vst [vmem:[#allocation83_spill] sm:$0xff] %v6730_v23  ;;  %10903 = vst [vmem:[#allocation84_spill] sm:$0xff] %v6733_v26  ;;  %v769_v41 = vadd.f32 %v768_v36, %v6677_v50  ;;  %v820_v47 = vrot.slane %v6682_v48, 4  ;;  %v839_v51 = vrot.slane %v6702_v27, 6  ;;  %v856_v40 = vrot.slane %v767_v44, 4  ;;  %v7021_v26 = vld [vmem:[#allocation12 + $0x2e0] sm:$0xff] }
 0x25f   :  { %v772_v33 = vpop.f32.mrf.mxu1  ;;  %v6739_v43 = vsel %vm789_vm3, %v799_v52, %v807_v45  ;;  %v832_v38 = vrot.slane %v6682_v48, 6  ;;  %v872_v8 = vrot.slane %v6667_v46, 2  ;;  %v880_v30 = vrot.slane %v767_v44, 2  ;;  %v7033_v23 = vld [vmem:[#allocation12 + $0x2a8] sm:$0xff] }
 0x260   :  { %v773_v6 = vadd.f32 %v772_v33, %v614_v32  ;;  %v6744_v55 = vsel %vm789_vm3, %v831_v54, %v839_v51  ;;  %v6748_v42 = vsel %vm789_vm3, %v6667_v46, %v856_v40  ;;  %v857_v36 = vrot.slane %v769_v41, 4 }
 0x261   :  { %10904 = vst [vmem:[#allocation85_spill] sm:$0xff] %v6744_v55  ;;  %10905 = vst [vmem:[#allocation86_spill] sm:$0xff] %v6748_v42  ;;  %v774_v22 = vpop.f32.mrf.mxu1  ;;  %v801_v28 = vrot.slane %v6720_v34, 2  ;;  %v6752_v52 = vsel %vm789_vm3, %v872_v8, %v880_v30  ;;  %v873_v45 = vrot.slane %v6672_v35, 2  ;;  %v881_v24 = vrot.slane %v769_v41, 2  ;;  %v7017_v55 = vld [vmem:[#allocation12 + $0x2e8] sm:$0xff] }
 0x262   :  { %10906 = vst [vmem:[#allocation87_spill] sm:$0xff] %v6752_v52  ;;  %v775_v29 = vadd.f32 %v774_v22, %v6677_v50  ;;  %v808_v32 = vrot.slane %v773_v6, 2  ;;  %v6757_v54 = vsel %vm789_vm3, %v820_v47, %v773_v6  ;;  %v821_v51 = vrot.slane %v6720_v34, 4 }
 0x263   :  { %10907 = vst [vmem:[#allocation88_spill] sm:$0xff] %v6757_v54  ;;  %v840_v40 = vrot.slane %v773_v6, 6  ;;  %v6762_v33 = vsel %vm789_vm3, %v6672_v35, %v857_v36  ;;  %v6765_v42 = vsel %vm789_vm3, %v873_v45, %v881_v24  ;;  %v892_v8 = vrot.slane %v6667_v46, 4  ;;  %v7029_v54 = vld [vmem:[#allocation12 + $0x2c0] sm:$0xff] }
 0x264   :  { %10908 = vst [vmem:[#allocation89_spill] sm:$0xff] %v6762_v33  ;;  %10909 = vst [vmem:[#allocation90_spill] sm:$0xff] %v6765_v42  ;;  %v6769_v30 = vsel %vm789_vm3, %v800_v53, %v808_v32  ;;  %v809_v22 = vrot.slane %v775_v29, 2  ;;  %v833_v50 = vrot.slane %v6720_v34, 6  ;;  %v893_v47 = vrot.slane %v6672_v35, 4 }
 0x265   :  { %v6774_v52 = vsel %vm789_vm3, %v821_v51, %v775_v29  ;;  %v6777_v20 = vsel %vm789_vm3, %v832_v38, %v840_v40  ;;  %v841_v36 = vrot.slane %v775_v29, 6  ;;  %v6780_v24 = vsel %vm789_vm3, %v892_v8, %v767_v44 }
 0x266   :  { %10910 = vst [vmem:[#allocation91_spill] sm:$0xff] %v6774_v52  ;;  %10911 = vst [vmem:[#allocation92_spill] sm:$0xff] %v6777_v20  ;;  %v6783_v45 = vsel %vm789_vm3, %v801_v28, %v809_v22  ;;  %v6786_v53 = vsel %vm789_vm3, %v893_v47, %v769_v41  ;;  %v904_v32 = vrot.slane %v6667_v46, 6  ;;  %v912_v42 = vrot.slane %v767_v44, 6  ;;  %v988_v22 = vpop.f32.mrf.mxu0  ;;  %v7013_v20 = vld [vmem:[#allocation12 + $0x300] sm:$0xff]  ;;  %v7025_v52 = vld [vmem:[#allocation12 + $0x2c8] sm:$0xff] }
 0x267   :  { %10912 = vst [vmem:[#allocation93_spill] sm:$0xff] %v6780_v24  ;;  %10913 = vst [vmem:[#allocation94_spill] sm:$0xff] %v6786_v53  ;;  %v6790_v33 = vsel %vm789_vm3, %v833_v50, %v841_v36  ;;  %v905_v51 = vrot.slane %v6672_v35, 6  ;;  %v913_v38 = vrot.slane %v769_v41, 6  ;;  %v781_v28 = vrot.slane %v6688_v25, 4  ;;  %v7001_v53 = vld [vmem:[#allocation12 + $0x328] sm:$0xff] }
 0x268   :  { %10914 = vst [vmem:[#allocation95_spill] sm:$0xff] %v6790_v33  ;;  %v6794_v40 = vsel %vm789_vm3, %v904_v32, %v912_v42  ;;  %v782_v47 = vrot.slane %v6702_v27, 4  ;;  %v990_v50 = vpop.f32.mrf.mxu0  ;;  %v784_v25 = vrot.slane %v775_v29, 4  ;;  %v7005_v24 = vld [vmem:[#allocation12 + $0x320] sm:$0xff]  ;;  %v7009_v33 = vld [vmem:[#allocation12 + $0x308] sm:$0xff] }
 0x269   :  { %10915 = vst [vmem:[#allocation96_spill] sm:$0xff] %v6794_v40  ;;  %v6797_v8 = vsel %vm789_vm3, %v905_v51, %v913_v38  ;;  %v790_v46 = vsel %vm789_vm3, %v6664_v1, %v781_v28  ;;  %v783_v51 = vrot.slane %v773_v6, 4 }
 0x26a   :  { %10916 = vst [vmem:[#allocation97_spill] sm:$0xff] %v6797_v8  ;;  %v791_v44 = vsel %vm789_vm3, %v6670_v37, %v782_v47  ;;  %v1064_v35 = vadd.f32 %v988_v22, %v790_v46  ;;  %v793_v37 = vsel %vm789_vm3, %v6720_v34, %v784_v25  ;;  %v6814_v34 = vsel %vm254_vm4, 1.0, %v10846_v31  ;;  %v6833_v25 = vld [vmem:[#allocation12 + $0x1c8] sm:$0xff]  ;;  %v6989_v31 = vld [vmem:[#allocation12 + $0x360] sm:$0xff] }
 0x26b   :  { %v1065_v41 = vadd.f32 %v990_v50, %v791_v44  ;;  %v792_v27 = vsel %vm789_vm3, %v6682_v48, %v783_v51  ;;  %10917 = vst [vmem:[#allocation98_spill] sm:$0xff] %v6814_v34 }
 0x26c   :  { %v4856_v36 = vmul.f32 -1.442695, %v1064_v35 }
 0x26d   :  { %v4857_v42 = vmul.f32 -1.442695, %v1065_v41 }
 0x26e   :  { %5013 = vpow2.f32 %v4856_v36 }
 0x26f   :  { %5015 = vpow2.f32 %v4857_v42 }
 0x27b   :  { %v5014_v32 = vpop.eup %5013 }
 0x27c   :  { %v5016_v38 = vpop.eup %5015  ;;  %v1077_v8 = vadd.f32 1.0, %v5014_v32 }
 0x27d   :  { %v1078_v40 = vadd.f32 1.0, %v5016_v38 }
 0x27e   :  { %5017 = vrcp.f32 %v1077_v8  ;;  %v6817_v8 = vsub.f32 1.0, %v6814_v34 }
 0x27f   :  { %5019 = vrcp.f32 %v1078_v40 }
 0x280   :  { %10918 = vst [vmem:[#allocation99_spill] sm:$0xff] %v6817_v8 }
 0x28b   :  { %v5018_v6 = vpop.eup %5017 }
 0x28c   :  { %v5020_v44 = vpop.eup %5019 }
 0x28d   :  { %v1087_v41 = vmul.f32 0.0, %v5020_v44  ;;  %v6949_v44 = vld [vmem:[#allocation12] sm:$0xff] }
 0x29b   :  { %v1059_v1 = vpop.f32.mrf.mxu1 }
 0x29c   :  { %v1066_v28 = vadd.f32 %v1059_v1, %v792_v27  ;;  %v6837_v27 = vld [vmem:[#allocation12 + $0x1c0] sm:$0xff]  ;;  %v6841_v1 = vld [vmem:[#allocation12 + $0x1a8] sm:$0xff] }
 0x29d   :  { %v1061_v22 = vpop.f32.mrf.mxu1 }
 0x29e   :  { %v4858_v47 = vmul.f32 -1.442695, %v1066_v28  ;;  %v1067_v46 = vadd.f32 %v1061_v22, %v793_v37  ;;  %v6845_v28 = vld [vmem:[#allocation12 + $0x1a0] sm:$0xff]  ;;  %v6937_v22 = vld [vmem:[#allocation12 + $0x28] sm:$0xff] }
 0x29f   :  { %v6933_v37 = vld [vmem:[#allocation12 + $0x40] sm:$0xff] }
 0x2a0   :  { %5021 = vpow2.f32 %v4858_v47  ;;  %v6941_v47 = vld [vmem:[#allocation12 + $0x20] sm:$0xff] }
 0x2a1   :  { %5023 = vtanh.f32 %v1067_v46  ;;  %v6945_v46 = vld [vmem:[#allocation12 + $0x8] sm:$0xff] }
 0x2ad   :  { %v5022_v29 = vpop.eup %5021 }
 0x2ae   :  { %v5024_v50 = vpop.eup %5023  ;;  %v1079_v35 = vadd.f32 1.0, %v5022_v29  ;;  %v10935_v29 = vld [vmem:[#allocation37_spill] sm:$0xff] }
 0x2af   :  { %v1088_v36 = vmul.f32 %v5024_v50, %v5018_v6  ;;  %v10933_v6 = vld [vmem:[#allocation36_spill] sm:$0xff] }
 0x2b0   :  { %5025 = vrcp.f32 %v1079_v35  ;;  %10934 = vst [vmem:[#allocation36_spill] sm:$0xff] %v6949_v44  ;;  %v6953_v50 = vld [vmem:[#allocation12 + $0x3e8] sm:$0xff]  ;;  %v10937_v35 = vld [vmem:[#allocation38_spill] sm:$0xff] }
 0x2b1   :  { %v6809_v48 = vadd.f32 %v1088_v36, %v1087_v41  ;;  %10936 = vst [vmem:[#allocation37_spill] sm:$0xff] %v6953_v50  ;;  %v6957_v41 = vld [vmem:[#allocation12 + $0x3e0] sm:$0xff] }
 0x2b2   :  { %10938 = vst [vmem:[#allocation38_spill] sm:$0xff] %v6957_v41  ;;  %v10939_v36 = vld [vmem:[#allocation39_spill] sm:$0xff] }
 0x2b3   :  { %5027 = vtanh.f32 %v6809_v48 }
 0x2bd   :  { %v5026_v40 = vpop.eup %5025 }
 0x2c0   :  { %v5028_v42 = vpop.eup %5027 }
 0x2c1   :  { %v1091_v32 = vmul.f32 %v5028_v42, %v5026_v40  ;;  %v6961_v40 = vld [vmem:[#allocation12 + $0x3c8] sm:$0xff] }
 0x2c2   :  { %10940 = vst [vmem:[#allocation39_spill] sm:$0xff] %v6961_v40  ;;  %v10941_v42 = vld [vmem:[#allocation40_spill] sm:$0xff] }
 0x2c3   :  { %v6820_v51 = vmul.f32 %v1091_v32, %v6817_v8  ;;  %v6823_v38 = vmul.f32 %v6814_v34, %v1091_v32  ;;  %v6965_v32 = vld [vmem:[#allocation12 + $0x3c0] sm:$0xff] }
 0x2c4   :  { %10942 = vst [vmem:[#allocation40_spill] sm:$0xff] %v6965_v32 }
 0x2c5   :  { %10919 = vst [vmem:[#allocation100_spill] sm:$0xff] %v6820_v51  ;;  %10920 = vst [vmem:[#allocation101_spill] sm:$0xff] %v6823_v38  ;;  %1158 = vmatprep.mubr.f32.mxu0 %v6820_v51  ;;  %1229 = vmatprep.mubr.f32.mxu1 %v6820_v51  ;;  %v6997_v51 = vld [vmem:[#allocation12 + $0x340] sm:$0xff] }
 0x2c6   :  { %1159 = vmatmul.mubr.f32.vlgmr.msra.gmra.mxu0 %v6823_v38  ;;  %1230 = vmatmul.mubr.f32.vlgmr.msra.gmra.mxu1 %v6823_v38  ;;  %v6993_v38 = vld [vmem:[#allocation12 + $0x348] sm:$0xff] }
 0x2c7   :  { %1267 = vmatpush1.msra.mxu0 %v6829_v39  ;;  %1338 = vmatpush1.msra.mxu1 %v6379_v56  ;;  %v6849_v56 = vld [vmem:[#allocation12 + $0x188] sm:$0xff] }
 0x2c8   :  { %1268 = vmatprep.subr.mxu0 %v6833_v25  ;;  %1339 = vmatprep.subr.mxu1 %v6381_v57  ;;  %v6853_v57 = vld [vmem:[#allocation12 + $0x180] sm:$0xff] }
 0x2c9   :  { %1269 = vmatpush1.msra.mxu0 %v6837_v27  ;;  %1340 = vmatpush1.msra.mxu1 %v6385_v58  ;;  %v6857_v58 = vld [vmem:[#allocation12 + $0x168] sm:$0xff] }
 0x2ca   :  { %1270 = vmatprep.subr.mxu0 %v6841_v1  ;;  %1341 = vmatprep.subr.mxu1 %v6389_v59  ;;  %v6861_v59 = vld [vmem:[#allocation12 + $0x160] sm:$0xff] }
 0x2cb   :  { %1271 = vmatpush1.msra.mxu0 %v6845_v28  ;;  %1342 = vmatpush1.msra.mxu1 %v6392_v60  ;;  %v6865_v60 = vld [vmem:[#allocation12 + $0x148] sm:$0xff] }
 0x2cc   :  { %1272 = vmatprep.subr.mxu0 %v6849_v56  ;;  %1343 = vmatprep.subr.mxu1 %v6395_v61  ;;  %v6869_v61 = vld [vmem:[#allocation12 + $0x140] sm:$0xff] }
 0x2cd   :  { %1273 = vmatpush1.msra.mxu0 %v6853_v57  ;;  %1344 = vmatpush1.msra.mxu1 %v6400_v62  ;;  %v6873_v62 = vld [vmem:[#allocation12 + $0x128] sm:$0xff] }
 0x2ce   :  { %1274 = vmatprep.subr.mxu0 %v6857_v58  ;;  %1345 = vmatprep.subr.mxu1 %v6403_v63  ;;  %v6877_v63 = vld [vmem:[#allocation12 + $0x120] sm:$0xff] }
 0x2cf   :  { %1275 = vmatpush1.msra.mxu0 %v6861_v59  ;;  %1346 = vmatpush1.msra.mxu1 %v6407_v0  ;;  %v6881_v0 = vld [vmem:[#allocation12 + $0x108] sm:$0xff] }
 0x2d0   :  { %1276 = vmatprep.subr.mxu0 %v6865_v60  ;;  %1347 = vmatprep.subr.mxu1 %v6410_v2  ;;  %v6885_v2 = vld [vmem:[#allocation12 + $0x100] sm:$0xff] }
 0x2d1   :  { %1277 = vmatpush1.msra.mxu0 %v6869_v61  ;;  %1348 = vmatpush1.msra.mxu1 %v6413_v3  ;;  %v6889_v3 = vld [vmem:[#allocation12 + $0xe8] sm:$0xff] }
 0x2d2   :  { %1278 = vmatprep.subr.mxu0 %v6873_v62  ;;  %1349 = vmatprep.subr.mxu1 %v6416_v5  ;;  %v6893_v5 = vld [vmem:[#allocation12 + $0xe0] sm:$0xff] }
 0x2d3   :  { %1279 = vmatpush1.msra.mxu0 %v6877_v63  ;;  %1350 = vmatpush1.msra.mxu1 %v6419_v7  ;;  %v6897_v7 = vld [vmem:[#allocation12 + $0xc8] sm:$0xff] }
 0x2d4   :  { %1280 = vmatprep.subr.mxu0 %v6881_v0  ;;  %1351 = vmatprep.subr.mxu1 %v6422_v9  ;;  %v6901_v9 = vld [vmem:[#allocation12 + $0xc0] sm:$0xff] }
 0x2d5   :  { %1281 = vmatpush1.msra.mxu0 %v6885_v2  ;;  %1352 = vmatpush1.msra.mxu1 %v6425_v10  ;;  %v6905_v10 = vld [vmem:[#allocation12 + $0xa8] sm:$0xff] }
 0x2d6   :  { %1282 = vmatprep.subr.mxu0 %v6889_v3  ;;  %1353 = vmatprep.subr.mxu1 %v6428_v11  ;;  %v6909_v11 = vld [vmem:[#allocation12 + $0xa0] sm:$0xff] }
 0x2d7   :  { %1283 = vmatpush1.msra.mxu0 %v6893_v5  ;;  %1354 = vmatpush1.msra.mxu1 %v6431_v12  ;;  %v6913_v12 = vld [vmem:[#allocation12 + $0x88] sm:$0xff] }
 0x2d8   :  { %1284 = vmatprep.subr.mxu0 %v6897_v7  ;;  %1355 = vmatprep.subr.mxu1 %v6434_v13  ;;  %v6917_v13 = vld [vmem:[#allocation12 + $0x80] sm:$0xff] }
 0x2d9   :  { %1285 = vmatpush1.msra.mxu0 %v6901_v9  ;;  %1356 = vmatpush1.msra.mxu1 %v6437_v14  ;;  %10921 = vst [vmem:[#allocation102_spill] sm:$0xff] %v6917_v13  ;;  %v6921_v14 = vld [vmem:[#allocation12 + $0x68] sm:$0xff] }
 0x2da   :  { %1286 = vmatprep.subr.mxu0 %v6905_v10  ;;  %1357 = vmatprep.subr.mxu1 %v6440_v15  ;;  %10922 = vst [vmem:[#allocation103_spill] sm:$0xff] %v6921_v14  ;;  %v6925_v15 = vld [vmem:[#allocation12 + $0x60] sm:$0xff] }
 0x2db   :  { %1287 = vmatpush1.msra.mxu0 %v6909_v11  ;;  %1358 = vmatpush1.msra.mxu1 %v6443_v16  ;;  %10923 = vst [vmem:[#allocation104_spill] sm:$0xff] %v6925_v15  ;;  %v6929_v16 = vld [vmem:[#allocation12 + $0x48] sm:$0xff] }
 0x2dc   :  { %1288 = vmatprep.subr.mxu0 %v6913_v12  ;;  %1359 = vmatprep.subr.mxu1 %v6446_v17  ;;  %10924 = vst [vmem:[#allocation105_spill] sm:$0xff] %v6929_v16  ;;  %v10925_v17 = vld [vmem:[#allocation32_spill] sm:$0xff] }
 0x2dd   :  { %1289 = vmatpush1.msra.mxu0 %v6917_v13  ;;  %1360 = vmatpush1.msra.mxu1 %v6449_v18  ;;  %10926 = vst [vmem:[#allocation32_spill] sm:$0xff] %v6933_v37  ;;  %v10927_v18 = vld [vmem:[#allocation33_spill] sm:$0xff] }
 0x2de   :  { %1290 = vmatprep.subr.mxu0 %v6921_v14  ;;  %1361 = vmatprep.subr.mxu1 %v6452_v19  ;;  %10928 = vst [vmem:[#allocation33_spill] sm:$0xff] %v6937_v22  ;;  %v10929_v19 = vld [vmem:[#allocation34_spill] sm:$0xff] }
 0x2df   :  { %1291 = vmatpush1.msra.mxu0 %v6925_v15  ;;  %1362 = vmatpush1.msra.mxu1 %v6455_v21  ;;  %10930 = vst [vmem:[#allocation34_spill] sm:$0xff] %v6941_v47  ;;  %v10931_v21 = vld [vmem:[#allocation35_spill] sm:$0xff] }
 0x2e0   :  { %1292 = vmatprep.subr.mxu0 %v6929_v16  ;;  %1363 = vmatprep.subr.mxu1 %v10925_v17  ;;  %10932 = vst [vmem:[#allocation35_spill] sm:$0xff] %v6945_v46  ;;  %v10943_v17 = vld [vmem:[#allocation41_spill] sm:$0xff] }
 0x2e1   :  { %1293 = vmatpush1.msra.mxu0 %v6933_v37  ;;  %1364 = vmatpush1.msra.mxu1 %v10927_v18  ;;  %v6969_v18 = vld [vmem:[#allocation12 + $0x3a8] sm:$0xff] }
 0x2e2   :  { %1294 = vmatprep.subr.mxu0 %v6937_v22  ;;  %1365 = vmatprep.subr.mxu1 %v10929_v19  ;;  %10944 = vst [vmem:[#allocation41_spill] sm:$0xff] %v6969_v18  ;;  %v10945_v19 = vld [vmem:[#allocation42_spill] sm:$0xff] }
 0x2e3   :  { %1295 = vmatpush1.msra.mxu0 %v6941_v47  ;;  %1366 = vmatpush1.msra.mxu1 %v10931_v21  ;;  %v6973_v21 = vld [vmem:[#allocation12 + $0x3a0] sm:$0xff] }
 0x2e4   :  { %1296 = vmatprep.subr.mxu0 %v6945_v46  ;;  %1367 = vmatprep.subr.mxu1 %v10933_v6  ;;  %10946 = vst [vmem:[#allocation42_spill] sm:$0xff] %v6973_v21  ;;  %v10947_v6 = vld [vmem:[#allocation43_spill] sm:$0xff] }
 0x2e5   :  { %1297 = vmatpush1.msra.mxu0 %v6949_v44  ;;  %1368 = vmatpush1.msra.mxu1 %v10935_v29  ;;  %v6977_v29 = vld [vmem:[#allocation12 + $0x388] sm:$0xff] }
 0x2e6   :  { %1298 = vmatprep.subr.mxu0 %v6953_v50  ;;  %1369 = vmatprep.subr.mxu1 %v10937_v35  ;;  %10948 = vst [vmem:[#allocation43_spill] sm:$0xff] %v6977_v29  ;;  %v10949_v35 = vld [vmem:[#allocation44_spill] sm:$0xff] }
 0x2e7   :  { %1299 = vmatpush2.msra.mxu0 %v6957_v41  ;;  %1370 = vmatpush2.msra.mxu1 %v10939_v36  ;;  %v6981_v36 = vld [vmem:[#allocation12 + $0x380] sm:$0xff] }
 0x2e8   :  { %1300 = vmatprep.subr.mxu0 %v6961_v40  ;;  %1371 = vmatprep.subr.mxu1 %v10941_v42  ;;  %10950 = vst [vmem:[#allocation44_spill] sm:$0xff] %v6981_v36  ;;  %v10951_v42 = vld [vmem:[#allocation45_spill] sm:$0xff] }
 0x2e9   :  { %1301 = vmatpush2.msra.mxu0 %v6965_v32  ;;  %1372 = vmatpush2.msra.mxu1 %v10943_v17  ;;  %v6985_v17 = vld [vmem:[#allocation12 + $0x368] sm:$0xff] }
 0x2ea   :  { %1302 = vmatprep.subr.mxu0 %v6969_v18  ;;  %1373 = vmatprep.subr.mxu1 %v10945_v19  ;;  %10952 = vst [vmem:[#allocation45_spill] sm:$0xff] %v6985_v17  ;;  %v10953_v19 = vld [vmem:[#allocation46_spill] sm:$0xff] }
 0x2eb   :  { %1303 = vmatpush2.msra.mxu0 %v6973_v21  ;;  %1374 = vmatpush2.msra.mxu1 %v10947_v6  ;;  %10954 = vst [vmem:[#allocation46_spill] sm:$0xff] %v6989_v31  ;;  %v10955_v6 = vld [vmem:[#allocation47_spill] sm:$0xff] }
 0x2ec   :  { %1304 = vmatprep.subr.mxu0 %v6977_v29  ;;  %1375 = vmatprep.subr.mxu1 %v10949_v35  ;;  %10956 = vst [vmem:[#allocation47_spill] sm:$0xff] %v6993_v38  ;;  %v10957_v35 = vld [vmem:[#allocation48_spill] sm:$0xff] }
 0x2ed   :  { %1305 = vmatpush2.msra.mxu0 %v6981_v36  ;;  %1376 = vmatpush2.msra.mxu1 %v10951_v42  ;;  %10958 = vst [vmem:[#allocation48_spill] sm:$0xff] %v6997_v51  ;;  %v10959_v42 = vld [vmem:[#allocation49_spill] sm:$0xff] }
 0x2ee   :  { %1306 = vmatprep.subr.mxu0 %v6985_v17  ;;  %1377 = vmatprep.subr.mxu1 %v10953_v19  ;;  %10960 = vst [vmem:[#allocation49_spill] sm:$0xff] %v7001_v53  ;;  %v10961_v19 = vld [vmem:[#allocation50_spill] sm:$0xff] }
 0x2ef   :  { %1307 = vmatpush2.msra.mxu0 %v6989_v31  ;;  %1378 = vmatpush2.msra.mxu1 %v10955_v6  ;;  %10962 = vst [vmem:[#allocation50_spill] sm:$0xff] %v7005_v24  ;;  %v10963_v6 = vld [vmem:[#allocation51_spill] sm:$0xff] }
 0x2f0   :  { %1308 = vmatprep.subr.mxu0 %v6993_v38  ;;  %1379 = vmatprep.subr.mxu1 %v10957_v35  ;;  %10964 = vst [vmem:[#allocation51_spill] sm:$0xff] %v7009_v33  ;;  %v10965_v35 = vld [vmem:[#allocation52_spill] sm:$0xff] }
 0x2f1   :  { %1309 = vmatpush2.msra.mxu0 %v6997_v51  ;;  %1380 = vmatpush2.msra.mxu1 %v10959_v42  ;;  %10966 = vst [vmem:[#allocation52_spill] sm:$0xff] %v7013_v20  ;;  %v10967_v42 = vld [vmem:[#allocation53_spill] sm:$0xff] }
 0x2f2   :  { %1310 = vmatprep.subr.mxu0 %v7001_v53  ;;  %1381 = vmatprep.subr.mxu1 %v10961_v19  ;;  %10968 = vst [vmem:[#allocation53_spill] sm:$0xff] %v7017_v55  ;;  %v10969_v19 = vld [vmem:[#allocation54_spill] sm:$0xff] }
 0x2f3   :  { %1311 = vmatpush2.msra.mxu0 %v7005_v24  ;;  %1382 = vmatpush2.msra.mxu1 %v10963_v6  ;;  %10970 = vst [vmem:[#allocation54_spill] sm:$0xff] %v7021_v26  ;;  %v10971_v6 = vld [vmem:[#allocation55_spill] sm:$0xff] }
 0x2f4   :  { %1312 = vmatprep.subr.mxu0 %v7009_v33  ;;  %1383 = vmatprep.subr.mxu1 %v10965_v35  ;;  %10972 = vst [vmem:[#allocation55_spill] sm:$0xff] %v7025_v52  ;;  %v10973_v35 = vld [vmem:[#allocation56_spill] sm:$0xff] }
 0x2f5   :  { %1313 = vmatpush2.msra.mxu0 %v7013_v20  ;;  %1384 = vmatpush2.msra.mxu1 %v10967_v42  ;;  %10974 = vst [vmem:[#allocation56_spill] sm:$0xff] %v7029_v54  ;;  %v10975_v42 = vld [vmem:[#allocation57_spill] sm:$0xff] }
 0x2f6   :  { %1314 = vmatprep.subr.mxu0 %v7017_v55  ;;  %1385 = vmatprep.subr.mxu1 %v10969_v19  ;;  %10976 = vst [vmem:[#allocation57_spill] sm:$0xff] %v7033_v23  ;;  %v10977_v19 = vld [vmem:[#allocation58_spill] sm:$0xff] }
 0x2f7   :  { %1315 = vmatpush2.msra.mxu0 %v7021_v26  ;;  %1386 = vmatpush2.msra.mxu1 %v10971_v6  ;;  %10978 = vst [vmem:[#allocation58_spill] sm:$0xff] %v7037_v4  ;;  %v10979_v6 = vld [vmem:[#allocation59_spill] sm:$0xff] }
 0x2f8   :  { %1316 = vmatprep.subr.mxu0 %v7025_v52  ;;  %1387 = vmatprep.subr.mxu1 %v10973_v35  ;;  %v7041_v52 = vld [vmem:[#allocation12 + $0x288] sm:$0xff] }
 0x2f9   :  { %1317 = vmatpush2.msra.mxu0 %v7029_v54  ;;  %1388 = vmatpush2.msra.mxu1 %v10975_v42  ;;  %10980 = vst [vmem:[#allocation59_spill] sm:$0xff] %v7041_v52  ;;  %v10981_v35 = vld [vmem:[#allocation60_spill] sm:$0xff]  ;;  %v7045_v54 = vld [vmem:[#allocation12 + $0x280] sm:$0xff]  ;;  %v10983_v42 = vld [vmem:[#allocation61_spill] sm:$0xff] }
 0x2fa   :  { %1318 = vmatprep.subr.mxu0 %v7033_v23  ;;  %1389 = vmatprep.subr.mxu1 %v10977_v19  ;;  %10982 = vst [vmem:[#allocation60_spill] sm:$0xff] %v7045_v54  ;;  %v7049_v23 = vld [vmem:[#allocation12 + $0x268] sm:$0xff]  ;;  %v10985_v19 = vld [vmem:[#allocation62_spill] sm:$0xff] }
 0x2fb   :  { %1319 = vmatpush2.msra.mxu0 %v7037_v4  ;;  %1390 = vmatpush2.msra.mxu1 %v10979_v6  ;;  %10984 = vst [vmem:[#allocation61_spill] sm:$0xff] %v7049_v23  ;;  %v7053_v4 = vld [vmem:[#allocation12 + $0x260] sm:$0xff] }
 0x2fc   :  { %1320 = vmatprep.subr.mxu0 %v7041_v52  ;;  %1391 = vmatprep.subr.mxu1 %v10981_v35  ;;  %10986 = vst [vmem:[#allocation62_spill] sm:$0xff] %v7053_v4  ;;  %v10987_v6 = vld [vmem:[#allocation63_spill] sm:$0xff]  ;;  %v10989_v35 = vld [vmem:[#allocation64_spill] sm:$0xff] }
 0x2fd   :  { %1321 = vmatpush2.msra.mxu0 %v7045_v54  ;;  %1392 = vmatpush2.msra.mxu1 %v10983_v42  ;;  %v7057_v52 = vld [vmem:[#allocation12 + $0x248] sm:$0xff]  ;;  %v7061_v54 = vld [vmem:[#allocation12 + $0x240] sm:$0xff]  ;;  %v10991_v42 = vld [vmem:[#allocation65_spill] sm:$0xff] }
 0x2fe   :  { %1322 = vmatprep.subr.mxu0 %v7049_v23  ;;  %1393 = vmatprep.subr.mxu1 %v10985_v19  ;;  %10988 = vst [vmem:[#allocation63_spill] sm:$0xff] %v7057_v52  ;;  %10990 = vst [vmem:[#allocation64_spill] sm:$0xff] %v7061_v54  ;;  %v7065_v23 = vld [vmem:[#allocation12 + $0x228] sm:$0xff]  ;;  %v10993_v19 = vld [vmem:[#allocation66_spill] sm:$0xff] }
 0x2ff   :  { %1323 = vmatpush2.msra.mxu0 %v7053_v4  ;;  %1394 = vmatpush2.msra.mxu1 %v10987_v6  ;;  %10992 = vst [vmem:[#allocation65_spill] sm:$0xff] %v7065_v23  ;;  %v7069_v4 = vld [vmem:[#allocation12 + $0x220] sm:$0xff] }
 0x300   :  { %1324 = vmatprep.subr.mxu0 %v7057_v52  ;;  %1395 = vmatprep.subr.mxu1 %v10989_v35  ;;  %10994 = vst [vmem:[#allocation66_spill] sm:$0xff] %v7069_v4  ;;  %v10995_v6 = vld [vmem:[#allocation67_spill] sm:$0xff]  ;;  %v10997_v35 = vld [vmem:[#allocation68_spill] sm:$0xff] }
 0x301   :  { %1325 = vmatpush2.msra.mxu0 %v7061_v54  ;;  %1396 = vmatpush2.msra.mxu1 %v10991_v42  ;;  %v7073_v52 = vld [vmem:[#allocation12 + $0x208] sm:$0xff]  ;;  %v7077_v54 = vld [vmem:[#allocation12 + $0x200] sm:$0xff]  ;;  %v10999_v42 = vld [vmem:[#allocation69_spill] sm:$0xff] }
 0x302   :  { %1326 = vmatprep.subr.mxu0 %v7065_v23  ;;  %1397 = vmatprep.subr.mxu1 %v10993_v19  ;;  %10996 = vst [vmem:[#allocation67_spill] sm:$0xff] %v7073_v52  ;;  %10998 = vst [vmem:[#allocation68_spill] sm:$0xff] %v7077_v54  ;;  %v7081_v23 = vld [vmem:[#allocation12 + $0x1e8] sm:$0xff] }
 0x303   :  { %1327 = vmatpush2.msra.mxu0 %v7069_v4  ;;  %1398 = vmatpush2.msra.mxu1 %v10995_v6  ;;  %11000 = vst [vmem:[#allocation69_spill] sm:$0xff] %v7081_v23  ;;  %v11001_v19 = vld [vmem:[#allocation31_spill] sm:$0xff] }
 0x304   :  { %1328 = vmatprep.subr.mxu0 %v7073_v52  ;;  %1399 = vmatprep.subr.mxu1 %v10997_v35 }
 0x305   :  { %1329 = vmatpush2.msra.mxu0 %v7077_v54  ;;  %1400 = vmatpush2.msra.mxu1 %v10999_v42 }
 0x306   :  { %1438 = vmatprep.subr.mxu0 %v7081_v23  ;;  %1509 = vmatprep.subr.mxu1 %v11001_v19 }
 0x386   :  { %v1160_v4 = vpop.f32.mrf.mxu0  ;;  %v1231_v20 = vpop.f32.mrf.mxu1 }
 0x387   :  { %v1236_v6 = vadd.f32 %v1160_v4, %v6723_v49  ;;  %v1238_v54 = vadd.f32 %v1231_v20, %v6769_v30 }
 0x388   :  { %v1162_v26 = vpop.f32.mrf.mxu0  ;;  %v1233_v42 = vpop.f32.mrf.mxu1 }
 0x389   :  { %v4859_v55 = vmul.f32 -1.442695, %v1236_v6  ;;  %v1237_v52 = vadd.f32 %v1162_v26, %v6739_v43  ;;  %v4861_v33 = vmul.f32 -1.442695, %v1238_v54  ;;  %v1239_v24 = vadd.f32 %v1233_v42, %v6783_v45  ;;  %v7116_v42 = vld [vmem:[#allocation12 + $0x1b8] sm:$0xff] }
 0x38b   :  { %5029 = vpow2.f32 %v4859_v55  ;;  %v4860_v35 = vmul.f32 -1.442695, %v1237_v52 }
 0x38d   :  { %5031 = vpow2.f32 %v4860_v35  ;;  %v7112_v35 = vld [vmem:[#allocation12 + $0x1d0] sm:$0xff] }
 0x38e   :  { %5033 = vpow2.f32 %v4861_v33 }
 0x38f   :  { %5035 = vtanh.f32 %v1239_v24 }
 0x398   :  { %v5030_v23 = vpop.eup %5029 }
 0x399   :  { %v1249_v53 = vadd.f32 1.0, %v5030_v23 }
 0x39a   :  { %v5032_v19 = vpop.eup %5031 }
 0x39b   :  { %5037 = vrcp.f32 %v1249_v53  ;;  %v1250_v4 = vadd.f32 1.0, %v5032_v19  ;;  %v5034_v49 = vpop.eup %5033  ;;  %v7104_v53 = vld [vmem:[#allocation12 + $0x1f0] sm:$0xff] }
 0x39c   :  { %v5036_v26 = vpop.eup %5035  ;;  %v1251_v6 = vadd.f32 1.0, %v5034_v49  ;;  %v7120_v19 = vld [vmem:[#allocation12 + $0x1b0] sm:$0xff] }
 0x39d   :  { %5039 = vrcp.f32 %v1250_v4  ;;  %v7124_v4 = vld [vmem:[#allocation12 + $0x198] sm:$0xff]  ;;  %v7128_v49 = vld [vmem:[#allocation12 + $0x190] sm:$0xff] }
 0x39e   :  { %5041 = vrcp.f32 %v1251_v6  ;;  %v7148_v6 = vld [vmem:[#allocation12 + $0x138] sm:$0xff] }
 0x3a8   :  { %v5038_v43 = vpop.eup %5037 }
 0x3a9   :  { %v1260_v55 = vmul.f32 %v5038_v43, %v5036_v26  ;;  %v7132_v26 = vld [vmem:[#allocation12 + $0x178] sm:$0xff]  ;;  %v7136_v43 = vld [vmem:[#allocation12 + $0x170] sm:$0xff] }
 0x3aa   :  { %v5040_v52 = vpop.eup %5039 }
 0x3ab   :  { %v1259_v20 = vmul.f32 %v5040_v52, %v6809_v48  ;;  %v5042_v23 = vpop.eup %5041  ;;  %v7108_v48 = vld [vmem:[#allocation12 + $0x1d8] sm:$0xff]  ;;  %v7144_v52 = vld [vmem:[#allocation12 + $0x150] sm:$0xff] }
 0x3ad   :  { %v7090_v30 = vadd.f32 %v1260_v55, %v1259_v20  ;;  %v7140_v55 = vld [vmem:[#allocation12 + $0x158] sm:$0xff]  ;;  %v7152_v20 = vld [vmem:[#allocation12 + $0x130] sm:$0xff] }
 0x3af   :  { %5043 = vtanh.f32 %v7090_v30 }
 0x3bc   :  { %v5044_v54 = vpop.eup %5043 }
 0x3bd   :  { %v1263_v33 = vmul.f32 %v5044_v54, %v5042_v23  ;;  %v7156_v23 = vld [vmem:[#allocation12 + $0x118] sm:$0xff]  ;;  %v7160_v54 = vld [vmem:[#allocation12 + $0x110] sm:$0xff] }
 0x3be   :  { %11004 = vst [vmem:[#allocation107_spill] sm:$0xff] %v7160_v54 }
 0x3bf   :  { %v7094_v24 = vmul.f32 %v1263_v33, %v6817_v8  ;;  %v7097_v45 = vmul.f32 %v6814_v34, %v1263_v33  ;;  %v7164_v33 = vld [vmem:[#allocation12 + $0xf8] sm:$0xff] }
 0x3c0   :  { %11005 = vst [vmem:[#allocation108_spill] sm:$0xff] %v7164_v33 }
 0x3c1   :  { %11002 = vst [vmem:[#allocation31_spill] sm:$0xff] %v7094_v24  ;;  %11003 = vst [vmem:[#allocation106_spill] sm:$0xff] %v7097_v45  ;;  %1330 = vmatprep.mubr.f32.mxu0 %v7094_v24  ;;  %1401 = vmatprep.mubr.f32.mxu1 %v7094_v24  ;;  %v7172_v24 = vld [vmem:[#allocation12 + $0xd8] sm:$0xff] }
 0x3c2   :  { %1331 = vmatmul.mubr.f32.vlgmr.msra.gmra.mxu0 %v7097_v45  ;;  %1402 = vmatmul.mubr.f32.vlgmr.msra.gmra.mxu1 %v7097_v45  ;;  %v7168_v45 = vld [vmem:[#allocation12 + $0xf0] sm:$0xff]  ;;  %11007 = vst [vmem:[#allocation110_spill] sm:$0xff] %v7172_v24 }
 0x3c3   :  { %1439 = vmatpush1.msra.mxu0 %v6829_v39  ;;  %1510 = vmatpush1.msra.mxu1 %v7104_v53  ;;  %11006 = vst [vmem:[#allocation109_spill] sm:$0xff] %v7168_v45 }
 0x3c4   :  { %1440 = vmatprep.subr.mxu0 %v6833_v25  ;;  %1511 = vmatprep.subr.mxu1 %v7108_v48 }
 0x3c5   :  { %1441 = vmatpush1.msra.mxu0 %v6837_v27  ;;  %1512 = vmatpush1.msra.mxu1 %v7112_v35 }
 0x3c6   :  { %1442 = vmatprep.subr.mxu0 %v6841_v1  ;;  %1513 = vmatprep.subr.mxu1 %v7116_v42 }
 0x3c7   :  { %1443 = vmatpush1.msra.mxu0 %v6845_v28  ;;  %1514 = vmatpush1.msra.mxu1 %v7120_v19 }
 0x3c8   :  { %1444 = vmatprep.subr.mxu0 %v6849_v56  ;;  %1515 = vmatprep.subr.mxu1 %v7124_v4 }
 0x3c9   :  { %1445 = vmatpush1.msra.mxu0 %v6853_v57  ;;  %1516 = vmatpush1.msra.mxu1 %v7128_v49 }
 0x3ca   :  { %1446 = vmatprep.subr.mxu0 %v6857_v58  ;;  %1517 = vmatprep.subr.mxu1 %v7132_v26 }
 0x3cb   :  { %1447 = vmatpush1.msra.mxu0 %v6861_v59  ;;  %1518 = vmatpush1.msra.mxu1 %v7136_v43 }
 0x3cc   :  { %1448 = vmatprep.subr.mxu0 %v6865_v60  ;;  %1519 = vmatprep.subr.mxu1 %v7140_v55 }
 0x3cd   :  { %1449 = vmatpush1.msra.mxu0 %v6869_v61  ;;  %1520 = vmatpush1.msra.mxu1 %v7144_v52 }
 0x3ce   :  { %1450 = vmatprep.subr.mxu0 %v6873_v62  ;;  %1521 = vmatprep.subr.mxu1 %v7148_v6 }
 0x3cf   :  { %1451 = vmatpush1.msra.mxu0 %v6877_v63  ;;  %1522 = vmatpush1.msra.mxu1 %v7152_v20 }
 0x3d0   :  { %1452 = vmatprep.subr.mxu0 %v6881_v0  ;;  %1523 = vmatprep.subr.mxu1 %v7156_v23 }
 0x3d1   :  { %1453 = vmatpush1.msra.mxu0 %v6885_v2  ;;  %1524 = vmatpush1.msra.mxu1 %v7160_v54  ;;  %v7176_v54 = vld [vmem:[#allocation12 + $0xd0] sm:$0xff] }
 0x3d2   :  { %1454 = vmatprep.subr.mxu0 %v6889_v3  ;;  %1525 = vmatprep.subr.mxu1 %v7164_v33  ;;  %11008 = vst [vmem:[#allocation111_spill] sm:$0xff] %v7176_v54  ;;  %v7180_v33 = vld [vmem:[#allocation12 + $0xb8] sm:$0xff] }
 0x3d3   :  { %1455 = vmatpush1.msra.mxu0 %v6893_v5  ;;  %1526 = vmatpush1.msra.mxu1 %v7168_v45  ;;  %11009 = vst [vmem:[#allocation112_spill] sm:$0xff] %v7180_v33  ;;  %v7184_v45 = vld [vmem:[#allocation12 + $0xb0] sm:$0xff] }
 0x3d4   :  { %1456 = vmatprep.subr.mxu0 %v6897_v7  ;;  %1527 = vmatprep.subr.mxu1 %v7172_v24  ;;  %11010 = vst [vmem:[#allocation113_spill] sm:$0xff] %v7184_v45  ;;  %v7188_v24 = vld [vmem:[#allocation12 + $0x98] sm:$0xff] }
 0x3d5   :  { %1457 = vmatpush1.msra.mxu0 %v6901_v9  ;;  %1528 = vmatpush1.msra.mxu1 %v7176_v54  ;;  %11011 = vst [vmem:[#allocation114_spill] sm:$0xff] %v7188_v24  ;;  %v7192_v54 = vld [vmem:[#allocation12 + $0x90] sm:$0xff] }
 0x3d6   :  { %1458 = vmatprep.subr.mxu0 %v6905_v10  ;;  %1529 = vmatprep.subr.mxu1 %v7180_v33  ;;  %11012 = vst [vmem:[#allocation115_spill] sm:$0xff] %v7192_v54  ;;  %v7196_v33 = vld [vmem:[#allocation12 + $0x78] sm:$0xff] }
 0x3d7   :  { %1459 = vmatpush1.msra.mxu0 %v6909_v11  ;;  %1530 = vmatpush1.msra.mxu1 %v7184_v45  ;;  %11013 = vst [vmem:[#allocation116_spill] sm:$0xff] %v7196_v33  ;;  %v7200_v45 = vld [vmem:[#allocation12 + $0x70] sm:$0xff] }
 0x3d8   :  { %1460 = vmatprep.subr.mxu0 %v6913_v12  ;;  %1531 = vmatprep.subr.mxu1 %v7188_v24  ;;  %11014 = vst [vmem:[#allocation117_spill] sm:$0xff] %v7200_v45  ;;  %v7204_v24 = vld [vmem:[#allocation12 + $0x58] sm:$0xff] }
 0x3d9   :  { %1461 = vmatpush1.msra.mxu0 %v6917_v13  ;;  %1532 = vmatpush1.msra.mxu1 %v7192_v54  ;;  %11015 = vst [vmem:[#allocation118_spill] sm:$0xff] %v7204_v24  ;;  %v7208_v54 = vld [vmem:[#allocation12 + $0x50] sm:$0xff] }
 0x3da   :  { %1462 = vmatprep.subr.mxu0 %v6921_v14  ;;  %1533 = vmatprep.subr.mxu1 %v7196_v33  ;;  %11016 = vst [vmem:[#allocation119_spill] sm:$0xff] %v7208_v54  ;;  %v7212_v33 = vld [vmem:[#allocation12 + $0x38] sm:$0xff] }
 0x3db   :  { %1463 = vmatpush1.msra.mxu0 %v6925_v15  ;;  %1534 = vmatpush1.msra.mxu1 %v7200_v45  ;;  %11017 = vst [vmem:[#allocation120_spill] sm:$0xff] %v7212_v33  ;;  %v7216_v45 = vld [vmem:[#allocation12 + $0x30] sm:$0xff] }
 0x3dc   :  { %1464 = vmatprep.subr.mxu0 %v6929_v16  ;;  %1535 = vmatprep.subr.mxu1 %v7204_v24  ;;  %11018 = vst [vmem:[#allocation121_spill] sm:$0xff] %v7216_v45  ;;  %v7220_v24 = vld [vmem:[#allocation12 + $0x18] sm:$0xff] }
 0x3dd   :  { %1465 = vmatpush1.msra.mxu0 %v6933_v37  ;;  %1536 = vmatpush1.msra.mxu1 %v7208_v54  ;;  %11019 = vst [vmem:[#allocation122_spill] sm:$0xff] %v7220_v24  ;;  %v7224_v54 = vld [vmem:[#allocation12 + $0x10] sm:$0xff] }
 0x3de   :  { %1466 = vmatprep.subr.mxu0 %v6937_v22  ;;  %1537 = vmatprep.subr.mxu1 %v7212_v33  ;;  %11020 = vst [vmem:[#allocation123_spill] sm:$0xff] %v7224_v54  ;;  %v7228_v33 = vld [vmem:[#allocation12 + $0x3f8] sm:$0xff] }
 0x3df   :  { %1467 = vmatpush1.msra.mxu0 %v6941_v47  ;;  %1538 = vmatpush1.msra.mxu1 %v7216_v45  ;;  %11021 = vst [vmem:[#allocation124_spill] sm:$0xff] %v7228_v33  ;;  %v7232_v45 = vld [vmem:[#allocation12 + $0x3f0] sm:$0xff] }
 0x3e0   :  { %1468 = vmatprep.subr.mxu0 %v6945_v46  ;;  %1539 = vmatprep.subr.mxu1 %v7220_v24  ;;  %11022 = vst [vmem:[#allocation125_spill] sm:$0xff] %v7232_v45  ;;  %v7236_v24 = vld [vmem:[#allocation12 + $0x3d8] sm:$0xff] }
 0x3e1   :  { %1469 = vmatpush1.msra.mxu0 %v6949_v44  ;;  %1540 = vmatpush1.msra.mxu1 %v7224_v54  ;;  %11023 = vst [vmem:[#allocation126_spill] sm:$0xff] %v7236_v24  ;;  %v7240_v54 = vld [vmem:[#allocation12 + $0x3d0] sm:$0xff] }
 0x3e2   :  { %1470 = vmatprep.subr.mxu0 %v6953_v50  ;;  %1541 = vmatprep.subr.mxu1 %v7228_v33  ;;  %11024 = vst [vmem:[#allocation127_spill] sm:$0xff] %v7240_v54  ;;  %v7244_v33 = vld [vmem:[#allocation12 + $0x3b8] sm:$0xff] }
 0x3e3   :  { %1471 = vmatpush2.msra.mxu0 %v6957_v41  ;;  %1542 = vmatpush2.msra.mxu1 %v7232_v45  ;;  %11025 = vst [vmem:[#allocation128_spill] sm:$0xff] %v7244_v33  ;;  %v7248_v45 = vld [vmem:[#allocation12 + $0x3b0] sm:$0xff] }
 0x3e4   :  { %1472 = vmatprep.subr.mxu0 %v6961_v40  ;;  %1543 = vmatprep.subr.mxu1 %v7236_v24  ;;  %11026 = vst [vmem:[#allocation129_spill] sm:$0xff] %v7248_v45  ;;  %v7252_v24 = vld [vmem:[#allocation12 + $0x398] sm:$0xff] }
 0x3e5   :  { %1473 = vmatpush2.msra.mxu0 %v6965_v32  ;;  %1544 = vmatpush2.msra.mxu1 %v7240_v54  ;;  %11027 = vst [vmem:[#allocation130_spill] sm:$0xff] %v7252_v24  ;;  %v7256_v54 = vld [vmem:[#allocation12 + $0x390] sm:$0xff] }
 0x3e6   :  { %1474 = vmatprep.subr.mxu0 %v6969_v18  ;;  %1545 = vmatprep.subr.mxu1 %v7244_v33  ;;  %11028 = vst [vmem:[#allocation131_spill] sm:$0xff] %v7256_v54  ;;  %v7260_v33 = vld [vmem:[#allocation12 + $0x378] sm:$0xff]  ;;  %v11077_v32 = vld [vmem:[#allocation88_spill] sm:$0xff] }
 0x3e7   :  { %1475 = vmatpush2.msra.mxu0 %v6973_v21  ;;  %1546 = vmatpush2.msra.mxu1 %v7248_v45  ;;  %11029 = vst [vmem:[#allocation132_spill] sm:$0xff] %v7260_v33  ;;  %v7264_v45 = vld [vmem:[#allocation12 + $0x370] sm:$0xff]  ;;  %v11076_v21 = vld [vmem:[#allocation83_spill] sm:$0xff] }
 0x3e8   :  { %1476 = vmatprep.subr.mxu0 %v6977_v29  ;;  %1547 = vmatprep.subr.mxu1 %v7252_v24  ;;  %11030 = vst [vmem:[#allocation133_spill] sm:$0xff] %v7264_v45  ;;  %v7268_v24 = vld [vmem:[#allocation12 + $0x358] sm:$0xff] }
 0x3e9   :  { %1477 = vmatpush2.msra.mxu0 %v6981_v36  ;;  %1548 = vmatpush2.msra.mxu1 %v7256_v54  ;;  %11031 = vst [vmem:[#allocation134_spill] sm:$0xff] %v7268_v24  ;;  %v7272_v54 = vld [vmem:[#allocation12 + $0x350] sm:$0xff] }
 0x3ea   :  { %1478 = vmatprep.subr.mxu0 %v6985_v17  ;;  %1549 = vmatprep.subr.mxu1 %v7260_v33  ;;  %11032 = vst [vmem:[#allocation135_spill] sm:$0xff] %v7272_v54  ;;  %v11033_v17 = vld [vmem:[#allocation49_spill] sm:$0xff] }
 0x3eb   :  { %1479 = vmatpush2.msra.mxu0 %v6989_v31  ;;  %1550 = vmatpush2.msra.mxu1 %v7264_v45  ;;  %v7276_v33 = vld [vmem:[#allocation12 + $0x338] sm:$0xff]  ;;  %v7280_v45 = vld [vmem:[#allocation12 + $0x330] sm:$0xff] }
 0x3ec   :  { %1480 = vmatprep.subr.mxu0 %v6993_v38  ;;  %1551 = vmatprep.subr.mxu1 %v7268_v24  ;;  %11034 = vst [vmem:[#allocation136_spill] sm:$0xff] %v7276_v33  ;;  %v11035_v31 = vld [vmem:[#allocation50_spill] sm:$0xff]  ;;  %11036 = vst [vmem:[#allocation137_spill] sm:$0xff] %v7280_v45  ;;  %v11037_v38 = vld [vmem:[#allocation51_spill] sm:$0xff] }
 0x3ed   :  { %1481 = vmatpush2.msra.mxu0 %v6997_v51  ;;  %1552 = vmatpush2.msra.mxu1 %v7272_v54  ;;  %v7284_v24 = vld [vmem:[#allocation12 + $0x318] sm:$0xff]  ;;  %v11039_v51 = vld [vmem:[#allocation52_spill] sm:$0xff] }
 0x3ee   :  { %1482 = vmatprep.subr.mxu0 %v11033_v17  ;;  %1553 = vmatprep.subr.mxu1 %v7276_v33  ;;  %11038 = vst [vmem:[#allocation138_spill] sm:$0xff] %v7284_v24  ;;  %v7288_v54 = vld [vmem:[#allocation12 + $0x310] sm:$0xff]  ;;  %v7292_v33 = vld [vmem:[#allocation12 + $0x2f8] sm:$0xff] }
 0x3ef   :  { %1483 = vmatpush2.msra.mxu0 %v11035_v31  ;;  %1554 = vmatpush2.msra.mxu1 %v7280_v45  ;;  %11040 = vst [vmem:[#allocation139_spill] sm:$0xff] %v7288_v54  ;;  %v11041_v17 = vld [vmem:[#allocation53_spill] sm:$0xff]  ;;  %11042 = vst [vmem:[#allocation140_spill] sm:$0xff] %v7292_v33  ;;  %v11043_v31 = vld [vmem:[#allocation54_spill] sm:$0xff] }
 0x3f0   :  { %1484 = vmatprep.subr.mxu0 %v11037_v38  ;;  %1555 = vmatprep.subr.mxu1 %v7284_v24  ;;  %v7296_v45 = vld [vmem:[#allocation12 + $0x2f0] sm:$0xff]  ;;  %v11045_v38 = vld [vmem:[#allocation55_spill] sm:$0xff]  ;;  %v7300_v24 = vld [vmem:[#allocation12 + $0x2d8] sm:$0xff] }
 0x3f1   :  { %1485 = vmatpush2.msra.mxu0 %v11039_v51  ;;  %1556 = vmatpush2.msra.mxu1 %v7288_v54  ;;  %11044 = vst [vmem:[#allocation141_spill] sm:$0xff] %v7296_v45  ;;  %11046 = vst [vmem:[#allocation142_spill] sm:$0xff] %v7300_v24  ;;  %v11047_v51 = vld [vmem:[#allocation56_spill] sm:$0xff] }
 0x3f2   :  { %1486 = vmatprep.subr.mxu0 %v11041_v17  ;;  %1557 = vmatprep.subr.mxu1 %v7292_v33  ;;  %v7304_v54 = vld [vmem:[#allocation12 + $0x2d0] sm:$0xff]  ;;  %v7308_v33 = vld [vmem:[#allocation12 + $0x2b8] sm:$0xff] }
 0x3f3   :  { %1487 = vmatpush2.msra.mxu0 %v11043_v31  ;;  %1558 = vmatpush2.msra.mxu1 %v7296_v45  ;;  %11048 = vst [vmem:[#allocation143_spill] sm:$0xff] %v7304_v54  ;;  %v11049_v17 = vld [vmem:[#allocation57_spill] sm:$0xff]  ;;  %11050 = vst [vmem:[#allocation144_spill] sm:$0xff] %v7308_v33  ;;  %v11051_v31 = vld [vmem:[#allocation58_spill] sm:$0xff] }
 0x3f4   :  { %1488 = vmatprep.subr.mxu0 %v11045_v38  ;;  %1559 = vmatprep.subr.mxu1 %v7300_v24  ;;  %v7312_v45 = vld [vmem:[#allocation12 + $0x2b0] sm:$0xff]  ;;  %v11053_v38 = vld [vmem:[#allocation59_spill] sm:$0xff]  ;;  %v7316_v24 = vld [vmem:[#allocation12 + $0x298] sm:$0xff] }
 0x3f5   :  { %1489 = vmatpush2.msra.mxu0 %v11047_v51  ;;  %1560 = vmatpush2.msra.mxu1 %v7304_v54  ;;  %11052 = vst [vmem:[#allocation145_spill] sm:$0xff] %v7312_v45  ;;  %11054 = vst [vmem:[#allocation146_spill] sm:$0xff] %v7316_v24  ;;  %v11055_v51 = vld [vmem:[#allocation60_spill] sm:$0xff] }
 0x3f6   :  { %1490 = vmatprep.subr.mxu0 %v11049_v17  ;;  %1561 = vmatprep.subr.mxu1 %v7308_v33  ;;  %v7320_v54 = vld [vmem:[#allocation12 + $0x290] sm:$0xff]  ;;  %v7324_v33 = vld [vmem:[#allocation12 + $0x278] sm:$0xff] }
 0x3f7   :  { %1491 = vmatpush2.msra.mxu0 %v11051_v31  ;;  %1562 = vmatpush2.msra.mxu1 %v7312_v45  ;;  %11056 = vst [vmem:[#allocation147_spill] sm:$0xff] %v7320_v54  ;;  %v11057_v17 = vld [vmem:[#allocation61_spill] sm:$0xff]  ;;  %11058 = vst [vmem:[#allocation148_spill] sm:$0xff] %v7324_v33  ;;  %v11059_v31 = vld [vmem:[#allocation62_spill] sm:$0xff] }
 0x3f8   :  { %1492 = vmatprep.subr.mxu0 %v11053_v38  ;;  %1563 = vmatprep.subr.mxu1 %v7316_v24  ;;  %v7328_v45 = vld [vmem:[#allocation12 + $0x270] sm:$0xff]  ;;  %v11061_v38 = vld [vmem:[#allocation63_spill] sm:$0xff]  ;;  %v7332_v24 = vld [vmem:[#allocation12 + $0x258] sm:$0xff] }
 0x3f9   :  { %1493 = vmatpush2.msra.mxu0 %v11055_v51  ;;  %1564 = vmatpush2.msra.mxu1 %v7320_v54  ;;  %11060 = vst [vmem:[#allocation149_spill] sm:$0xff] %v7328_v45  ;;  %11062 = vst [vmem:[#allocation150_spill] sm:$0xff] %v7332_v24  ;;  %v11063_v51 = vld [vmem:[#allocation64_spill] sm:$0xff] }
 0x3fa   :  { %1494 = vmatprep.subr.mxu0 %v11057_v17  ;;  %1565 = vmatprep.subr.mxu1 %v7324_v33  ;;  %v7336_v54 = vld [vmem:[#allocation12 + $0x250] sm:$0xff]  ;;  %v7340_v33 = vld [vmem:[#allocation12 + $0x238] sm:$0xff] }
 0x3fb   :  { %1495 = vmatpush2.msra.mxu0 %v11059_v31  ;;  %1566 = vmatpush2.msra.mxu1 %v7328_v45  ;;  %11064 = vst [vmem:[#allocation151_spill] sm:$0xff] %v7336_v54  ;;  %v11065_v17 = vld [vmem:[#allocation65_spill] sm:$0xff]  ;;  %11066 = vst [vmem:[#allocation152_spill] sm:$0xff] %v7340_v33  ;;  %v11067_v31 = vld [vmem:[#allocation66_spill] sm:$0xff] }
 0x3fc   :  { %1496 = vmatprep.subr.mxu0 %v11061_v38  ;;  %1567 = vmatprep.subr.mxu1 %v7332_v24  ;;  %v7344_v45 = vld [vmem:[#allocation12 + $0x230] sm:$0xff]  ;;  %v11069_v38 = vld [vmem:[#allocation67_spill] sm:$0xff]  ;;  %v7348_v24 = vld [vmem:[#allocation12 + $0x218] sm:$0xff] }
 0x3fd   :  { %1497 = vmatpush2.msra.mxu0 %v11063_v51  ;;  %1568 = vmatpush2.msra.mxu1 %v7336_v54  ;;  %11068 = vst [vmem:[#allocation153_spill] sm:$0xff] %v7344_v45  ;;  %11070 = vst [vmem:[#allocation154_spill] sm:$0xff] %v7348_v24  ;;  %v11071_v51 = vld [vmem:[#allocation68_spill] sm:$0xff] }
 0x3fe   :  { %1498 = vmatprep.subr.mxu0 %v11065_v17  ;;  %1569 = vmatprep.subr.mxu1 %v7340_v33  ;;  %v7352_v54 = vld [vmem:[#allocation12 + $0x210] sm:$0xff]  ;;  %v7356_v33 = vld [vmem:[#allocation12 + $0x1f8] sm:$0xff] }
 0x3ff   :  { %1499 = vmatpush2.msra.mxu0 %v11067_v31  ;;  %1570 = vmatpush2.msra.mxu1 %v7344_v45  ;;  %11072 = vst [vmem:[#allocation155_spill] sm:$0xff] %v7352_v54  ;;  %v11073_v17 = vld [vmem:[#allocation69_spill] sm:$0xff]  ;;  %11074 = vst [vmem:[#allocation156_spill] sm:$0xff] %v7356_v33  ;;  %v11075_v45 = vld [vmem:[#allocation79_spill] sm:$0xff] }
 0x400   :  { %1500 = vmatprep.subr.mxu0 %v11069_v38  ;;  %1571 = vmatprep.subr.mxu1 %v7348_v24 }
 0x401   :  { %1501 = vmatpush2.msra.mxu0 %v11071_v51  ;;  %1572 = vmatpush2.msra.mxu1 %v7352_v54 }
 0x402   :  { %1610 = vmatprep.subr.mxu0 %v11073_v17  ;;  %1681 = vmatprep.subr.mxu1 %v7356_v33  ;;  %v11078_v17 = vld [vmem:[#allocation91_spill] sm:$0xff] }
 0x482   :  { %v1332_v31 = vpop.f32.mrf.mxu0  ;;  %v1403_v51 = vpop.f32.mrf.mxu1 }
 0x483   :  { %v1408_v36 = vadd.f32 %v1332_v31, %v11075_v45  ;;  %v1410_v40 = vadd.f32 %v1403_v51, %v11077_v32  ;;  %v11083_v45 = vld [vmem:[#allocation109_spill] sm:$0xff] }
 0x484   :  { %v1334_v38 = vpop.f32.mrf.mxu0  ;;  %v1405_v54 = vpop.f32.mrf.mxu1 }
 0x485   :  { %v4862_v29 = vmul.f32 -1.442695, %v1408_v36  ;;  %v1409_v18 = vadd.f32 %v1334_v38, %v11076_v21  ;;  %v4864_v41 = vmul.f32 -1.442695, %v1410_v40  ;;  %v1411_v50 = vadd.f32 %v1405_v54, %v11078_v17  ;;  %v11081_v17 = vld [vmem:[#allocation107_spill] sm:$0xff]  ;;  %v11084_v54 = vld [vmem:[#allocation110_spill] sm:$0xff] }
 0x487   :  { %5045 = vpow2.f32 %v4862_v29  ;;  %v4863_v24 = vmul.f32 -1.442695, %v1409_v18 }
 0x489   :  { %5047 = vpow2.f32 %v4863_v24 }
 0x48a   :  { %5049 = vpow2.f32 %v4864_v41 }
 0x48b   :  { %5051 = vtanh.f32 %v1411_v50 }
 0x494   :  { %v5046_v44 = vpop.eup %5045 }
 0x495   :  { %v1421_v46 = vadd.f32 1.0, %v5046_v44 }
 0x496   :  { %v5048_v33 = vpop.eup %5047 }
 0x497   :  { %5053 = vrcp.f32 %v1421_v46  ;;  %v1422_v31 = vadd.f32 1.0, %v5048_v33  ;;  %v5050_v36 = vpop.eup %5049  ;;  %v11085_v33 = vld [vmem:[#allocation111_spill] sm:$0xff] }
 0x498   :  { %v5052_v38 = vpop.eup %5051  ;;  %v1423_v24 = vadd.f32 1.0, %v5050_v36  ;;  %v11087_v36 = vld [vmem:[#allocation113_spill] sm:$0xff] }
 0x499   :  { %5055 = vrcp.f32 %v1422_v31  ;;  %v11086_v31 = vld [vmem:[#allocation112_spill] sm:$0xff] }
 0x49a   :  { %5057 = vrcp.f32 %v1423_v24  ;;  %v11092_v24 = vld [vmem:[#allocation118_spill] sm:$0xff] }
 0x4a4   :  { %v5054_v21 = vpop.eup %5053 }
 0x4a5   :  { %v1432_v18 = vmul.f32 %v5054_v21, %v5052_v38  ;;  %v11088_v38 = vld [vmem:[#allocation114_spill] sm:$0xff]  ;;  %v11089_v21 = vld [vmem:[#allocation115_spill] sm:$0xff] }
 0x4a6   :  { %v5056_v29 = vpop.eup %5055 }
 0x4a7   :  { %v1431_v51 = vmul.f32 %v5056_v29, %v7090_v30  ;;  %v5058_v44 = vpop.eup %5057  ;;  %v11082_v30 = vld [vmem:[#allocation108_spill] sm:$0xff]  ;;  %v11091_v29 = vld [vmem:[#allocation117_spill] sm:$0xff] }
 0x4a9   :  { %v7364_v32 = vadd.f32 %v1432_v18, %v1431_v51  ;;  %v11090_v18 = vld [vmem:[#allocation116_spill] sm:$0xff]  ;;  %v11093_v51 = vld [vmem:[#allocation119_spill] sm:$0xff] }
 0x4ab   :  { %5059 = vtanh.f32 %v7364_v32 }
 0x4b8   :  { %v5060_v41 = vpop.eup %5059 }
 0x4b9   :  { %v1435_v40 = vmul.f32 %v5060_v41, %v5058_v44  ;;  %v11094_v44 = vld [vmem:[#allocation120_spill] sm:$0xff]  ;;  %v11095_v41 = vld [vmem:[#allocation121_spill] sm:$0xff] }
 0x4bb   :  { %v7368_v46 = vmul.f32 %v1435_v40, %v6817_v8  ;;  %v7371_v50 = vmul.f32 %v6814_v34, %v1435_v40  ;;  %v11096_v40 = vld [vmem:[#allocation35_spill] sm:$0xff] }
 0x4bd   :  { %11079 = vst [vmem:[#allocation79_spill] sm:$0xff] %v7368_v46  ;;  %11080 = vst [vmem:[#allocation83_spill] sm:$0xff] %v7371_v50  ;;  %1502 = vmatprep.mubr.f32.mxu0 %v7368_v46  ;;  %1573 = vmatprep.mubr.f32.mxu1 %v7368_v46  ;;  %v11098_v46 = vld [vmem:[#allocation36_spill] sm:$0xff] }
 0x4be   :  { %1503 = vmatmul.mubr.f32.vlgmr.msra.gmra.mxu0 %v7371_v50  ;;  %1574 = vmatmul.mubr.f32.vlgmr.msra.gmra.mxu1 %v7371_v50  ;;  %v11097_v50 = vld [vmem:[#allocation122_spill] sm:$0xff] }
 0x4bf   :  { %1611 = vmatpush1.msra.mxu0 %v6829_v39  ;;  %1682 = vmatpush1.msra.mxu1 %v7104_v53 }
 0x4c0   :  { %1612 = vmatprep.subr.mxu0 %v6833_v25  ;;  %1683 = vmatprep.subr.mxu1 %v7108_v48 }
 0x4c1   :  { %1613 = vmatpush1.msra.mxu0 %v6837_v27  ;;  %1684 = vmatpush1.msra.mxu1 %v7112_v35 }
 0x4c2   :  { %1614 = vmatprep.subr.mxu0 %v6841_v1  ;;  %1685 = vmatprep.subr.mxu1 %v7116_v42 }
 0x4c3   :  { %1615 = vmatpush1.msra.mxu0 %v6845_v28  ;;  %1686 = vmatpush1.msra.mxu1 %v7120_v19 }
 0x4c4   :  { %1616 = vmatprep.subr.mxu0 %v6849_v56  ;;  %1687 = vmatprep.subr.mxu1 %v7124_v4 }
 0x4c5   :  { %1617 = vmatpush1.msra.mxu0 %v6853_v57  ;;  %1688 = vmatpush1.msra.mxu1 %v7128_v49 }
 0x4c6   :  { %1618 = vmatprep.subr.mxu0 %v6857_v58  ;;  %1689 = vmatprep.subr.mxu1 %v7132_v26 }
 0x4c7   :  { %1619 = vmatpush1.msra.mxu0 %v6861_v59  ;;  %1690 = vmatpush1.msra.mxu1 %v7136_v43 }
 0x4c8   :  { %1620 = vmatprep.subr.mxu0 %v6865_v60  ;;  %1691 = vmatprep.subr.mxu1 %v7140_v55 }
 0x4c9   :  { %1621 = vmatpush1.msra.mxu0 %v6869_v61  ;;  %1692 = vmatpush1.msra.mxu1 %v7144_v52 }
 0x4ca   :  { %1622 = vmatprep.subr.mxu0 %v6873_v62  ;;  %1693 = vmatprep.subr.mxu1 %v7148_v6 }
 0x4cb   :  { %1623 = vmatpush1.msra.mxu0 %v6877_v63  ;;  %1694 = vmatpush1.msra.mxu1 %v7152_v20 }
 0x4cc   :  { %1624 = vmatprep.subr.mxu0 %v6881_v0  ;;  %1695 = vmatprep.subr.mxu1 %v7156_v23 }
 0x4cd   :  { %1625 = vmatpush1.msra.mxu0 %v6885_v2  ;;  %1696 = vmatpush1.msra.mxu1 %v11081_v17 }
 0x4ce   :  { %1626 = vmatprep.subr.mxu0 %v6889_v3  ;;  %1697 = vmatprep.subr.mxu1 %v11082_v30 }
 0x4cf   :  { %1627 = vmatpush1.msra.mxu0 %v6893_v5  ;;  %1698 = vmatpush1.msra.mxu1 %v11083_v45 }
 0x4d0   :  { %1628 = vmatprep.subr.mxu0 %v6897_v7  ;;  %1699 = vmatprep.subr.mxu1 %v11084_v54 }
 0x4d1   :  { %1629 = vmatpush1.msra.mxu0 %v6901_v9  ;;  %1700 = vmatpush1.msra.mxu1 %v11085_v33 }
 0x4d2   :  { %1630 = vmatprep.subr.mxu0 %v6905_v10  ;;  %1701 = vmatprep.subr.mxu1 %v11086_v31 }
 0x4d3   :  { %1631 = vmatpush1.msra.mxu0 %v6909_v11  ;;  %1702 = vmatpush1.msra.mxu1 %v11087_v36 }
 0x4d4   :  { %1632 = vmatprep.subr.mxu0 %v6913_v12  ;;  %1703 = vmatprep.subr.mxu1 %v11088_v38 }
 0x4d5   :  { %1633 = vmatpush1.msra.mxu0 %v6917_v13  ;;  %1704 = vmatpush1.msra.mxu1 %v11089_v21 }
 0x4d6   :  { %1634 = vmatprep.subr.mxu0 %v6921_v14  ;;  %1705 = vmatprep.subr.mxu1 %v11090_v18 }
 0x4d7   :  { %1635 = vmatpush1.msra.mxu0 %v6925_v15  ;;  %1706 = vmatpush1.msra.mxu1 %v11091_v29 }
 0x4d8   :  { %1636 = vmatprep.subr.mxu0 %v6929_v16  ;;  %1707 = vmatprep.subr.mxu1 %v11092_v24  ;;  %v11099_v16 = vld [vmem:[#allocation123_spill] sm:$0xff]  ;;  %v11100_v24 = vld [vmem:[#allocation37_spill] sm:$0xff] }
 0x4d9   :  { %1637 = vmatpush1.msra.mxu0 %v6933_v37  ;;  %1708 = vmatpush1.msra.mxu1 %v11093_v51  ;;  %v11101_v37 = vld [vmem:[#allocation124_spill] sm:$0xff]  ;;  %v11102_v51 = vld [vmem:[#allocation38_spill] sm:$0xff] }
 0x4da   :  { %1638 = vmatprep.subr.mxu0 %v6937_v22  ;;  %1709 = vmatprep.subr.mxu1 %v11094_v44  ;;  %v11103_v22 = vld [vmem:[#allocation125_spill] sm:$0xff]  ;;  %v11104_v44 = vld [vmem:[#allocation39_spill] sm:$0xff] }
 0x4db   :  { %1639 = vmatpush1.msra.mxu0 %v6941_v47  ;;  %1710 = vmatpush1.msra.mxu1 %v11095_v41  ;;  %v11105_v47 = vld [vmem:[#allocation126_spill] sm:$0xff]  ;;  %v11106_v41 = vld [vmem:[#allocation40_spill] sm:$0xff] }
 0x4dc   :  { %1640 = vmatprep.subr.mxu0 %v11096_v40  ;;  %1711 = vmatprep.subr.mxu1 %v11097_v50  ;;  %v11107_v40 = vld [vmem:[#allocation127_spill] sm:$0xff]  ;;  %v11108_v50 = vld [vmem:[#allocation41_spill] sm:$0xff] }
 0x4dd   :  { %1641 = vmatpush1.msra.mxu0 %v11098_v46  ;;  %1712 = vmatpush1.msra.mxu1 %v11099_v16  ;;  %v11109_v46 = vld [vmem:[#allocation128_spill] sm:$0xff]  ;;  %v11110_v16 = vld [vmem:[#allocation42_spill] sm:$0xff] }
 0x4de   :  { %1642 = vmatprep.subr.mxu0 %v11100_v24  ;;  %1713 = vmatprep.subr.mxu1 %v11101_v37  ;;  %v11111_v24 = vld [vmem:[#allocation129_spill] sm:$0xff]  ;;  %v11112_v37 = vld [vmem:[#allocation43_spill] sm:$0xff] }
 0x4df   :  { %1643 = vmatpush2.msra.mxu0 %v11102_v51  ;;  %1714 = vmatpush2.msra.mxu1 %v11103_v22  ;;  %v11113_v51 = vld [vmem:[#allocation130_spill] sm:$0xff]  ;;  %v11114_v22 = vld [vmem:[#allocation44_spill] sm:$0xff] }
 0x4e0   :  { %1644 = vmatprep.subr.mxu0 %v11104_v44  ;;  %1715 = vmatprep.subr.mxu1 %v11105_v47  ;;  %v11115_v44 = vld [vmem:[#allocation131_spill] sm:$0xff]  ;;  %v11116_v47 = vld [vmem:[#allocation45_spill] sm:$0xff] }
 0x4e1   :  { %1645 = vmatpush2.msra.mxu0 %v11106_v41  ;;  %1716 = vmatpush2.msra.mxu1 %v11107_v40  ;;  %v11117_v41 = vld [vmem:[#allocation132_spill] sm:$0xff]  ;;  %v11118_v40 = vld [vmem:[#allocation46_spill] sm:$0xff] }
 0x4e2   :  { %1646 = vmatprep.subr.mxu0 %v11108_v50  ;;  %1717 = vmatprep.subr.mxu1 %v11109_v46  ;;  %v11119_v50 = vld [vmem:[#allocation133_spill] sm:$0xff]  ;;  %v11120_v46 = vld [vmem:[#allocation47_spill] sm:$0xff] }
 0x4e3   :  { %1647 = vmatpush2.msra.mxu0 %v11110_v16  ;;  %1718 = vmatpush2.msra.mxu1 %v11111_v24  ;;  %v11121_v16 = vld [vmem:[#allocation134_spill] sm:$0xff]  ;;  %v11122_v24 = vld [vmem:[#allocation48_spill] sm:$0xff] }
 0x4e4   :  { %1648 = vmatprep.subr.mxu0 %v11112_v37  ;;  %1719 = vmatprep.subr.mxu1 %v11113_v51  ;;  %v11123_v37 = vld [vmem:[#allocation135_spill] sm:$0xff]  ;;  %v11124_v51 = vld [vmem:[#allocation49_spill] sm:$0xff] }
 0x4e5   :  { %1649 = vmatpush2.msra.mxu0 %v11114_v22  ;;  %1720 = vmatpush2.msra.mxu1 %v11115_v44  ;;  %v11125_v22 = vld [vmem:[#allocation136_spill] sm:$0xff]  ;;  %v11126_v44 = vld [vmem:[#allocation50_spill] sm:$0xff] }
 0x4e6   :  { %1650 = vmatprep.subr.mxu0 %v11116_v47  ;;  %1721 = vmatprep.subr.mxu1 %v11117_v41  ;;  %v11127_v47 = vld [vmem:[#allocation137_spill] sm:$0xff]  ;;  %v11128_v41 = vld [vmem:[#allocation51_spill] sm:$0xff] }
 0x4e7   :  { %1651 = vmatpush2.msra.mxu0 %v11118_v40  ;;  %1722 = vmatpush2.msra.mxu1 %v11119_v50  ;;  %v11129_v40 = vld [vmem:[#allocation138_spill] sm:$0xff]  ;;  %v11130_v50 = vld [vmem:[#allocation52_spill] sm:$0xff] }
 0x4e8   :  { %1652 = vmatprep.subr.mxu0 %v11120_v46  ;;  %1723 = vmatprep.subr.mxu1 %v11121_v16  ;;  %v11131_v46 = vld [vmem:[#allocation139_spill] sm:$0xff]  ;;  %v11132_v16 = vld [vmem:[#allocation53_spill] sm:$0xff] }
 0x4e9   :  { %1653 = vmatpush2.msra.mxu0 %v11122_v24  ;;  %1724 = vmatpush2.msra.mxu1 %v11123_v37  ;;  %v11133_v24 = vld [vmem:[#allocation140_spill] sm:$0xff]  ;;  %v11134_v37 = vld [vmem:[#allocation54_spill] sm:$0xff] }
 0x4ea   :  { %1654 = vmatprep.subr.mxu0 %v11124_v51  ;;  %1725 = vmatprep.subr.mxu1 %v11125_v22  ;;  %v11135_v51 = vld [vmem:[#allocation141_spill] sm:$0xff]  ;;  %v11136_v22 = vld [vmem:[#allocation55_spill] sm:$0xff] }
 0x4eb   :  { %1655 = vmatpush2.msra.mxu0 %v11126_v44  ;;  %1726 = vmatpush2.msra.mxu1 %v11127_v47  ;;  %v11137_v44 = vld [vmem:[#allocation142_spill] sm:$0xff]  ;;  %v11138_v47 = vld [vmem:[#allocation56_spill] sm:$0xff] }
 0x4ec   :  { %1656 = vmatprep.subr.mxu0 %v11128_v41  ;;  %1727 = vmatprep.subr.mxu1 %v11129_v40  ;;  %v11139_v41 = vld [vmem:[#allocation143_spill] sm:$0xff]  ;;  %v11140_v40 = vld [vmem:[#allocation57_spill] sm:$0xff] }
 0x4ed   :  { %1657 = vmatpush2.msra.mxu0 %v11130_v50  ;;  %1728 = vmatpush2.msra.mxu1 %v11131_v46  ;;  %v11141_v50 = vld [vmem:[#allocation144_spill] sm:$0xff]  ;;  %v11142_v46 = vld [vmem:[#allocation58_spill] sm:$0xff] }
 0x4ee   :  { %1658 = vmatprep.subr.mxu0 %v11132_v16  ;;  %1729 = vmatprep.subr.mxu1 %v11133_v24  ;;  %v11143_v16 = vld [vmem:[#allocation145_spill] sm:$0xff]  ;;  %v11144_v24 = vld [vmem:[#allocation59_spill] sm:$0xff] }
 0x4ef   :  { %1659 = vmatpush2.msra.mxu0 %v11134_v37  ;;  %1730 = vmatpush2.msra.mxu1 %v11135_v51  ;;  %v11145_v37 = vld [vmem:[#allocation146_spill] sm:$0xff]  ;;  %v11146_v51 = vld [vmem:[#allocation60_spill] sm:$0xff] }
 0x4f0   :  { %1660 = vmatprep.subr.mxu0 %v11136_v22  ;;  %1731 = vmatprep.subr.mxu1 %v11137_v44  ;;  %v11147_v22 = vld [vmem:[#allocation147_spill] sm:$0xff]  ;;  %v11148_v44 = vld [vmem:[#allocation61_spill] sm:$0xff] }
 0x4f1   :  { %1661 = vmatpush2.msra.mxu0 %v11138_v47  ;;  %1732 = vmatpush2.msra.mxu1 %v11139_v41  ;;  %v11149_v47 = vld [vmem:[#allocation148_spill] sm:$0xff]  ;;  %v11150_v41 = vld [vmem:[#allocation62_spill] sm:$0xff] }
 0x4f2   :  { %1662 = vmatprep.subr.mxu0 %v11140_v40  ;;  %1733 = vmatprep.subr.mxu1 %v11141_v50  ;;  %v11151_v40 = vld [vmem:[#allocation149_spill] sm:$0xff]  ;;  %v11152_v50 = vld [vmem:[#allocation63_spill] sm:$0xff] }
 0x4f3   :  { %1663 = vmatpush2.msra.mxu0 %v11142_v46  ;;  %1734 = vmatpush2.msra.mxu1 %v11143_v16  ;;  %v11153_v46 = vld [vmem:[#allocation150_spill] sm:$0xff]  ;;  %v11154_v16 = vld [vmem:[#allocation64_spill] sm:$0xff] }
 0x4f4   :  { %1664 = vmatprep.subr.mxu0 %v11144_v24  ;;  %1735 = vmatprep.subr.mxu1 %v11145_v37  ;;  %v11155_v24 = vld [vmem:[#allocation151_spill] sm:$0xff]  ;;  %v11156_v37 = vld [vmem:[#allocation65_spill] sm:$0xff] }
 0x4f5   :  { %1665 = vmatpush2.msra.mxu0 %v11146_v51  ;;  %1736 = vmatpush2.msra.mxu1 %v11147_v22  ;;  %v11157_v51 = vld [vmem:[#allocation152_spill] sm:$0xff]  ;;  %v11158_v22 = vld [vmem:[#allocation66_spill] sm:$0xff] }
 0x4f6   :  { %1666 = vmatprep.subr.mxu0 %v11148_v44  ;;  %1737 = vmatprep.subr.mxu1 %v11149_v47  ;;  %v11159_v44 = vld [vmem:[#allocation153_spill] sm:$0xff]  ;;  %v11160_v47 = vld [vmem:[#allocation67_spill] sm:$0xff] }
 0x4f7   :  { %1667 = vmatpush2.msra.mxu0 %v11150_v41  ;;  %1738 = vmatpush2.msra.mxu1 %v11151_v40  ;;  %v11161_v41 = vld [vmem:[#allocation154_spill] sm:$0xff]  ;;  %v11162_v40 = vld [vmem:[#allocation68_spill] sm:$0xff] }
 0x4f8   :  { %1668 = vmatprep.subr.mxu0 %v11152_v50  ;;  %1739 = vmatprep.subr.mxu1 %v11153_v46  ;;  %v11163_v50 = vld [vmem:[#allocation155_spill] sm:$0xff]  ;;  %v11164_v46 = vld [vmem:[#allocation69_spill] sm:$0xff] }
 0x4f9   :  { %1669 = vmatpush2.msra.mxu0 %v11154_v16  ;;  %1740 = vmatpush2.msra.mxu1 %v11155_v24  ;;  %v11165_v16 = vld [vmem:[#allocation156_spill] sm:$0xff] }
 0x4fa   :  { %1670 = vmatprep.subr.mxu0 %v11156_v37  ;;  %1741 = vmatprep.subr.mxu1 %v11157_v51  ;;  %v11166_v37 = vld [vmem:[#allocation84_spill] sm:$0xff] }
 0x4fb   :  { %1671 = vmatpush2.msra.mxu0 %v11158_v22  ;;  %1742 = vmatpush2.msra.mxu1 %v11159_v44  ;;  %v11167_v22 = vld [vmem:[#allocation85_spill] sm:$0xff] }
 0x4fc   :  { %1672 = vmatprep.subr.mxu0 %v11160_v47  ;;  %1743 = vmatprep.subr.mxu1 %v11161_v41  ;;  %v11168_v41 = vld [vmem:[#allocation92_spill] sm:$0xff] }
 0x4fd   :  { %1673 = vmatpush2.msra.mxu0 %v11162_v40  ;;  %1744 = vmatpush2.msra.mxu1 %v11163_v50  ;;  %v11169_v50 = vld [vmem:[#allocation95_spill] sm:$0xff] }
 0x4fe   :  { %1782 = vmatprep.subr.mxu0 %v11164_v46  ;;  %1853 = vmatprep.subr.mxu1 %v11165_v16 }
 0x57e   :  { %v1504_v24 = vpop.f32.mrf.mxu0  ;;  %v1575_v47 = vpop.f32.mrf.mxu1 }
 0x57f   :  { %v1580_v29 = vadd.f32 %v1504_v24, %v11166_v37  ;;  %v1582_v14 = vadd.f32 %v1575_v47, %v11168_v41  ;;  %v11197_v41 = vld [vmem:[#allocation40_spill] sm:$0xff] }
 0x580   :  { %v1506_v51 = vpop.f32.mrf.mxu0  ;;  %v1577_v40 = vpop.f32.mrf.mxu1 }
 0x581   :  { %v4865_v15 = vmul.f32 -1.442695, %v1580_v29  ;;  %v1581_v18 = vadd.f32 %v1506_v51, %v11167_v22  ;;  %v4867_v21 = vmul.f32 -1.442695, %v1582_v14  ;;  %v1583_v13 = vadd.f32 %v1577_v40, %v11169_v50  ;;  %v11198_v40 = vld [vmem:[#allocation127_spill] sm:$0xff] }
 0x583   :  { %5061 = vpow2.f32 %v4865_v15  ;;  %v4866_v44 = vmul.f32 -1.442695, %v1581_v18 }
 0x585   :  { %5063 = vpow2.f32 %v4866_v44 }
 0x586   :  { %5065 = vpow2.f32 %v4867_v21  ;;  %v11196_v21 = vld [vmem:[#allocation126_spill] sm:$0xff] }
 0x587   :  { %5067 = vtanh.f32 %v1583_v13 }
 0x590   :  { %v5062_v46 = vpop.eup %5061 }
 0x591   :  { %v1593_v38 = vadd.f32 1.0, %v5062_v46 }
 0x592   :  { %v5064_v16 = vpop.eup %5063 }
 0x593   :  { %5069 = vrcp.f32 %v1593_v38  ;;  %v1594_v37 = vadd.f32 1.0, %v5064_v16  ;;  %v5066_v29 = vpop.eup %5065  ;;  %v11195_v38 = vld [vmem:[#allocation39_spill] sm:$0xff] }
 0x594   :  { %v5068_v22 = vpop.eup %5067  ;;  %v1595_v51 = vadd.f32 1.0, %v5066_v29  ;;  %v11200_v29 = vld [vmem:[#allocation128_spill] sm:$0xff] }
 0x595   :  { %5071 = vrcp.f32 %v1594_v37  ;;  %v11199_v37 = vld [vmem:[#allocation41_spill] sm:$0xff] }
 0x596   :  { %5073 = vrcp.f32 %v1595_v51  ;;  %v11205_v51 = vld [vmem:[#allocation44_spill] sm:$0xff] }
 0x5a0   :  { %v5070_v15 = vpop.eup %5069 }
 0x5a1   :  { %v1604_v18 = vmul.f32 %v5070_v15, %v5068_v22  ;;  %v11201_v22 = vld [vmem:[#allocation42_spill] sm:$0xff]  ;;  %v11202_v15 = vld [vmem:[#allocation129_spill] sm:$0xff] }
 0x5a2   :  { %v5072_v24 = vpop.eup %5071 }
 0x5a3   :  { %v1603_v47 = vmul.f32 %v5072_v24, %v7364_v32  ;;  %v5074_v14 = vpop.eup %5073  ;;  %v11194_v32 = vld [vmem:[#allocation125_spill] sm:$0xff]  ;;  %v11204_v24 = vld [vmem:[#allocation130_spill] sm:$0xff] }
 0x5a5   :  { %v7510_v44 = vadd.f32 %v1604_v18, %v1603_v47  ;;  %v11203_v18 = vld [vmem:[#allocation43_spill] sm:$0xff] }
 0x5a6   :  { %v11206_v47 = vld [vmem:[#allocation131_spill] sm:$0xff] }
 0x5a7   :  { %5075 = vtanh.f32 %v7510_v44 }
 0x5b4   :  { %v5076_v46 = vpop.eup %5075 }
 0x5b5   :  { %v1607_v50 = vmul.f32 %v5076_v46, %v5074_v14  ;;  %v11207_v14 = vld [vmem:[#allocation45_spill] sm:$0xff]  ;;  %v11208_v46 = vld [vmem:[#allocation132_spill] sm:$0xff] }
 0x5b7   :  { %v7514_v13 = vmul.f32 %v1607_v50, %v6817_v8  ;;  %v7517_v16 = vmul.f32 %v6814_v34, %v1607_v50  ;;  %v11209_v50 = vld [vmem:[#allocation46_spill] sm:$0xff] }
 0x5b9   :  { %11170 = vst [vmem:[#allocation88_spill] sm:$0xff] %v7514_v13  ;;  %11171 = vst [vmem:[#allocation91_spill] sm:$0xff] %v7517_v16  ;;  %1674 = vmatprep.mubr.f32.mxu0 %v7514_v13  ;;  %1745 = vmatprep.mubr.f32.mxu1 %v7514_v13  ;;  %v11239_v13 = vld [vmem:[#allocation61_spill] sm:$0xff] }
 0x5ba   :  { %1675 = vmatmul.mubr.f32.vlgmr.msra.gmra.mxu0 %v7517_v16  ;;  %1746 = vmatmul.mubr.f32.vlgmr.msra.gmra.mxu1 %v7517_v16  ;;  %v11237_v16 = vld [vmem:[#allocation60_spill] sm:$0xff] }
 0x5bb   :  { %1783 = vmatpush1.msra.mxu0 %v6829_v39  ;;  %1854 = vmatpush1.msra.mxu1 %v7104_v53  ;;  %v11172_v39 = vld [vmem:[#allocation114_spill] sm:$0xff] }
 0x5bc   :  { %1784 = vmatprep.subr.mxu0 %v6833_v25  ;;  %1855 = vmatprep.subr.mxu1 %v7108_v48  ;;  %v11173_v25 = vld [vmem:[#allocation102_spill] sm:$0xff] }
 0x5bd   :  { %1785 = vmatpush1.msra.mxu0 %v6837_v27  ;;  %1856 = vmatpush1.msra.mxu1 %v7112_v35  ;;  %v11174_v27 = vld [vmem:[#allocation115_spill] sm:$0xff] }
 0x5be   :  { %1786 = vmatprep.subr.mxu0 %v6841_v1  ;;  %1857 = vmatprep.subr.mxu1 %v7116_v42  ;;  %v11175_v1 = vld [vmem:[#allocation103_spill] sm:$0xff] }
 0x5bf   :  { %1787 = vmatpush1.msra.mxu0 %v6845_v28  ;;  %1858 = vmatpush1.msra.mxu1 %v7120_v19  ;;  %v11176_v28 = vld [vmem:[#allocation116_spill] sm:$0xff] }
 0x5c0   :  { %1788 = vmatprep.subr.mxu0 %v6849_v56  ;;  %1859 = vmatprep.subr.mxu1 %v7124_v4  ;;  %v11177_v56 = vld [vmem:[#allocation104_spill] sm:$0xff] }
 0x5c1   :  { %1789 = vmatpush1.msra.mxu0 %v6853_v57  ;;  %1860 = vmatpush1.msra.mxu1 %v7128_v49  ;;  %v11178_v57 = vld [vmem:[#allocation117_spill] sm:$0xff] }
 0x5c2   :  { %1790 = vmatprep.subr.mxu0 %v6857_v58  ;;  %1861 = vmatprep.subr.mxu1 %v7132_v26  ;;  %v11179_v58 = vld [vmem:[#allocation105_spill] sm:$0xff] }
 0x5c3   :  { %1791 = vmatpush1.msra.mxu0 %v6861_v59  ;;  %1862 = vmatpush1.msra.mxu1 %v7136_v43  ;;  %v11180_v59 = vld [vmem:[#allocation118_spill] sm:$0xff] }
 0x5c4   :  { %1792 = vmatprep.subr.mxu0 %v6865_v60  ;;  %1863 = vmatprep.subr.mxu1 %v7140_v55  ;;  %v11181_v60 = vld [vmem:[#allocation32_spill] sm:$0xff] }
 0x5c5   :  { %1793 = vmatpush1.msra.mxu0 %v6869_v61  ;;  %1864 = vmatpush1.msra.mxu1 %v7144_v52  ;;  %v11182_v61 = vld [vmem:[#allocation119_spill] sm:$0xff] }
 0x5c6   :  { %1794 = vmatprep.subr.mxu0 %v6873_v62  ;;  %1865 = vmatprep.subr.mxu1 %v7148_v6  ;;  %v11183_v62 = vld [vmem:[#allocation33_spill] sm:$0xff] }
 0x5c7   :  { %1795 = vmatpush1.msra.mxu0 %v6877_v63  ;;  %1866 = vmatpush1.msra.mxu1 %v7152_v20  ;;  %v11184_v63 = vld [vmem:[#allocation120_spill] sm:$0xff] }
 0x5c8   :  { %1796 = vmatprep.subr.mxu0 %v6881_v0  ;;  %1867 = vmatprep.subr.mxu1 %v7156_v23  ;;  %v11185_v0 = vld [vmem:[#allocation34_spill] sm:$0xff] }
 0x5c9   :  { %1797 = vmatpush1.msra.mxu0 %v6885_v2  ;;  %1868 = vmatpush1.msra.mxu1 %v11081_v17  ;;  %v11186_v2 = vld [vmem:[#allocation121_spill] sm:$0xff] }
 0x5ca   :  { %1798 = vmatprep.subr.mxu0 %v6889_v3  ;;  %1869 = vmatprep.subr.mxu1 %v11082_v30  ;;  %v11187_v3 = vld [vmem:[#allocation35_spill] sm:$0xff] }
 0x5cb   :  { %1799 = vmatpush1.msra.mxu0 %v6893_v5  ;;  %1870 = vmatpush1.msra.mxu1 %v11083_v45  ;;  %v11188_v5 = vld [vmem:[#allocation122_spill] sm:$0xff] }
 0x5cc   :  { %1800 = vmatprep.subr.mxu0 %v6897_v7  ;;  %1871 = vmatprep.subr.mxu1 %v11084_v54  ;;  %v11189_v7 = vld [vmem:[#allocation36_spill] sm:$0xff] }
 0x5cd   :  { %1801 = vmatpush1.msra.mxu0 %v6901_v9  ;;  %1872 = vmatpush1.msra.mxu1 %v11085_v33  ;;  %v11190_v9 = vld [vmem:[#allocation123_spill] sm:$0xff] }
 0x5ce   :  { %1802 = vmatprep.subr.mxu0 %v6905_v10  ;;  %1873 = vmatprep.subr.mxu1 %v11086_v31  ;;  %v11191_v10 = vld [vmem:[#allocation37_spill] sm:$0xff] }
 0x5cf   :  { %1803 = vmatpush1.msra.mxu0 %v6909_v11  ;;  %1874 = vmatpush1.msra.mxu1 %v11087_v36  ;;  %v11192_v11 = vld [vmem:[#allocation124_spill] sm:$0xff] }
 0x5d0   :  { %1804 = vmatprep.subr.mxu0 %v6913_v12  ;;  %1875 = vmatprep.subr.mxu1 %v11172_v39  ;;  %v11193_v12 = vld [vmem:[#allocation38_spill] sm:$0xff] }
 0x5d1   :  { %1805 = vmatpush1.msra.mxu0 %v11173_v25  ;;  %1876 = vmatpush1.msra.mxu1 %v11174_v27  ;;  %v11210_v25 = vld [vmem:[#allocation133_spill] sm:$0xff] }
 0x5d2   :  { %1806 = vmatprep.subr.mxu0 %v11175_v1  ;;  %1877 = vmatprep.subr.mxu1 %v11176_v28  ;;  %v11211_v1 = vld [vmem:[#allocation47_spill] sm:$0xff] }
 0x5d3   :  { %1807 = vmatpush1.msra.mxu0 %v11177_v56  ;;  %1878 = vmatpush1.msra.mxu1 %v11178_v57  ;;  %v11212_v56 = vld [vmem:[#allocation134_spill] sm:$0xff] }
 0x5d4   :  { %1808 = vmatprep.subr.mxu0 %v11179_v58  ;;  %1879 = vmatprep.subr.mxu1 %v11180_v59  ;;  %v11213_v58 = vld [vmem:[#allocation48_spill] sm:$0xff] }
 0x5d5   :  { %1809 = vmatpush1.msra.mxu0 %v11181_v60  ;;  %1880 = vmatpush1.msra.mxu1 %v11182_v61  ;;  %v11214_v60 = vld [vmem:[#allocation135_spill] sm:$0xff] }
 0x5d6   :  { %1810 = vmatprep.subr.mxu0 %v11183_v62  ;;  %1881 = vmatprep.subr.mxu1 %v11184_v63  ;;  %v11215_v62 = vld [vmem:[#allocation49_spill] sm:$0xff] }
 0x5d7   :  { %1811 = vmatpush1.msra.mxu0 %v11185_v0  ;;  %1882 = vmatpush1.msra.mxu1 %v11186_v2  ;;  %v11216_v0 = vld [vmem:[#allocation136_spill] sm:$0xff] }
 0x5d8   :  { %1812 = vmatprep.subr.mxu0 %v11187_v3  ;;  %1883 = vmatprep.subr.mxu1 %v11188_v5  ;;  %v11217_v3 = vld [vmem:[#allocation50_spill] sm:$0xff] }
 0x5d9   :  { %1813 = vmatpush1.msra.mxu0 %v11189_v7  ;;  %1884 = vmatpush1.msra.mxu1 %v11190_v9  ;;  %v11218_v7 = vld [vmem:[#allocation137_spill] sm:$0xff] }
 0x5da   :  { %1814 = vmatprep.subr.mxu0 %v11191_v10  ;;  %1885 = vmatprep.subr.mxu1 %v11192_v11  ;;  %v11219_v10 = vld [vmem:[#allocation51_spill] sm:$0xff] }
 0x5db   :  { %1815 = vmatpush2.msra.mxu0 %v11193_v12  ;;  %1886 = vmatpush2.msra.mxu1 %v11194_v32  ;;  %v11220_v12 = vld [vmem:[#allocation138_spill] sm:$0xff] }
 0x5dc   :  { %1816 = vmatprep.subr.mxu0 %v11195_v38  ;;  %1887 = vmatprep.subr.mxu1 %v11196_v21  ;;  %v11221_v38 = vld [vmem:[#allocation52_spill] sm:$0xff] }
 0x5dd   :  { %1817 = vmatpush2.msra.mxu0 %v11197_v41  ;;  %1888 = vmatpush2.msra.mxu1 %v11198_v40  ;;  %v11222_v41 = vld [vmem:[#allocation139_spill] sm:$0xff] }
 0x5de   :  { %1818 = vmatprep.subr.mxu0 %v11199_v37  ;;  %1889 = vmatprep.subr.mxu1 %v11200_v29  ;;  %v11223_v37 = vld [vmem:[#allocation53_spill] sm:$0xff] }
 0x5df   :  { %1819 = vmatpush2.msra.mxu0 %v11201_v22  ;;  %1890 = vmatpush2.msra.mxu1 %v11202_v15  ;;  %v11224_v22 = vld [vmem:[#allocation140_spill] sm:$0xff] }
 0x5e0   :  { %1820 = vmatprep.subr.mxu0 %v11203_v18  ;;  %1891 = vmatprep.subr.mxu1 %v11204_v24  ;;  %v11225_v18 = vld [vmem:[#allocation54_spill] sm:$0xff] }
 0x5e1   :  { %1821 = vmatpush2.msra.mxu0 %v11205_v51  ;;  %1892 = vmatpush2.msra.mxu1 %v11206_v47  ;;  %v11226_v51 = vld [vmem:[#allocation141_spill] sm:$0xff] }
 0x5e2   :  { %1822 = vmatprep.subr.mxu0 %v11207_v14  ;;  %1893 = vmatprep.subr.mxu1 %v11208_v46  ;;  %v11227_v14 = vld [vmem:[#allocation55_spill] sm:$0xff] }
 0x5e3   :  { %1823 = vmatpush2.msra.mxu0 %v11209_v50  ;;  %1894 = vmatpush2.msra.mxu1 %v11210_v25  ;;  %v11228_v50 = vld [vmem:[#allocation142_spill] sm:$0xff] }
 0x5e4   :  { %1824 = vmatprep.subr.mxu0 %v11211_v1  ;;  %1895 = vmatprep.subr.mxu1 %v11212_v56  ;;  %v11229_v1 = vld [vmem:[#allocation56_spill] sm:$0xff] }
 0x5e5   :  { %1825 = vmatpush2.msra.mxu0 %v11213_v58  ;;  %1896 = vmatpush2.msra.mxu1 %v11214_v60  ;;  %v11230_v58 = vld [vmem:[#allocation143_spill] sm:$0xff] }
 0x5e6   :  { %1826 = vmatprep.subr.mxu0 %v11215_v62  ;;  %1897 = vmatprep.subr.mxu1 %v11216_v0  ;;  %v11231_v62 = vld [vmem:[#allocation57_spill] sm:$0xff] }
 0x5e7   :  { %1827 = vmatpush2.msra.mxu0 %v11217_v3  ;;  %1898 = vmatpush2.msra.mxu1 %v11218_v7  ;;  %v11232_v3 = vld [vmem:[#allocation144_spill] sm:$0xff] }
 0x5e8   :  { %1828 = vmatprep.subr.mxu0 %v11219_v10  ;;  %1899 = vmatprep.subr.mxu1 %v11220_v12  ;;  %v11233_v10 = vld [vmem:[#allocation58_spill] sm:$0xff] }
 0x5e9   :  { %1829 = vmatpush2.msra.mxu0 %v11221_v38  ;;  %1900 = vmatpush2.msra.mxu1 %v11222_v41  ;;  %v11234_v38 = vld [vmem:[#allocation145_spill] sm:$0xff] }
 0x5ea   :  { %1830 = vmatprep.subr.mxu0 %v11223_v37  ;;  %1901 = vmatprep.subr.mxu1 %v11224_v22  ;;  %v11235_v37 = vld [vmem:[#allocation59_spill] sm:$0xff] }
 0x5eb   :  { %1831 = vmatpush2.msra.mxu0 %v11225_v18  ;;  %1902 = vmatpush2.msra.mxu1 %v11226_v51  ;;  %v11236_v18 = vld [vmem:[#allocation146_spill] sm:$0xff] }
 0x5ec   :  { %1832 = vmatprep.subr.mxu0 %v11227_v14  ;;  %1903 = vmatprep.subr.mxu1 %v11228_v50  ;;  %v11238_v14 = vld [vmem:[#allocation147_spill] sm:$0xff] }
 0x5ed   :  { %1833 = vmatpush2.msra.mxu0 %v11229_v1  ;;  %1904 = vmatpush2.msra.mxu1 %v11230_v58  ;;  %v11240_v1 = vld [vmem:[#allocation148_spill] sm:$0xff]  ;;  %v11241_v58 = vld [vmem:[#allocation62_spill] sm:$0xff] }
 0x5ee   :  { %1834 = vmatprep.subr.mxu0 %v11231_v62  ;;  %1905 = vmatprep.subr.mxu1 %v11232_v3  ;;  %v11242_v62 = vld [vmem:[#allocation149_spill] sm:$0xff]  ;;  %v11243_v3 = vld [vmem:[#allocation63_spill] sm:$0xff] }
 0x5ef   :  { %1835 = vmatpush2.msra.mxu0 %v11233_v10  ;;  %1906 = vmatpush2.msra.mxu1 %v11234_v38  ;;  %v11244_v10 = vld [vmem:[#allocation150_spill] sm:$0xff]  ;;  %v11245_v38 = vld [vmem:[#allocation64_spill] sm:$0xff] }
 0x5f0   :  { %1836 = vmatprep.subr.mxu0 %v11235_v37  ;;  %1907 = vmatprep.subr.mxu1 %v11236_v18  ;;  %v11246_v37 = vld [vmem:[#allocation151_spill] sm:$0xff]  ;;  %v11247_v18 = vld [vmem:[#allocation65_spill] sm:$0xff] }
 0x5f1   :  { %1837 = vmatpush2.msra.mxu0 %v11237_v16  ;;  %1908 = vmatpush2.msra.mxu1 %v11238_v14  ;;  %v11248_v16 = vld [vmem:[#allocation152_spill] sm:$0xff]  ;;  %v11249_v14 = vld [vmem:[#allocation66_spill] sm:$0xff] }
 0x5f2   :  { %1838 = vmatprep.subr.mxu0 %v11239_v13  ;;  %1909 = vmatprep.subr.mxu1 %v11240_v1  ;;  %v11250_v13 = vld [vmem:[#allocation153_spill] sm:$0xff]  ;;  %v11251_v1 = vld [vmem:[#allocation67_spill] sm:$0xff] }
 0x5f3   :  { %1839 = vmatpush2.msra.mxu0 %v11241_v58  ;;  %1910 = vmatpush2.msra.mxu1 %v11242_v62  ;;  %v11252_v58 = vld [vmem:[#allocation154_spill] sm:$0xff]  ;;  %v11253_v62 = vld [vmem:[#allocation68_spill] sm:$0xff] }
 0x5f4   :  { %1840 = vmatprep.subr.mxu0 %v11243_v3  ;;  %1911 = vmatprep.subr.mxu1 %v11244_v10  ;;  %v11254_v3 = vld [vmem:[#allocation155_spill] sm:$0xff]  ;;  %v11255_v10 = vld [vmem:[#allocation69_spill] sm:$0xff] }
 0x5f5   :  { %1841 = vmatpush2.msra.mxu0 %v11245_v38  ;;  %1912 = vmatpush2.msra.mxu1 %v11246_v37  ;;  %v11256_v38 = vld [vmem:[#allocation156_spill] sm:$0xff] }
 0x5f6   :  { %1842 = vmatprep.subr.mxu0 %v11247_v18  ;;  %1913 = vmatprep.subr.mxu1 %v11248_v16  ;;  %v11257_v18 = vld [vmem:[#allocation75_spill] sm:$0xff] }
 0x5f7   :  { %1843 = vmatpush2.msra.mxu0 %v11249_v14  ;;  %1914 = vmatpush2.msra.mxu1 %v11250_v13  ;;  %v11258_v14 = vld [vmem:[#allocation80_spill] sm:$0xff] }
 0x5f8   :  { %1844 = vmatprep.subr.mxu0 %v11251_v1  ;;  %1915 = vmatprep.subr.mxu1 %v11252_v58  ;;  %v11259_v58 = vld [vmem:[#allocation86_spill] sm:$0xff] }
 0x5f9   :  { %1845 = vmatpush2.msra.mxu0 %v11253_v62  ;;  %1916 = vmatpush2.msra.mxu1 %v11254_v3  ;;  %v11260_v3 = vld [vmem:[#allocation89_spill] sm:$0xff] }
 0x5fa   :  { %1954 = vmatprep.subr.mxu0 %v11255_v10  ;;  %2025 = vmatprep.subr.mxu1 %v11256_v38 }
 0x67a   :  { %v1676_v37 = vpop.f32.mrf.mxu0  ;;  %v1747_v1 = vpop.f32.mrf.mxu1 }
 0x67b   :  { %v1752_v50 = vadd.f32 %v1676_v37, %v11257_v18  ;;  %v1754_v41 = vadd.f32 %v1747_v1, %v11259_v58  ;;  %v7677_v1 = vld [vmem:[#allocation12 + $0x1c0] sm:$0xff] }
 0x67c   :  { %v1678_v16 = vpop.f32.mrf.mxu0  ;;  %v1749_v62 = vpop.f32.mrf.mxu1 }
 0x67d   :  { %v4868_v51 = vmul.f32 -1.442695, %v1752_v50  ;;  %v1753_v22 = vadd.f32 %v1678_v16, %v11258_v14  ;;  %v4870_v12 = vmul.f32 -1.442695, %v1754_v41  ;;  %v1755_v7 = vadd.f32 %v1749_v62, %v11260_v3  ;;  %v7681_v62 = vld [vmem:[#allocation12 + $0x1a8] sm:$0xff] }
 0x67f   :  { %5077 = vpow2.f32 %v4868_v51  ;;  %v4869_v13 = vmul.f32 -1.442695, %v1753_v22 }
 0x681   :  { %5079 = vpow2.f32 %v4869_v13 }
 0x682   :  { %5081 = vpow2.f32 %v4870_v12 }
 0x683   :  { %5083 = vtanh.f32 %v1755_v7 }
 0x68c   :  { %v5078_v10 = vpop.eup %5077 }
 0x68d   :  { %v1765_v0 = vadd.f32 1.0, %v5078_v10  ;;  %v7685_v10 = vld [vmem:[#allocation12 + $0x1a0] sm:$0xff] }
 0x68e   :  { %v5080_v38 = vpop.eup %5079 }
 0x68f   :  { %5085 = vrcp.f32 %v1765_v0  ;;  %v1766_v37 = vadd.f32 1.0, %v5080_v38  ;;  %v5082_v50 = vpop.eup %5081  ;;  %v7673_v38 = vld [vmem:[#allocation12 + $0x1c8] sm:$0xff] }
 0x690   :  { %v5084_v16 = vpop.eup %5083  ;;  %v1767_v18 = vadd.f32 1.0, %v5082_v50  ;;  %v7849_v50 = vld [vmem:[#allocation12 + $0x308] sm:$0xff] }
 0x691   :  { %5087 = vrcp.f32 %v1766_v37  ;;  %v7845_v37 = vld [vmem:[#allocation12 + $0x320] sm:$0xff]  ;;  %11267 = vst [vmem:[#allocation111_spill] sm:$0xff] %v7849_v50 }
 0x692   :  { %5089 = vrcp.f32 %v1767_v18  ;;  %11265 = vst [vmem:[#allocation110_spill] sm:$0xff] %v7845_v37  ;;  %v11274_v18 = vld [vmem:[#allocation141_spill] sm:$0xff] }
 0x69c   :  { %v5086_v51 = vpop.eup %5085 }
 0x69d   :  { %v1776_v22 = vmul.f32 %v5086_v51, %v5084_v16  ;;  %v7853_v16 = vld [vmem:[#allocation12 + $0x300] sm:$0xff]  ;;  %v7857_v51 = vld [vmem:[#allocation12 + $0x2e8] sm:$0xff] }
 0x69e   :  { %v5088_v13 = vpop.eup %5087  ;;  %11269 = vst [vmem:[#allocation112_spill] sm:$0xff] %v7853_v16  ;;  %11271 = vst [vmem:[#allocation113_spill] sm:$0xff] %v7857_v51 }
 0x69f   :  { %v1775_v58 = vmul.f32 %v5088_v13, %v7510_v44  ;;  %v5090_v41 = vpop.eup %5089  ;;  %v7669_v44 = vld [vmem:[#allocation12 + $0x1e0] sm:$0xff] }
 0x6a0   :  { %v7861_v13 = vld [vmem:[#allocation12 + $0x2e0] sm:$0xff] }
 0x6a1   :  { %v7656_v14 = vadd.f32 %v1776_v22, %v1775_v58  ;;  %v11272_v22 = vld [vmem:[#allocation140_spill] sm:$0xff]  ;;  %11273 = vst [vmem:[#allocation84_spill] sm:$0xff] %v7861_v13 }
 0x6a2   :  { %v7865_v58 = vld [vmem:[#allocation12 + $0x2c8] sm:$0xff] }
 0x6a3   :  { %5091 = vtanh.f32 %v7656_v14  ;;  %11275 = vst [vmem:[#allocation85_spill] sm:$0xff] %v7865_v58 }
 0x6b0   :  { %v5092_v12 = vpop.eup %5091 }
 0x6b1   :  { %v1779_v3 = vmul.f32 %v5092_v12, %v5090_v41  ;;  %v11276_v41 = vld [vmem:[#allocation142_spill] sm:$0xff] }
 0x6b2   :  { %v7869_v12 = vld [vmem:[#allocation12 + $0x2c0] sm:$0xff] }
 0x6b3   :  { %v7660_v0 = vmul.f32 %v1779_v3, %v6817_v8  ;;  %v7663_v7 = vmul.f32 %v6814_v34, %v1779_v3  ;;  %11277 = vst [vmem:[#allocation92_spill] sm:$0xff] %v7869_v12  ;;  %v11278_v3 = vld [vmem:[#allocation143_spill] sm:$0xff] }
 0x6b5   :  { %1846 = vmatprep.mubr.f32.mxu0 %v7660_v0  ;;  %1917 = vmatprep.mubr.f32.mxu1 %v7660_v0 }
 0x6b6   :  { %1847 = vmatmul.mubr.f32.vlgmr.msra.gmra.mxu0 %v7663_v7  ;;  %1918 = vmatmul.mubr.f32.vlgmr.msra.gmra.mxu1 %v7663_v7 }
 0x6b7   :  { %1955 = vmatpush1.msra.mxu0 %v7669_v44  ;;  %2026 = vmatpush1.msra.mxu1 %v7104_v53  ;;  %v7689_v53 = vld [vmem:[#allocation12 + $0x188] sm:$0xff] }
 0x6b8   :  { %1956 = vmatprep.subr.mxu0 %v7673_v38  ;;  %2027 = vmatprep.subr.mxu1 %v7108_v48  ;;  %v7693_v48 = vld [vmem:[#allocation12 + $0x180] sm:$0xff] }
 0x6b9   :  { %1957 = vmatpush1.msra.mxu0 %v7677_v1  ;;  %2028 = vmatpush1.msra.mxu1 %v7112_v35  ;;  %v7697_v35 = vld [vmem:[#allocation12 + $0x168] sm:$0xff] }
 0x6ba   :  { %1958 = vmatprep.subr.mxu0 %v7681_v62  ;;  %2029 = vmatprep.subr.mxu1 %v7116_v42  ;;  %v7701_v42 = vld [vmem:[#allocation12 + $0x160] sm:$0xff] }
 0x6bb   :  { %1959 = vmatpush1.msra.mxu0 %v7685_v10  ;;  %2030 = vmatpush1.msra.mxu1 %v7120_v19  ;;  %v7705_v19 = vld [vmem:[#allocation12 + $0x148] sm:$0xff] }
 0x6bc   :  { %1960 = vmatprep.subr.mxu0 %v7689_v53  ;;  %2031 = vmatprep.subr.mxu1 %v7124_v4  ;;  %v7709_v4 = vld [vmem:[#allocation12 + $0x140] sm:$0xff] }
 0x6bd   :  { %1961 = vmatpush1.msra.mxu0 %v7693_v48  ;;  %2032 = vmatpush1.msra.mxu1 %v7128_v49  ;;  %v7713_v49 = vld [vmem:[#allocation12 + $0x128] sm:$0xff] }
 0x6be   :  { %1962 = vmatprep.subr.mxu0 %v7697_v35  ;;  %2033 = vmatprep.subr.mxu1 %v7132_v26  ;;  %v7717_v26 = vld [vmem:[#allocation12 + $0x120] sm:$0xff] }
 0x6bf   :  { %1963 = vmatpush1.msra.mxu0 %v7701_v42  ;;  %2034 = vmatpush1.msra.mxu1 %v7136_v43  ;;  %v7721_v43 = vld [vmem:[#allocation12 + $0x108] sm:$0xff] }
 0x6c0   :  { %1964 = vmatprep.subr.mxu0 %v7705_v19  ;;  %2035 = vmatprep.subr.mxu1 %v7140_v55  ;;  %v7725_v55 = vld [vmem:[#allocation12 + $0x100] sm:$0xff] }
 0x6c1   :  { %1965 = vmatpush1.msra.mxu0 %v7709_v4  ;;  %2036 = vmatpush1.msra.mxu1 %v7144_v52  ;;  %v7729_v52 = vld [vmem:[#allocation12 + $0xe8] sm:$0xff] }
 0x6c2   :  { %1966 = vmatprep.subr.mxu0 %v7713_v49  ;;  %2037 = vmatprep.subr.mxu1 %v7148_v6  ;;  %v7733_v6 = vld [vmem:[#allocation12 + $0xe0] sm:$0xff] }
 0x6c3   :  { %1967 = vmatpush1.msra.mxu0 %v7717_v26  ;;  %2038 = vmatpush1.msra.mxu1 %v7152_v20  ;;  %v7737_v20 = vld [vmem:[#allocation12 + $0xc8] sm:$0xff] }
 0x6c4   :  { %1968 = vmatprep.subr.mxu0 %v7721_v43  ;;  %2039 = vmatprep.subr.mxu1 %v7156_v23  ;;  %v7741_v23 = vld [vmem:[#allocation12 + $0xc0] sm:$0xff] }
 0x6c5   :  { %1969 = vmatpush1.msra.mxu0 %v7725_v55  ;;  %2040 = vmatpush1.msra.mxu1 %v11081_v17  ;;  %v7745_v17 = vld [vmem:[#allocation12 + $0xa8] sm:$0xff] }
 0x6c6   :  { %1970 = vmatprep.subr.mxu0 %v7729_v52  ;;  %2041 = vmatprep.subr.mxu1 %v11082_v30  ;;  %v7749_v30 = vld [vmem:[#allocation12 + $0xa0] sm:$0xff] }
 0x6c7   :  { %1971 = vmatpush1.msra.mxu0 %v7733_v6  ;;  %2042 = vmatpush1.msra.mxu1 %v11083_v45  ;;  %v7753_v45 = vld [vmem:[#allocation12 + $0x88] sm:$0xff] }
 0x6c8   :  { %1972 = vmatprep.subr.mxu0 %v7737_v20  ;;  %2043 = vmatprep.subr.mxu1 %v11084_v54  ;;  %v7757_v54 = vld [vmem:[#allocation12 + $0x80] sm:$0xff] }
 0x6c9   :  { %1973 = vmatpush1.msra.mxu0 %v7741_v23  ;;  %2044 = vmatpush1.msra.mxu1 %v11085_v33  ;;  %v7761_v33 = vld [vmem:[#allocation12 + $0x68] sm:$0xff] }
 0x6ca   :  { %1974 = vmatprep.subr.mxu0 %v7745_v17  ;;  %2045 = vmatprep.subr.mxu1 %v11086_v31  ;;  %v7765_v31 = vld [vmem:[#allocation12 + $0x60] sm:$0xff] }
 0x6cb   :  { %1975 = vmatpush1.msra.mxu0 %v7749_v30  ;;  %2046 = vmatpush1.msra.mxu1 %v11087_v36  ;;  %v7769_v36 = vld [vmem:[#allocation12 + $0x48] sm:$0xff] }
 0x6cc   :  { %1976 = vmatprep.subr.mxu0 %v7753_v45  ;;  %2047 = vmatprep.subr.mxu1 %v11172_v39  ;;  %v7773_v39 = vld [vmem:[#allocation12 + $0x40] sm:$0xff] }
 0x6cd   :  { %1977 = vmatpush1.msra.mxu0 %v7757_v54  ;;  %2048 = vmatpush1.msra.mxu1 %v11174_v27  ;;  %v7777_v27 = vld [vmem:[#allocation12 + $0x28] sm:$0xff] }
 0x6ce   :  { %1978 = vmatprep.subr.mxu0 %v7761_v33  ;;  %2049 = vmatprep.subr.mxu1 %v11176_v28  ;;  %v7781_v28 = vld [vmem:[#allocation12 + $0x20] sm:$0xff] }
 0x6cf   :  { %1979 = vmatpush1.msra.mxu0 %v7765_v31  ;;  %2050 = vmatpush1.msra.mxu1 %v11178_v57  ;;  %v7785_v57 = vld [vmem:[#allocation12 + $0x8] sm:$0xff] }
 0x6d0   :  { %1980 = vmatprep.subr.mxu0 %v7769_v36  ;;  %2051 = vmatprep.subr.mxu1 %v11180_v59  ;;  %v7789_v59 = vld [vmem:[#allocation12] sm:$0xff] }
 0x6d1   :  { %1981 = vmatpush1.msra.mxu0 %v7773_v39  ;;  %2052 = vmatpush1.msra.mxu1 %v11182_v61  ;;  %v7793_v61 = vld [vmem:[#allocation12 + $0x3e8] sm:$0xff] }
 0x6d2   :  { %1982 = vmatprep.subr.mxu0 %v7777_v27  ;;  %2053 = vmatprep.subr.mxu1 %v11184_v63  ;;  %v7797_v63 = vld [vmem:[#allocation12 + $0x3e0] sm:$0xff] }
 0x6d3   :  { %1983 = vmatpush1.msra.mxu0 %v7781_v28  ;;  %2054 = vmatpush1.msra.mxu1 %v11186_v2  ;;  %v7801_v2 = vld [vmem:[#allocation12 + $0x3c8] sm:$0xff] }
 0x6d4   :  { %1984 = vmatprep.subr.mxu0 %v7785_v57  ;;  %2055 = vmatprep.subr.mxu1 %v11188_v5  ;;  %v7805_v5 = vld [vmem:[#allocation12 + $0x3c0] sm:$0xff] }
 0x6d5   :  { %1985 = vmatpush1.msra.mxu0 %v7789_v59  ;;  %2056 = vmatpush1.msra.mxu1 %v11190_v9  ;;  %v7809_v9 = vld [vmem:[#allocation12 + $0x3a8] sm:$0xff] }
 0x6d6   :  { %1986 = vmatprep.subr.mxu0 %v7793_v61  ;;  %2057 = vmatprep.subr.mxu1 %v11192_v11  ;;  %v7813_v11 = vld [vmem:[#allocation12 + $0x3a0] sm:$0xff] }
 0x6d7   :  { %1987 = vmatpush2.msra.mxu0 %v7797_v63  ;;  %2058 = vmatpush2.msra.mxu1 %v11194_v32  ;;  %v7817_v32 = vld [vmem:[#allocation12 + $0x388] sm:$0xff] }
 0x6d8   :  { %1988 = vmatprep.subr.mxu0 %v7801_v2  ;;  %2059 = vmatprep.subr.mxu1 %v11196_v21  ;;  %v7821_v21 = vld [vmem:[#allocation12 + $0x380] sm:$0xff] }
 0x6d9   :  { %1989 = vmatpush2.msra.mxu0 %v7805_v5  ;;  %2060 = vmatpush2.msra.mxu1 %v11198_v40  ;;  %v7825_v40 = vld [vmem:[#allocation12 + $0x368] sm:$0xff] }
 0x6da   :  { %1990 = vmatprep.subr.mxu0 %v7809_v9  ;;  %2061 = vmatprep.subr.mxu1 %v11200_v29  ;;  %v7829_v29 = vld [vmem:[#allocation12 + $0x360] sm:$0xff] }
 0x6db   :  { %1991 = vmatpush2.msra.mxu0 %v7813_v11  ;;  %2062 = vmatpush2.msra.mxu1 %v11202_v15  ;;  %v7833_v15 = vld [vmem:[#allocation12 + $0x348] sm:$0xff] }
 0x6dc   :  { %1992 = vmatprep.subr.mxu0 %v7817_v32  ;;  %2063 = vmatprep.subr.mxu1 %v11204_v24  ;;  %11261 = vst [vmem:[#allocation107_spill] sm:$0xff] %v7833_v15  ;;  %v7837_v24 = vld [vmem:[#allocation12 + $0x340] sm:$0xff] }
 0x6dd   :  { %1993 = vmatpush2.msra.mxu0 %v7821_v21  ;;  %2064 = vmatpush2.msra.mxu1 %v11206_v47  ;;  %11262 = vst [vmem:[#allocation108_spill] sm:$0xff] %v7837_v24  ;;  %v7841_v47 = vld [vmem:[#allocation12 + $0x328] sm:$0xff] }
 0x6de   :  { %1994 = vmatprep.subr.mxu0 %v7825_v40  ;;  %2065 = vmatprep.subr.mxu1 %v11208_v46  ;;  %11263 = vst [vmem:[#allocation109_spill] sm:$0xff] %v7841_v47  ;;  %v11264_v46 = vld [vmem:[#allocation136_spill] sm:$0xff] }
 0x6df   :  { %1995 = vmatpush2.msra.mxu0 %v7829_v29  ;;  %2066 = vmatpush2.msra.mxu1 %v11210_v25  ;;  %v11266_v25 = vld [vmem:[#allocation137_spill] sm:$0xff] }
 0x6e0   :  { %1996 = vmatprep.subr.mxu0 %v7833_v15  ;;  %2067 = vmatprep.subr.mxu1 %v11212_v56  ;;  %v11268_v56 = vld [vmem:[#allocation138_spill] sm:$0xff] }
 0x6e1   :  { %1997 = vmatpush2.msra.mxu0 %v7837_v24  ;;  %2068 = vmatpush2.msra.mxu1 %v11214_v60  ;;  %v11270_v60 = vld [vmem:[#allocation139_spill] sm:$0xff] }
 0x6e2   :  { %1998 = vmatprep.subr.mxu0 %v7841_v47  ;;  %2069 = vmatprep.subr.mxu1 %v11264_v46  ;;  %v7873_v46 = vld [vmem:[#allocation12 + $0x2a8] sm:$0xff] }
 0x6e3   :  { %1999 = vmatpush2.msra.mxu0 %v7845_v37  ;;  %2070 = vmatpush2.msra.mxu1 %v11266_v25  ;;  %11279 = vst [vmem:[#allocation95_spill] sm:$0xff] %v7873_v46  ;;  %v11280_v25 = vld [vmem:[#allocation144_spill] sm:$0xff] }
 0x6e4   :  { %2000 = vmatprep.subr.mxu0 %v7849_v50  ;;  %2071 = vmatprep.subr.mxu1 %v11268_v56  ;;  %v7877_v56 = vld [vmem:[#allocation12 + $0x2a0] sm:$0xff] }
 0x6e5   :  { %2001 = vmatpush2.msra.mxu0 %v7853_v16  ;;  %2072 = vmatpush2.msra.mxu1 %v11270_v60  ;;  %11281 = vst [vmem:[#allocation114_spill] sm:$0xff] %v7877_v56  ;;  %v11282_v60 = vld [vmem:[#allocation145_spill] sm:$0xff]  ;;  %v11306_v50 = vld [vmem:[#allocation87_spill] sm:$0xff] }
 0x6e6   :  { %2002 = vmatprep.subr.mxu0 %v7857_v51  ;;  %2073 = vmatprep.subr.mxu1 %v11272_v22  ;;  %v7881_v22 = vld [vmem:[#allocation12 + $0x288] sm:$0xff]  ;;  %v11305_v51 = vld [vmem:[#allocation81_spill] sm:$0xff] }
 0x6e7   :  { %2003 = vmatpush2.msra.mxu0 %v7861_v13  ;;  %2074 = vmatpush2.msra.mxu1 %v11274_v18  ;;  %11283 = vst [vmem:[#allocation102_spill] sm:$0xff] %v7881_v22  ;;  %v11284_v18 = vld [vmem:[#allocation146_spill] sm:$0xff] }
 0x6e8   :  { %2004 = vmatprep.subr.mxu0 %v7865_v58  ;;  %2075 = vmatprep.subr.mxu1 %v11276_v41  ;;  %v7885_v41 = vld [vmem:[#allocation12 + $0x280] sm:$0xff] }
 0x6e9   :  { %2005 = vmatpush2.msra.mxu0 %v7869_v12  ;;  %2076 = vmatpush2.msra.mxu1 %v11278_v3  ;;  %11285 = vst [vmem:[#allocation115_spill] sm:$0xff] %v7885_v41  ;;  %v11286_v3 = vld [vmem:[#allocation147_spill] sm:$0xff] }
 0x6ea   :  { %2006 = vmatprep.subr.mxu0 %v7873_v46  ;;  %2077 = vmatprep.subr.mxu1 %v11280_v25  ;;  %v7889_v46 = vld [vmem:[#allocation12 + $0x268] sm:$0xff] }
 0x6eb   :  { %2007 = vmatpush2.msra.mxu0 %v7877_v56  ;;  %2078 = vmatpush2.msra.mxu1 %v11282_v60  ;;  %11287 = vst [vmem:[#allocation103_spill] sm:$0xff] %v7889_v46  ;;  %v11288_v25 = vld [vmem:[#allocation148_spill] sm:$0xff]  ;;  %v7893_v56 = vld [vmem:[#allocation12 + $0x260] sm:$0xff]  ;;  %v11290_v60 = vld [vmem:[#allocation149_spill] sm:$0xff] }
 0x6ec   :  { %2008 = vmatprep.subr.mxu0 %v7881_v22  ;;  %2079 = vmatprep.subr.mxu1 %v11284_v18  ;;  %11289 = vst [vmem:[#allocation116_spill] sm:$0xff] %v7893_v56  ;;  %v7897_v22 = vld [vmem:[#allocation12 + $0x248] sm:$0xff]  ;;  %v11292_v18 = vld [vmem:[#allocation150_spill] sm:$0xff] }
 0x6ed   :  { %2009 = vmatpush2.msra.mxu0 %v7885_v41  ;;  %2080 = vmatpush2.msra.mxu1 %v11286_v3  ;;  %11291 = vst [vmem:[#allocation104_spill] sm:$0xff] %v7897_v22  ;;  %v7901_v41 = vld [vmem:[#allocation12 + $0x240] sm:$0xff] }
 0x6ee   :  { %2010 = vmatprep.subr.mxu0 %v7889_v46  ;;  %2081 = vmatprep.subr.mxu1 %v11288_v25  ;;  %11293 = vst [vmem:[#allocation117_spill] sm:$0xff] %v7901_v41  ;;  %v11294_v3 = vld [vmem:[#allocation151_spill] sm:$0xff]  ;;  %v11296_v25 = vld [vmem:[#allocation152_spill] sm:$0xff] }
 0x6ef   :  { %2011 = vmatpush2.msra.mxu0 %v7893_v56  ;;  %2082 = vmatpush2.msra.mxu1 %v11290_v60  ;;  %v7905_v46 = vld [vmem:[#allocation12 + $0x228] sm:$0xff]  ;;  %v7909_v56 = vld [vmem:[#allocation12 + $0x220] sm:$0xff]  ;;  %v11298_v60 = vld [vmem:[#allocation153_spill] sm:$0xff] }
 0x6f0   :  { %2012 = vmatprep.subr.mxu0 %v7897_v22  ;;  %2083 = vmatprep.subr.mxu1 %v11292_v18  ;;  %11295 = vst [vmem:[#allocation105_spill] sm:$0xff] %v7905_v46  ;;  %11297 = vst [vmem:[#allocation118_spill] sm:$0xff] %v7909_v56  ;;  %v7913_v22 = vld [vmem:[#allocation12 + $0x208] sm:$0xff]  ;;  %v11300_v18 = vld [vmem:[#allocation154_spill] sm:$0xff] }
 0x6f1   :  { %2013 = vmatpush2.msra.mxu0 %v7901_v41  ;;  %2084 = vmatpush2.msra.mxu1 %v11294_v3  ;;  %11299 = vst [vmem:[#allocation32_spill] sm:$0xff] %v7913_v22  ;;  %v7917_v41 = vld [vmem:[#allocation12 + $0x200] sm:$0xff] }
 0x6f2   :  { %2014 = vmatprep.subr.mxu0 %v7905_v46  ;;  %2085 = vmatprep.subr.mxu1 %v11296_v25  ;;  %11301 = vst [vmem:[#allocation119_spill] sm:$0xff] %v7917_v41  ;;  %v11302_v3 = vld [vmem:[#allocation155_spill] sm:$0xff]  ;;  %v11303_v25 = vld [vmem:[#allocation156_spill] sm:$0xff] }
 0x6f3   :  { %2015 = vmatpush2.msra.mxu0 %v7909_v56  ;;  %2086 = vmatpush2.msra.mxu1 %v11298_v60  ;;  %v5332_v46 = vld [vmem:[#allocation12 + $0x1e8] sm:$0xff] }
 0x6f4   :  { %2016 = vmatprep.subr.mxu0 %v7913_v22  ;;  %2087 = vmatprep.subr.mxu1 %v11300_v18  ;;  %v11304_v56 = vld [vmem:[#allocation76_spill] sm:$0xff] }
 0x6f5   :  { %2017 = vmatpush2.msra.mxu0 %v7917_v41  ;;  %2088 = vmatpush2.msra.mxu1 %v11302_v3  ;;  %v11307_v3 = vld [vmem:[#allocation90_spill] sm:$0xff] }
 0x6f6   :  { %2126 = vmatprep.subr.mxu0 %v5332_v46  ;;  %2197 = vmatprep.subr.mxu1 %v11303_v25 }
 0x776   :  { %v1848_v12 = vpop.f32.mrf.mxu0  ;;  %v1919_v18 = vpop.f32.mrf.mxu1 }
 0x777   :  { %v1924_v58 = vadd.f32 %v1848_v12, %v11304_v56  ;;  %v1926_v37 = vadd.f32 %v1919_v18, %v11306_v50  ;;  %v11309_v18 = vld [vmem:[#allocation83_spill] sm:$0xff] }
 0x778   :  { %v1850_v60 = vpop.f32.mrf.mxu0  ;;  %v1921_v41 = vpop.f32.mrf.mxu1 }
 0x779   :  { %v4871_v13 = vmul.f32 -1.442695, %v1924_v58  ;;  %v1925_v16 = vadd.f32 %v1850_v60, %v11305_v51  ;;  %v4873_v47 = vmul.f32 -1.442695, %v1926_v37  ;;  %v1927_v24 = vadd.f32 %v1921_v41, %v11307_v3 }
 0x77a   :  { %v2340_v3 = vrot.slane %v11309_v18, 2 }
 0x77b   :  { %5093 = vpow2.f32 %v4871_v13  ;;  %v4872_v22 = vmul.f32 -1.442695, %v1925_v16 }
 0x77d   :  { %5095 = vpow2.f32 %v4872_v22 }
 0x77e   :  { %5097 = vpow2.f32 %v4873_v47 }
 0x77f   :  { %5099 = vtanh.f32 %v1927_v24  ;;  %v11308_v24 = vld [vmem:[#allocation79_spill] sm:$0xff] }
 0x788   :  { %v5094_v46 = vpop.eup %5093 }
 0x789   :  { %v1937_v15 = vadd.f32 1.0, %v5094_v46 }
 0x78a   :  { %v5096_v25 = vpop.eup %5095 }
 0x78b   :  { %5101 = vrcp.f32 %v1937_v15  ;;  %v1938_v12 = vadd.f32 1.0, %v5096_v25  ;;  %v5098_v58 = vpop.eup %5097  ;;  %v2341_v15 = vrot.slane %v11308_v24, 2 }
 0x78c   :  { %v5100_v51 = vpop.eup %5099  ;;  %v1939_v22 = vadd.f32 1.0, %v5098_v58  ;;  %v11311_v58 = vld [vmem:[#allocation91_spill] sm:$0xff] }
 0x78d   :  { %5103 = vrcp.f32 %v1938_v12  ;;  %v11310_v12 = vld [vmem:[#allocation88_spill] sm:$0xff] }
 0x78e   :  { %5105 = vrcp.f32 %v1939_v22 }
 0x798   :  { %v5102_v13 = vpop.eup %5101 }
 0x799   :  { %v1948_v16 = vmul.f32 %v5102_v13, %v5100_v51  ;;  %v2332_v51 = vrot.slane %v11311_v58, 2 }
 0x79a   :  { %v5104_v56 = vpop.eup %5103 }
 0x79b   :  { %v1947_v50 = vmul.f32 %v5104_v56, %v7656_v14  ;;  %v5106_v37 = vpop.eup %5105  ;;  %v2333_v14 = vrot.slane %v11310_v12, 2  ;;  %v2336_v22 = vadd.f32 %v2332_v51, %v7663_v7  ;;  %v5336_v51 = vld [vmem:[#allocation12 + $0x1b8] sm:$0xff] }
 0x79d   :  { %v7927_v60 = vadd.f32 %v1948_v16, %v1947_v50  ;;  %v2337_v56 = vadd.f32 %v2333_v14, %v7660_v0  ;;  %v5335_v14 = vld [vmem:[#allocation12 + $0x1d0] sm:$0xff] }
 0x79f   :  { %5107 = vtanh.f32 %v7927_v60 }
 0x7ac   :  { %v5108_v47 = vpop.eup %5107 }
 0x7ad   :  { %v1951_v41 = vmul.f32 %v5108_v47, %v5106_v37  ;;  %v5333_v47 = vld [vmem:[#allocation12 + $0x1f0] sm:$0xff] }
 0x7af   :  { %v7933_v46 = vmul.f32 %v1951_v41, %v6817_v8  ;;  %v7936_v25 = vmul.f32 %v6814_v34, %v1951_v41  ;;  %v5334_v41 = vld [vmem:[#allocation12 + $0x1d8] sm:$0xff] }
 0x7b1   :  { %2018 = vmatprep.mubr.f32.mxu0 %v7933_v46  ;;  %v2345_v13 = vadd.f32 %v2341_v15, %v7933_v46  ;;  %2089 = vmatprep.mubr.f32.mxu1 %v7933_v46  ;;  %v2344_v16 = vadd.f32 %v2340_v3, %v7936_v25 }
 0x7b2   :  { %2019 = vmatmul.mubr.f32.vlgmr.msra.gmra.mxu0 %v7936_v25  ;;  %2090 = vmatmul.mubr.f32.vlgmr.msra.gmra.mxu1 %v7936_v25 }
 0x7b3   :  { %v2383_v50 = vrot.slane %v2345_v13, 6  ;;  %v2382_v37 = vrot.slane %v2344_v16, 6  ;;  %2127 = vmatpush1.msra.mxu0 %v7669_v44  ;;  %2198 = vmatpush1.msra.mxu1 %v5333_v47  ;;  %v5337_v44 = vld [vmem:[#allocation12 + $0x1b0] sm:$0xff]  ;;  %v11312_v16 = vld [vmem:[#allocation107_spill] sm:$0xff] }
 0x7b4   :  { %2128 = vmatprep.subr.mxu0 %v7673_v38  ;;  %2199 = vmatprep.subr.mxu1 %v5334_v41  ;;  %v5338_v38 = vld [vmem:[#allocation12 + $0x198] sm:$0xff]  ;;  %v5339_v13 = vld [vmem:[#allocation12 + $0x190] sm:$0xff] }
 0x7b5   :  { %v7951_v15 = vsel %vm789_vm3, %v2337_v56, %v2383_v50  ;;  %v7954_v3 = vsel %vm789_vm3, %v2336_v22, %v2382_v37  ;;  %2129 = vmatpush1.msra.mxu0 %v7677_v1  ;;  %2200 = vmatpush1.msra.mxu1 %v5335_v14  ;;  %v5340_v1 = vld [vmem:[#allocation12 + $0x178] sm:$0xff]  ;;  %v11313_v56 = vld [vmem:[#allocation108_spill] sm:$0xff]  ;;  %v11316_v37 = vld [vmem:[#allocation111_spill] sm:$0xff] }
 0x7b6   :  { %2130 = vmatprep.subr.mxu0 %v7681_v62  ;;  %2201 = vmatprep.subr.mxu1 %v5336_v51  ;;  %v5341_v62 = vld [vmem:[#allocation12 + $0x170] sm:$0xff]  ;;  %v11315_v50 = vld [vmem:[#allocation110_spill] sm:$0xff] }
 0x7b7   :  { %2131 = vmatpush1.msra.mxu0 %v7685_v10  ;;  %2202 = vmatpush1.msra.mxu1 %v5337_v44  ;;  %v5342_v10 = vld [vmem:[#allocation12 + $0x158] sm:$0xff]  ;;  %v11317_v47 = vld [vmem:[#allocation112_spill] sm:$0xff] }
 0x7b8   :  { %2132 = vmatprep.subr.mxu0 %v7689_v53  ;;  %2203 = vmatprep.subr.mxu1 %v5338_v38  ;;  %v5343_v53 = vld [vmem:[#allocation12 + $0x150] sm:$0xff]  ;;  %v5380_v51 = vld [vmem:[#allocation12 + $0x2f8] sm:$0xff] }
 0x7b9   :  { %2133 = vmatpush1.msra.mxu0 %v7693_v48  ;;  %2204 = vmatpush1.msra.mxu1 %v5339_v13  ;;  %v5344_v48 = vld [vmem:[#allocation12 + $0x138] sm:$0xff]  ;;  %v5379_v41 = vld [vmem:[#allocation12 + $0x310] sm:$0xff] }
 0x7ba   :  { %2134 = vmatprep.subr.mxu0 %v7697_v35  ;;  %2205 = vmatprep.subr.mxu1 %v5340_v1  ;;  %v5345_v35 = vld [vmem:[#allocation12 + $0x130] sm:$0xff]  ;;  %v5382_v1 = vld [vmem:[#allocation12 + $0x2d8] sm:$0xff] }
 0x7bb   :  { %2135 = vmatpush1.msra.mxu0 %v7701_v42  ;;  %2206 = vmatpush1.msra.mxu1 %v5341_v62  ;;  %v5346_v42 = vld [vmem:[#allocation12 + $0x118] sm:$0xff]  ;;  %v11319_v44 = vld [vmem:[#allocation84_spill] sm:$0xff] }
 0x7bc   :  { %2136 = vmatprep.subr.mxu0 %v7705_v19  ;;  %2207 = vmatprep.subr.mxu1 %v5342_v10  ;;  %v5347_v19 = vld [vmem:[#allocation12 + $0x110] sm:$0xff] }
 0x7bd   :  { %2137 = vmatpush1.msra.mxu0 %v7709_v4  ;;  %2208 = vmatpush1.msra.mxu1 %v5343_v53  ;;  %v5348_v4 = vld [vmem:[#allocation12 + $0xf8] sm:$0xff]  ;;  %v5381_v38 = vld [vmem:[#allocation12 + $0x2f0] sm:$0xff]  ;;  %v11322_v53 = vld [vmem:[#allocation95_spill] sm:$0xff] }
 0x7be   :  { %2138 = vmatprep.subr.mxu0 %v7713_v49  ;;  %2209 = vmatprep.subr.mxu1 %v5344_v48  ;;  %v5349_v49 = vld [vmem:[#allocation12 + $0xf0] sm:$0xff]  ;;  %v5384_v48 = vld [vmem:[#allocation12 + $0x2b8] sm:$0xff] }
 0x7bf   :  { %2139 = vmatpush1.msra.mxu0 %v7717_v26  ;;  %2210 = vmatpush1.msra.mxu1 %v5345_v35  ;;  %v5350_v26 = vld [vmem:[#allocation12 + $0xd8] sm:$0xff]  ;;  %v11321_v62 = vld [vmem:[#allocation92_spill] sm:$0xff] }
 0x7c0   :  { %2140 = vmatprep.subr.mxu0 %v7721_v43  ;;  %2211 = vmatprep.subr.mxu1 %v5346_v42  ;;  %v5351_v43 = vld [vmem:[#allocation12 + $0xd0] sm:$0xff]  ;;  %v11323_v35 = vld [vmem:[#allocation114_spill] sm:$0xff] }
 0x7c1   :  { %2141 = vmatpush1.msra.mxu0 %v7725_v55  ;;  %2212 = vmatpush1.msra.mxu1 %v5347_v19  ;;  %v5352_v55 = vld [vmem:[#allocation12 + $0xb8] sm:$0xff]  ;;  %v5383_v10 = vld [vmem:[#allocation12 + $0x2d0] sm:$0xff] }
 0x7c2   :  { %2142 = vmatprep.subr.mxu0 %v7729_v52  ;;  %2213 = vmatprep.subr.mxu1 %v5348_v4  ;;  %v5353_v52 = vld [vmem:[#allocation12 + $0xb0] sm:$0xff]  ;;  %v11324_v19 = vld [vmem:[#allocation102_spill] sm:$0xff] }
 0x7c3   :  { %2143 = vmatpush1.msra.mxu0 %v7733_v6  ;;  %2214 = vmatpush1.msra.mxu1 %v5349_v49  ;;  %v5354_v6 = vld [vmem:[#allocation12 + $0x98] sm:$0xff]  ;;  %v5385_v42 = vld [vmem:[#allocation12 + $0x2b0] sm:$0xff]  ;;  %v11325_v49 = vld [vmem:[#allocation115_spill] sm:$0xff] }
 0x7c4   :  { %2144 = vmatprep.subr.mxu0 %v7737_v20  ;;  %2215 = vmatprep.subr.mxu1 %v5350_v26  ;;  %v5355_v20 = vld [vmem:[#allocation12 + $0x90] sm:$0xff]  ;;  %v5386_v4 = vld [vmem:[#allocation12 + $0x298] sm:$0xff] }
 0x7c5   :  { %2145 = vmatpush1.msra.mxu0 %v7741_v23  ;;  %2216 = vmatpush1.msra.mxu1 %v5351_v43  ;;  %v5356_v23 = vld [vmem:[#allocation12 + $0x78] sm:$0xff]  ;;  %v5387_v26 = vld [vmem:[#allocation12 + $0x290] sm:$0xff]  ;;  %v11326_v43 = vld [vmem:[#allocation103_spill] sm:$0xff] }
 0x7c6   :  { %2146 = vmatprep.subr.mxu0 %v7745_v17  ;;  %2217 = vmatprep.subr.mxu1 %v5352_v55  ;;  %v5357_v17 = vld [vmem:[#allocation12 + $0x70] sm:$0xff]  ;;  %v5388_v55 = vld [vmem:[#allocation12 + $0x278] sm:$0xff] }
 0x7c7   :  { %2147 = vmatpush1.msra.mxu0 %v7749_v30  ;;  %2218 = vmatpush1.msra.mxu1 %v5353_v52  ;;  %v5358_v30 = vld [vmem:[#allocation12 + $0x58] sm:$0xff]  ;;  %v11327_v52 = vld [vmem:[#allocation116_spill] sm:$0xff] }
 0x7c8   :  { %2148 = vmatprep.subr.mxu0 %v7753_v45  ;;  %2219 = vmatprep.subr.mxu1 %v5354_v6  ;;  %v5359_v45 = vld [vmem:[#allocation12 + $0x50] sm:$0xff] }
 0x7c9   :  { %2149 = vmatpush1.msra.mxu0 %v7757_v54  ;;  %2220 = vmatpush1.msra.mxu1 %v5355_v20  ;;  %v5360_v54 = vld [vmem:[#allocation12 + $0x38] sm:$0xff]  ;;  %v5389_v6 = vld [vmem:[#allocation12 + $0x270] sm:$0xff] }
 0x7ca   :  { %2150 = vmatprep.subr.mxu0 %v7761_v33  ;;  %2221 = vmatprep.subr.mxu1 %v5356_v23  ;;  %v5361_v33 = vld [vmem:[#allocation12 + $0x30] sm:$0xff]  ;;  %v5390_v23 = vld [vmem:[#allocation12 + $0x258] sm:$0xff] }
 0x7cb   :  { %2151 = vmatpush1.msra.mxu0 %v7765_v31  ;;  %2222 = vmatpush1.msra.mxu1 %v5357_v17  ;;  %v5362_v31 = vld [vmem:[#allocation12 + $0x18] sm:$0xff]  ;;  %v11328_v20 = vld [vmem:[#allocation104_spill] sm:$0xff] }
 0x7cc   :  { %2152 = vmatprep.subr.mxu0 %v7769_v36  ;;  %2223 = vmatprep.subr.mxu1 %v5358_v30  ;;  %v5363_v36 = vld [vmem:[#allocation12 + $0x10] sm:$0xff] }
 0x7cd   :  { %2153 = vmatpush1.msra.mxu0 %v7773_v39  ;;  %2224 = vmatpush1.msra.mxu1 %v5359_v45  ;;  %v5364_v39 = vld [vmem:[#allocation12 + $0x3f8] sm:$0xff]  ;;  %v5391_v30 = vld [vmem:[#allocation12 + $0x250] sm:$0xff] }
 0x7ce   :  { %2154 = vmatprep.subr.mxu0 %v7777_v27  ;;  %2225 = vmatprep.subr.mxu1 %v5360_v54  ;;  %v5365_v27 = vld [vmem:[#allocation12 + $0x3f0] sm:$0xff]  ;;  %v5392_v54 = vld [vmem:[#allocation12 + $0x238] sm:$0xff] }
 0x7cf   :  { %2155 = vmatpush1.msra.mxu0 %v7781_v28  ;;  %2226 = vmatpush1.msra.mxu1 %v5361_v33  ;;  %v5366_v28 = vld [vmem:[#allocation12 + $0x3d8] sm:$0xff] }
 0x7d0   :  { %2156 = vmatprep.subr.mxu0 %v7785_v57  ;;  %2227 = vmatprep.subr.mxu1 %v5362_v31  ;;  %v5367_v57 = vld [vmem:[#allocation12 + $0x3d0] sm:$0xff]  ;;  %v11331_v33 = vld [vmem:[#allocation118_spill] sm:$0xff] }
 0x7d1   :  { %2157 = vmatpush1.msra.mxu0 %v7789_v59  ;;  %2228 = vmatpush1.msra.mxu1 %v5363_v36  ;;  %v5368_v59 = vld [vmem:[#allocation12 + $0x3b8] sm:$0xff]  ;;  %v5393_v31 = vld [vmem:[#allocation12 + $0x230] sm:$0xff] }
 0x7d2   :  { %2158 = vmatprep.subr.mxu0 %v7793_v61  ;;  %2229 = vmatprep.subr.mxu1 %v5364_v39  ;;  %v5369_v61 = vld [vmem:[#allocation12 + $0x3b0] sm:$0xff]  ;;  %v5394_v39 = vld [vmem:[#allocation12 + $0x218] sm:$0xff] }
 0x7d3   :  { %2159 = vmatpush2.msra.mxu0 %v7797_v63  ;;  %2230 = vmatpush2.msra.mxu1 %v5365_v27  ;;  %v5370_v63 = vld [vmem:[#allocation12 + $0x398] sm:$0xff]  ;;  %v11332_v36 = vld [vmem:[#allocation32_spill] sm:$0xff]  ;;  %v11333_v27 = vld [vmem:[#allocation119_spill] sm:$0xff] }
 0x7d4   :  { %2160 = vmatprep.subr.mxu0 %v7801_v2  ;;  %2231 = vmatprep.subr.mxu1 %v5366_v28  ;;  %v5371_v2 = vld [vmem:[#allocation12 + $0x390] sm:$0xff] }
 0x7d5   :  { %2161 = vmatpush2.msra.mxu0 %v7805_v5  ;;  %2232 = vmatpush2.msra.mxu1 %v5367_v57  ;;  %v5372_v5 = vld [vmem:[#allocation12 + $0x378] sm:$0xff]  ;;  %v5395_v28 = vld [vmem:[#allocation12 + $0x210] sm:$0xff] }
 0x7d6   :  { %2162 = vmatprep.subr.mxu0 %v7809_v9  ;;  %2233 = vmatprep.subr.mxu1 %v5368_v59  ;;  %v5373_v9 = vld [vmem:[#allocation12 + $0x370] sm:$0xff]  ;;  %v11334_v59 = vld [vmem:[#allocation74_spill] sm:$0xff] }
 0x7d7   :  { %2163 = vmatpush2.msra.mxu0 %v7813_v11  ;;  %2234 = vmatpush2.msra.mxu1 %v5369_v61  ;;  %v5374_v11 = vld [vmem:[#allocation12 + $0x358] sm:$0xff] }
 0x7d8   :  { %2164 = vmatprep.subr.mxu0 %v7817_v32  ;;  %2235 = vmatprep.subr.mxu1 %v5370_v63  ;;  %v5375_v32 = vld [vmem:[#allocation12 + $0x350] sm:$0xff] }
 0x7d9   :  { %2165 = vmatpush2.msra.mxu0 %v7821_v21  ;;  %2236 = vmatpush2.msra.mxu1 %v5371_v2  ;;  %v11314_v22 = vld [vmem:[#allocation109_spill] sm:$0xff] }
 0x7da   :  { %2166 = vmatprep.subr.mxu0 %v7825_v40  ;;  %2237 = vmatprep.subr.mxu1 %v5372_v5  ;;  %v5376_v21 = vld [vmem:[#allocation12 + $0x338] sm:$0xff]  ;;  %v5377_v40 = vld [vmem:[#allocation12 + $0x330] sm:$0xff] }
 0x7db   :  { %2167 = vmatpush2.msra.mxu0 %v7829_v29  ;;  %2238 = vmatpush2.msra.mxu1 %v5373_v9  ;;  %v5378_v29 = vld [vmem:[#allocation12 + $0x318] sm:$0xff] }
 0x7dc   :  { %2168 = vmatprep.subr.mxu0 %v11312_v16  ;;  %2239 = vmatprep.subr.mxu1 %v5374_v11  ;;  %v11318_v14 = vld [vmem:[#allocation113_spill] sm:$0xff] }
 0x7dd   :  { %2169 = vmatpush2.msra.mxu0 %v11313_v56  ;;  %2240 = vmatpush2.msra.mxu1 %v5375_v32  ;;  %v11320_v13 = vld [vmem:[#allocation85_spill] sm:$0xff] }
 0x7de   :  { %2170 = vmatprep.subr.mxu0 %v11314_v22  ;;  %2241 = vmatprep.subr.mxu1 %v5376_v21  ;;  %v11329_v17 = vld [vmem:[#allocation117_spill] sm:$0xff] }
 0x7df   :  { %2171 = vmatpush2.msra.mxu0 %v11315_v50  ;;  %2242 = vmatpush2.msra.mxu1 %v5377_v40  ;;  %v11330_v45 = vld [vmem:[#allocation105_spill] sm:$0xff]  ;;  %v11337_v50 = vld [vmem:[#allocation94_spill] sm:$0xff] }
 0x7e0   :  { %2172 = vmatprep.subr.mxu0 %v11316_v37  ;;  %2243 = vmatprep.subr.mxu1 %v5378_v29  ;;  %v11335_v5 = vld [vmem:[#allocation77_spill] sm:$0xff] }
 0x7e1   :  { %2173 = vmatpush2.msra.mxu0 %v11317_v47  ;;  %2244 = vmatpush2.msra.mxu1 %v5379_v41  ;;  %v11336_v56 = vld [vmem:[#allocation93_spill] sm:$0xff] }
 0x7e2   :  { %2174 = vmatprep.subr.mxu0 %v11318_v14  ;;  %2245 = vmatprep.subr.mxu1 %v5380_v51 }
 0x7e3   :  { %2175 = vmatpush2.msra.mxu0 %v11319_v44  ;;  %2246 = vmatpush2.msra.mxu1 %v5381_v38 }
 0x7e4   :  { %2176 = vmatprep.subr.mxu0 %v11320_v13  ;;  %2247 = vmatprep.subr.mxu1 %v5382_v1 }
 0x7e5   :  { %2177 = vmatpush2.msra.mxu0 %v11321_v62  ;;  %2248 = vmatpush2.msra.mxu1 %v5383_v10 }
 0x7e6   :  { %2178 = vmatprep.subr.mxu0 %v11322_v53  ;;  %2249 = vmatprep.subr.mxu1 %v5384_v48 }
 0x7e7   :  { %2179 = vmatpush2.msra.mxu0 %v11323_v35  ;;  %2250 = vmatpush2.msra.mxu1 %v5385_v42  ;;  %v11338_v42 = vld [vmem:[#allocation31_spill] sm:$0xff] }
 0x7e8   :  { %2180 = vmatprep.subr.mxu0 %v11324_v19  ;;  %2251 = vmatprep.subr.mxu1 %v5386_v4  ;;  %v2349_v19 = vrot.slane %v11338_v42, 2  ;;  %v11339_v4 = vld [vmem:[#allocation106_spill] sm:$0xff] }
 0x7e9   :  { %2181 = vmatpush2.msra.mxu0 %v11325_v49  ;;  %2252 = vmatpush2.msra.mxu1 %v5387_v26  ;;  %v2348_v49 = vrot.slane %v11339_v4, 2 }
 0x7ea   :  { %2182 = vmatprep.subr.mxu0 %v11326_v43  ;;  %2253 = vmatprep.subr.mxu1 %v5388_v55 }
 0x7eb   :  { %2183 = vmatpush2.msra.mxu0 %v11327_v52  ;;  %2254 = vmatpush2.msra.mxu1 %v5389_v6 }
 0x7ec   :  { %2184 = vmatprep.subr.mxu0 %v11328_v20  ;;  %2255 = vmatprep.subr.mxu1 %v5390_v23 }
 0x7ed   :  { %2185 = vmatpush2.msra.mxu0 %v11329_v17  ;;  %2256 = vmatpush2.msra.mxu1 %v5391_v30 }
 0x7ee   :  { %2186 = vmatprep.subr.mxu0 %v11330_v45  ;;  %2257 = vmatprep.subr.mxu1 %v5392_v54 }
 0x7ef   :  { %2187 = vmatpush2.msra.mxu0 %v11331_v33  ;;  %2258 = vmatpush2.msra.mxu1 %v5393_v31 }
 0x7f0   :  { %2188 = vmatprep.subr.mxu0 %v11332_v36  ;;  %2259 = vmatprep.subr.mxu1 %v5394_v39 }
 0x7f1   :  { %2189 = vmatpush2.msra.mxu0 %v11333_v27  ;;  %2260 = vmatpush2.msra.mxu1 %v5395_v28 }
 0x872   :  { %v2020_v57 = vpop.f32.mrf.mxu0  ;;  %v2091_v11 = vpop.f32.mrf.mxu1 }
 0x873   :  { %v2096_v61 = vadd.f32 %v2020_v57, %v11334_v59  ;;  %v2098_v32 = vadd.f32 %v2091_v11, %v11336_v56 }
 0x874   :  { %v2022_v63 = vpop.f32.mrf.mxu0  ;;  %v2093_v22 = vpop.f32.mrf.mxu1 }
 0x875   :  { %v4874_v2 = vmul.f32 -1.442695, %v2096_v61  ;;  %v2097_v9 = vadd.f32 %v2022_v63, %v11335_v5  ;;  %v4876_v21 = vmul.f32 -1.442695, %v2098_v32  ;;  %v2099_v40 = vadd.f32 %v2093_v22, %v11337_v50 }
 0x877   :  { %5109 = vpow2.f32 %v4874_v2  ;;  %v4875_v16 = vmul.f32 -1.442695, %v2097_v9 }
 0x879   :  { %5111 = vpow2.f32 %v4875_v16 }
 0x87a   :  { %5113 = vpow2.f32 %v4876_v21 }
 0x87b   :  { %5115 = vtanh.f32 %v2099_v40 }
 0x884   :  { %v5110_v37 = vpop.eup %5109 }
 0x885   :  { %v2109_v29 = vadd.f32 1.0, %v5110_v37 }
 0x886   :  { %v5112_v47 = vpop.eup %5111 }
 0x887   :  { %5117 = vrcp.f32 %v2109_v29  ;;  %v2110_v41 = vadd.f32 1.0, %v5112_v47  ;;  %v5114_v14 = vpop.eup %5113 }
 0x888   :  { %v5116_v51 = vpop.eup %5115  ;;  %v2111_v1 = vadd.f32 1.0, %v5114_v14 }
 0x889   :  { %5119 = vrcp.f32 %v2110_v41 }
 0x88a   :  { %5121 = vrcp.f32 %v2111_v1 }
 0x894   :  { %v5118_v44 = vpop.eup %5117 }
 0x895   :  { %v2120_v38 = vmul.f32 %v5118_v44, %v5116_v51 }
 0x896   :  { %v5120_v13 = vpop.eup %5119 }
 0x897   :  { %v2119_v62 = vmul.f32 %v5120_v13, %v7927_v60  ;;  %v5122_v53 = vpop.eup %5121 }
 0x899   :  { %v8022_v10 = vadd.f32 %v2120_v38, %v2119_v62 }
 0x89b   :  { %5123 = vtanh.f32 %v8022_v10 }
 0x8a8   :  { %v5124_v48 = vpop.eup %5123 }
 0x8a9   :  { %v2123_v35 = vmul.f32 %v5124_v48, %v5122_v53 }
 0x8ab   :  { %v8028_v26 = vmul.f32 %v2123_v35, %v6817_v8  ;;  %v8031_v43 = vmul.f32 %v6814_v34, %v2123_v35 }
 0x8ad   :  { %2190 = vmatprep.mubr.f32.mxu0 %v8028_v26  ;;  %v2353_v60 = vadd.f32 %v2349_v19, %v8028_v26  ;;  %2261 = vmatprep.mubr.f32.mxu1 %v8028_v26  ;;  %v2352_v55 = vadd.f32 %v2348_v49, %v8031_v43 }
 0x8ae   :  { %2191 = vmatmul.mubr.f32.vlgmr.msra.gmra.mxu0 %v8031_v43  ;;  %2262 = vmatmul.mubr.f32.vlgmr.msra.gmra.mxu1 %v8031_v43 }
 0x8af   :  { %v2389_v52 = vrot.slane %v2353_v60, 4  ;;  %v2388_v6 = vrot.slane %v2352_v55, 4 }
 0x8b1   :  { %v8041_v20 = vsel %vm2400_vm5, %v7951_v15, %v2389_v52  ;;  %v8045_v23 = vsel %vm2400_vm5, %v7954_v3, %v2388_v6 }
 0x8b2   :  { %5903 = shalt.err (!%p5900_p1)  }
 0x8b3   :  { %120 = dma.hbm_to_vmem [thread:$0]  %s10147_s7, 16384, %s118_s2, [#allocation5] }
 0x8b4   :  { %s5912_s18 = scalar_lea.vmem %s130_s28, 16384  ;;  %p5917_p3 = scmp.lt.s32.totalorder %s130_s28, %s130_s28 }
 0x8b5   :  { %p5913_p2 = scmp.ne.s32.totalorder %s130_s28, %s5912_s18  ;;  %p5918_p4 = scmp.lt.s32.totalorder %s5912_s18, %s5912_s18 }
 0x8b7   :  { %p5919_p5 = por %p5918_p4, %p5917_p3 }
 0x8b9   :  { %p5920_p6 = pnand %p5919_p5, %p5913_p2 }
 0x8bb   :  { %5923 = shalt.err (!%p5920_p6)  }
 0x8bc   :  { %132 = dma.hbm_to_vmem [thread:$0]  %s10148_s8, 16384, %s130_s28, [#allocation5 + $0x1] }
 0x8bd   :  { %s5992_s4 = smov [#allocation4]  }
 0x8be   :  { %s141_s21 = sshll.u32 %s5992_s4, 4  ;;  %s142_s21 = int_to_ptr.vmem [resolvable:$true] %s141_s21 }
 0x8bf   :  { %s5932_s22 = scalar_lea.vmem %s142_s21, 16384  ;;  %p5937_p8 = scmp.lt.s32.totalorder %s142_s21, %s142_s21 }
 0x8c0   :  { %p5933_p7 = scmp.ne.s32.totalorder %s142_s21, %s5932_s22  ;;  %p5938_p9 = scmp.lt.s32.totalorder %s5932_s22, %s5932_s22 }
 0x8c2   :  { %p5939_p10 = por %p5938_p9, %p5937_p8 }
 0x8c4   :  { %p5940_p11 = pnand %p5939_p10, %p5933_p7 }
 0x8c6   :  { %5943 = shalt.err (!%p5940_p11)  }
 0x8c7   :  { %144 = dma.hbm_to_vmem [thread:$0]  %s10149_s9, 16384, %s142_s21, [#allocation5 + $0x2]  ;;  %v11340_v3 = vld [vmem:[#allocation78_spill] sm:$0xff]  ;;  %v11342_v39 = vld [vmem:[#allocation96_spill] sm:$0xff]  ;;  %v11343_v59 = vld [vmem:[#allocation97_spill] sm:$0xff]  ;;  %v2309_v37 = vrot.slane %v8028_v26, 2 }
 0x8c8   :  { %v11341_v54 = vld [vmem:[#allocation82_spill] sm:$0xff]  ;;  %v2308_v29 = vrot.slane %v8031_v43, 2  ;;  %v2325_v14 = vrot.slane %v7660_v0, 2  ;;  %v2324_v51 = vrot.slane %v7663_v7, 2  ;;  %v2317_v44 = vrot.slane %v7933_v46, 2  ;;  %v11345_v48 = vld [vmem:[#allocation101_spill] sm:$0xff] }
 0x8c9   :  { %v2316_v38 = vrot.slane %v7936_v25, 2  ;;  %v2313_v1 = vadd.f32 %v2309_v37, %v11338_v42  ;;  %v2356_v35 = vrot.slane %v11345_v48, 2  ;;  %vm2403_vm6 = vcmask 1045504  }
 0x8ca   :  { %v2312_v62 = vadd.f32 %v2308_v29, %v11339_v4  ;;  %v2329_v0 = vadd.f32 %v2325_v14, %v11310_v12  ;;  %v2328_v7 = vadd.f32 %v2324_v51, %v11311_v58  ;;  %v2321_v46 = vadd.f32 %v2317_v44, %v11308_v24 }
 0x8cb   :  { %v2320_v25 = vadd.f32 %v2316_v38, %v11309_v18  ;;  %v2365_v60 = vrot.slane %v2313_v1, 6 }
 0x8cc   :  { %v2364_v55 = vrot.slane %v2312_v62, 6  ;;  %v2377_v12 = vrot.slane %v2329_v0, 2  ;;  %v2371_v58 = vrot.slane %v2321_v46, 4 }
 0x96e   :  { %v2192_v15 = vpop.f32.mrf.mxu0  ;;  %v2263_v36 = vpop.f32.mrf.mxu1 }
 0x96f   :  { %v2268_v17 = vadd.f32 %v2192_v15, %v11340_v3  ;;  %v2270_v27 = vadd.f32 %v2263_v36, %v11342_v39 }
 0x970   :  { %v2194_v30 = vpop.f32.mrf.mxu0  ;;  %v2265_v28 = vpop.f32.mrf.mxu1 }
 0x971   :  { %v4877_v45 = vmul.f32 -1.442695, %v2268_v17  ;;  %v2269_v33 = vadd.f32 %v2194_v30, %v11341_v54  ;;  %v4879_v57 = vmul.f32 -1.442695, %v2270_v27  ;;  %v2271_v61 = vadd.f32 %v2265_v28, %v11343_v59 }
 0x972   :  { %v2376_v17 = vrot.slane %v2328_v7, 2  ;;  %v2370_v30 = vrot.slane %v2320_v25, 4 }
 0x973   :  { %5125 = vpow2.f32 %v4877_v45  ;;  %v4878_v31 = vmul.f32 -1.442695, %v2269_v33 }
 0x975   :  { %5127 = vpow2.f32 %v4878_v31 }
 0x976   :  { %5129 = vpow2.f32 %v4879_v57 }
 0x977   :  { %5131 = vtanh.f32 %v2271_v61 }
 0x980   :  { %v5126_v63 = vpop.eup %5125 }
 0x981   :  { %v2281_v2 = vadd.f32 1.0, %v5126_v63 }
 0x982   :  { %v5128_v5 = vpop.eup %5127 }
 0x983   :  { %5133 = vrcp.f32 %v2281_v2  ;;  %v2282_v9 = vadd.f32 1.0, %v5128_v5  ;;  %v5130_v16 = vpop.eup %5129 }
 0x984   :  { %v5132_v11 = vpop.eup %5131  ;;  %v2283_v21 = vadd.f32 1.0, %v5130_v16 }
 0x985   :  { %5135 = vrcp.f32 %v2282_v9 }
 0x986   :  { %5137 = vrcp.f32 %v2283_v21 }
 0x990   :  { %v5134_v56 = vpop.eup %5133 }
 0x991   :  { %v2292_v32 = vmul.f32 %v5134_v56, %v5132_v11 }
 0x992   :  { %v5136_v22 = vpop.eup %5135 }
 0x993   :  { %v2291_v50 = vmul.f32 %v5136_v22, %v8022_v10  ;;  %v5138_v47 = vpop.eup %5137  ;;  %v11344_v10 = vld [vmem:[#allocation100_spill] sm:$0xff] }
 0x994   :  { %v2357_v53 = vrot.slane %v11344_v10, 2 }
 0x995   :  { %v2293_v40 = vadd.f32 %v2292_v32, %v2291_v50 }
 0x997   :  { %5139 = vtanh.f32 %v2293_v40 }
 0x9a4   :  { %v5140_v41 = vpop.eup %5139 }
 0x9a5   :  { %v2295_v13 = vmul.f32 %v5140_v41, %v5138_v47 }
 0x9a7   :  { %v2296_v19 = vmul.f32 %v6814_v34, %v2295_v13  ;;  %v2297_v49 = vmul.f32 %v2295_v13, %v6817_v8 }
 0x9a9   :  { %v2300_v26 = vrot.slane %v2296_v19, 2  ;;  %v2301_v42 = vrot.slane %v2297_v49, 2  ;;  %v2360_v43 = vadd.f32 %v2356_v35, %v2296_v19  ;;  %v2361_v4 = vadd.f32 %v2357_v53, %v2297_v49 }
 0x9ab   :  { %v2304_v52 = vadd.f32 %v2300_v26, %v11345_v48  ;;  %v2305_v6 = vadd.f32 %v2301_v42, %v11344_v10  ;;  %v2394_v15 = vrot.slane %v2360_v43, 2  ;;  %v2395_v3 = vrot.slane %v2361_v4, 2 }
 0x9ad   :  { %v2398_v24 = vsel %vm789_vm3, %v2304_v52, %v2364_v55  ;;  %v2399_v18 = vsel %vm789_vm3, %v2305_v6, %v2365_v60  ;;  %v8083_v45 = vsel %vm2403_vm6, %v8045_v23, %v2394_v15  ;;  %v8087_v54 = vsel %vm2403_vm6, %v8041_v20, %v2395_v3 }
 0x9ae   :  { %v2401_v33 = vsel %vm2400_vm5, %v2398_v24, %v2370_v30  ;;  %v2402_v31 = vsel %vm2400_vm5, %v2399_v18, %v2371_v58 }
 0x9af   :  { %v8092_v36 = vsel %vm2403_vm6, %v2401_v33, %v2376_v17  ;;  %v8095_v39 = vsel %vm2403_vm6, %v2402_v31, %v2377_v12 }
 0x9b0   :  { %5970 = dma.done.wait [#allocation5], 16384 }
 0x9b1   :  { %5971 = vsyncadd [#allocation5], 4294950912 }
 0x9b2   :  { %5972 = dma.done.wait [#allocation5 + $0x1], 16384 }
 0x9b3   :  { %5973 = vsyncadd [#allocation5 + $0x1], 4294950912 }
 0x9b4   :  { %5974 = dma.done.wait [#allocation5 + $0x2], 16384 }
 0x9b5   :  { %5975 = vsyncadd [#allocation5 + $0x2], 4294950912  ;;  %2891 = vmatprep.mubr.f32.mxu0 %v8095_v39  ;;  %2968 = vmatprep.mubr.f32.mxu1 %v8095_v39  ;;  %v2481_v20 = vld [vmem:[#allocation2 + $0x1e8] sm:$0xff]  ;;  %v2483_v23 = vld [vmem:[#allocation2 + $0x1f8] sm:$0xff]  ;;  %vm4793_vm7 = vcmask 25600   ;;  %s5993_s3 = smov [#allocation15]  }
 0x9b6   :  { %v2480_v27 = vld [vmem:[#allocation2 + $0x1e0] sm:$0xff]  ;;  %2827 = vmatprep.subr.mxu0 %v2481_v20  ;;  %2904 = vmatprep.subr.mxu1 %v2483_v23  ;;  %v2482_v28 = vld [vmem:[#allocation2 + $0x1f0] sm:$0xff]  ;;  %v2477_v57 = vld [vmem:[#allocation2 + $0x1c8] sm:$0xff]  ;;  %s4812_s16 = sshll.u32 %s5993_s3, 4  ;;  %s4813_s16 = int_to_ptr.vmem [resolvable:$true] %s4812_s16 }
 0x9b7   :  { %v2479_v59 = vld [vmem:[#allocation2 + $0x1d8] sm:$0xff]  ;;  %2828 = vmatpush1.msra.mxu0 %v2480_v27  ;;  %2905 = vmatpush1.msra.mxu1 %v2482_v28  ;;  %v2476_v61 = vld [vmem:[#allocation2 + $0x1c0] sm:$0xff]  ;;  %v2478_v63 = vld [vmem:[#allocation2 + $0x1d0] sm:$0xff]  ;;  %p5949_p13 = scmp.lt.s32.totalorder %s4813_s16, %s4813_s16 }
 0x9b8   :  { %v2473_v2 = vld [vmem:[#allocation2 + $0x1a8] sm:$0xff]  ;;  %2829 = vmatprep.subr.mxu0 %v2477_v57  ;;  %2906 = vmatprep.subr.mxu1 %v2479_v59  ;;  %v2475_v5 = vld [vmem:[#allocation2 + $0x1b8] sm:$0xff]  ;;  %v2472_v9 = vld [vmem:[#allocation2 + $0x1a0] sm:$0xff] }
 0x9b9   :  { %v2474_v16 = vld [vmem:[#allocation2 + $0x1b0] sm:$0xff]  ;;  %2830 = vmatpush1.msra.mxu0 %v2476_v61  ;;  %2907 = vmatpush1.msra.mxu1 %v2478_v63  ;;  %v2469_v11 = vld [vmem:[#allocation2 + $0x188] sm:$0xff]  ;;  %v2471_v56 = vld [vmem:[#allocation2 + $0x198] sm:$0xff] }
 0x9ba   :  { %2831 = vmatprep.subr.mxu0 %v2473_v2  ;;  %2908 = vmatprep.subr.mxu1 %v2475_v5  ;;  %v2468_v32 = vld [vmem:[#allocation2 + $0x180] sm:$0xff]  ;;  %v2470_v22 = vld [vmem:[#allocation2 + $0x190] sm:$0xff]  ;;  %v2465_v21 = vld [vmem:[#allocation2 + $0x168] sm:$0xff] }
 0x9bb   :  { %2832 = vmatpush1.msra.mxu0 %v2472_v9  ;;  %2909 = vmatpush1.msra.mxu1 %v2474_v16  ;;  %v2467_v50 = vld [vmem:[#allocation2 + $0x178] sm:$0xff]  ;;  %v2464_v40 = vld [vmem:[#allocation2 + $0x160] sm:$0xff]  ;;  %v2466_v37 = vld [vmem:[#allocation2 + $0x170] sm:$0xff] }
 0x9bc   :  { %2833 = vmatprep.subr.mxu0 %v2469_v11  ;;  %2910 = vmatprep.subr.mxu1 %v2471_v56  ;;  %v2461_v29 = vld [vmem:[#allocation2 + $0x148] sm:$0xff]  ;;  %v2463_v47 = vld [vmem:[#allocation2 + $0x158] sm:$0xff]  ;;  %v2460_v41 = vld [vmem:[#allocation2 + $0x140] sm:$0xff] }
 0x9bd   :  { %2834 = vmatpush1.msra.mxu0 %v2468_v32  ;;  %2911 = vmatpush1.msra.mxu1 %v2470_v22  ;;  %v2462_v14 = vld [vmem:[#allocation2 + $0x150] sm:$0xff]  ;;  %v2457_v51 = vld [vmem:[#allocation2 + $0x128] sm:$0xff]  ;;  %v2459_v44 = vld [vmem:[#allocation2 + $0x138] sm:$0xff] }
 0x9be   :  { %2835 = vmatprep.subr.mxu0 %v2465_v21  ;;  %2912 = vmatprep.subr.mxu1 %v2467_v50  ;;  %v2456_v38 = vld [vmem:[#allocation2 + $0x120] sm:$0xff]  ;;  %v2458_v13 = vld [vmem:[#allocation2 + $0x130] sm:$0xff]  ;;  %v2453_v1 = vld [vmem:[#allocation2 + $0x108] sm:$0xff] }
 0x9bf   :  { %2836 = vmatpush1.msra.mxu0 %v2464_v40  ;;  %2913 = vmatpush1.msra.mxu1 %v2466_v37  ;;  %v2455_v62 = vld [vmem:[#allocation2 + $0x118] sm:$0xff]  ;;  %v2452_v10 = vld [vmem:[#allocation2 + $0x100] sm:$0xff]  ;;  %v2454_v53 = vld [vmem:[#allocation2 + $0x110] sm:$0xff] }
 0x9c0   :  { %2837 = vmatprep.subr.mxu0 %v2461_v29  ;;  %2914 = vmatprep.subr.mxu1 %v2463_v47  ;;  %v2449_v48 = vld [vmem:[#allocation2 + $0xe8] sm:$0xff]  ;;  %v2451_v35 = vld [vmem:[#allocation2 + $0xf8] sm:$0xff]  ;;  %v2448_v19 = vld [vmem:[#allocation2 + $0xe0] sm:$0xff] }
 0x9c1   :  { %2838 = vmatpush1.msra.mxu0 %v2460_v41  ;;  %2915 = vmatpush1.msra.mxu1 %v2462_v14  ;;  %v2450_v49 = vld [vmem:[#allocation2 + $0xf0] sm:$0xff]  ;;  %v2445_v0 = vld [vmem:[#allocation2 + $0xc8] sm:$0xff]  ;;  %v2447_v7 = vld [vmem:[#allocation2 + $0xd8] sm:$0xff] }
 0x9c2   :  { %2839 = vmatprep.subr.mxu0 %v2457_v51  ;;  %2916 = vmatprep.subr.mxu1 %v2459_v44  ;;  %v2444_v46 = vld [vmem:[#allocation2 + $0xc0] sm:$0xff]  ;;  %v2446_v25 = vld [vmem:[#allocation2 + $0xd0] sm:$0xff]  ;;  %v2441_v26 = vld [vmem:[#allocation2 + $0xa8] sm:$0xff] }
 0x9c3   :  { %2840 = vmatpush1.msra.mxu0 %v2456_v38  ;;  %2917 = vmatpush1.msra.mxu1 %v2458_v13  ;;  %v2443_v42 = vld [vmem:[#allocation2 + $0xb8] sm:$0xff]  ;;  %v2440_v43 = vld [vmem:[#allocation2 + $0xa0] sm:$0xff]  ;;  %v2442_v4 = vld [vmem:[#allocation2 + $0xb0] sm:$0xff] }
 0x9c4   :  { %2841 = vmatprep.subr.mxu0 %v2453_v1  ;;  %2918 = vmatprep.subr.mxu1 %v2455_v62  ;;  %v2437_v60 = vld [vmem:[#allocation2 + $0x88] sm:$0xff]  ;;  %v2439_v55 = vld [vmem:[#allocation2 + $0x98] sm:$0xff]  ;;  %v2436_v52 = vld [vmem:[#allocation2 + $0x80] sm:$0xff] }
 0x9c5   :  { %2842 = vmatpush1.msra.mxu0 %v2452_v10  ;;  %2919 = vmatpush1.msra.mxu1 %v2454_v53  ;;  %v2438_v6 = vld [vmem:[#allocation2 + $0x90] sm:$0xff]  ;;  %v2433_v15 = vld [vmem:[#allocation2 + $0x68] sm:$0xff]  ;;  %v2435_v3 = vld [vmem:[#allocation2 + $0x78] sm:$0xff] }
 0x9c6   :  { %2843 = vmatprep.subr.mxu0 %v2449_v48  ;;  %2920 = vmatprep.subr.mxu1 %v2451_v35  ;;  %v2432_v12 = vld [vmem:[#allocation2 + $0x60] sm:$0xff]  ;;  %v2434_v17 = vld [vmem:[#allocation2 + $0x70] sm:$0xff]  ;;  %v2429_v58 = vld [vmem:[#allocation2 + $0x48] sm:$0xff] }
 0x9c7   :  { %2844 = vmatpush1.msra.mxu0 %v2448_v19  ;;  %2921 = vmatpush1.msra.mxu1 %v2450_v49  ;;  %v2431_v30 = vld [vmem:[#allocation2 + $0x58] sm:$0xff]  ;;  %v2428_v24 = vld [vmem:[#allocation2 + $0x40] sm:$0xff]  ;;  %v2430_v18 = vld [vmem:[#allocation2 + $0x50] sm:$0xff] }
 0x9c8   :  { %2845 = vmatprep.subr.mxu0 %v2445_v0  ;;  %2922 = vmatprep.subr.mxu1 %v2447_v7  ;;  %v2425_v33 = vld [vmem:[#allocation2 + $0x28] sm:$0xff]  ;;  %v2427_v31 = vld [vmem:[#allocation2 + $0x38] sm:$0xff]  ;;  %v2424_v20 = vld [vmem:[#allocation2 + $0x20] sm:$0xff] }
 0x9c9   :  { %2846 = vmatpush1.msra.mxu0 %v2444_v46  ;;  %2923 = vmatpush1.msra.mxu1 %v2446_v25  ;;  %v2426_v23 = vld [vmem:[#allocation2 + $0x30] sm:$0xff]  ;;  %v2421_v27 = vld [vmem:[#allocation2 + $0x8] sm:$0xff]  ;;  %v2423_v28 = vld [vmem:[#allocation2 + $0x18] sm:$0xff] }
 0x9ca   :  { %2847 = vmatprep.subr.mxu0 %v2441_v26  ;;  %2924 = vmatprep.subr.mxu1 %v2443_v42  ;;  %v2420_v57 = vld [vmem:[#allocation2] sm:$0xff]  ;;  %v2422_v59 = vld [vmem:[#allocation2 + $0x10] sm:$0xff]  ;;  %v2545_v61 = vld [vmem:[#allocation2 + $0x3e8] sm:$0xff] }
 0x9cb   :  { %2848 = vmatpush1.msra.mxu0 %v2440_v43  ;;  %2925 = vmatpush1.msra.mxu1 %v2442_v4  ;;  %v2547_v63 = vld [vmem:[#allocation2 + $0x3f8] sm:$0xff]  ;;  %v2544_v2 = vld [vmem:[#allocation2 + $0x3e0] sm:$0xff]  ;;  %v2546_v5 = vld [vmem:[#allocation2 + $0x3f0] sm:$0xff] }
 0x9cc   :  { %2849 = vmatprep.subr.mxu0 %v2437_v60  ;;  %2926 = vmatprep.subr.mxu1 %v2439_v55  ;;  %v2541_v9 = vld [vmem:[#allocation2 + $0x3c8] sm:$0xff]  ;;  %v2543_v16 = vld [vmem:[#allocation2 + $0x3d8] sm:$0xff]  ;;  %v2540_v11 = vld [vmem:[#allocation2 + $0x3c0] sm:$0xff] }
 0x9cd   :  { %2850 = vmatpush1.msra.mxu0 %v2436_v52  ;;  %2927 = vmatpush1.msra.mxu1 %v2438_v6  ;;  %v2542_v56 = vld [vmem:[#allocation2 + $0x3d0] sm:$0xff]  ;;  %v2537_v32 = vld [vmem:[#allocation2 + $0x3a8] sm:$0xff]  ;;  %v2539_v22 = vld [vmem:[#allocation2 + $0x3b8] sm:$0xff] }
 0x9ce   :  { %2851 = vmatprep.subr.mxu0 %v2433_v15  ;;  %2928 = vmatprep.subr.mxu1 %v2435_v3  ;;  %v2536_v21 = vld [vmem:[#allocation2 + $0x3a0] sm:$0xff]  ;;  %v2538_v50 = vld [vmem:[#allocation2 + $0x3b0] sm:$0xff]  ;;  %v2533_v40 = vld [vmem:[#allocation2 + $0x388] sm:$0xff] }
 0x9cf   :  { %2852 = vmatpush1.msra.mxu0 %v2432_v12  ;;  %2929 = vmatpush1.msra.mxu1 %v2434_v17  ;;  %v2535_v37 = vld [vmem:[#allocation2 + $0x398] sm:$0xff]  ;;  %v2532_v29 = vld [vmem:[#allocation2 + $0x380] sm:$0xff]  ;;  %v2534_v47 = vld [vmem:[#allocation2 + $0x390] sm:$0xff] }
 0x9d0   :  { %2853 = vmatprep.subr.mxu0 %v2429_v58  ;;  %2930 = vmatprep.subr.mxu1 %v2431_v30  ;;  %v2529_v41 = vld [vmem:[#allocation2 + $0x368] sm:$0xff]  ;;  %v2531_v14 = vld [vmem:[#allocation2 + $0x378] sm:$0xff]  ;;  %v2528_v51 = vld [vmem:[#allocation2 + $0x360] sm:$0xff] }
 0x9d1   :  { %2854 = vmatpush1.msra.mxu0 %v2428_v24  ;;  %2931 = vmatpush1.msra.mxu1 %v2430_v18  ;;  %v2530_v44 = vld [vmem:[#allocation2 + $0x370] sm:$0xff]  ;;  %v2525_v38 = vld [vmem:[#allocation2 + $0x348] sm:$0xff]  ;;  %v2527_v13 = vld [vmem:[#allocation2 + $0x358] sm:$0xff] }
 0x9d2   :  { %2855 = vmatprep.subr.mxu0 %v2425_v33  ;;  %2932 = vmatprep.subr.mxu1 %v2427_v31  ;;  %v2524_v1 = vld [vmem:[#allocation2 + $0x340] sm:$0xff]  ;;  %v2526_v62 = vld [vmem:[#allocation2 + $0x350] sm:$0xff]  ;;  %v2521_v10 = vld [vmem:[#allocation2 + $0x328] sm:$0xff] }
 0x9d3   :  { %2856 = vmatpush1.msra.mxu0 %v2424_v20  ;;  %2933 = vmatpush1.msra.mxu1 %v2426_v23  ;;  %v2523_v53 = vld [vmem:[#allocation2 + $0x338] sm:$0xff]  ;;  %v2520_v48 = vld [vmem:[#allocation2 + $0x320] sm:$0xff]  ;;  %v2522_v35 = vld [vmem:[#allocation2 + $0x330] sm:$0xff] }
 0x9d4   :  { %2857 = vmatprep.subr.mxu0 %v2421_v27  ;;  %2934 = vmatprep.subr.mxu1 %v2423_v28  ;;  %v2517_v19 = vld [vmem:[#allocation2 + $0x308] sm:$0xff]  ;;  %v2519_v49 = vld [vmem:[#allocation2 + $0x318] sm:$0xff]  ;;  %v2516_v0 = vld [vmem:[#allocation2 + $0x300] sm:$0xff] }
 0x9d5   :  { %2858 = vmatpush1.msra.mxu0 %v2420_v57  ;;  %2935 = vmatpush1.msra.mxu1 %v2422_v59  ;;  %v2518_v7 = vld [vmem:[#allocation2 + $0x310] sm:$0xff]  ;;  %v2513_v46 = vld [vmem:[#allocation2 + $0x2e8] sm:$0xff]  ;;  %v2515_v25 = vld [vmem:[#allocation2 + $0x2f8] sm:$0xff] }
 0x9d6   :  { %2859 = vmatprep.subr.mxu0 %v2545_v61  ;;  %2936 = vmatprep.subr.mxu1 %v2547_v63  ;;  %v2512_v26 = vld [vmem:[#allocation2 + $0x2e0] sm:$0xff]  ;;  %v2514_v42 = vld [vmem:[#allocation2 + $0x2f0] sm:$0xff]  ;;  %v2509_v43 = vld [vmem:[#allocation2 + $0x2c8] sm:$0xff] }
 0x9d7   :  { %2860 = vmatpush2.msra.mxu0 %v2544_v2  ;;  %2937 = vmatpush2.msra.mxu1 %v2546_v5  ;;  %v2511_v4 = vld [vmem:[#allocation2 + $0x2d8] sm:$0xff]  ;;  %v2508_v60 = vld [vmem:[#allocation2 + $0x2c0] sm:$0xff]  ;;  %v2510_v55 = vld [vmem:[#allocation2 + $0x2d0] sm:$0xff] }
 0x9d8   :  { %2861 = vmatprep.subr.mxu0 %v2541_v9  ;;  %2938 = vmatprep.subr.mxu1 %v2543_v16  ;;  %v2505_v52 = vld [vmem:[#allocation2 + $0x2a8] sm:$0xff]  ;;  %v2507_v6 = vld [vmem:[#allocation2 + $0x2b8] sm:$0xff]  ;;  %v2504_v15 = vld [vmem:[#allocation2 + $0x2a0] sm:$0xff] }
 0x9d9   :  { %2862 = vmatpush2.msra.mxu0 %v2540_v11  ;;  %2939 = vmatpush2.msra.mxu1 %v2542_v56  ;;  %v2506_v3 = vld [vmem:[#allocation2 + $0x2b0] sm:$0xff]  ;;  %v2501_v12 = vld [vmem:[#allocation2 + $0x288] sm:$0xff]  ;;  %v2503_v17 = vld [vmem:[#allocation2 + $0x298] sm:$0xff] }
 0x9da   :  { %2863 = vmatprep.subr.mxu0 %v2537_v32  ;;  %2940 = vmatprep.subr.mxu1 %v2539_v22  ;;  %v2500_v58 = vld [vmem:[#allocation2 + $0x280] sm:$0xff]  ;;  %v2502_v30 = vld [vmem:[#allocation2 + $0x290] sm:$0xff]  ;;  %v2497_v24 = vld [vmem:[#allocation2 + $0x268] sm:$0xff] }
 0x9db   :  { %2864 = vmatpush2.msra.mxu0 %v2536_v21  ;;  %2941 = vmatpush2.msra.mxu1 %v2538_v50  ;;  %v2499_v18 = vld [vmem:[#allocation2 + $0x278] sm:$0xff]  ;;  %v2496_v33 = vld [vmem:[#allocation2 + $0x260] sm:$0xff]  ;;  %v2498_v31 = vld [vmem:[#allocation2 + $0x270] sm:$0xff] }
 0x9dc   :  { %2865 = vmatprep.subr.mxu0 %v2533_v40  ;;  %2942 = vmatprep.subr.mxu1 %v2535_v37  ;;  %v2493_v20 = vld [vmem:[#allocation2 + $0x248] sm:$0xff]  ;;  %v2495_v23 = vld [vmem:[#allocation2 + $0x258] sm:$0xff]  ;;  %v2492_v27 = vld [vmem:[#allocation2 + $0x240] sm:$0xff] }
 0x9dd   :  { %2866 = vmatpush2.msra.mxu0 %v2532_v29  ;;  %2943 = vmatpush2.msra.mxu1 %v2534_v47  ;;  %v2494_v28 = vld [vmem:[#allocation2 + $0x250] sm:$0xff]  ;;  %v2489_v57 = vld [vmem:[#allocation2 + $0x228] sm:$0xff]  ;;  %v2491_v59 = vld [vmem:[#allocation2 + $0x238] sm:$0xff] }
 0x9de   :  { %2867 = vmatprep.subr.mxu0 %v2529_v41  ;;  %2944 = vmatprep.subr.mxu1 %v2531_v14  ;;  %v2488_v61 = vld [vmem:[#allocation2 + $0x220] sm:$0xff]  ;;  %v2490_v63 = vld [vmem:[#allocation2 + $0x230] sm:$0xff]  ;;  %v2485_v2 = vld [vmem:[#allocation2 + $0x208] sm:$0xff] }
 0x9df   :  { %2868 = vmatpush2.msra.mxu0 %v2528_v51  ;;  %2945 = vmatpush2.msra.mxu1 %v2530_v44  ;;  %v2487_v5 = vld [vmem:[#allocation2 + $0x218] sm:$0xff]  ;;  %v2484_v9 = vld [vmem:[#allocation2 + $0x200] sm:$0xff]  ;;  %v2486_v16 = vld [vmem:[#allocation2 + $0x210] sm:$0xff] }
 0x9e0   :  { %2869 = vmatprep.subr.mxu0 %v2525_v38  ;;  %2946 = vmatprep.subr.mxu1 %v2527_v13  ;;  %v2609_v11 = vld [vmem:[#allocation3 + $0x1e8] sm:$0xff]  ;;  %v2611_v56 = vld [vmem:[#allocation3 + $0x1f8] sm:$0xff]  ;;  %v2608_v32 = vld [vmem:[#allocation3 + $0x1e0] sm:$0xff] }
 0x9e1   :  { %2870 = vmatpush2.msra.mxu0 %v2524_v1  ;;  %2947 = vmatpush2.msra.mxu1 %v2526_v62  ;;  %v2610_v22 = vld [vmem:[#allocation3 + $0x1f0] sm:$0xff]  ;;  %v2605_v21 = vld [vmem:[#allocation3 + $0x1c8] sm:$0xff]  ;;  %v2607_v50 = vld [vmem:[#allocation3 + $0x1d8] sm:$0xff] }
 0x9e2   :  { %2871 = vmatprep.subr.mxu0 %v2521_v10  ;;  %2948 = vmatprep.subr.mxu1 %v2523_v53  ;;  %v2604_v40 = vld [vmem:[#allocation3 + $0x1c0] sm:$0xff]  ;;  %v2606_v37 = vld [vmem:[#allocation3 + $0x1d0] sm:$0xff]  ;;  %v2601_v29 = vld [vmem:[#allocation3 + $0x1a8] sm:$0xff] }
 0x9e3   :  { %2872 = vmatpush2.msra.mxu0 %v2520_v48  ;;  %2949 = vmatpush2.msra.mxu1 %v2522_v35  ;;  %v2603_v47 = vld [vmem:[#allocation3 + $0x1b8] sm:$0xff]  ;;  %v2600_v41 = vld [vmem:[#allocation3 + $0x1a0] sm:$0xff]  ;;  %v2602_v14 = vld [vmem:[#allocation3 + $0x1b0] sm:$0xff] }
 0x9e4   :  { %2873 = vmatprep.subr.mxu0 %v2517_v19  ;;  %2950 = vmatprep.subr.mxu1 %v2519_v49  ;;  %v2597_v51 = vld [vmem:[#allocation3 + $0x188] sm:$0xff]  ;;  %v2599_v44 = vld [vmem:[#allocation3 + $0x198] sm:$0xff]  ;;  %v2596_v38 = vld [vmem:[#allocation3 + $0x180] sm:$0xff] }
 0x9e5   :  { %2874 = vmatpush2.msra.mxu0 %v2516_v0  ;;  %2951 = vmatpush2.msra.mxu1 %v2518_v7  ;;  %v2598_v13 = vld [vmem:[#allocation3 + $0x190] sm:$0xff]  ;;  %v2593_v1 = vld [vmem:[#allocation3 + $0x168] sm:$0xff]  ;;  %v2595_v62 = vld [vmem:[#allocation3 + $0x178] sm:$0xff] }
 0x9e6   :  { %2875 = vmatprep.subr.mxu0 %v2513_v46  ;;  %2952 = vmatprep.subr.mxu1 %v2515_v25  ;;  %v2592_v10 = vld [vmem:[#allocation3 + $0x160] sm:$0xff]  ;;  %v2594_v53 = vld [vmem:[#allocation3 + $0x170] sm:$0xff]  ;;  %v2589_v48 = vld [vmem:[#allocation3 + $0x148] sm:$0xff] }
 0x9e7   :  { %2876 = vmatpush2.msra.mxu0 %v2512_v26  ;;  %2953 = vmatpush2.msra.mxu1 %v2514_v42  ;;  %v2591_v35 = vld [vmem:[#allocation3 + $0x158] sm:$0xff]  ;;  %v2588_v19 = vld [vmem:[#allocation3 + $0x140] sm:$0xff]  ;;  %v2590_v49 = vld [vmem:[#allocation3 + $0x150] sm:$0xff] }
 0x9e8   :  { %2877 = vmatprep.subr.mxu0 %v2509_v43  ;;  %2954 = vmatprep.subr.mxu1 %v2511_v4  ;;  %v2585_v0 = vld [vmem:[#allocation3 + $0x128] sm:$0xff]  ;;  %v2587_v7 = vld [vmem:[#allocation3 + $0x138] sm:$0xff]  ;;  %v2584_v46 = vld [vmem:[#allocation3 + $0x120] sm:$0xff] }
 0x9e9   :  { %2878 = vmatpush2.msra.mxu0 %v2508_v60  ;;  %2955 = vmatpush2.msra.mxu1 %v2510_v55  ;;  %v2586_v25 = vld [vmem:[#allocation3 + $0x130] sm:$0xff]  ;;  %v2581_v26 = vld [vmem:[#allocation3 + $0x108] sm:$0xff]  ;;  %v2583_v42 = vld [vmem:[#allocation3 + $0x118] sm:$0xff] }
 0x9ea   :  { %2879 = vmatprep.subr.mxu0 %v2505_v52  ;;  %2956 = vmatprep.subr.mxu1 %v2507_v6  ;;  %v2580_v43 = vld [vmem:[#allocation3 + $0x100] sm:$0xff]  ;;  %v2582_v4 = vld [vmem:[#allocation3 + $0x110] sm:$0xff]  ;;  %v2577_v60 = vld [vmem:[#allocation3 + $0xe8] sm:$0xff] }
 0x9eb   :  { %2880 = vmatpush2.msra.mxu0 %v2504_v15  ;;  %2957 = vmatpush2.msra.mxu1 %v2506_v3  ;;  %v2579_v55 = vld [vmem:[#allocation3 + $0xf8] sm:$0xff]  ;;  %v2576_v52 = vld [vmem:[#allocation3 + $0xe0] sm:$0xff]  ;;  %v2578_v6 = vld [vmem:[#allocation3 + $0xf0] sm:$0xff] }
 0x9ec   :  { %2881 = vmatprep.subr.mxu0 %v2501_v12  ;;  %2958 = vmatprep.subr.mxu1 %v2503_v17  ;;  %v2573_v15 = vld [vmem:[#allocation3 + $0xc8] sm:$0xff]  ;;  %v2575_v3 = vld [vmem:[#allocation3 + $0xd8] sm:$0xff]  ;;  %v2572_v12 = vld [vmem:[#allocation3 + $0xc0] sm:$0xff] }
 0x9ed   :  { %2882 = vmatpush2.msra.mxu0 %v2500_v58  ;;  %2959 = vmatpush2.msra.mxu1 %v2502_v30  ;;  %v2574_v17 = vld [vmem:[#allocation3 + $0xd0] sm:$0xff]  ;;  %v2569_v58 = vld [vmem:[#allocation3 + $0xa8] sm:$0xff]  ;;  %v2571_v30 = vld [vmem:[#allocation3 + $0xb8] sm:$0xff] }
 0x9ee   :  { %2883 = vmatprep.subr.mxu0 %v2497_v24  ;;  %2960 = vmatprep.subr.mxu1 %v2499_v18  ;;  %v2568_v24 = vld [vmem:[#allocation3 + $0xa0] sm:$0xff]  ;;  %v2570_v18 = vld [vmem:[#allocation3 + $0xb0] sm:$0xff] }
 0x9ef   :  { %2884 = vmatpush2.msra.mxu0 %v2496_v33  ;;  %2961 = vmatpush2.msra.mxu1 %v2498_v31  ;;  %v2565_v33 = vld [vmem:[#allocation3 + $0x88] sm:$0xff]  ;;  %v2567_v31 = vld [vmem:[#allocation3 + $0x98] sm:$0xff]  ;;  %v8295_v34 = vld [vmem:[#allocation4] sm:$0xff] }
 0x9f0   :  { %2885 = vmatprep.subr.mxu0 %v2493_v20  ;;  %2962 = vmatprep.subr.mxu1 %v2495_v23  ;;  %v2564_v20 = vld [vmem:[#allocation3 + $0x80] sm:$0xff]  ;;  %v2566_v23 = vld [vmem:[#allocation3 + $0x90] sm:$0xff]  ;;  %11373 = vst [vmem:[#allocation133_spill] sm:$0xff] %v8295_v34 }
 0x9f1   :  { %2886 = vmatpush2.msra.mxu0 %v2492_v27  ;;  %2963 = vmatpush2.msra.mxu1 %v2494_v28  ;;  %v2561_v27 = vld [vmem:[#allocation3 + $0x68] sm:$0xff]  ;;  %v2563_v28 = vld [vmem:[#allocation3 + $0x78] sm:$0xff]  ;;  %v8297_v8 = vld [vmem:[#allocation4 + $0x10] sm:$0xff] }
 0x9f2   :  { %2887 = vmatprep.subr.mxu0 %v2489_v57  ;;  %2964 = vmatprep.subr.mxu1 %v2491_v59  ;;  %v2560_v57 = vld [vmem:[#allocation3 + $0x60] sm:$0xff]  ;;  %v2562_v59 = vld [vmem:[#allocation3 + $0x70] sm:$0xff]  ;;  %11374 = vst [vmem:[#allocation47_spill] sm:$0xff] %v8297_v8 }
 0x9f3   :  { %2888 = vmatpush2.msra.mxu0 %v2488_v61  ;;  %2965 = vmatpush2.msra.mxu1 %v2490_v63  ;;  %v2557_v61 = vld [vmem:[#allocation3 + $0x48] sm:$0xff]  ;;  %v2559_v63 = vld [vmem:[#allocation3 + $0x58] sm:$0xff] }
 0x9f4   :  { %2889 = vmatprep.subr.mxu0 %v2485_v2  ;;  %2966 = vmatprep.subr.mxu1 %v2487_v5  ;;  %v2556_v2 = vld [vmem:[#allocation3 + $0x40] sm:$0xff]  ;;  %v2558_v5 = vld [vmem:[#allocation3 + $0x50] sm:$0xff] }
 0x9f5   :  { %2890 = vmatpush2.msra.mxu0 %v2484_v9  ;;  %2967 = vmatpush2.msra.mxu1 %v2486_v16  ;;  %v2553_v9 = vld [vmem:[#allocation3 + $0x28] sm:$0xff]  ;;  %v2555_v16 = vld [vmem:[#allocation3 + $0x38] sm:$0xff] }
 0x9f6   :  { %2892 = vmatmul.mubr.f32.vlgmr.msra.gmra.mxu0 %v8092_v36  ;;  %3002 = vmatprep.subr.mxu0 %v2609_v11  ;;  %v2552_v11 = vld [vmem:[#allocation3 + $0x20] sm:$0xff] }
 0x9f7   :  { %3079 = vmatprep.subr.mxu1 %v2611_v56  ;;  %2969 = vmatmul.mubr.f32.vlgmr.msra.gmra.mxu1 %v8092_v36  ;;  %v2554_v56 = vld [vmem:[#allocation3 + $0x30] sm:$0xff] }
 0x9f8   :  { %3003 = vmatpush1.msra.mxu0 %v2608_v32  ;;  %3080 = vmatpush1.msra.mxu1 %v2610_v22  ;;  %v2549_v32 = vld [vmem:[#allocation3 + $0x8] sm:$0xff]  ;;  %v2551_v22 = vld [vmem:[#allocation3 + $0x18] sm:$0xff] }
 0x9f9   :  { %3004 = vmatprep.subr.mxu0 %v2605_v21  ;;  %3081 = vmatprep.subr.mxu1 %v2607_v50  ;;  %v2548_v21 = vld [vmem:[#allocation3] sm:$0xff]  ;;  %v2550_v50 = vld [vmem:[#allocation3 + $0x10] sm:$0xff] }
 0x9fa   :  { %3005 = vmatpush1.msra.mxu0 %v2604_v40  ;;  %3082 = vmatpush1.msra.mxu1 %v2606_v37  ;;  %v2673_v40 = vld [vmem:[#allocation3 + $0x3e8] sm:$0xff]  ;;  %v2675_v37 = vld [vmem:[#allocation3 + $0x3f8] sm:$0xff] }
 0x9fb   :  { %3006 = vmatprep.subr.mxu0 %v2601_v29  ;;  %3083 = vmatprep.subr.mxu1 %v2603_v47  ;;  %v2672_v29 = vld [vmem:[#allocation3 + $0x3e0] sm:$0xff]  ;;  %v2674_v47 = vld [vmem:[#allocation3 + $0x3f0] sm:$0xff] }
 0x9fc   :  { %3007 = vmatpush1.msra.mxu0 %v2600_v41  ;;  %3084 = vmatpush1.msra.mxu1 %v2602_v14  ;;  %v2669_v41 = vld [vmem:[#allocation3 + $0x3c8] sm:$0xff]  ;;  %v2671_v14 = vld [vmem:[#allocation3 + $0x3d8] sm:$0xff] }
 0x9fd   :  { %3008 = vmatprep.subr.mxu0 %v2597_v51  ;;  %3085 = vmatprep.subr.mxu1 %v2599_v44  ;;  %v2668_v51 = vld [vmem:[#allocation3 + $0x3c0] sm:$0xff]  ;;  %v2670_v44 = vld [vmem:[#allocation3 + $0x3d0] sm:$0xff] }
 0x9fe   :  { %3009 = vmatpush1.msra.mxu0 %v2596_v38  ;;  %3086 = vmatpush1.msra.mxu1 %v2598_v13  ;;  %v2665_v38 = vld [vmem:[#allocation3 + $0x3a8] sm:$0xff]  ;;  %v2667_v13 = vld [vmem:[#allocation3 + $0x3b8] sm:$0xff] }
 0x9ff   :  { %3010 = vmatprep.subr.mxu0 %v2593_v1  ;;  %3087 = vmatprep.subr.mxu1 %v2595_v62  ;;  %v2664_v1 = vld [vmem:[#allocation3 + $0x3a0] sm:$0xff]  ;;  %v2666_v62 = vld [vmem:[#allocation3 + $0x3b0] sm:$0xff] }
 0xa00   :  { %3011 = vmatpush1.msra.mxu0 %v2592_v10  ;;  %3088 = vmatpush1.msra.mxu1 %v2594_v53  ;;  %v2661_v10 = vld [vmem:[#allocation3 + $0x388] sm:$0xff]  ;;  %v2663_v53 = vld [vmem:[#allocation3 + $0x398] sm:$0xff] }
 0xa01   :  { %3012 = vmatprep.subr.mxu0 %v2589_v48  ;;  %3089 = vmatprep.subr.mxu1 %v2591_v35  ;;  %v2660_v48 = vld [vmem:[#allocation3 + $0x380] sm:$0xff]  ;;  %v2662_v35 = vld [vmem:[#allocation3 + $0x390] sm:$0xff] }
 0xa02   :  { %3013 = vmatpush1.msra.mxu0 %v2588_v19  ;;  %3090 = vmatpush1.msra.mxu1 %v2590_v49  ;;  %v2657_v19 = vld [vmem:[#allocation3 + $0x368] sm:$0xff]  ;;  %v2659_v49 = vld [vmem:[#allocation3 + $0x378] sm:$0xff] }
 0xa03   :  { %3014 = vmatprep.subr.mxu0 %v2585_v0  ;;  %3091 = vmatprep.subr.mxu1 %v2587_v7  ;;  %v2656_v0 = vld [vmem:[#allocation3 + $0x360] sm:$0xff]  ;;  %v2658_v7 = vld [vmem:[#allocation3 + $0x370] sm:$0xff] }
 0xa04   :  { %3015 = vmatpush1.msra.mxu0 %v2584_v46  ;;  %3092 = vmatpush1.msra.mxu1 %v2586_v25  ;;  %v2653_v46 = vld [vmem:[#allocation3 + $0x348] sm:$0xff]  ;;  %v2655_v25 = vld [vmem:[#allocation3 + $0x358] sm:$0xff] }
 0xa05   :  { %3016 = vmatprep.subr.mxu0 %v2581_v26  ;;  %3093 = vmatprep.subr.mxu1 %v2583_v42  ;;  %v2652_v26 = vld [vmem:[#allocation3 + $0x340] sm:$0xff]  ;;  %v2654_v42 = vld [vmem:[#allocation3 + $0x350] sm:$0xff] }
 0xa06   :  { %3017 = vmatpush1.msra.mxu0 %v2580_v43  ;;  %3094 = vmatpush1.msra.mxu1 %v2582_v4  ;;  %v2649_v43 = vld [vmem:[#allocation3 + $0x328] sm:$0xff]  ;;  %v2651_v4 = vld [vmem:[#allocation3 + $0x338] sm:$0xff] }
 0xa07   :  { %3018 = vmatprep.subr.mxu0 %v2577_v60  ;;  %3095 = vmatprep.subr.mxu1 %v2579_v55  ;;  %v2648_v60 = vld [vmem:[#allocation3 + $0x320] sm:$0xff]  ;;  %v2650_v55 = vld [vmem:[#allocation3 + $0x330] sm:$0xff] }
 0xa08   :  { %3019 = vmatpush1.msra.mxu0 %v2576_v52  ;;  %3096 = vmatpush1.msra.mxu1 %v2578_v6  ;;  %v2645_v52 = vld [vmem:[#allocation3 + $0x308] sm:$0xff]  ;;  %v2647_v6 = vld [vmem:[#allocation3 + $0x318] sm:$0xff] }
 0xa09   :  { %3020 = vmatprep.subr.mxu0 %v2573_v15  ;;  %3097 = vmatprep.subr.mxu1 %v2575_v3  ;;  %v2644_v15 = vld [vmem:[#allocation3 + $0x300] sm:$0xff]  ;;  %v2646_v3 = vld [vmem:[#allocation3 + $0x310] sm:$0xff] }
 0xa0a   :  { %3021 = vmatpush1.msra.mxu0 %v2572_v12  ;;  %3098 = vmatpush1.msra.mxu1 %v2574_v17  ;;  %v2641_v12 = vld [vmem:[#allocation3 + $0x2e8] sm:$0xff]  ;;  %v2643_v17 = vld [vmem:[#allocation3 + $0x2f8] sm:$0xff] }
 0xa0b   :  { %3022 = vmatprep.subr.mxu0 %v2569_v58  ;;  %3099 = vmatprep.subr.mxu1 %v2571_v30  ;;  %v2640_v58 = vld [vmem:[#allocation3 + $0x2e0] sm:$0xff]  ;;  %v2642_v30 = vld [vmem:[#allocation3 + $0x2f0] sm:$0xff] }
 0xa0c   :  { %3023 = vmatpush1.msra.mxu0 %v2568_v24  ;;  %3100 = vmatpush1.msra.mxu1 %v2570_v18  ;;  %v2637_v24 = vld [vmem:[#allocation3 + $0x2c8] sm:$0xff]  ;;  %v2639_v18 = vld [vmem:[#allocation3 + $0x2d8] sm:$0xff] }
 0xa0d   :  { %3024 = vmatprep.subr.mxu0 %v2565_v33  ;;  %3101 = vmatprep.subr.mxu1 %v2567_v31  ;;  %v2636_v33 = vld [vmem:[#allocation3 + $0x2c0] sm:$0xff]  ;;  %v2638_v31 = vld [vmem:[#allocation3 + $0x2d0] sm:$0xff] }
 0xa0e   :  { %3025 = vmatpush1.msra.mxu0 %v2564_v20  ;;  %3102 = vmatpush1.msra.mxu1 %v2566_v23  ;;  %v2633_v20 = vld [vmem:[#allocation3 + $0x2a8] sm:$0xff]  ;;  %v2635_v23 = vld [vmem:[#allocation3 + $0x2b8] sm:$0xff] }
 0xa0f   :  { %3026 = vmatprep.subr.mxu0 %v2561_v27  ;;  %3103 = vmatprep.subr.mxu1 %v2563_v28  ;;  %v2632_v27 = vld [vmem:[#allocation3 + $0x2a0] sm:$0xff]  ;;  %v2634_v28 = vld [vmem:[#allocation3 + $0x2b0] sm:$0xff] }
 0xa10   :  { %3027 = vmatpush1.msra.mxu0 %v2560_v57  ;;  %3104 = vmatpush1.msra.mxu1 %v2562_v59  ;;  %v2629_v57 = vld [vmem:[#allocation3 + $0x288] sm:$0xff]  ;;  %v2631_v59 = vld [vmem:[#allocation3 + $0x298] sm:$0xff] }
 0xa11   :  { %3028 = vmatprep.subr.mxu0 %v2557_v61  ;;  %3105 = vmatprep.subr.mxu1 %v2559_v63  ;;  %v2628_v61 = vld [vmem:[#allocation3 + $0x280] sm:$0xff]  ;;  %v2630_v63 = vld [vmem:[#allocation3 + $0x290] sm:$0xff] }
 0xa12   :  { %3029 = vmatpush1.msra.mxu0 %v2556_v2  ;;  %3106 = vmatpush1.msra.mxu1 %v2558_v5  ;;  %v2625_v2 = vld [vmem:[#allocation3 + $0x268] sm:$0xff]  ;;  %v2627_v5 = vld [vmem:[#allocation3 + $0x278] sm:$0xff] }
 0xa13   :  { %3030 = vmatprep.subr.mxu0 %v2553_v9  ;;  %3107 = vmatprep.subr.mxu1 %v2555_v16  ;;  %v2624_v9 = vld [vmem:[#allocation3 + $0x260] sm:$0xff]  ;;  %v2626_v16 = vld [vmem:[#allocation3 + $0x270] sm:$0xff] }
 0xa14   :  { %3031 = vmatpush1.msra.mxu0 %v2552_v11  ;;  %3108 = vmatpush1.msra.mxu1 %v2554_v56  ;;  %v2621_v11 = vld [vmem:[#allocation3 + $0x248] sm:$0xff]  ;;  %v2623_v56 = vld [vmem:[#allocation3 + $0x258] sm:$0xff] }
 0xa15   :  { %3032 = vmatprep.subr.mxu0 %v2549_v32  ;;  %3109 = vmatprep.subr.mxu1 %v2551_v22  ;;  %v2620_v32 = vld [vmem:[#allocation3 + $0x240] sm:$0xff]  ;;  %v2622_v22 = vld [vmem:[#allocation3 + $0x250] sm:$0xff] }
 0xa16   :  { %3033 = vmatpush1.msra.mxu0 %v2548_v21  ;;  %3110 = vmatpush1.msra.mxu1 %v2550_v50  ;;  %v2617_v21 = vld [vmem:[#allocation3 + $0x228] sm:$0xff]  ;;  %v2619_v50 = vld [vmem:[#allocation3 + $0x238] sm:$0xff] }
 0xa17   :  { %3034 = vmatprep.subr.mxu0 %v2673_v40  ;;  %3111 = vmatprep.subr.mxu1 %v2675_v37  ;;  %v2616_v40 = vld [vmem:[#allocation3 + $0x220] sm:$0xff]  ;;  %v2618_v37 = vld [vmem:[#allocation3 + $0x230] sm:$0xff] }
 0xa18   :  { %3035 = vmatpush2.msra.mxu0 %v2672_v29  ;;  %3112 = vmatpush2.msra.mxu1 %v2674_v47  ;;  %v2613_v29 = vld [vmem:[#allocation3 + $0x208] sm:$0xff]  ;;  %v2615_v47 = vld [vmem:[#allocation3 + $0x218] sm:$0xff] }
 0xa19   :  { %3036 = vmatprep.subr.mxu0 %v2669_v41  ;;  %3113 = vmatprep.subr.mxu1 %v2671_v14  ;;  %v2612_v41 = vld [vmem:[#allocation3 + $0x200] sm:$0xff]  ;;  %v2614_v14 = vld [vmem:[#allocation3 + $0x210] sm:$0xff] }
 0xa1a   :  { %3037 = vmatpush2.msra.mxu0 %v2668_v51  ;;  %3114 = vmatpush2.msra.mxu1 %v2670_v44  ;;  %v8106_v51 = vld [vmem:[#allocation4 + $0x1e8] sm:$0xff]  ;;  %v8108_v44 = vld [vmem:[#allocation4 + $0x1f8] sm:$0xff] }
 0xa1b   :  { %3038 = vmatprep.subr.mxu0 %v2665_v38  ;;  %3115 = vmatprep.subr.mxu1 %v2667_v13  ;;  %v8111_v38 = vld [vmem:[#allocation4 + $0x1e0] sm:$0xff]  ;;  %v8113_v13 = vld [vmem:[#allocation4 + $0x1f0] sm:$0xff] }
 0xa1c   :  { %3039 = vmatpush2.msra.mxu0 %v2664_v1  ;;  %3116 = vmatpush2.msra.mxu1 %v2666_v62  ;;  %v8117_v1 = vld [vmem:[#allocation4 + $0x1c8] sm:$0xff]  ;;  %v8119_v62 = vld [vmem:[#allocation4 + $0x1d8] sm:$0xff] }
 0xa1d   :  { %3040 = vmatprep.subr.mxu0 %v2661_v10  ;;  %3117 = vmatprep.subr.mxu1 %v2663_v53  ;;  %v8127_v10 = vld [vmem:[#allocation4 + $0x1d0] sm:$0xff]  ;;  %v8135_v53 = vld [vmem:[#allocation4 + $0x1b8] sm:$0xff] }
 0xa1e   :  { %3041 = vmatpush2.msra.mxu0 %v2660_v48  ;;  %3118 = vmatpush2.msra.mxu1 %v2662_v35  ;;  %v8139_v48 = vld [vmem:[#allocation4 + $0x1a0] sm:$0xff]  ;;  %v8141_v35 = vld [vmem:[#allocation4 + $0x1b0] sm:$0xff] }
 0xa1f   :  { %3042 = vmatprep.subr.mxu0 %v2657_v19  ;;  %3119 = vmatprep.subr.mxu1 %v2659_v49  ;;  %v8145_v19 = vld [vmem:[#allocation4 + $0x188] sm:$0xff]  ;;  %v8147_v49 = vld [vmem:[#allocation4 + $0x198] sm:$0xff] }
 0xa20   :  { %3043 = vmatpush2.msra.mxu0 %v2656_v0  ;;  %3120 = vmatpush2.msra.mxu1 %v2658_v7  ;;  %v8153_v0 = vld [vmem:[#allocation4 + $0x190] sm:$0xff]  ;;  %v8157_v7 = vld [vmem:[#allocation4 + $0x168] sm:$0xff] }
 0xa21   :  { %3044 = vmatprep.subr.mxu0 %v2653_v46  ;;  %3121 = vmatprep.subr.mxu1 %v2655_v25  ;;  %v8159_v46 = vld [vmem:[#allocation4 + $0x178] sm:$0xff]  ;;  %v8165_v25 = vld [vmem:[#allocation4 + $0x170] sm:$0xff] }
 0xa22   :  { %3045 = vmatpush2.msra.mxu0 %v2652_v26  ;;  %3122 = vmatpush2.msra.mxu1 %v2654_v42  ;;  %v8169_v26 = vld [vmem:[#allocation4 + $0x148] sm:$0xff]  ;;  %v8171_v42 = vld [vmem:[#allocation4 + $0x158] sm:$0xff] }
 0xa23   :  { %3046 = vmatprep.subr.mxu0 %v2649_v43  ;;  %3123 = vmatprep.subr.mxu1 %v2651_v4  ;;  %v8175_v43 = vld [vmem:[#allocation4 + $0x140] sm:$0xff]  ;;  %v8177_v4 = vld [vmem:[#allocation4 + $0x150] sm:$0xff] }
 0xa24   :  { %3047 = vmatpush2.msra.mxu0 %v2648_v60  ;;  %3124 = vmatpush2.msra.mxu1 %v2650_v55  ;;  %v8181_v60 = vld [vmem:[#allocation4 + $0x128] sm:$0xff]  ;;  %v8183_v55 = vld [vmem:[#allocation4 + $0x138] sm:$0xff] }
 0xa25   :  { %3048 = vmatprep.subr.mxu0 %v2645_v52  ;;  %3125 = vmatprep.subr.mxu1 %v2647_v6  ;;  %v8187_v52 = vld [vmem:[#allocation4 + $0x120] sm:$0xff]  ;;  %v8189_v6 = vld [vmem:[#allocation4 + $0x130] sm:$0xff] }
 0xa26   :  { %3049 = vmatpush2.msra.mxu0 %v2644_v15  ;;  %3126 = vmatpush2.msra.mxu1 %v2646_v3  ;;  %v8193_v15 = vld [vmem:[#allocation4 + $0x108] sm:$0xff]  ;;  %v8195_v3 = vld [vmem:[#allocation4 + $0x118] sm:$0xff] }
 0xa27   :  { %3050 = vmatprep.subr.mxu0 %v2641_v12  ;;  %3127 = vmatprep.subr.mxu1 %v2643_v17  ;;  %v8199_v12 = vld [vmem:[#allocation4 + $0x100] sm:$0xff]  ;;  %v8201_v17 = vld [vmem:[#allocation4 + $0x110] sm:$0xff] }
 0xa28   :  { %3051 = vmatpush2.msra.mxu0 %v2640_v58  ;;  %3128 = vmatpush2.msra.mxu1 %v2642_v30  ;;  %v8205_v58 = vld [vmem:[#allocation4 + $0xe8] sm:$0xff]  ;;  %v8207_v30 = vld [vmem:[#allocation4 + $0xf8] sm:$0xff] }
 0xa29   :  { %3052 = vmatprep.subr.mxu0 %v2637_v24  ;;  %3129 = vmatprep.subr.mxu1 %v2639_v18  ;;  %v8211_v24 = vld [vmem:[#allocation4 + $0xe0] sm:$0xff]  ;;  %v8213_v18 = vld [vmem:[#allocation4 + $0xf0] sm:$0xff] }
 0xa2a   :  { %3053 = vmatpush2.msra.mxu0 %v2636_v33  ;;  %3130 = vmatpush2.msra.mxu1 %v2638_v31  ;;  %11346 = vst [vmem:[#allocation33_spill] sm:$0xff] %v8213_v18  ;;  %v8217_v33 = vld [vmem:[#allocation4 + $0xc8] sm:$0xff]  ;;  %v8219_v31 = vld [vmem:[#allocation4 + $0xd8] sm:$0xff] }
 0xa2b   :  { %3054 = vmatprep.subr.mxu0 %v2633_v20  ;;  %3131 = vmatprep.subr.mxu1 %v2635_v23  ;;  %11347 = vst [vmem:[#allocation120_spill] sm:$0xff] %v8217_v33  ;;  %11348 = vst [vmem:[#allocation34_spill] sm:$0xff] %v8219_v31  ;;  %v8223_v20 = vld [vmem:[#allocation4 + $0xc0] sm:$0xff]  ;;  %v8225_v23 = vld [vmem:[#allocation4 + $0xd0] sm:$0xff] }
 0xa2c   :  { %3055 = vmatpush2.msra.mxu0 %v2632_v27  ;;  %3132 = vmatpush2.msra.mxu1 %v2634_v28  ;;  %11349 = vst [vmem:[#allocation121_spill] sm:$0xff] %v8223_v20  ;;  %11350 = vst [vmem:[#allocation35_spill] sm:$0xff] %v8225_v23  ;;  %v8229_v27 = vld [vmem:[#allocation4 + $0xa8] sm:$0xff]  ;;  %v8231_v28 = vld [vmem:[#allocation4 + $0xb8] sm:$0xff] }
 0xa2d   :  { %3056 = vmatprep.subr.mxu0 %v2629_v57  ;;  %3133 = vmatprep.subr.mxu1 %v2631_v59  ;;  %11351 = vst [vmem:[#allocation122_spill] sm:$0xff] %v8229_v27  ;;  %11352 = vst [vmem:[#allocation36_spill] sm:$0xff] %v8231_v28  ;;  %v8235_v57 = vld [vmem:[#allocation4 + $0xa0] sm:$0xff]  ;;  %v8237_v59 = vld [vmem:[#allocation4 + $0xb0] sm:$0xff] }
 0xa2e   :  { %3057 = vmatpush2.msra.mxu0 %v2628_v61  ;;  %3134 = vmatpush2.msra.mxu1 %v2630_v63  ;;  %11353 = vst [vmem:[#allocation123_spill] sm:$0xff] %v8235_v57  ;;  %11354 = vst [vmem:[#allocation37_spill] sm:$0xff] %v8237_v59  ;;  %v8241_v61 = vld [vmem:[#allocation4 + $0x88] sm:$0xff]  ;;  %v8243_v63 = vld [vmem:[#allocation4 + $0x98] sm:$0xff] }
 0xa2f   :  { %3058 = vmatprep.subr.mxu0 %v2625_v2  ;;  %3135 = vmatprep.subr.mxu1 %v2627_v5  ;;  %11355 = vst [vmem:[#allocation124_spill] sm:$0xff] %v8241_v61  ;;  %11356 = vst [vmem:[#allocation38_spill] sm:$0xff] %v8243_v63  ;;  %v8247_v2 = vld [vmem:[#allocation4 + $0x80] sm:$0xff]  ;;  %v8249_v5 = vld [vmem:[#allocation4 + $0x90] sm:$0xff] }
 0xa30   :  { %3059 = vmatpush2.msra.mxu0 %v2624_v9  ;;  %3136 = vmatpush2.msra.mxu1 %v2626_v16  ;;  %11357 = vst [vmem:[#allocation125_spill] sm:$0xff] %v8247_v2  ;;  %11358 = vst [vmem:[#allocation39_spill] sm:$0xff] %v8249_v5  ;;  %v8253_v9 = vld [vmem:[#allocation4 + $0x68] sm:$0xff]  ;;  %v8255_v16 = vld [vmem:[#allocation4 + $0x78] sm:$0xff] }
 0xa31   :  { %2897 = vmatprep.mubr.f32.mxu0 %v8087_v54  ;;  %3060 = vmatprep.subr.mxu0 %v2621_v11  ;;  %11359 = vst [vmem:[#allocation126_spill] sm:$0xff] %v8253_v9  ;;  %11360 = vst [vmem:[#allocation40_spill] sm:$0xff] %v8255_v16  ;;  %v8259_v11 = vld [vmem:[#allocation4 + $0x60] sm:$0xff] }
 0xa32   :  { %3137 = vmatprep.subr.mxu1 %v2623_v56  ;;  %2898 = vmatmul.mubr.f32.gmra.mxu0 %v8083_v45  ;;  %11361 = vst [vmem:[#allocation127_spill] sm:$0xff] %v8259_v11  ;;  %v8261_v56 = vld [vmem:[#allocation4 + $0x70] sm:$0xff] }
 0xa33   :  { %2974 = vmatprep.mubr.f32.mxu1 %v8087_v54  ;;  %3061 = vmatpush2.msra.mxu0 %v2620_v32  ;;  %11362 = vst [vmem:[#allocation41_spill] sm:$0xff] %v8261_v56  ;;  %v8265_v32 = vld [vmem:[#allocation4 + $0x48] sm:$0xff] }
 0xa34   :  { %3138 = vmatpush2.msra.mxu1 %v2622_v22  ;;  %3062 = vmatprep.subr.mxu0 %v2617_v21  ;;  %11363 = vst [vmem:[#allocation128_spill] sm:$0xff] %v8265_v32  ;;  %v8267_v22 = vld [vmem:[#allocation4 + $0x58] sm:$0xff]  ;;  %v8271_v21 = vld [vmem:[#allocation4 + $0x40] sm:$0xff] }
 0xa35   :  { %2975 = vmatmul.mubr.f32.gmra.mxu1 %v8083_v45  ;;  %3139 = vmatprep.subr.mxu1 %v2619_v50  ;;  %11364 = vst [vmem:[#allocation42_spill] sm:$0xff] %v8267_v22  ;;  %11365 = vst [vmem:[#allocation129_spill] sm:$0xff] %v8271_v21  ;;  %v8273_v50 = vld [vmem:[#allocation4 + $0x50] sm:$0xff] }
 0xa36   :  { %3063 = vmatpush2.msra.mxu0 %v2616_v40  ;;  %3140 = vmatpush2.msra.mxu1 %v2618_v37  ;;  %11366 = vst [vmem:[#allocation43_spill] sm:$0xff] %v8273_v50  ;;  %v8277_v40 = vld [vmem:[#allocation4 + $0x28] sm:$0xff]  ;;  %v8279_v37 = vld [vmem:[#allocation4 + $0x38] sm:$0xff] }
 0xa37   :  { %3064 = vmatprep.subr.mxu0 %v2613_v29  ;;  %3141 = vmatprep.subr.mxu1 %v2615_v47  ;;  %11367 = vst [vmem:[#allocation130_spill] sm:$0xff] %v8277_v40  ;;  %11368 = vst [vmem:[#allocation44_spill] sm:$0xff] %v8279_v37  ;;  %v8283_v29 = vld [vmem:[#allocation4 + $0x20] sm:$0xff]  ;;  %v8285_v47 = vld [vmem:[#allocation4 + $0x30] sm:$0xff] }
 0xa38   :  { %3065 = vmatpush2.msra.mxu0 %v2612_v41  ;;  %3066 = vmatprep.mubr.f32.mxu0 %v8095_v39  ;;  %11369 = vst [vmem:[#allocation131_spill] sm:$0xff] %v8283_v29  ;;  %11370 = vst [vmem:[#allocation45_spill] sm:$0xff] %v8285_v47  ;;  %v8289_v41 = vld [vmem:[#allocation4 + $0x8] sm:$0xff] }
 0xa39   :  { %3142 = vmatpush2.msra.mxu1 %v2614_v14  ;;  %3143 = vmatprep.mubr.f32.mxu1 %v8095_v39  ;;  %v8125_v39 = vld [vmem:[#allocation4 + $0x1c0] sm:$0xff]  ;;  %11371 = vst [vmem:[#allocation132_spill] sm:$0xff] %v8289_v41  ;;  %v8291_v14 = vld [vmem:[#allocation4 + $0x18] sm:$0xff] }
 0xa3a   :  { %3067 = vmatmul.mubr.f32.vlgmr.msra.gmra.mxu0 %v8092_v36  ;;  %3144 = vmatmul.mubr.f32.vlgmr.msra.gmra.mxu1 %v8092_v36  ;;  %v8133_v36 = vld [vmem:[#allocation4 + $0x1a8] sm:$0xff]  ;;  %11372 = vst [vmem:[#allocation46_spill] sm:$0xff] %v8291_v14 }
 0xa3b   :  { %3300 = vmatprep.subr.mxu0 %v8106_v51  ;;  %3371 = vmatprep.subr.mxu1 %v8108_v44 }
 0xa3c   :  { %3301 = vmatpush1.msra.mxu0 %v8111_v38  ;;  %3372 = vmatpush1.msra.mxu1 %v8113_v13 }
 0xa3d   :  { %3302 = vmatprep.subr.mxu0 %v8117_v1  ;;  %3373 = vmatprep.subr.mxu1 %v8119_v62 }
 0xa3e   :  { %3072 = vmatprep.mubr.f32.mxu0 %v8087_v54  ;;  %3149 = vmatprep.mubr.f32.mxu1 %v8087_v54  ;;  %v8151_v54 = vld [vmem:[#allocation4 + $0x180] sm:$0xff] }
 0xa3f   :  { %3303 = vmatpush1.msra.mxu0 %v8125_v39  ;;  %3374 = vmatpush1.msra.mxu1 %v8127_v10 }
 0xa40   :  { %3073 = vmatmul.mubr.f32.gmra.mxu0 %v8083_v45  ;;  %3150 = vmatmul.mubr.f32.gmra.mxu1 %v8083_v45  ;;  %v8163_v45 = vld [vmem:[#allocation4 + $0x160] sm:$0xff] }
 0xa41   :  { %3304 = vmatprep.subr.mxu0 %v8133_v36  ;;  %3375 = vmatprep.subr.mxu1 %v8135_v53 }
 0xa42   :  { %3305 = vmatpush1.msra.mxu0 %v8139_v48  ;;  %3376 = vmatpush1.msra.mxu1 %v8141_v35 }
 0xa43   :  { %3306 = vmatprep.subr.mxu0 %v8145_v19  ;;  %3377 = vmatprep.subr.mxu1 %v8147_v49 }
 0xa44   :  { %3307 = vmatpush1.msra.mxu0 %v8151_v54  ;;  %3378 = vmatpush1.msra.mxu1 %v8153_v0 }
 0xa45   :  { %3308 = vmatprep.subr.mxu0 %v8157_v7  ;;  %3379 = vmatprep.subr.mxu1 %v8159_v46 }
 0xa46   :  { %3309 = vmatpush1.msra.mxu0 %v8163_v45  ;;  %3380 = vmatpush1.msra.mxu1 %v8165_v25 }
 0xa47   :  { %3310 = vmatprep.subr.mxu0 %v8169_v26  ;;  %3381 = vmatprep.subr.mxu1 %v8171_v42 }
 0xa48   :  { %3311 = vmatpush1.msra.mxu0 %v8175_v43  ;;  %3382 = vmatpush1.msra.mxu1 %v8177_v4 }
 0xa49   :  { %3312 = vmatprep.subr.mxu0 %v8181_v60  ;;  %3383 = vmatprep.subr.mxu1 %v8183_v55 }
 0xa4a   :  { %3313 = vmatpush1.msra.mxu0 %v8187_v52  ;;  %3384 = vmatpush1.msra.mxu1 %v8189_v6 }
 0xa4b   :  { %3314 = vmatprep.subr.mxu0 %v8193_v15  ;;  %3385 = vmatprep.subr.mxu1 %v8195_v3 }
 0xa4c   :  { %3315 = vmatpush1.msra.mxu0 %v8199_v12  ;;  %3386 = vmatpush1.msra.mxu1 %v8201_v17 }
 0xa4d   :  { %3316 = vmatprep.subr.mxu0 %v8205_v58  ;;  %3387 = vmatprep.subr.mxu1 %v8207_v30 }
 0xa4e   :  { %3317 = vmatpush1.msra.mxu0 %v8211_v24  ;;  %3388 = vmatpush1.msra.mxu1 %v8213_v18 }
 0xa4f   :  { %3318 = vmatprep.subr.mxu0 %v8217_v33  ;;  %3389 = vmatprep.subr.mxu1 %v8219_v31 }
 0xa50   :  { %3319 = vmatpush1.msra.mxu0 %v8223_v20  ;;  %3390 = vmatpush1.msra.mxu1 %v8225_v23 }
 0xa51   :  { %3320 = vmatprep.subr.mxu0 %v8229_v27  ;;  %3391 = vmatprep.subr.mxu1 %v8231_v28 }
 0xa52   :  { %3321 = vmatpush1.msra.mxu0 %v8235_v57  ;;  %3392 = vmatpush1.msra.mxu1 %v8237_v59 }
 0xa53   :  { %3322 = vmatprep.subr.mxu0 %v8241_v61  ;;  %3393 = vmatprep.subr.mxu1 %v8243_v63 }
 0xa54   :  { %3323 = vmatpush1.msra.mxu0 %v8247_v2  ;;  %3394 = vmatpush1.msra.mxu1 %v8249_v5 }
 0xa55   :  { %3324 = vmatprep.subr.mxu0 %v8253_v9  ;;  %3395 = vmatprep.subr.mxu1 %v8255_v16 }
 0xa56   :  { %3325 = vmatpush1.msra.mxu0 %v8259_v11  ;;  %3396 = vmatpush1.msra.mxu1 %v8261_v56 }
 0xa57   :  { %3326 = vmatprep.subr.mxu0 %v8265_v32  ;;  %3397 = vmatprep.subr.mxu1 %v8267_v22  ;;  %v8301_v22 = vld [vmem:[#allocation4 + $0x3e8] sm:$0xff] }
 0xa58   :  { %3327 = vmatpush1.msra.mxu0 %v8271_v21  ;;  %3398 = vmatpush1.msra.mxu1 %v8273_v50  ;;  %11375 = vst [vmem:[#allocation134_spill] sm:$0xff] %v8301_v22  ;;  %v8303_v21 = vld [vmem:[#allocation4 + $0x3f8] sm:$0xff]  ;;  %v8307_v50 = vld [vmem:[#allocation4 + $0x3e0] sm:$0xff] }
 0xa59   :  { %3328 = vmatprep.subr.mxu0 %v8277_v40  ;;  %3399 = vmatprep.subr.mxu1 %v8279_v37  ;;  %11376 = vst [vmem:[#allocation48_spill] sm:$0xff] %v8303_v21  ;;  %11377 = vst [vmem:[#allocation135_spill] sm:$0xff] %v8307_v50  ;;  %v8309_v40 = vld [vmem:[#allocation4 + $0x3f0] sm:$0xff]  ;;  %v8313_v37 = vld [vmem:[#allocation4 + $0x3c8] sm:$0xff] }
 0xa5a   :  { %3329 = vmatpush1.msra.mxu0 %v8283_v29  ;;  %3400 = vmatpush1.msra.mxu1 %v8285_v47  ;;  %11378 = vst [vmem:[#allocation49_spill] sm:$0xff] %v8309_v40  ;;  %11379 = vst [vmem:[#allocation50_spill] sm:$0xff] %v8313_v37  ;;  %v8315_v29 = vld [vmem:[#allocation4 + $0x3d8] sm:$0xff]  ;;  %v8319_v47 = vld [vmem:[#allocation4 + $0x3c0] sm:$0xff] }
 0xa5b   :  { %3330 = vmatprep.subr.mxu0 %v8289_v41  ;;  %3401 = vmatprep.subr.mxu1 %v8291_v14  ;;  %11380 = vst [vmem:[#allocation51_spill] sm:$0xff] %v8315_v29  ;;  %11381 = vst [vmem:[#allocation52_spill] sm:$0xff] %v8319_v47  ;;  %v8321_v41 = vld [vmem:[#allocation4 + $0x3d0] sm:$0xff]  ;;  %v8325_v14 = vld [vmem:[#allocation4 + $0x3a8] sm:$0xff] }
 0xa5c   :  { %3331 = vmatpush1.msra.mxu0 %v8295_v34  ;;  %3402 = vmatpush1.msra.mxu1 %v8297_v8  ;;  %11382 = vst [vmem:[#allocation53_spill] sm:$0xff] %v8321_v41  ;;  %11383 = vst [vmem:[#allocation54_spill] sm:$0xff] %v8325_v14  ;;  %v8327_v34 = vld [vmem:[#allocation4 + $0x3b8] sm:$0xff]  ;;  %v8331_v8 = vld [vmem:[#allocation4 + $0x3a0] sm:$0xff] }
 0xa5d   :  { %3332 = vmatprep.subr.mxu0 %v8301_v22  ;;  %3403 = vmatprep.subr.mxu1 %v8303_v21  ;;  %11384 = vst [vmem:[#allocation55_spill] sm:$0xff] %v8327_v34  ;;  %11385 = vst [vmem:[#allocation56_spill] sm:$0xff] %v8331_v8  ;;  %v8333_v22 = vld [vmem:[#allocation4 + $0x3b0] sm:$0xff]  ;;  %v8337_v21 = vld [vmem:[#allocation4 + $0x388] sm:$0xff] }
 0xa5e   :  { %3333 = vmatpush2.msra.mxu0 %v8307_v50  ;;  %3404 = vmatpush2.msra.mxu1 %v8309_v40  ;;  %11386 = vst [vmem:[#allocation57_spill] sm:$0xff] %v8333_v22  ;;  %11387 = vst [vmem:[#allocation58_spill] sm:$0xff] %v8337_v21  ;;  %v8339_v50 = vld [vmem:[#allocation4 + $0x398] sm:$0xff]  ;;  %v8343_v40 = vld [vmem:[#allocation4 + $0x380] sm:$0xff] }
 0xa5f   :  { %3334 = vmatprep.subr.mxu0 %v8313_v37  ;;  %3405 = vmatprep.subr.mxu1 %v8315_v29  ;;  %11388 = vst [vmem:[#allocation59_spill] sm:$0xff] %v8339_v50  ;;  %11389 = vst [vmem:[#allocation60_spill] sm:$0xff] %v8343_v40  ;;  %v8345_v37 = vld [vmem:[#allocation4 + $0x390] sm:$0xff]  ;;  %v8349_v29 = vld [vmem:[#allocation4 + $0x368] sm:$0xff] }
 0xa60   :  { %3335 = vmatpush2.msra.mxu0 %v8319_v47  ;;  %3406 = vmatpush2.msra.mxu1 %v8321_v41  ;;  %11390 = vst [vmem:[#allocation61_spill] sm:$0xff] %v8345_v37  ;;  %11391 = vst [vmem:[#allocation62_spill] sm:$0xff] %v8349_v29  ;;  %v8351_v47 = vld [vmem:[#allocation4 + $0x378] sm:$0xff]  ;;  %v8355_v41 = vld [vmem:[#allocation4 + $0x360] sm:$0xff] }
 0xa61   :  { %3336 = vmatprep.subr.mxu0 %v8325_v14  ;;  %3407 = vmatprep.subr.mxu1 %v8327_v34  ;;  %11392 = vst [vmem:[#allocation63_spill] sm:$0xff] %v8351_v47  ;;  %11393 = vst [vmem:[#allocation64_spill] sm:$0xff] %v8355_v41  ;;  %v8357_v14 = vld [vmem:[#allocation4 + $0x370] sm:$0xff]  ;;  %v8361_v34 = vld [vmem:[#allocation4 + $0x348] sm:$0xff] }
 0xa62   :  { %3337 = vmatpush2.msra.mxu0 %v8331_v8  ;;  %3408 = vmatpush2.msra.mxu1 %v8333_v22  ;;  %11394 = vst [vmem:[#allocation65_spill] sm:$0xff] %v8357_v14  ;;  %11395 = vst [vmem:[#allocation66_spill] sm:$0xff] %v8361_v34  ;;  %v8363_v8 = vld [vmem:[#allocation4 + $0x358] sm:$0xff]  ;;  %v8367_v22 = vld [vmem:[#allocation4 + $0x340] sm:$0xff] }
 0xa63   :  { %3338 = vmatprep.subr.mxu0 %v8337_v21  ;;  %3409 = vmatprep.subr.mxu1 %v8339_v50  ;;  %11396 = vst [vmem:[#allocation67_spill] sm:$0xff] %v8363_v8  ;;  %11397 = vst [vmem:[#allocation68_spill] sm:$0xff] %v8367_v22  ;;  %v8369_v21 = vld [vmem:[#allocation4 + $0x350] sm:$0xff]  ;;  %v8373_v50 = vld [vmem:[#allocation4 + $0x328] sm:$0xff] }
 0xa64   :  { %3339 = vmatpush2.msra.mxu0 %v8343_v40  ;;  %3410 = vmatpush2.msra.mxu1 %v8345_v37  ;;  %11398 = vst [vmem:[#allocation69_spill] sm:$0xff] %v8369_v21  ;;  %11399 = vst [vmem:[#allocation75_spill] sm:$0xff] %v8373_v50  ;;  %v8375_v40 = vld [vmem:[#allocation4 + $0x338] sm:$0xff]  ;;  %v8379_v37 = vld [vmem:[#allocation4 + $0x320] sm:$0xff] }
 0xa65   :  { %3340 = vmatprep.subr.mxu0 %v8349_v29  ;;  %3411 = vmatprep.subr.mxu1 %v8351_v47  ;;  %11400 = vst [vmem:[#allocation80_spill] sm:$0xff] %v8375_v40  ;;  %11401 = vst [vmem:[#allocation86_spill] sm:$0xff] %v8379_v37  ;;  %v8381_v29 = vld [vmem:[#allocation4 + $0x330] sm:$0xff]  ;;  %v8385_v47 = vld [vmem:[#allocation4 + $0x308] sm:$0xff] }
 0xa66   :  { %3341 = vmatpush2.msra.mxu0 %v8355_v41  ;;  %3412 = vmatpush2.msra.mxu1 %v8357_v14  ;;  %11402 = vst [vmem:[#allocation89_spill] sm:$0xff] %v8381_v29  ;;  %11403 = vst [vmem:[#allocation136_spill] sm:$0xff] %v8385_v47  ;;  %v8387_v41 = vld [vmem:[#allocation4 + $0x318] sm:$0xff]  ;;  %v8391_v14 = vld [vmem:[#allocation4 + $0x300] sm:$0xff] }
 0xa67   :  { %3342 = vmatprep.subr.mxu0 %v8361_v34  ;;  %3413 = vmatprep.subr.mxu1 %v8363_v8  ;;  %11404 = vst [vmem:[#allocation137_spill] sm:$0xff] %v8387_v41  ;;  %11405 = vst [vmem:[#allocation138_spill] sm:$0xff] %v8391_v14  ;;  %v8393_v34 = vld [vmem:[#allocation4 + $0x310] sm:$0xff]  ;;  %v8397_v8 = vld [vmem:[#allocation4 + $0x2e8] sm:$0xff] }
 0xa68   :  { %3343 = vmatpush2.msra.mxu0 %v8367_v22  ;;  %3414 = vmatpush2.msra.mxu1 %v8369_v21  ;;  %11406 = vst [vmem:[#allocation139_spill] sm:$0xff] %v8393_v34  ;;  %11407 = vst [vmem:[#allocation140_spill] sm:$0xff] %v8397_v8  ;;  %v8399_v22 = vld [vmem:[#allocation4 + $0x2f8] sm:$0xff]  ;;  %v8403_v21 = vld [vmem:[#allocation4 + $0x2e0] sm:$0xff] }
 0xa69   :  { %3344 = vmatprep.subr.mxu0 %v8373_v50  ;;  %3415 = vmatprep.subr.mxu1 %v8375_v40  ;;  %11408 = vst [vmem:[#allocation141_spill] sm:$0xff] %v8399_v22  ;;  %11409 = vst [vmem:[#allocation142_spill] sm:$0xff] %v8403_v21  ;;  %v8405_v50 = vld [vmem:[#allocation4 + $0x2f0] sm:$0xff]  ;;  %v8409_v40 = vld [vmem:[#allocation4 + $0x2c8] sm:$0xff] }
 0xa6a   :  { %3345 = vmatpush2.msra.mxu0 %v8379_v37  ;;  %3416 = vmatpush2.msra.mxu1 %v8381_v29  ;;  %11410 = vst [vmem:[#allocation143_spill] sm:$0xff] %v8405_v50  ;;  %11411 = vst [vmem:[#allocation144_spill] sm:$0xff] %v8409_v40  ;;  %v8411_v37 = vld [vmem:[#allocation4 + $0x2d8] sm:$0xff]  ;;  %v8415_v29 = vld [vmem:[#allocation4 + $0x2c0] sm:$0xff] }
 0xa6b   :  { %3346 = vmatprep.subr.mxu0 %v8385_v47  ;;  %3417 = vmatprep.subr.mxu1 %v8387_v41  ;;  %11412 = vst [vmem:[#allocation145_spill] sm:$0xff] %v8411_v37  ;;  %11413 = vst [vmem:[#allocation146_spill] sm:$0xff] %v8415_v29  ;;  %v8417_v47 = vld [vmem:[#allocation4 + $0x2d0] sm:$0xff]  ;;  %v8421_v41 = vld [vmem:[#allocation4 + $0x2a8] sm:$0xff] }
 0xa6c   :  { %3347 = vmatpush2.msra.mxu0 %v8391_v14  ;;  %3418 = vmatpush2.msra.mxu1 %v8393_v34  ;;  %11414 = vst [vmem:[#allocation147_spill] sm:$0xff] %v8417_v47  ;;  %11415 = vst [vmem:[#allocation148_spill] sm:$0xff] %v8421_v41  ;;  %v8423_v14 = vld [vmem:[#allocation4 + $0x2b8] sm:$0xff]  ;;  %v8427_v34 = vld [vmem:[#allocation4 + $0x2a0] sm:$0xff] }
 0xa6d   :  { %3348 = vmatprep.subr.mxu0 %v8397_v8  ;;  %3419 = vmatprep.subr.mxu1 %v8399_v22  ;;  %11416 = vst [vmem:[#allocation149_spill] sm:$0xff] %v8423_v14  ;;  %11417 = vst [vmem:[#allocation150_spill] sm:$0xff] %v8427_v34  ;;  %v8429_v8 = vld [vmem:[#allocation4 + $0x2b0] sm:$0xff]  ;;  %v8433_v22 = vld [vmem:[#allocation4 + $0x288] sm:$0xff] }
 0xa6e   :  { %3349 = vmatpush2.msra.mxu0 %v8403_v21  ;;  %3420 = vmatpush2.msra.mxu1 %v8405_v50  ;;  %11418 = vst [vmem:[#allocation151_spill] sm:$0xff] %v8429_v8  ;;  %11419 = vst [vmem:[#allocation152_spill] sm:$0xff] %v8433_v22  ;;  %v8435_v21 = vld [vmem:[#allocation4 + $0x298] sm:$0xff]  ;;  %v8439_v50 = vld [vmem:[#allocation4 + $0x280] sm:$0xff] }
 0xa6f   :  { %3350 = vmatprep.subr.mxu0 %v8409_v40  ;;  %3421 = vmatprep.subr.mxu1 %v8411_v37  ;;  %11420 = vst [vmem:[#allocation153_spill] sm:$0xff] %v8435_v21  ;;  %11421 = vst [vmem:[#allocation154_spill] sm:$0xff] %v8439_v50  ;;  %v8441_v40 = vld [vmem:[#allocation4 + $0x290] sm:$0xff]  ;;  %v8445_v37 = vld [vmem:[#allocation4 + $0x268] sm:$0xff] }
 0xa70   :  { %3351 = vmatpush2.msra.mxu0 %v8415_v29  ;;  %3422 = vmatpush2.msra.mxu1 %v8417_v47  ;;  %11422 = vst [vmem:[#allocation155_spill] sm:$0xff] %v8441_v40  ;;  %11423 = vst [vmem:[#allocation156_spill] sm:$0xff] %v8445_v37  ;;  %v8447_v29 = vld [vmem:[#allocation4 + $0x278] sm:$0xff]  ;;  %v8451_v47 = vld [vmem:[#allocation4 + $0x260] sm:$0xff] }
 0xa71   :  { %3352 = vmatprep.subr.mxu0 %v8421_v41  ;;  %3423 = vmatprep.subr.mxu1 %v8423_v14  ;;  %11424 = vst [vmem:[#allocation76_spill] sm:$0xff] %v8447_v29  ;;  %11425 = vst [vmem:[#allocation81_spill] sm:$0xff] %v8451_v47  ;;  %v8453_v41 = vld [vmem:[#allocation4 + $0x270] sm:$0xff]  ;;  %v8457_v14 = vld [vmem:[#allocation4 + $0x248] sm:$0xff] }
 0xa72   :  { %3353 = vmatpush2.msra.mxu0 %v8427_v34  ;;  %3424 = vmatpush2.msra.mxu1 %v8429_v8  ;;  %11426 = vst [vmem:[#allocation87_spill] sm:$0xff] %v8453_v41  ;;  %11427 = vst [vmem:[#allocation90_spill] sm:$0xff] %v8457_v14  ;;  %v8459_v34 = vld [vmem:[#allocation4 + $0x258] sm:$0xff]  ;;  %v8463_v8 = vld [vmem:[#allocation4 + $0x240] sm:$0xff] }
 0xa73   :  { %3354 = vmatprep.subr.mxu0 %v8433_v22  ;;  %3425 = vmatprep.subr.mxu1 %v8435_v21  ;;  %11428 = vst [vmem:[#allocation79_spill] sm:$0xff] %v8459_v34  ;;  %11429 = vst [vmem:[#allocation83_spill] sm:$0xff] %v8463_v8  ;;  %v8465_v22 = vld [vmem:[#allocation4 + $0x250] sm:$0xff]  ;;  %v8469_v21 = vld [vmem:[#allocation4 + $0x228] sm:$0xff] }
 0xa74   :  { %3355 = vmatpush2.msra.mxu0 %v8439_v50  ;;  %3426 = vmatpush2.msra.mxu1 %v8441_v40  ;;  %11430 = vst [vmem:[#allocation88_spill] sm:$0xff] %v8465_v22  ;;  %11431 = vst [vmem:[#allocation91_spill] sm:$0xff] %v8469_v21  ;;  %v8471_v50 = vld [vmem:[#allocation4 + $0x238] sm:$0xff]  ;;  %v8475_v40 = vld [vmem:[#allocation4 + $0x220] sm:$0xff] }
 0xa75   :  { %3356 = vmatprep.subr.mxu0 %v8445_v37  ;;  %3427 = vmatprep.subr.mxu1 %v8447_v29  ;;  %11432 = vst [vmem:[#allocation107_spill] sm:$0xff] %v8471_v50  ;;  %11433 = vst [vmem:[#allocation108_spill] sm:$0xff] %v8475_v40  ;;  %v8477_v37 = vld [vmem:[#allocation4 + $0x230] sm:$0xff]  ;;  %v8481_v29 = vld [vmem:[#allocation4 + $0x208] sm:$0xff] }
 0xa76   :  { %3357 = vmatpush2.msra.mxu0 %v8451_v47  ;;  %3428 = vmatpush2.msra.mxu1 %v8453_v41  ;;  %11434 = vst [vmem:[#allocation109_spill] sm:$0xff] %v8477_v37  ;;  %11435 = vst [vmem:[#allocation110_spill] sm:$0xff] %v8481_v29  ;;  %v8483_v47 = vld [vmem:[#allocation4 + $0x218] sm:$0xff]  ;;  %v8487_v41 = vld [vmem:[#allocation4 + $0x200] sm:$0xff] }
 0xa77   :  { %3358 = vmatprep.subr.mxu0 %v8457_v14  ;;  %3429 = vmatprep.subr.mxu1 %v8459_v34  ;;  %11436 = vst [vmem:[#allocation111_spill] sm:$0xff] %v8483_v47  ;;  %11437 = vst [vmem:[#allocation112_spill] sm:$0xff] %v8487_v41  ;;  %v8491_v34 = vld [vmem:[#allocation4 + $0x210] sm:$0xff] }
 0xa78   :  { %3359 = vmatpush2.msra.mxu0 %v8463_v8  ;;  %3430 = vmatpush2.msra.mxu1 %v8465_v22  ;;  %11438 = vst [vmem:[#allocation113_spill] sm:$0xff] %v8491_v34  ;;  %v11439_v22 = vmov 0.0  }
 0xa79   :  { %3360 = vmatprep.subr.mxu0 %v8469_v21  ;;  %3431 = vmatprep.subr.mxu1 %v8471_v50 }
 0xa7a   :  { %3361 = vmatpush2.msra.mxu0 %v8475_v40  ;;  %3432 = vmatpush2.msra.mxu1 %v8477_v37 }
 0xa7b   :  { %3362 = vmatprep.subr.mxu0 %v8481_v29  ;;  %3433 = vmatprep.subr.mxu1 %v8483_v47 }
 0xa7c   :  { %3363 = vmatpush2.msra.mxu0 %v8487_v41  ;;  %3364 = vmatprep.mubr.f32.mxu0 %v11439_v22 }
 0xa7d   :  { %3434 = vmatpush2.msra.mxu1 %v8491_v34  ;;  %3435 = vmatprep.mubr.f32.mxu1 %v11439_v22 }
 0xa7e   :  { %3365 = vmatmul.mubr.f32.vlgmr.msra.gmra.mxu0 %v11439_v22  ;;  %3436 = vmatmul.mubr.f32.vlgmr.msra.gmra.mxu1 %v11439_v22  ;;  %v11450_v22 = vld [vmem:[#allocation47_spill] sm:$0xff] }
 0xa7f   :  { %3472 = vmatprep.subr.mxu0 %v8106_v51  ;;  %3543 = vmatprep.subr.mxu1 %v8108_v44 }
 0xa80   :  { %3473 = vmatpush1.msra.mxu0 %v8111_v38  ;;  %3544 = vmatpush1.msra.mxu1 %v8113_v13  ;;  %v11440_v38 = vld [vmem:[#allocation42_spill] sm:$0xff]  ;;  %v11441_v13 = vld [vmem:[#allocation129_spill] sm:$0xff] }
 0xa81   :  { %3474 = vmatprep.subr.mxu0 %v8117_v1  ;;  %3545 = vmatprep.subr.mxu1 %v8119_v62  ;;  %v11442_v1 = vld [vmem:[#allocation43_spill] sm:$0xff]  ;;  %v11443_v62 = vld [vmem:[#allocation130_spill] sm:$0xff] }
 0xa82   :  { %3475 = vmatpush1.msra.mxu0 %v8125_v39  ;;  %3546 = vmatpush1.msra.mxu1 %v8127_v10  ;;  %v11444_v39 = vld [vmem:[#allocation44_spill] sm:$0xff]  ;;  %v11445_v10 = vld [vmem:[#allocation131_spill] sm:$0xff] }
 0xa83   :  { %3476 = vmatprep.subr.mxu0 %v8133_v36  ;;  %3547 = vmatprep.subr.mxu1 %v8135_v53  ;;  %v11446_v36 = vld [vmem:[#allocation45_spill] sm:$0xff]  ;;  %v11447_v53 = vld [vmem:[#allocation132_spill] sm:$0xff] }
 0xa84   :  { %3477 = vmatpush1.msra.mxu0 %v8139_v48  ;;  %3548 = vmatpush1.msra.mxu1 %v8141_v35  ;;  %v11448_v48 = vld [vmem:[#allocation46_spill] sm:$0xff]  ;;  %v11449_v35 = vld [vmem:[#allocation133_spill] sm:$0xff] }
 0xa85   :  { %3478 = vmatprep.subr.mxu0 %v8145_v19  ;;  %3549 = vmatprep.subr.mxu1 %v8147_v49 }
 0xa86   :  { %3479 = vmatpush1.msra.mxu0 %v8151_v54  ;;  %3550 = vmatpush1.msra.mxu1 %v8153_v0 }
 0xa87   :  { %3480 = vmatprep.subr.mxu0 %v8157_v7  ;;  %3551 = vmatprep.subr.mxu1 %v8159_v46 }
 0xa88   :  { %3481 = vmatpush1.msra.mxu0 %v8163_v45  ;;  %3552 = vmatpush1.msra.mxu1 %v8165_v25 }
 0xa89   :  { %3482 = vmatprep.subr.mxu0 %v8169_v26  ;;  %3553 = vmatprep.subr.mxu1 %v8171_v42 }
 0xa8a   :  { %3483 = vmatpush1.msra.mxu0 %v8175_v43  ;;  %3554 = vmatpush1.msra.mxu1 %v8177_v4 }
 0xa8b   :  { %3484 = vmatprep.subr.mxu0 %v8181_v60  ;;  %3555 = vmatprep.subr.mxu1 %v8183_v55 }
 0xa8c   :  { %3485 = vmatpush1.msra.mxu0 %v8187_v52  ;;  %3556 = vmatpush1.msra.mxu1 %v8189_v6 }
 0xa8d   :  { %3486 = vmatprep.subr.mxu0 %v8193_v15  ;;  %3557 = vmatprep.subr.mxu1 %v8195_v3 }
 0xa8e   :  { %3487 = vmatpush1.msra.mxu0 %v8199_v12  ;;  %3558 = vmatpush1.msra.mxu1 %v8201_v17 }
 0xa8f   :  { %3488 = vmatprep.subr.mxu0 %v8205_v58  ;;  %3559 = vmatprep.subr.mxu1 %v8207_v30 }
 0xa90   :  { %3489 = vmatpush1.msra.mxu0 %v8211_v24  ;;  %3560 = vmatpush1.msra.mxu1 %v8213_v18 }
 0xa91   :  { %3490 = vmatprep.subr.mxu0 %v8217_v33  ;;  %3561 = vmatprep.subr.mxu1 %v8219_v31 }
 0xa92   :  { %3491 = vmatpush1.msra.mxu0 %v8223_v20  ;;  %3562 = vmatpush1.msra.mxu1 %v8225_v23 }
 0xa93   :  { %3492 = vmatprep.subr.mxu0 %v8229_v27  ;;  %3563 = vmatprep.subr.mxu1 %v8231_v28 }
 0xa94   :  { %3493 = vmatpush1.msra.mxu0 %v8235_v57  ;;  %3564 = vmatpush1.msra.mxu1 %v8237_v59 }
 0xa95   :  { %3494 = vmatprep.subr.mxu0 %v8241_v61  ;;  %3565 = vmatprep.subr.mxu1 %v8243_v63 }
 0xa96   :  { %3495 = vmatpush1.msra.mxu0 %v8247_v2  ;;  %3566 = vmatpush1.msra.mxu1 %v8249_v5 }
 0xa97   :  { %3496 = vmatprep.subr.mxu0 %v8253_v9  ;;  %3567 = vmatprep.subr.mxu1 %v8255_v16 }
 0xa98   :  { %3497 = vmatpush1.msra.mxu0 %v8259_v11  ;;  %3568 = vmatpush1.msra.mxu1 %v8261_v56 }
 0xa99   :  { %3498 = vmatprep.subr.mxu0 %v8265_v32  ;;  %3569 = vmatprep.subr.mxu1 %v11440_v38  ;;  %v11451_v38 = vld [vmem:[#allocation134_spill] sm:$0xff] }
 0xa9a   :  { %3499 = vmatpush1.msra.mxu0 %v11441_v13  ;;  %3570 = vmatpush1.msra.mxu1 %v11442_v1  ;;  %v11452_v13 = vld [vmem:[#allocation48_spill] sm:$0xff]  ;;  %v11453_v1 = vld [vmem:[#allocation135_spill] sm:$0xff] }
 0xa9b   :  { %3500 = vmatprep.subr.mxu0 %v11443_v62  ;;  %3571 = vmatprep.subr.mxu1 %v11444_v39  ;;  %v11454_v62 = vld [vmem:[#allocation49_spill] sm:$0xff]  ;;  %v11455_v39 = vld [vmem:[#allocation50_spill] sm:$0xff] }
 0xa9c   :  { %3501 = vmatpush1.msra.mxu0 %v11445_v10  ;;  %3572 = vmatpush1.msra.mxu1 %v11446_v36  ;;  %v11456_v10 = vld [vmem:[#allocation51_spill] sm:$0xff]  ;;  %v11457_v36 = vld [vmem:[#allocation52_spill] sm:$0xff] }
 0xa9d   :  { %3502 = vmatprep.subr.mxu0 %v11447_v53  ;;  %3573 = vmatprep.subr.mxu1 %v11448_v48  ;;  %v11458_v53 = vld [vmem:[#allocation53_spill] sm:$0xff]  ;;  %v11459_v48 = vld [vmem:[#allocation54_spill] sm:$0xff] }
 0xa9e   :  { %3503 = vmatpush1.msra.mxu0 %v11449_v35  ;;  %3574 = vmatpush1.msra.mxu1 %v11450_v22  ;;  %v11460_v35 = vld [vmem:[#allocation55_spill] sm:$0xff]  ;;  %v11461_v22 = vld [vmem:[#allocation56_spill] sm:$0xff] }
 0xa9f   :  { %3504 = vmatprep.subr.mxu0 %v11451_v38  ;;  %3575 = vmatprep.subr.mxu1 %v11452_v13  ;;  %v11462_v38 = vld [vmem:[#allocation57_spill] sm:$0xff]  ;;  %v11463_v13 = vld [vmem:[#allocation58_spill] sm:$0xff] }
 0xaa0   :  { %3505 = vmatpush2.msra.mxu0 %v11453_v1  ;;  %3576 = vmatpush2.msra.mxu1 %v11454_v62  ;;  %v11464_v1 = vld [vmem:[#allocation59_spill] sm:$0xff]  ;;  %v11465_v62 = vld [vmem:[#allocation60_spill] sm:$0xff] }
 0xaa1   :  { %3506 = vmatprep.subr.mxu0 %v11455_v39  ;;  %3577 = vmatprep.subr.mxu1 %v11456_v10  ;;  %v11466_v39 = vld [vmem:[#allocation61_spill] sm:$0xff]  ;;  %v11467_v10 = vld [vmem:[#allocation62_spill] sm:$0xff] }
 0xaa2   :  { %3507 = vmatpush2.msra.mxu0 %v11457_v36  ;;  %3578 = vmatpush2.msra.mxu1 %v11458_v53  ;;  %v11468_v36 = vld [vmem:[#allocation63_spill] sm:$0xff]  ;;  %v11469_v53 = vld [vmem:[#allocation64_spill] sm:$0xff] }
 0xaa3   :  { %3508 = vmatprep.subr.mxu0 %v11459_v48  ;;  %3579 = vmatprep.subr.mxu1 %v11460_v35  ;;  %v11470_v48 = vld [vmem:[#allocation65_spill] sm:$0xff]  ;;  %v11471_v35 = vld [vmem:[#allocation66_spill] sm:$0xff] }
 0xaa4   :  { %3509 = vmatpush2.msra.mxu0 %v11461_v22  ;;  %3580 = vmatpush2.msra.mxu1 %v11462_v38  ;;  %v11472_v22 = vld [vmem:[#allocation67_spill] sm:$0xff]  ;;  %v11473_v38 = vld [vmem:[#allocation68_spill] sm:$0xff] }
 0xaa5   :  { %3510 = vmatprep.subr.mxu0 %v11463_v13  ;;  %3581 = vmatprep.subr.mxu1 %v11464_v1  ;;  %v11474_v13 = vld [vmem:[#allocation69_spill] sm:$0xff]  ;;  %v11475_v1 = vld [vmem:[#allocation75_spill] sm:$0xff] }
 0xaa6   :  { %3511 = vmatpush2.msra.mxu0 %v11465_v62  ;;  %3582 = vmatpush2.msra.mxu1 %v11466_v39  ;;  %v11476_v62 = vld [vmem:[#allocation80_spill] sm:$0xff]  ;;  %v11477_v39 = vld [vmem:[#allocation86_spill] sm:$0xff] }
 0xaa7   :  { %3512 = vmatprep.subr.mxu0 %v11467_v10  ;;  %3583 = vmatprep.subr.mxu1 %v11468_v36  ;;  %v11478_v10 = vld [vmem:[#allocation89_spill] sm:$0xff]  ;;  %v11479_v36 = vld [vmem:[#allocation136_spill] sm:$0xff] }
 0xaa8   :  { %3513 = vmatpush2.msra.mxu0 %v11469_v53  ;;  %3584 = vmatpush2.msra.mxu1 %v11470_v48  ;;  %v11480_v53 = vld [vmem:[#allocation137_spill] sm:$0xff]  ;;  %v11481_v48 = vld [vmem:[#allocation138_spill] sm:$0xff] }
 0xaa9   :  { %3514 = vmatprep.subr.mxu0 %v11471_v35  ;;  %3585 = vmatprep.subr.mxu1 %v11472_v22  ;;  %v11482_v35 = vld [vmem:[#allocation139_spill] sm:$0xff]  ;;  %v11483_v22 = vld [vmem:[#allocation140_spill] sm:$0xff] }
 0xaaa   :  { %3515 = vmatpush2.msra.mxu0 %v11473_v38  ;;  %3586 = vmatpush2.msra.mxu1 %v11474_v13  ;;  %v11484_v38 = vld [vmem:[#allocation141_spill] sm:$0xff]  ;;  %v11485_v13 = vld [vmem:[#allocation142_spill] sm:$0xff] }
 0xaab   :  { %3516 = vmatprep.subr.mxu0 %v11475_v1  ;;  %3587 = vmatprep.subr.mxu1 %v11476_v62  ;;  %v11486_v1 = vld [vmem:[#allocation143_spill] sm:$0xff]  ;;  %v11487_v62 = vld [vmem:[#allocation144_spill] sm:$0xff] }
 0xaac   :  { %3517 = vmatpush2.msra.mxu0 %v11477_v39  ;;  %3588 = vmatpush2.msra.mxu1 %v11478_v10  ;;  %v11488_v39 = vld [vmem:[#allocation145_spill] sm:$0xff]  ;;  %v11489_v10 = vld [vmem:[#allocation146_spill] sm:$0xff] }
 0xaad   :  { %3518 = vmatprep.subr.mxu0 %v11479_v36  ;;  %3589 = vmatprep.subr.mxu1 %v11480_v53  ;;  %v11490_v36 = vld [vmem:[#allocation147_spill] sm:$0xff]  ;;  %v11491_v53 = vld [vmem:[#allocation148_spill] sm:$0xff] }
 0xaae   :  { %3519 = vmatpush2.msra.mxu0 %v11481_v48  ;;  %3590 = vmatpush2.msra.mxu1 %v11482_v35  ;;  %v11492_v48 = vld [vmem:[#allocation149_spill] sm:$0xff]  ;;  %v11493_v35 = vld [vmem:[#allocation150_spill] sm:$0xff] }
 0xaaf   :  { %3520 = vmatprep.subr.mxu0 %v11483_v22  ;;  %3591 = vmatprep.subr.mxu1 %v11484_v38  ;;  %v11494_v22 = vld [vmem:[#allocation151_spill] sm:$0xff]  ;;  %v11495_v38 = vld [vmem:[#allocation152_spill] sm:$0xff] }
 0xab0   :  { %3521 = vmatpush2.msra.mxu0 %v11485_v13  ;;  %3592 = vmatpush2.msra.mxu1 %v11486_v1  ;;  %v11496_v13 = vld [vmem:[#allocation153_spill] sm:$0xff]  ;;  %v11497_v1 = vld [vmem:[#allocation154_spill] sm:$0xff] }
 0xab1   :  { %3522 = vmatprep.subr.mxu0 %v11487_v62  ;;  %3593 = vmatprep.subr.mxu1 %v11488_v39  ;;  %v11498_v62 = vld [vmem:[#allocation155_spill] sm:$0xff]  ;;  %v11499_v39 = vld [vmem:[#allocation156_spill] sm:$0xff] }
 0xab2   :  { %3523 = vmatpush2.msra.mxu0 %v11489_v10  ;;  %3594 = vmatpush2.msra.mxu1 %v11490_v36  ;;  %v11500_v10 = vld [vmem:[#allocation76_spill] sm:$0xff]  ;;  %v11501_v36 = vld [vmem:[#allocation81_spill] sm:$0xff] }
 0xab3   :  { %3524 = vmatprep.subr.mxu0 %v11491_v53  ;;  %3595 = vmatprep.subr.mxu1 %v11492_v48  ;;  %v11502_v53 = vld [vmem:[#allocation87_spill] sm:$0xff] }
 0xab4   :  { %3525 = vmatpush2.msra.mxu0 %v11493_v35  ;;  %3596 = vmatpush2.msra.mxu1 %v11494_v22  ;;  %v11503_v35 = vld [vmem:[#allocation79_spill] sm:$0xff] }
 0xab5   :  { %3526 = vmatprep.subr.mxu0 %v11495_v38  ;;  %3597 = vmatprep.subr.mxu1 %v11496_v13  ;;  %v11504_v38 = vld [vmem:[#allocation88_spill] sm:$0xff] }
 0xab6   :  { %3527 = vmatpush2.msra.mxu0 %v11497_v1  ;;  %3598 = vmatpush2.msra.mxu1 %v11498_v62 }
 0xab7   :  { %3528 = vmatprep.subr.mxu0 %v11499_v39  ;;  %3599 = vmatprep.subr.mxu1 %v11500_v10  ;;  %v11508_v39 = vld [vmem:[#allocation73_spill] sm:$0xff] }
 0xab8   :  { %3529 = vmatpush2.msra.mxu0 %v11501_v36  ;;  %3600 = vmatpush2.msra.mxu1 %v11502_v53  ;;  %v2805_v53 = vld [vmem:[%s10151_s11] sm:$0xf] }
 0xab9   :  { %3530 = vmatprep.subr.mxu0 %v8457_v14  ;;  %3601 = vmatprep.subr.mxu1 %v11503_v35  ;;  %v8667_v16 = vrot.slane %v2805_v53, %v11508_v39 }
 0xaba   :  { %3531 = vmatpush2.msra.mxu0 %v8463_v8  ;;  %3602 = vmatpush2.msra.mxu1 %v11504_v38  ;;  %v8631_v38 = vpop.f32.mrf.mxu0  ;;  %v11507_v8 = vld [vmem:[#allocation72_spill] sm:$0xff] }
 0xabb   :  { %3532 = vmatprep.subr.mxu0 %v8469_v21  ;;  %3603 = vmatprep.subr.mxu1 %v8471_v50  ;;  %v8636_v50 = vpop.f32.mrf.mxu1  ;;  %v11506_v21 = vld [vmem:[#allocation71_spill] sm:$0xff]  ;;  %v8663_v48 = vrot.slane %v2805_v53, %v11507_v8 }
 0xabc   :  { %3533 = vmatpush2.msra.mxu0 %v8475_v40  ;;  %3604 = vmatpush2.msra.mxu1 %v8477_v37  ;;  %v2804_v40 = vld [vmem:[%s10150_s10] sm:$0xf]  ;;  %v8638_v37 = vpop.f32.mrf.mxu0  ;;  %v2989_v32 = vrot.slane %v2805_v53, %v11506_v21 }
 0xabd   :  { %3534 = vmatprep.subr.mxu0 %v8481_v29  ;;  %3605 = vmatprep.subr.mxu1 %v8483_v47  ;;  %v11505_v29 = vld [vmem:[#allocation70_spill] sm:$0xff]  ;;  %v8650_v35 = vrot.slane %v2804_v40, %v11507_v8  ;;  %v8657_v62 = vrot.slane %v2804_v40, %v11508_v39 }
 0xabe   :  { %3535 = vmatpush2.msra.mxu0 %v8487_v41  ;;  %3606 = vmatpush2.msra.mxu1 %v8491_v34  ;;  %v8641_v47 = vrot.slane %v2804_v40, %v11505_v29  ;;  %v8644_v34 = vrot.slane %v2804_v40, %v11506_v21  ;;  %v2985_v22 = vrot.slane %v2805_v53, %v11505_v29 }
 0xabf   :  { %3644 = vmatprep.subr.mxu0 %v8106_v51  ;;  %3715 = vmatprep.subr.mxu1 %v8108_v44  ;;  %v8646_v51 = vpop.f32.mrf.mxu1 }
 0xaf2   :  { %v2899_v41 = vpop.f32.mrf.mxu0 }
 0xaf3   :  { %v2900_v44 = vadd.f32 %v2899_v41, %v8641_v47 }
 0xaf4   :  { %v2901_v14 = vpop.f32.mrf.mxu0 }
 0xaf5   :  { %v2976_v36 = vpop.f32.mrf.mxu1  ;;  %v2902_v10 = vadd.f32 %v2901_v14, %v8644_v34  ;;  %v3268_v14 = vrot.slane %v2900_v44, 4  ;;  %v3248_v5 = vrot.slane %v2900_v44, 2 }
 0xaf6   :  { %v2977_v1 = vadd.f32 %v2976_v36, %v8650_v35 }
 0xaf7   :  { %v2978_v13 = vpop.f32.mrf.mxu1  ;;  %v3249_v2 = vrot.slane %v2902_v10, 2  ;;  %v3269_v8 = vrot.slane %v2902_v10, 4 }
 0xaf8   :  { %v2979_v41 = vadd.f32 %v2978_v13, %v8657_v62  ;;  %v3270_v40 = vrot.slane %v2977_v1, 4  ;;  %v3250_v13 = vrot.slane %v2977_v1, 2 }
 0xafa   :  { %v3068_v56 = vpop.f32.mrf.mxu0  ;;  %v3145_v11 = vpop.f32.mrf.mxu1  ;;  %v3251_v61 = vrot.slane %v2979_v41, 2  ;;  %v3271_v59 = vrot.slane %v2979_v41, 4 }
 0xafb   :  { %v3069_v9 = vadd.f32 %v3068_v56, %v2985_v22  ;;  %v3146_v36 = vadd.f32 %v3145_v11, %v8663_v48 }
 0xafc   :  { %v3070_v29 = vpop.f32.mrf.mxu0  ;;  %v3147_v63 = vpop.f32.mrf.mxu1 }
 0xafd   :  { %v3071_v57 = vadd.f32 %v3070_v29, %v2989_v32  ;;  %v3148_v21 = vadd.f32 %v3147_v63, %v8667_v16  ;;  %v3232_v28 = vrot.slane %v3069_v9, 4  ;;  %v3234_v27 = vrot.slane %v3146_v36, 4 }
 0xafe   :  { %v3256_v39 = vrot.slane %v3069_v9, 2  ;;  %v3258_v53 = vrot.slane %v3146_v36, 2  ;;  %v8672_v23 = vsel %vm789_vm3, %v3268_v14, %v3069_v9  ;;  %v8675_v11 = vsel %vm789_vm3, %v3270_v40, %v3146_v36 }
 0xaff   :  { %11509 = vst [vmem:[#allocation84_spill] sm:$0xff] %v8672_v23  ;;  %11510 = vst [vmem:[#allocation85_spill] sm:$0xff] %v8675_v11  ;;  %v8678_v56 = vsel %vm789_vm3, %v2900_v44, %v3232_v28  ;;  %v8681_v20 = vsel %vm789_vm3, %v2977_v1, %v3234_v27  ;;  %v3233_v31 = vrot.slane %v3071_v57, 4  ;;  %v3235_v29 = vrot.slane %v3148_v21, 4 }
 0xb00   :  { %11511 = vst [vmem:[#allocation92_spill] sm:$0xff] %v8678_v56  ;;  %11512 = vst [vmem:[#allocation95_spill] sm:$0xff] %v8681_v20  ;;  %v8684_v63 = vsel %vm789_vm3, %v3248_v5, %v3256_v39  ;;  %v8687_v33 = vsel %vm789_vm3, %v3250_v13, %v3258_v53  ;;  %v3257_v18 = vrot.slane %v3071_v57, 2  ;;  %v3259_v14 = vrot.slane %v3148_v21, 2  ;;  %v9056_v20 = vld [vmem:[#allocation4 + $0x60] sm:$0xff]  ;;  %v9062_v56 = vld [vmem:[#allocation4 + $0x48] sm:$0xff] }
 0xb01   :  { %11513 = vst [vmem:[#allocation114_spill] sm:$0xff] %v8684_v63  ;;  %11514 = vst [vmem:[#allocation102_spill] sm:$0xff] %v8687_v33  ;;  %v8690_v23 = vsel %vm789_vm3, %v2902_v10, %v3233_v31  ;;  %v8693_v40 = vsel %vm789_vm3, %v2979_v41, %v3235_v29  ;;  %v8702_v5 = vsel %vm789_vm3, %v3269_v8, %v3071_v57  ;;  %v3282_v39 = vrot.slane %v2977_v1, 6  ;;  %v3074_v1 = vpop.f32.mrf.mxu0  ;;  %v3151_v8 = vpop.f32.mrf.mxu1 }
 0xb02   :  { %11515 = vst [vmem:[#allocation115_spill] sm:$0xff] %v8690_v23  ;;  %11516 = vst [vmem:[#allocation103_spill] sm:$0xff] %v8693_v40  ;;  %v8696_v28 = vsel %vm789_vm3, %v3249_v2, %v3257_v18  ;;  %v8699_v27 = vsel %vm789_vm3, %v3251_v61, %v3259_v14  ;;  %v8705_v13 = vsel %vm789_vm3, %v3271_v59, %v3148_v21  ;;  %v3283_v53 = vrot.slane %v2979_v41, 6  ;;  %v9059_v23 = vld [vmem:[#allocation4 + $0x70] sm:$0xff] }
 0xb03   :  { %11517 = vst [vmem:[#allocation116_spill] sm:$0xff] %v8696_v28  ;;  %11518 = vst [vmem:[#allocation104_spill] sm:$0xff] %v8699_v27  ;;  %v3280_v11 = vrot.slane %v2900_v44, 6  ;;  %v3288_v31 = vrot.slane %v3069_v9, 6  ;;  %v3290_v33 = vrot.slane %v3146_v36, 6  ;;  %v3281_v63 = vrot.slane %v2902_v10, 6  ;;  %v3076_v41 = vpop.f32.mrf.mxu0 }
 0xb04   :  { %11519 = vst [vmem:[#allocation117_spill] sm:$0xff] %v8702_v5  ;;  %11520 = vst [vmem:[#allocation105_spill] sm:$0xff] %v8705_v13  ;;  %v3289_v29 = vrot.slane %v3071_v57, 6  ;;  %v3291_v40 = vrot.slane %v3148_v21, 6  ;;  %v8719_v44 = vadd.f32 %v3074_v1, %v2985_v22  ;;  %v8721_v9 = vadd.f32 %v3076_v41, %v2989_v32  ;;  %v9044_v13 = vld [vmem:[#allocation4 + $0x80] sm:$0xff]  ;;  %v9047_v5 = vld [vmem:[#allocation4 + $0x90] sm:$0xff] }
 0xb05   :  { %v8708_v18 = vsel %vm789_vm3, %v3280_v11, %v3288_v31  ;;  %v8711_v61 = vsel %vm789_vm3, %v3282_v39, %v3290_v33  ;;  %v8726_v10 = vadd.f32 %v8631_v38, %v8641_v47  ;;  %v8731_v36 = vadd.f32 %v8638_v37, %v8644_v34  ;;  %v3153_v39 = vpop.f32.mrf.mxu1  ;;  %11630 = vst [vmem:[#allocation101_spill] sm:$0xff] %v9044_v13  ;;  %v9050_v27 = vld [vmem:[#allocation4 + $0x68] sm:$0xff]  ;;  %v9053_v28 = vld [vmem:[#allocation4 + $0x78] sm:$0xff] }
 0xb06   :  { %11521 = vst [vmem:[#allocation118_spill] sm:$0xff] %v8708_v18  ;;  %11522 = vst [vmem:[#allocation32_spill] sm:$0xff] %v8711_v61  ;;  %v8714_v2 = vsel %vm789_vm3, %v3281_v63, %v3289_v29  ;;  %v8717_v59 = vsel %vm789_vm3, %v3283_v53, %v3291_v40  ;;  %v3160_v57 = vrot.slane %v8719_v44, 4  ;;  %v3161_v33 = vrot.slane %v8721_v9, 4  ;;  %v9035_v61 = vld [vmem:[#allocation4 + $0xb0] sm:$0xff]  ;;  %v9041_v18 = vld [vmem:[#allocation4 + $0x98] sm:$0xff] }
 0xb07   :  { %11523 = vst [vmem:[#allocation119_spill] sm:$0xff] %v8714_v2  ;;  %11524 = vst [vmem:[#allocation74_spill] sm:$0xff] %v8717_v59  ;;  %v8738_v14 = vadd.f32 %v3151_v8, %v8663_v48  ;;  %v8743_v37 = vadd.f32 %v8636_v50, %v8650_v35  ;;  %v8746_v53 = vadd.f32 %v3153_v39, %v8667_v16  ;;  %v9032_v59 = vld [vmem:[#allocation4 + $0xa0] sm:$0xff]  ;;  %v9038_v2 = vld [vmem:[#allocation4 + $0x88] sm:$0xff] }
 0xb08   :  { %11525 = vst [vmem:[#allocation77_spill] sm:$0xff] %v8719_v44  ;;  %11526 = vst [vmem:[#allocation93_spill] sm:$0xff] %v8726_v10  ;;  %v3168_v21 = vsel %vm789_vm3, %v8726_v10, %v3160_v57  ;;  %v3169_v32 = vsel %vm789_vm3, %v8731_v36, %v3161_v33  ;;  %v8753_v41 = vadd.f32 %v8646_v51, %v8657_v62 }
 0xb09   :  { %11527 = vst [vmem:[#allocation94_spill] sm:$0xff] %v8731_v36  ;;  %v3162_v34 = vrot.slane %v8738_v14, 4  ;;  %11528 = vst [vmem:[#allocation31_spill] sm:$0xff] %v8743_v37  ;;  %v3163_v1 = vrot.slane %v8746_v53, 4 }
 0xb0a   :  { %11529 = vst [vmem:[#allocation106_spill] sm:$0xff] %v8753_v41  ;;  %11627 = vst [vmem:[#allocation96_spill] sm:$0xff] %v9035_v61 }
 0xb0b   :  { %v3170_v48 = vsel %vm789_vm3, %v8743_v37, %v3162_v34  ;;  %v3171_v50 = vsel %vm789_vm3, %v8753_v41, %v3163_v1  ;;  %v11531_v1 = vld [vmem:[#allocation98_spill] sm:$0xff]  ;;  %11628 = vst [vmem:[#allocation97_spill] sm:$0xff] %v9038_v2  ;;  %11629 = vst [vmem:[#allocation100_spill] sm:$0xff] %v9041_v18 }
 0xb0c   :  { %11631 = vst [vmem:[#allocation70_spill] sm:$0xff] %v9047_v5  ;;  %11632 = vst [vmem:[#allocation71_spill] sm:$0xff] %v9050_v27 }
 0xb0d   :  { %11633 = vst [vmem:[#allocation72_spill] sm:$0xff] %v9053_v28  ;;  %11634 = vst [vmem:[#allocation73_spill] sm:$0xff] %v9056_v20 }
 0xb0e   :  { %11636 = vst [vmem:[#allocation98_spill] sm:$0xff] %v9062_v56 }
 0xb3e   :  { %v3366_v22 = vpop.f32.mrf.mxu0  ;;  %v3437_v31 = vpop.f32.mrf.mxu1 }
 0xb3f   :  { %v3442_v11 = vadd.f32 %v3366_v22, %v3168_v21  ;;  %v3444_v29 = vadd.f32 %v3437_v31, %v3170_v48  ;;  %v11530_v48 = vld [vmem:[#allocation99_spill] sm:$0xff] }
 0xb40   :  { %v3368_v63 = vpop.f32.mrf.mxu0  ;;  %v3439_v57 = vpop.f32.mrf.mxu1  ;;  %11635 = vst [vmem:[#allocation99_spill] sm:$0xff] %v9059_v23 }
 0xb41   :  { %v4880_v47 = vmul.f32 -1.442695, %v3442_v11  ;;  %v3443_v38 = vadd.f32 %v3368_v63, %v3169_v32  ;;  %v4882_v33 = vmul.f32 -1.442695, %v3444_v29  ;;  %v3445_v8 = vadd.f32 %v3439_v57, %v3171_v50  ;;  %v8765_v50 = vld [vmem:[#allocation4 + $0x1f0] sm:$0xff] }
 0xb43   :  { %5396 = vpow2.f32 %v4880_v47  ;;  %v4881_v40 = vmul.f32 -1.442695, %v3443_v38 }
 0xb45   :  { %5398 = vpow2.f32 %v4881_v40 }
 0xb46   :  { %5400 = vpow2.f32 %v4882_v33  ;;  %v8762_v33 = vld [vmem:[#allocation4 + $0x1e0] sm:$0xff] }
 0xb50   :  { %v5397_v35 = vpop.eup %5396 }
 0xb51   :  { %v3455_v16 = vadd.f32 1.0, %v5397_v35  ;;  %v8768_v35 = vld [vmem:[#allocation4 + $0x1c8] sm:$0xff] }
 0xb52   :  { %v5399_v21 = vpop.eup %5398 }
 0xb53   :  { %5402 = vrcp.f32 %v3455_v16  ;;  %v3456_v22 = vadd.f32 1.0, %v5399_v21  ;;  %v5401_v11 = vpop.eup %5400  ;;  %v8774_v16 = vld [vmem:[#allocation4 + $0x1c0] sm:$0xff]  ;;  %v8777_v21 = vld [vmem:[#allocation4 + $0x1d0] sm:$0xff] }
 0xb54   :  { %5404 = vtanh.f32 %v3445_v8  ;;  %v3457_v62 = vadd.f32 1.0, %v5401_v11  ;;  %v8771_v8 = vld [vmem:[#allocation4 + $0x1d8] sm:$0xff] }
 0xb55   :  { %5406 = vrcp.f32 %v3456_v22  ;;  %v8780_v22 = vld [vmem:[#allocation4 + $0x1a8] sm:$0xff]  ;;  %v8783_v11 = vld [vmem:[#allocation4 + $0x1b8] sm:$0xff] }
 0xb56   :  { %5408 = vrcp.f32 %v3457_v62  ;;  %v11556_v62 = vld [vmem:[#allocation45_spill] sm:$0xff] }
 0xb60   :  { %v5403_v32 = vpop.eup %5402 }
 0xb61   :  { %v5405_v63 = vpop.eup %5404 }
 0xb62   :  { %v5407_v47 = vpop.eup %5406  ;;  %v3466_v38 = vmul.f32 %v5405_v63, %v5403_v32  ;;  %v8786_v32 = vld [vmem:[#allocation4 + $0x1a0] sm:$0xff]  ;;  %v8789_v63 = vld [vmem:[#allocation4 + $0x1b0] sm:$0xff] }
 0xb63   :  { %v3465_v51 = vmul.f32 0.0, %v5407_v47  ;;  %v5409_v39 = vpop.eup %5408  ;;  %v11555_v47 = vld [vmem:[#allocation131_spill] sm:$0xff] }
 0xb65   :  { %v8757_v40 = vadd.f32 %v3466_v38, %v3465_v51  ;;  %v11557_v51 = vld [vmem:[#allocation132_spill] sm:$0xff]  ;;  %v11558_v38 = vld [vmem:[#allocation46_spill] sm:$0xff] }
 0xb67   :  { %5410 = vtanh.f32 %v8757_v40 }
 0xb74   :  { %v5411_v34 = vpop.eup %5410 }
 0xb75   :  { %v3469_v31 = vmul.f32 %v5411_v34, %v5409_v39  ;;  %v11559_v39 = vld [vmem:[#allocation133_spill] sm:$0xff]  ;;  %v11560_v34 = vld [vmem:[#allocation47_spill] sm:$0xff] }
 0xb77   :  { %v3471_v29 = vmul.f32 %v3469_v31, %v11530_v48  ;;  %v3470_v57 = vmul.f32 %v11531_v1, %v3469_v31  ;;  %v11561_v31 = vld [vmem:[#allocation134_spill] sm:$0xff] }
 0xb79   :  { %3536 = vmatprep.mubr.f32.mxu0 %v3471_v29  ;;  %3607 = vmatprep.mubr.f32.mxu1 %v3471_v29  ;;  %v11562_v29 = vld [vmem:[#allocation48_spill] sm:$0xff] }
 0xb7a   :  { %3537 = vmatmul.mubr.f32.vlgmr.msra.gmra.mxu0 %v3470_v57  ;;  %3608 = vmatmul.mubr.f32.vlgmr.msra.gmra.mxu1 %v3470_v57  ;;  %v11563_v57 = vld [vmem:[#allocation135_spill] sm:$0xff] }
 0xb7b   :  { %3645 = vmatpush1.msra.mxu0 %v8762_v33  ;;  %3716 = vmatpush1.msra.mxu1 %v8765_v50 }
 0xb7c   :  { %3646 = vmatprep.subr.mxu0 %v8768_v35  ;;  %3717 = vmatprep.subr.mxu1 %v8771_v8 }
 0xb7d   :  { %3647 = vmatpush1.msra.mxu0 %v8774_v16  ;;  %3718 = vmatpush1.msra.mxu1 %v8777_v21 }
 0xb7e   :  { %3648 = vmatprep.subr.mxu0 %v8780_v22  ;;  %3719 = vmatprep.subr.mxu1 %v8783_v11 }
 0xb7f   :  { %3649 = vmatpush1.msra.mxu0 %v8786_v32  ;;  %3720 = vmatpush1.msra.mxu1 %v8789_v63 }
 0xb80   :  { %3650 = vmatprep.subr.mxu0 %v8145_v19  ;;  %3721 = vmatprep.subr.mxu1 %v8147_v49  ;;  %v11532_v19 = vld [vmem:[#allocation33_spill] sm:$0xff]  ;;  %v11533_v49 = vld [vmem:[#allocation120_spill] sm:$0xff] }
 0xb81   :  { %3651 = vmatpush1.msra.mxu0 %v8151_v54  ;;  %3722 = vmatpush1.msra.mxu1 %v8153_v0  ;;  %v11534_v54 = vld [vmem:[#allocation34_spill] sm:$0xff]  ;;  %v11535_v0 = vld [vmem:[#allocation121_spill] sm:$0xff] }
 0xb82   :  { %3652 = vmatprep.subr.mxu0 %v8157_v7  ;;  %3723 = vmatprep.subr.mxu1 %v8159_v46  ;;  %v11536_v7 = vld [vmem:[#allocation35_spill] sm:$0xff]  ;;  %v11537_v46 = vld [vmem:[#allocation122_spill] sm:$0xff] }
 0xb83   :  { %3653 = vmatpush1.msra.mxu0 %v8163_v45  ;;  %3724 = vmatpush1.msra.mxu1 %v8165_v25  ;;  %v11538_v45 = vld [vmem:[#allocation36_spill] sm:$0xff]  ;;  %v11539_v25 = vld [vmem:[#allocation123_spill] sm:$0xff] }
 0xb84   :  { %3654 = vmatprep.subr.mxu0 %v8169_v26  ;;  %3725 = vmatprep.subr.mxu1 %v8171_v42  ;;  %v11540_v26 = vld [vmem:[#allocation37_spill] sm:$0xff]  ;;  %v11541_v42 = vld [vmem:[#allocation124_spill] sm:$0xff] }
 0xb85   :  { %3655 = vmatpush1.msra.mxu0 %v8175_v43  ;;  %3726 = vmatpush1.msra.mxu1 %v8177_v4  ;;  %v11542_v43 = vld [vmem:[#allocation38_spill] sm:$0xff]  ;;  %v11543_v4 = vld [vmem:[#allocation125_spill] sm:$0xff] }
 0xb86   :  { %3656 = vmatprep.subr.mxu0 %v8181_v60  ;;  %3727 = vmatprep.subr.mxu1 %v8183_v55  ;;  %v11544_v60 = vld [vmem:[#allocation39_spill] sm:$0xff]  ;;  %v11545_v55 = vld [vmem:[#allocation126_spill] sm:$0xff] }
 0xb87   :  { %3657 = vmatpush1.msra.mxu0 %v8187_v52  ;;  %3728 = vmatpush1.msra.mxu1 %v8189_v6  ;;  %v11546_v52 = vld [vmem:[#allocation40_spill] sm:$0xff]  ;;  %v11547_v6 = vld [vmem:[#allocation127_spill] sm:$0xff] }
 0xb88   :  { %3658 = vmatprep.subr.mxu0 %v8193_v15  ;;  %3729 = vmatprep.subr.mxu1 %v8195_v3  ;;  %v11548_v15 = vld [vmem:[#allocation41_spill] sm:$0xff]  ;;  %v11549_v3 = vld [vmem:[#allocation128_spill] sm:$0xff] }
 0xb89   :  { %3659 = vmatpush1.msra.mxu0 %v8199_v12  ;;  %3730 = vmatpush1.msra.mxu1 %v8201_v17  ;;  %v11550_v12 = vld [vmem:[#allocation42_spill] sm:$0xff]  ;;  %v11551_v17 = vld [vmem:[#allocation129_spill] sm:$0xff] }
 0xb8a   :  { %3660 = vmatprep.subr.mxu0 %v8205_v58  ;;  %3731 = vmatprep.subr.mxu1 %v8207_v30  ;;  %v11552_v58 = vld [vmem:[#allocation43_spill] sm:$0xff]  ;;  %v11553_v30 = vld [vmem:[#allocation130_spill] sm:$0xff] }
 0xb8b   :  { %3661 = vmatpush1.msra.mxu0 %v8211_v24  ;;  %3732 = vmatpush1.msra.mxu1 %v11532_v19  ;;  %v11554_v24 = vld [vmem:[#allocation44_spill] sm:$0xff]  ;;  %v11564_v19 = vld [vmem:[#allocation49_spill] sm:$0xff] }
 0xb8c   :  { %3662 = vmatprep.subr.mxu0 %v11533_v49  ;;  %3733 = vmatprep.subr.mxu1 %v11534_v54  ;;  %v11565_v49 = vld [vmem:[#allocation50_spill] sm:$0xff]  ;;  %v11566_v54 = vld [vmem:[#allocation51_spill] sm:$0xff] }
 0xb8d   :  { %3663 = vmatpush1.msra.mxu0 %v11535_v0  ;;  %3734 = vmatpush1.msra.mxu1 %v11536_v7  ;;  %v11567_v0 = vld [vmem:[#allocation52_spill] sm:$0xff]  ;;  %v11568_v7 = vld [vmem:[#allocation53_spill] sm:$0xff] }
 0xb8e   :  { %3664 = vmatprep.subr.mxu0 %v11537_v46  ;;  %3735 = vmatprep.subr.mxu1 %v11538_v45  ;;  %v11569_v46 = vld [vmem:[#allocation54_spill] sm:$0xff]  ;;  %v11570_v45 = vld [vmem:[#allocation55_spill] sm:$0xff] }
 0xb8f   :  { %3665 = vmatpush1.msra.mxu0 %v11539_v25  ;;  %3736 = vmatpush1.msra.mxu1 %v11540_v26  ;;  %v11571_v25 = vld [vmem:[#allocation56_spill] sm:$0xff]  ;;  %v11572_v26 = vld [vmem:[#allocation57_spill] sm:$0xff] }
 0xb90   :  { %3666 = vmatprep.subr.mxu0 %v11541_v42  ;;  %3737 = vmatprep.subr.mxu1 %v11542_v43  ;;  %v11573_v42 = vld [vmem:[#allocation58_spill] sm:$0xff]  ;;  %v11574_v43 = vld [vmem:[#allocation59_spill] sm:$0xff] }
 0xb91   :  { %3667 = vmatpush1.msra.mxu0 %v11543_v4  ;;  %3738 = vmatpush1.msra.mxu1 %v11544_v60  ;;  %v11575_v4 = vld [vmem:[#allocation60_spill] sm:$0xff]  ;;  %v11576_v60 = vld [vmem:[#allocation61_spill] sm:$0xff] }
 0xb92   :  { %3668 = vmatprep.subr.mxu0 %v11545_v55  ;;  %3739 = vmatprep.subr.mxu1 %v11546_v52  ;;  %v11577_v55 = vld [vmem:[#allocation62_spill] sm:$0xff]  ;;  %v11578_v52 = vld [vmem:[#allocation63_spill] sm:$0xff] }
 0xb93   :  { %3669 = vmatpush1.msra.mxu0 %v11547_v6  ;;  %3740 = vmatpush1.msra.mxu1 %v11548_v15  ;;  %v11579_v6 = vld [vmem:[#allocation64_spill] sm:$0xff]  ;;  %v11580_v15 = vld [vmem:[#allocation65_spill] sm:$0xff] }
 0xb94   :  { %3670 = vmatprep.subr.mxu0 %v11549_v3  ;;  %3741 = vmatprep.subr.mxu1 %v11550_v12  ;;  %v11581_v3 = vld [vmem:[#allocation66_spill] sm:$0xff]  ;;  %v11582_v12 = vld [vmem:[#allocation67_spill] sm:$0xff] }
 0xb95   :  { %3671 = vmatpush1.msra.mxu0 %v11551_v17  ;;  %3742 = vmatpush1.msra.mxu1 %v11552_v58  ;;  %v11583_v17 = vld [vmem:[#allocation68_spill] sm:$0xff]  ;;  %v11584_v58 = vld [vmem:[#allocation69_spill] sm:$0xff] }
 0xb96   :  { %3672 = vmatprep.subr.mxu0 %v11553_v30  ;;  %3743 = vmatprep.subr.mxu1 %v11554_v24  ;;  %v11585_v30 = vld [vmem:[#allocation75_spill] sm:$0xff]  ;;  %v11586_v24 = vld [vmem:[#allocation80_spill] sm:$0xff] }
 0xb97   :  { %3673 = vmatpush1.msra.mxu0 %v11555_v47  ;;  %3744 = vmatpush1.msra.mxu1 %v11556_v62  ;;  %v11587_v47 = vld [vmem:[#allocation86_spill] sm:$0xff]  ;;  %v11588_v62 = vld [vmem:[#allocation89_spill] sm:$0xff] }
 0xb98   :  { %3674 = vmatprep.subr.mxu0 %v11557_v51  ;;  %3745 = vmatprep.subr.mxu1 %v11558_v38  ;;  %v11589_v51 = vld [vmem:[#allocation136_spill] sm:$0xff]  ;;  %v11590_v38 = vld [vmem:[#allocation137_spill] sm:$0xff] }
 0xb99   :  { %3675 = vmatpush1.msra.mxu0 %v11559_v39  ;;  %3746 = vmatpush1.msra.mxu1 %v11560_v34  ;;  %v11591_v39 = vld [vmem:[#allocation138_spill] sm:$0xff]  ;;  %v11592_v34 = vld [vmem:[#allocation139_spill] sm:$0xff] }
 0xb9a   :  { %3676 = vmatprep.subr.mxu0 %v11561_v31  ;;  %3747 = vmatprep.subr.mxu1 %v11562_v29  ;;  %v11593_v31 = vld [vmem:[#allocation140_spill] sm:$0xff]  ;;  %v11594_v29 = vld [vmem:[#allocation141_spill] sm:$0xff] }
 0xb9b   :  { %3677 = vmatpush2.msra.mxu0 %v11563_v57  ;;  %3748 = vmatpush2.msra.mxu1 %v11564_v19  ;;  %v11595_v57 = vld [vmem:[#allocation142_spill] sm:$0xff]  ;;  %v11596_v19 = vld [vmem:[#allocation143_spill] sm:$0xff] }
 0xb9c   :  { %3678 = vmatprep.subr.mxu0 %v11565_v49  ;;  %3749 = vmatprep.subr.mxu1 %v11566_v54  ;;  %v11597_v49 = vld [vmem:[#allocation144_spill] sm:$0xff]  ;;  %v11598_v54 = vld [vmem:[#allocation145_spill] sm:$0xff] }
 0xb9d   :  { %3679 = vmatpush2.msra.mxu0 %v11567_v0  ;;  %3750 = vmatpush2.msra.mxu1 %v11568_v7  ;;  %v11599_v0 = vld [vmem:[#allocation146_spill] sm:$0xff]  ;;  %v11600_v7 = vld [vmem:[#allocation147_spill] sm:$0xff] }
 0xb9e   :  { %3680 = vmatprep.subr.mxu0 %v11569_v46  ;;  %3751 = vmatprep.subr.mxu1 %v11570_v45  ;;  %v11601_v46 = vld [vmem:[#allocation148_spill] sm:$0xff]  ;;  %v11602_v45 = vld [vmem:[#allocation149_spill] sm:$0xff] }
 0xb9f   :  { %3681 = vmatpush2.msra.mxu0 %v11571_v25  ;;  %3752 = vmatpush2.msra.mxu1 %v11572_v26  ;;  %v11603_v25 = vld [vmem:[#allocation150_spill] sm:$0xff]  ;;  %v11604_v26 = vld [vmem:[#allocation151_spill] sm:$0xff] }
 0xba0   :  { %3682 = vmatprep.subr.mxu0 %v11573_v42  ;;  %3753 = vmatprep.subr.mxu1 %v11574_v43  ;;  %v11605_v42 = vld [vmem:[#allocation152_spill] sm:$0xff]  ;;  %v11606_v43 = vld [vmem:[#allocation153_spill] sm:$0xff] }
 0xba1   :  { %3683 = vmatpush2.msra.mxu0 %v11575_v4  ;;  %3754 = vmatpush2.msra.mxu1 %v11576_v60  ;;  %v11607_v4 = vld [vmem:[#allocation154_spill] sm:$0xff]  ;;  %v11608_v60 = vld [vmem:[#allocation155_spill] sm:$0xff] }
 0xba2   :  { %3684 = vmatprep.subr.mxu0 %v11577_v55  ;;  %3755 = vmatprep.subr.mxu1 %v11578_v52  ;;  %v11609_v55 = vld [vmem:[#allocation156_spill] sm:$0xff] }
 0xba3   :  { %3685 = vmatpush2.msra.mxu0 %v11579_v6  ;;  %3756 = vmatpush2.msra.mxu1 %v11580_v15  ;;  %v11610_v52 = vld [vmem:[#allocation76_spill] sm:$0xff]  ;;  %v11611_v6 = vld [vmem:[#allocation81_spill] sm:$0xff]  ;;  %v11612_v15 = vld [vmem:[#allocation87_spill] sm:$0xff] }
 0xba4   :  { %3686 = vmatprep.subr.mxu0 %v11581_v3  ;;  %3757 = vmatprep.subr.mxu1 %v11582_v12  ;;  %v11613_v3 = vld [vmem:[#allocation90_spill] sm:$0xff]  ;;  %v11614_v12 = vld [vmem:[#allocation79_spill] sm:$0xff] }
 0xba5   :  { %3687 = vmatpush2.msra.mxu0 %v11583_v17  ;;  %3758 = vmatpush2.msra.mxu1 %v11584_v58  ;;  %v11615_v17 = vld [vmem:[#allocation83_spill] sm:$0xff]  ;;  %v11616_v58 = vld [vmem:[#allocation88_spill] sm:$0xff] }
 0xba6   :  { %3688 = vmatprep.subr.mxu0 %v11585_v30  ;;  %3759 = vmatprep.subr.mxu1 %v11586_v24  ;;  %v11617_v30 = vld [vmem:[#allocation91_spill] sm:$0xff] }
 0xba7   :  { %3689 = vmatpush2.msra.mxu0 %v11587_v47  ;;  %3760 = vmatpush2.msra.mxu1 %v11588_v62  ;;  %v11618_v24 = vld [vmem:[#allocation107_spill] sm:$0xff]  ;;  %v11619_v47 = vld [vmem:[#allocation108_spill] sm:$0xff]  ;;  %v11620_v62 = vld [vmem:[#allocation109_spill] sm:$0xff] }
 0xba8   :  { %3690 = vmatprep.subr.mxu0 %v11589_v51  ;;  %3761 = vmatprep.subr.mxu1 %v11590_v38  ;;  %v11621_v51 = vld [vmem:[#allocation110_spill] sm:$0xff]  ;;  %v11622_v38 = vld [vmem:[#allocation111_spill] sm:$0xff] }
 0xba9   :  { %3691 = vmatpush2.msra.mxu0 %v11591_v39  ;;  %3762 = vmatpush2.msra.mxu1 %v11592_v34  ;;  %v11623_v39 = vld [vmem:[#allocation112_spill] sm:$0xff]  ;;  %v11624_v34 = vld [vmem:[#allocation113_spill] sm:$0xff] }
 0xbaa   :  { %3692 = vmatprep.subr.mxu0 %v11593_v31  ;;  %3763 = vmatprep.subr.mxu1 %v11594_v29  ;;  %v8908_v31 = vld [vmem:[#allocation4 + $0x1e8] sm:$0xff]  ;;  %v8911_v29 = vld [vmem:[#allocation4 + $0x1f8] sm:$0xff] }
 0xbab   :  { %3693 = vmatpush2.msra.mxu0 %v11595_v57  ;;  %3764 = vmatpush2.msra.mxu1 %v11596_v19  ;;  %11625 = vst [vmem:[#allocation78_spill] sm:$0xff] %v8908_v31  ;;  %11626 = vst [vmem:[#allocation82_spill] sm:$0xff] %v8911_v29  ;;  %v3184_v57 = vrot.slane %v8719_v44, 2  ;;  %v3176_v19 = vrot.slane %v8726_v10, 2 }
 0xbac   :  { %3694 = vmatprep.subr.mxu0 %v11597_v49  ;;  %3765 = vmatprep.subr.mxu1 %v11598_v54  ;;  %v3185_v49 = vrot.slane %v8721_v9, 2 }
 0xbad   :  { %3695 = vmatpush2.msra.mxu0 %v11599_v0  ;;  %3766 = vmatpush2.msra.mxu1 %v11600_v7  ;;  %v3192_v54 = vsel %vm789_vm3, %v3176_v19, %v3184_v57  ;;  %v3177_v7 = vrot.slane %v8731_v36, 2 }
 0xbae   :  { %3696 = vmatprep.subr.mxu0 %v11601_v46  ;;  %3767 = vmatprep.subr.mxu1 %v11602_v45 }
 0xbaf   :  { %3697 = vmatpush2.msra.mxu0 %v11603_v25  ;;  %3768 = vmatpush2.msra.mxu1 %v11604_v26  ;;  %v3193_v45 = vsel %vm789_vm3, %v3177_v7, %v3185_v49 }
 0xbb0   :  { %3698 = vmatprep.subr.mxu0 %v11605_v42  ;;  %3769 = vmatprep.subr.mxu1 %v11606_v43 }
 0xbb1   :  { %3699 = vmatpush2.msra.mxu0 %v11607_v4  ;;  %3770 = vmatpush2.msra.mxu1 %v11608_v60  ;;  %v3186_v4 = vrot.slane %v8738_v14, 2  ;;  %v3178_v60 = vrot.slane %v8743_v37, 2 }
 0xbb2   :  { %3700 = vmatprep.subr.mxu0 %v11609_v55  ;;  %3771 = vmatprep.subr.mxu1 %v11610_v52 }
 0xbb3   :  { %3701 = vmatpush2.msra.mxu0 %v11611_v6  ;;  %3772 = vmatpush2.msra.mxu1 %v11612_v15  ;;  %v3194_v52 = vsel %vm789_vm3, %v3178_v60, %v3186_v4  ;;  %v3187_v15 = vrot.slane %v8746_v53, 2  ;;  %v8951_v4 = vld [vmem:[#allocation4 + $0x190] sm:$0xff]  ;;  %v8954_v60 = vld [vmem:[#allocation4 + $0x168] sm:$0xff] }
 0xbb4   :  { %3702 = vmatprep.subr.mxu0 %v11613_v3  ;;  %3773 = vmatprep.subr.mxu1 %v11614_v12  ;;  %v3179_v3 = vrot.slane %v8753_v41, 2 }
 0xbb5   :  { %3703 = vmatpush2.msra.mxu0 %v11615_v17  ;;  %3774 = vmatpush2.msra.mxu1 %v11616_v58 }
 0xbb6   :  { %3704 = vmatprep.subr.mxu0 %v11617_v30  ;;  %3775 = vmatprep.subr.mxu1 %v11618_v24  ;;  %v3195_v58 = vsel %vm789_vm3, %v3179_v3, %v3187_v15  ;;  %v8966_v15 = vld [vmem:[#allocation4 + $0x148] sm:$0xff]  ;;  %v8969_v3 = vld [vmem:[#allocation4 + $0x158] sm:$0xff] }
 0xbb7   :  { %3705 = vmatpush2.msra.mxu0 %v11619_v47  ;;  %3776 = vmatpush2.msra.mxu1 %v11620_v62 }
 0xbb8   :  { %3706 = vmatprep.subr.mxu0 %v11621_v51  ;;  %3777 = vmatprep.subr.mxu1 %v11622_v38 }
 0xbb9   :  { %3707 = vmatpush2.msra.mxu0 %v11623_v39  ;;  %3778 = vmatpush2.msra.mxu1 %v11624_v34 }
 0xbba   :  { %3816 = vmatprep.subr.mxu0 %v8908_v31  ;;  %3887 = vmatprep.subr.mxu1 %v8911_v29 }
 0xc3a   :  { %v3538_v0 = vpop.f32.mrf.mxu0  ;;  %v3609_v55 = vpop.f32.mrf.mxu1 }
 0xc3b   :  { %v3614_v46 = vadd.f32 %v3538_v0, %v3192_v54  ;;  %v3616_v6 = vadd.f32 %v3609_v55, %v3194_v52  ;;  %v8957_v55 = vld [vmem:[#allocation4 + $0x178] sm:$0xff]  ;;  %v8960_v52 = vld [vmem:[#allocation4 + $0x160] sm:$0xff] }
 0xc3c   :  { %v3540_v25 = vpop.f32.mrf.mxu0  ;;  %v3611_v12 = vpop.f32.mrf.mxu1 }
 0xc3d   :  { %v4883_v26 = vmul.f32 -1.442695, %v3614_v46  ;;  %v3615_v42 = vadd.f32 %v3540_v25, %v3193_v45  ;;  %v4885_v17 = vmul.f32 -1.442695, %v3616_v6  ;;  %v3617_v30 = vadd.f32 %v3611_v12, %v3195_v58  ;;  %v8963_v6 = vld [vmem:[#allocation4 + $0x170] sm:$0xff]  ;;  %v8972_v12 = vld [vmem:[#allocation4 + $0x140] sm:$0xff] }
 0xc3e   :  { %v8978_v58 = vld [vmem:[#allocation4 + $0x128] sm:$0xff] }
 0xc3f   :  { %5412 = vpow2.f32 %v4883_v26  ;;  %v4884_v43 = vmul.f32 -1.442695, %v3615_v42  ;;  %v8945_v42 = vld [vmem:[#allocation4 + $0x198] sm:$0xff] }
 0xc41   :  { %5414 = vpow2.f32 %v4884_v43  ;;  %v8948_v43 = vld [vmem:[#allocation4 + $0x180] sm:$0xff] }
 0xc42   :  { %5416 = vpow2.f32 %v4885_v17  ;;  %v8975_v17 = vld [vmem:[#allocation4 + $0x150] sm:$0xff] }
 0xc43   :  { %5418 = vtanh.f32 %v3617_v30  ;;  %v8981_v30 = vld [vmem:[#allocation4 + $0x138] sm:$0xff] }
 0xc4c   :  { %v5413_v24 = vpop.eup %5412 }
 0xc4d   :  { %v3627_v47 = vadd.f32 1.0, %v5413_v24  ;;  %v8984_v24 = vld [vmem:[#allocation4 + $0x120] sm:$0xff] }
 0xc4e   :  { %v5415_v62 = vpop.eup %5414 }
 0xc4f   :  { %5420 = vrcp.f32 %v3627_v47  ;;  %v3628_v51 = vadd.f32 1.0, %v5415_v62  ;;  %v5417_v38 = vpop.eup %5416  ;;  %v8987_v47 = vld [vmem:[#allocation4 + $0x130] sm:$0xff]  ;;  %v8990_v62 = vld [vmem:[#allocation4 + $0x108] sm:$0xff] }
 0xc50   :  { %v5419_v39 = vpop.eup %5418  ;;  %v3629_v49 = vadd.f32 1.0, %v5417_v38  ;;  %v8996_v38 = vld [vmem:[#allocation4 + $0x100] sm:$0xff] }
 0xc51   :  { %5422 = vrcp.f32 %v3628_v51  ;;  %v8993_v51 = vld [vmem:[#allocation4 + $0x118] sm:$0xff] }
 0xc52   :  { %5424 = vrcp.f32 %v3629_v49  ;;  %v9011_v49 = vld [vmem:[#allocation4 + $0xf0] sm:$0xff] }
 0xc5c   :  { %v5421_v34 = vpop.eup %5420 }
 0xc5d   :  { %v3638_v57 = vmul.f32 %v5421_v34, %v5419_v39  ;;  %v8999_v39 = vld [vmem:[#allocation4 + $0x110] sm:$0xff]  ;;  %v9002_v34 = vld [vmem:[#allocation4 + $0xe8] sm:$0xff] }
 0xc5e   :  { %v5423_v19 = vpop.eup %5422 }
 0xc5f   :  { %v3637_v54 = vmul.f32 %v5423_v19, %v8757_v40  ;;  %v5425_v7 = vpop.eup %5424  ;;  %v8942_v40 = vld [vmem:[#allocation4 + $0x188] sm:$0xff]  ;;  %v9008_v19 = vld [vmem:[#allocation4 + $0xe0] sm:$0xff] }
 0xc61   :  { %v8927_v0 = vadd.f32 %v3638_v57, %v3637_v54  ;;  %v9005_v57 = vld [vmem:[#allocation4 + $0xf8] sm:$0xff]  ;;  %v9014_v54 = vld [vmem:[#allocation4 + $0xc8] sm:$0xff] }
 0xc63   :  { %5426 = vtanh.f32 %v8927_v0 }
 0xc70   :  { %v5427_v46 = vpop.eup %5426 }
 0xc71   :  { %v3641_v45 = vmul.f32 %v5427_v46, %v5425_v7  ;;  %v9017_v7 = vld [vmem:[#allocation4 + $0xd8] sm:$0xff]  ;;  %v9020_v46 = vld [vmem:[#allocation4 + $0xc0] sm:$0xff] }
 0xc73   :  { %v3643_v25 = vmul.f32 %v3641_v45, %v11530_v48  ;;  %v3642_v26 = vmul.f32 %v11531_v1, %v3641_v45  ;;  %v9023_v45 = vld [vmem:[#allocation4 + $0xd0] sm:$0xff] }
 0xc75   :  { %3708 = vmatprep.mubr.f32.mxu0 %v3643_v25  ;;  %3779 = vmatprep.mubr.f32.mxu1 %v3643_v25  ;;  %v9026_v25 = vld [vmem:[#allocation4 + $0xa8] sm:$0xff] }
 0xc76   :  { %3709 = vmatmul.mubr.f32.vlgmr.msra.gmra.mxu0 %v3642_v26  ;;  %3780 = vmatmul.mubr.f32.vlgmr.msra.gmra.mxu1 %v3642_v26  ;;  %v9029_v26 = vld [vmem:[#allocation4 + $0xb8] sm:$0xff] }
 0xc77   :  { %3817 = vmatpush1.msra.mxu0 %v8762_v33  ;;  %3888 = vmatpush1.msra.mxu1 %v8765_v50 }
 0xc78   :  { %3818 = vmatprep.subr.mxu0 %v8768_v35  ;;  %3889 = vmatprep.subr.mxu1 %v8771_v8 }
 0xc79   :  { %3819 = vmatpush1.msra.mxu0 %v8774_v16  ;;  %3890 = vmatpush1.msra.mxu1 %v8777_v21 }
 0xc7a   :  { %3820 = vmatprep.subr.mxu0 %v8780_v22  ;;  %3891 = vmatprep.subr.mxu1 %v8783_v11 }
 0xc7b   :  { %3821 = vmatpush1.msra.mxu0 %v8786_v32  ;;  %3892 = vmatpush1.msra.mxu1 %v8789_v63 }
 0xc7c   :  { %3822 = vmatprep.subr.mxu0 %v8942_v40  ;;  %3893 = vmatprep.subr.mxu1 %v8945_v42 }
 0xc7d   :  { %3823 = vmatpush1.msra.mxu0 %v8948_v43  ;;  %3894 = vmatpush1.msra.mxu1 %v8951_v4 }
 0xc7e   :  { %3824 = vmatprep.subr.mxu0 %v8954_v60  ;;  %3895 = vmatprep.subr.mxu1 %v8957_v55 }
 0xc7f   :  { %3825 = vmatpush1.msra.mxu0 %v8960_v52  ;;  %3896 = vmatpush1.msra.mxu1 %v8963_v6 }
 0xc80   :  { %3826 = vmatprep.subr.mxu0 %v8966_v15  ;;  %3897 = vmatprep.subr.mxu1 %v8969_v3 }
 0xc81   :  { %3827 = vmatpush1.msra.mxu0 %v8972_v12  ;;  %3898 = vmatpush1.msra.mxu1 %v8975_v17 }
 0xc82   :  { %3828 = vmatprep.subr.mxu0 %v8978_v58  ;;  %3899 = vmatprep.subr.mxu1 %v8981_v30 }
 0xc83   :  { %3829 = vmatpush1.msra.mxu0 %v8984_v24  ;;  %3900 = vmatpush1.msra.mxu1 %v8987_v47 }
 0xc84   :  { %3830 = vmatprep.subr.mxu0 %v8990_v62  ;;  %3901 = vmatprep.subr.mxu1 %v8993_v51 }
 0xc85   :  { %3831 = vmatpush1.msra.mxu0 %v8996_v38  ;;  %3902 = vmatpush1.msra.mxu1 %v8999_v39 }
 0xc86   :  { %3832 = vmatprep.subr.mxu0 %v9002_v34  ;;  %3903 = vmatprep.subr.mxu1 %v9005_v57 }
 0xc87   :  { %3833 = vmatpush1.msra.mxu0 %v9008_v19  ;;  %3904 = vmatpush1.msra.mxu1 %v9011_v49 }
 0xc88   :  { %3834 = vmatprep.subr.mxu0 %v9014_v54  ;;  %3905 = vmatprep.subr.mxu1 %v9017_v7 }
 0xc89   :  { %3835 = vmatpush1.msra.mxu0 %v9020_v46  ;;  %3906 = vmatpush1.msra.mxu1 %v9023_v45 }
 0xc8a   :  { %3836 = vmatprep.subr.mxu0 %v9026_v25  ;;  %3907 = vmatprep.subr.mxu1 %v9029_v26 }
 0xc8b   :  { %3837 = vmatpush1.msra.mxu0 %v9032_v59  ;;  %3908 = vmatpush1.msra.mxu1 %v9035_v61 }
 0xc8c   :  { %3838 = vmatprep.subr.mxu0 %v9038_v2  ;;  %3909 = vmatprep.subr.mxu1 %v9041_v18 }
 0xc8d   :  { %3839 = vmatpush1.msra.mxu0 %v9044_v13  ;;  %3910 = vmatpush1.msra.mxu1 %v9047_v5  ;;  %v9065_v5 = vld [vmem:[#allocation4 + $0x58] sm:$0xff] }
 0xc8e   :  { %3840 = vmatprep.subr.mxu0 %v9050_v27  ;;  %3911 = vmatprep.subr.mxu1 %v9053_v28  ;;  %11637 = vst [vmem:[#allocation33_spill] sm:$0xff] %v9065_v5  ;;  %v9068_v27 = vld [vmem:[#allocation4 + $0x40] sm:$0xff]  ;;  %v9071_v28 = vld [vmem:[#allocation4 + $0x50] sm:$0xff] }
 0xc8f   :  { %3841 = vmatpush1.msra.mxu0 %v9056_v20  ;;  %3912 = vmatpush1.msra.mxu1 %v9059_v23  ;;  %11638 = vst [vmem:[#allocation120_spill] sm:$0xff] %v9068_v27  ;;  %11639 = vst [vmem:[#allocation34_spill] sm:$0xff] %v9071_v28  ;;  %v9074_v20 = vld [vmem:[#allocation4 + $0x28] sm:$0xff]  ;;  %v9077_v23 = vld [vmem:[#allocation4 + $0x38] sm:$0xff] }
 0xc90   :  { %3842 = vmatprep.subr.mxu0 %v9062_v56  ;;  %3913 = vmatprep.subr.mxu1 %v9065_v5  ;;  %11640 = vst [vmem:[#allocation121_spill] sm:$0xff] %v9074_v20  ;;  %11641 = vst [vmem:[#allocation35_spill] sm:$0xff] %v9077_v23  ;;  %v9080_v56 = vld [vmem:[#allocation4 + $0x20] sm:$0xff]  ;;  %v9083_v5 = vld [vmem:[#allocation4 + $0x30] sm:$0xff] }
 0xc91   :  { %3843 = vmatpush1.msra.mxu0 %v9068_v27  ;;  %3914 = vmatpush1.msra.mxu1 %v9071_v28  ;;  %11642 = vst [vmem:[#allocation122_spill] sm:$0xff] %v9080_v56  ;;  %11643 = vst [vmem:[#allocation36_spill] sm:$0xff] %v9083_v5  ;;  %v9086_v27 = vld [vmem:[#allocation4 + $0x8] sm:$0xff]  ;;  %v9089_v28 = vld [vmem:[#allocation4 + $0x18] sm:$0xff] }
 0xc92   :  { %3844 = vmatprep.subr.mxu0 %v9074_v20  ;;  %3915 = vmatprep.subr.mxu1 %v9077_v23  ;;  %11644 = vst [vmem:[#allocation123_spill] sm:$0xff] %v9086_v27  ;;  %11645 = vst [vmem:[#allocation37_spill] sm:$0xff] %v9089_v28  ;;  %v9092_v20 = vld [vmem:[#allocation4] sm:$0xff]  ;;  %v9095_v23 = vld [vmem:[#allocation4 + $0x10] sm:$0xff] }
 0xc93   :  { %3845 = vmatpush1.msra.mxu0 %v9080_v56  ;;  %3916 = vmatpush1.msra.mxu1 %v9083_v5  ;;  %11646 = vst [vmem:[#allocation124_spill] sm:$0xff] %v9092_v20  ;;  %11647 = vst [vmem:[#allocation38_spill] sm:$0xff] %v9095_v23  ;;  %v9098_v56 = vld [vmem:[#allocation4 + $0x3e8] sm:$0xff]  ;;  %v9101_v5 = vld [vmem:[#allocation4 + $0x3f8] sm:$0xff] }
 0xc94   :  { %3846 = vmatprep.subr.mxu0 %v9086_v27  ;;  %3917 = vmatprep.subr.mxu1 %v9089_v28  ;;  %11648 = vst [vmem:[#allocation125_spill] sm:$0xff] %v9098_v56  ;;  %11649 = vst [vmem:[#allocation39_spill] sm:$0xff] %v9101_v5  ;;  %v9104_v27 = vld [vmem:[#allocation4 + $0x3e0] sm:$0xff]  ;;  %v9107_v28 = vld [vmem:[#allocation4 + $0x3f0] sm:$0xff] }
 0xc95   :  { %3847 = vmatpush1.msra.mxu0 %v9092_v20  ;;  %3918 = vmatpush1.msra.mxu1 %v9095_v23  ;;  %11650 = vst [vmem:[#allocation126_spill] sm:$0xff] %v9104_v27  ;;  %11651 = vst [vmem:[#allocation40_spill] sm:$0xff] %v9107_v28  ;;  %v9110_v20 = vld [vmem:[#allocation4 + $0x3c8] sm:$0xff]  ;;  %v9113_v23 = vld [vmem:[#allocation4 + $0x3d8] sm:$0xff] }
 0xc96   :  { %3848 = vmatprep.subr.mxu0 %v9098_v56  ;;  %3919 = vmatprep.subr.mxu1 %v9101_v5  ;;  %11652 = vst [vmem:[#allocation127_spill] sm:$0xff] %v9110_v20  ;;  %11653 = vst [vmem:[#allocation41_spill] sm:$0xff] %v9113_v23  ;;  %v9116_v56 = vld [vmem:[#allocation4 + $0x3c0] sm:$0xff]  ;;  %v9119_v5 = vld [vmem:[#allocation4 + $0x3d0] sm:$0xff] }
 0xc97   :  { %3849 = vmatpush2.msra.mxu0 %v9104_v27  ;;  %3920 = vmatpush2.msra.mxu1 %v9107_v28  ;;  %11654 = vst [vmem:[#allocation128_spill] sm:$0xff] %v9116_v56  ;;  %11655 = vst [vmem:[#allocation42_spill] sm:$0xff] %v9119_v5  ;;  %v9122_v27 = vld [vmem:[#allocation4 + $0x3a8] sm:$0xff]  ;;  %v9125_v28 = vld [vmem:[#allocation4 + $0x3b8] sm:$0xff] }
 0xc98   :  { %3850 = vmatprep.subr.mxu0 %v9110_v20  ;;  %3921 = vmatprep.subr.mxu1 %v9113_v23  ;;  %11656 = vst [vmem:[#allocation129_spill] sm:$0xff] %v9122_v27  ;;  %11657 = vst [vmem:[#allocation43_spill] sm:$0xff] %v9125_v28  ;;  %v9128_v20 = vld [vmem:[#allocation4 + $0x3a0] sm:$0xff]  ;;  %v9131_v23 = vld [vmem:[#allocation4 + $0x3b0] sm:$0xff] }
 0xc99   :  { %3851 = vmatpush2.msra.mxu0 %v9116_v56  ;;  %3922 = vmatpush2.msra.mxu1 %v9119_v5  ;;  %11658 = vst [vmem:[#allocation130_spill] sm:$0xff] %v9128_v20  ;;  %11659 = vst [vmem:[#allocation44_spill] sm:$0xff] %v9131_v23  ;;  %v9134_v56 = vld [vmem:[#allocation4 + $0x388] sm:$0xff]  ;;  %v9137_v5 = vld [vmem:[#allocation4 + $0x398] sm:$0xff] }
 0xc9a   :  { %3852 = vmatprep.subr.mxu0 %v9122_v27  ;;  %3923 = vmatprep.subr.mxu1 %v9125_v28  ;;  %11660 = vst [vmem:[#allocation131_spill] sm:$0xff] %v9134_v56  ;;  %11661 = vst [vmem:[#allocation45_spill] sm:$0xff] %v9137_v5  ;;  %v9140_v27 = vld [vmem:[#allocation4 + $0x380] sm:$0xff]  ;;  %v9143_v28 = vld [vmem:[#allocation4 + $0x390] sm:$0xff] }
 0xc9b   :  { %3853 = vmatpush2.msra.mxu0 %v9128_v20  ;;  %3924 = vmatpush2.msra.mxu1 %v9131_v23  ;;  %11662 = vst [vmem:[#allocation132_spill] sm:$0xff] %v9140_v27  ;;  %11663 = vst [vmem:[#allocation46_spill] sm:$0xff] %v9143_v28  ;;  %v9146_v20 = vld [vmem:[#allocation4 + $0x368] sm:$0xff]  ;;  %v9149_v23 = vld [vmem:[#allocation4 + $0x378] sm:$0xff] }
 0xc9c   :  { %3854 = vmatprep.subr.mxu0 %v9134_v56  ;;  %3925 = vmatprep.subr.mxu1 %v9137_v5  ;;  %11664 = vst [vmem:[#allocation133_spill] sm:$0xff] %v9146_v20  ;;  %11665 = vst [vmem:[#allocation47_spill] sm:$0xff] %v9149_v23  ;;  %v9152_v56 = vld [vmem:[#allocation4 + $0x360] sm:$0xff]  ;;  %v9155_v5 = vld [vmem:[#allocation4 + $0x370] sm:$0xff] }
 0xc9d   :  { %3855 = vmatpush2.msra.mxu0 %v9140_v27  ;;  %3926 = vmatpush2.msra.mxu1 %v9143_v28  ;;  %11666 = vst [vmem:[#allocation134_spill] sm:$0xff] %v9152_v56  ;;  %11667 = vst [vmem:[#allocation48_spill] sm:$0xff] %v9155_v5  ;;  %v9158_v27 = vld [vmem:[#allocation4 + $0x348] sm:$0xff]  ;;  %v9161_v28 = vld [vmem:[#allocation4 + $0x358] sm:$0xff] }
 0xc9e   :  { %3856 = vmatprep.subr.mxu0 %v9146_v20  ;;  %3927 = vmatprep.subr.mxu1 %v9149_v23  ;;  %11668 = vst [vmem:[#allocation135_spill] sm:$0xff] %v9158_v27  ;;  %11669 = vst [vmem:[#allocation49_spill] sm:$0xff] %v9161_v28  ;;  %v9164_v20 = vld [vmem:[#allocation4 + $0x340] sm:$0xff]  ;;  %v9167_v23 = vld [vmem:[#allocation4 + $0x350] sm:$0xff] }
 0xc9f   :  { %3857 = vmatpush2.msra.mxu0 %v9152_v56  ;;  %3928 = vmatpush2.msra.mxu1 %v9155_v5  ;;  %11670 = vst [vmem:[#allocation50_spill] sm:$0xff] %v9164_v20  ;;  %11671 = vst [vmem:[#allocation51_spill] sm:$0xff] %v9167_v23  ;;  %v9170_v56 = vld [vmem:[#allocation4 + $0x328] sm:$0xff]  ;;  %v9173_v5 = vld [vmem:[#allocation4 + $0x338] sm:$0xff] }
 0xca0   :  { %3858 = vmatprep.subr.mxu0 %v9158_v27  ;;  %3929 = vmatprep.subr.mxu1 %v9161_v28  ;;  %11672 = vst [vmem:[#allocation52_spill] sm:$0xff] %v9170_v56  ;;  %11673 = vst [vmem:[#allocation53_spill] sm:$0xff] %v9173_v5  ;;  %v9176_v27 = vld [vmem:[#allocation4 + $0x320] sm:$0xff]  ;;  %v9179_v28 = vld [vmem:[#allocation4 + $0x330] sm:$0xff] }
 0xca1   :  { %3859 = vmatpush2.msra.mxu0 %v9164_v20  ;;  %3930 = vmatpush2.msra.mxu1 %v9167_v23  ;;  %11674 = vst [vmem:[#allocation54_spill] sm:$0xff] %v9176_v27  ;;  %11675 = vst [vmem:[#allocation55_spill] sm:$0xff] %v9179_v28  ;;  %v9182_v20 = vld [vmem:[#allocation4 + $0x308] sm:$0xff]  ;;  %v9185_v23 = vld [vmem:[#allocation4 + $0x318] sm:$0xff] }
 0xca2   :  { %3860 = vmatprep.subr.mxu0 %v9170_v56  ;;  %3931 = vmatprep.subr.mxu1 %v9173_v5  ;;  %11676 = vst [vmem:[#allocation56_spill] sm:$0xff] %v9182_v20  ;;  %11677 = vst [vmem:[#allocation57_spill] sm:$0xff] %v9185_v23  ;;  %v9188_v56 = vld [vmem:[#allocation4 + $0x300] sm:$0xff]  ;;  %v9191_v5 = vld [vmem:[#allocation4 + $0x310] sm:$0xff] }
 0xca3   :  { %3861 = vmatpush2.msra.mxu0 %v9176_v27  ;;  %3932 = vmatpush2.msra.mxu1 %v9179_v28  ;;  %11678 = vst [vmem:[#allocation58_spill] sm:$0xff] %v9188_v56  ;;  %11679 = vst [vmem:[#allocation59_spill] sm:$0xff] %v9191_v5  ;;  %v9194_v27 = vld [vmem:[#allocation4 + $0x2e8] sm:$0xff]  ;;  %v9197_v28 = vld [vmem:[#allocation4 + $0x2f8] sm:$0xff] }
 0xca4   :  { %3862 = vmatprep.subr.mxu0 %v9182_v20  ;;  %3933 = vmatprep.subr.mxu1 %v9185_v23  ;;  %11680 = vst [vmem:[#allocation60_spill] sm:$0xff] %v9194_v27  ;;  %11681 = vst [vmem:[#allocation61_spill] sm:$0xff] %v9197_v28  ;;  %v9200_v20 = vld [vmem:[#allocation4 + $0x2e0] sm:$0xff]  ;;  %v9203_v23 = vld [vmem:[#allocation4 + $0x2f0] sm:$0xff] }
 0xca5   :  { %3863 = vmatpush2.msra.mxu0 %v9188_v56  ;;  %3934 = vmatpush2.msra.mxu1 %v9191_v5  ;;  %11682 = vst [vmem:[#allocation62_spill] sm:$0xff] %v9200_v20  ;;  %11683 = vst [vmem:[#allocation63_spill] sm:$0xff] %v9203_v23  ;;  %v9206_v56 = vld [vmem:[#allocation4 + $0x2c8] sm:$0xff]  ;;  %v9209_v5 = vld [vmem:[#allocation4 + $0x2d8] sm:$0xff] }
 0xca6   :  { %3864 = vmatprep.subr.mxu0 %v9194_v27  ;;  %3935 = vmatprep.subr.mxu1 %v9197_v28  ;;  %11684 = vst [vmem:[#allocation64_spill] sm:$0xff] %v9206_v56  ;;  %11685 = vst [vmem:[#allocation65_spill] sm:$0xff] %v9209_v5  ;;  %v9212_v27 = vld [vmem:[#allocation4 + $0x2c0] sm:$0xff]  ;;  %v9215_v28 = vld [vmem:[#allocation4 + $0x2d0] sm:$0xff] }
 0xca7   :  { %3865 = vmatpush2.msra.mxu0 %v9200_v20  ;;  %3936 = vmatpush2.msra.mxu1 %v9203_v23  ;;  %11686 = vst [vmem:[#allocation66_spill] sm:$0xff] %v9212_v27  ;;  %11687 = vst [vmem:[#allocation67_spill] sm:$0xff] %v9215_v28  ;;  %v9218_v20 = vld [vmem:[#allocation4 + $0x2a8] sm:$0xff]  ;;  %v9221_v23 = vld [vmem:[#allocation4 + $0x2b8] sm:$0xff] }
 0xca8   :  { %3866 = vmatprep.subr.mxu0 %v9206_v56  ;;  %3937 = vmatprep.subr.mxu1 %v9209_v5  ;;  %11688 = vst [vmem:[#allocation68_spill] sm:$0xff] %v9218_v20  ;;  %11689 = vst [vmem:[#allocation69_spill] sm:$0xff] %v9221_v23  ;;  %v9224_v56 = vld [vmem:[#allocation4 + $0x2a0] sm:$0xff]  ;;  %v9227_v5 = vld [vmem:[#allocation4 + $0x2b0] sm:$0xff] }
 0xca9   :  { %3867 = vmatpush2.msra.mxu0 %v9212_v27  ;;  %3938 = vmatpush2.msra.mxu1 %v9215_v28  ;;  %11690 = vst [vmem:[#allocation75_spill] sm:$0xff] %v9224_v56  ;;  %11691 = vst [vmem:[#allocation80_spill] sm:$0xff] %v9227_v5  ;;  %v9230_v27 = vld [vmem:[#allocation4 + $0x288] sm:$0xff]  ;;  %v9233_v28 = vld [vmem:[#allocation4 + $0x298] sm:$0xff] }
 0xcaa   :  { %3868 = vmatprep.subr.mxu0 %v9218_v20  ;;  %3939 = vmatprep.subr.mxu1 %v9221_v23  ;;  %11692 = vst [vmem:[#allocation86_spill] sm:$0xff] %v9230_v27  ;;  %11693 = vst [vmem:[#allocation89_spill] sm:$0xff] %v9233_v28  ;;  %v9236_v20 = vld [vmem:[#allocation4 + $0x280] sm:$0xff]  ;;  %v9239_v23 = vld [vmem:[#allocation4 + $0x290] sm:$0xff] }
 0xcab   :  { %3869 = vmatpush2.msra.mxu0 %v9224_v56  ;;  %3940 = vmatpush2.msra.mxu1 %v9227_v5  ;;  %11694 = vst [vmem:[#allocation136_spill] sm:$0xff] %v9236_v20  ;;  %11695 = vst [vmem:[#allocation137_spill] sm:$0xff] %v9239_v23  ;;  %v9242_v56 = vld [vmem:[#allocation4 + $0x268] sm:$0xff]  ;;  %v9245_v5 = vld [vmem:[#allocation4 + $0x278] sm:$0xff] }
 0xcac   :  { %3870 = vmatprep.subr.mxu0 %v9230_v27  ;;  %3941 = vmatprep.subr.mxu1 %v9233_v28  ;;  %11696 = vst [vmem:[#allocation138_spill] sm:$0xff] %v9242_v56  ;;  %11697 = vst [vmem:[#allocation139_spill] sm:$0xff] %v9245_v5  ;;  %v9248_v27 = vld [vmem:[#allocation4 + $0x260] sm:$0xff]  ;;  %v9251_v28 = vld [vmem:[#allocation4 + $0x270] sm:$0xff] }
 0xcad   :  { %3871 = vmatpush2.msra.mxu0 %v9236_v20  ;;  %3942 = vmatpush2.msra.mxu1 %v9239_v23  ;;  %11698 = vst [vmem:[#allocation140_spill] sm:$0xff] %v9248_v27  ;;  %11699 = vst [vmem:[#allocation141_spill] sm:$0xff] %v9251_v28  ;;  %v9254_v20 = vld [vmem:[#allocation4 + $0x248] sm:$0xff]  ;;  %v9257_v23 = vld [vmem:[#allocation4 + $0x258] sm:$0xff] }
 0xcae   :  { %3872 = vmatprep.subr.mxu0 %v9242_v56  ;;  %3943 = vmatprep.subr.mxu1 %v9245_v5  ;;  %11700 = vst [vmem:[#allocation142_spill] sm:$0xff] %v9254_v20  ;;  %11701 = vst [vmem:[#allocation143_spill] sm:$0xff] %v9257_v23  ;;  %v9260_v56 = vld [vmem:[#allocation4 + $0x240] sm:$0xff]  ;;  %v9263_v5 = vld [vmem:[#allocation4 + $0x250] sm:$0xff] }
 0xcaf   :  { %3873 = vmatpush2.msra.mxu0 %v9248_v27  ;;  %3944 = vmatpush2.msra.mxu1 %v9251_v28  ;;  %11702 = vst [vmem:[#allocation144_spill] sm:$0xff] %v9260_v56  ;;  %11703 = vst [vmem:[#allocation145_spill] sm:$0xff] %v9263_v5  ;;  %v9266_v27 = vld [vmem:[#allocation4 + $0x228] sm:$0xff]  ;;  %v9269_v28 = vld [vmem:[#allocation4 + $0x238] sm:$0xff] }
 0xcb0   :  { %3874 = vmatprep.subr.mxu0 %v9254_v20  ;;  %3945 = vmatprep.subr.mxu1 %v9257_v23  ;;  %11704 = vst [vmem:[#allocation146_spill] sm:$0xff] %v9266_v27  ;;  %11705 = vst [vmem:[#allocation147_spill] sm:$0xff] %v9269_v28  ;;  %v9272_v20 = vld [vmem:[#allocation4 + $0x220] sm:$0xff]  ;;  %v9275_v23 = vld [vmem:[#allocation4 + $0x230] sm:$0xff] }
 0xcb1   :  { %3875 = vmatpush2.msra.mxu0 %v9260_v56  ;;  %3946 = vmatpush2.msra.mxu1 %v9263_v5  ;;  %11706 = vst [vmem:[#allocation148_spill] sm:$0xff] %v9272_v20  ;;  %11707 = vst [vmem:[#allocation149_spill] sm:$0xff] %v9275_v23  ;;  %v9278_v56 = vld [vmem:[#allocation4 + $0x208] sm:$0xff]  ;;  %v9281_v5 = vld [vmem:[#allocation4 + $0x218] sm:$0xff] }
 0xcb2   :  { %3876 = vmatprep.subr.mxu0 %v9266_v27  ;;  %3947 = vmatprep.subr.mxu1 %v9269_v28  ;;  %11708 = vst [vmem:[#allocation150_spill] sm:$0xff] %v9278_v56  ;;  %11709 = vst [vmem:[#allocation151_spill] sm:$0xff] %v9281_v5  ;;  %v9284_v27 = vld [vmem:[#allocation4 + $0x200] sm:$0xff]  ;;  %v9287_v28 = vld [vmem:[#allocation4 + $0x210] sm:$0xff] }
 0xcb3   :  { %3877 = vmatpush2.msra.mxu0 %v9272_v20  ;;  %3948 = vmatpush2.msra.mxu1 %v9275_v23  ;;  %11710 = vst [vmem:[#allocation152_spill] sm:$0xff] %v9284_v27  ;;  %11711 = vst [vmem:[#allocation153_spill] sm:$0xff] %v9287_v28  ;;  %v3196_v23 = vrot.slane %v8726_v10, 4 }
 0xcb4   :  { %3878 = vmatprep.subr.mxu0 %v9278_v56  ;;  %3949 = vmatprep.subr.mxu1 %v9281_v5  ;;  %v3197_v5 = vrot.slane %v8731_v36, 4 }
 0xcb5   :  { %3879 = vmatpush2.msra.mxu0 %v9284_v27  ;;  %3950 = vmatpush2.msra.mxu1 %v9287_v28  ;;  %v3204_v56 = vsel %vm789_vm3, %v3196_v23, %v8719_v44  ;;  %v3199_v44 = vrot.slane %v8753_v41, 4 }
 0xcb6   :  { %3988 = vmatprep.subr.mxu0 %v8908_v31  ;;  %4059 = vmatprep.subr.mxu1 %v8911_v29  ;;  %v3205_v27 = vsel %vm789_vm3, %v3197_v5, %v8721_v9  ;;  %v3198_v29 = vrot.slane %v8743_v37, 4 }
 0xcb8   :  { %v3206_v10 = vsel %vm789_vm3, %v3198_v29, %v8738_v14 }
 0xd36   :  { %v3710_v20 = vpop.f32.mrf.mxu0  ;;  %v3781_v31 = vpop.f32.mrf.mxu1 }
 0xd37   :  { %v3786_v13 = vadd.f32 %v3710_v20, %v3204_v56  ;;  %v3788_v23 = vadd.f32 %v3781_v31, %v3206_v10  ;;  %v3207_v56 = vsel %vm789_vm3, %v3199_v44, %v8746_v53 }
 0xd38   :  { %v3712_v18 = vpop.f32.mrf.mxu0  ;;  %v3783_v36 = vpop.f32.mrf.mxu1 }
 0xd39   :  { %v4886_v2 = vmul.f32 -1.442695, %v3786_v13  ;;  %v3787_v61 = vadd.f32 %v3712_v18, %v3205_v27  ;;  %v4888_v20 = vmul.f32 -1.442695, %v3788_v23  ;;  %v3789_v5 = vadd.f32 %v3783_v36, %v3207_v56 }
 0xd3b   :  { %5428 = vpow2.f32 %v4886_v2  ;;  %v4887_v28 = vmul.f32 -1.442695, %v3787_v61 }
 0xd3d   :  { %5430 = vpow2.f32 %v4887_v28 }
 0xd3e   :  { %5432 = vpow2.f32 %v4888_v20 }
 0xd3f   :  { %5434 = vtanh.f32 %v3789_v5 }
 0xd48   :  { %v5429_v13 = vpop.eup %5428 }
 0xd49   :  { %v3799_v27 = vadd.f32 1.0, %v5429_v13  ;;  %v11724_v13 = vld [vmem:[#allocation34_spill] sm:$0xff] }
 0xd4a   :  { %v5431_v18 = vpop.eup %5430 }
 0xd4b   :  { %5436 = vrcp.f32 %v3799_v27  ;;  %v3800_v28 = vadd.f32 1.0, %v5431_v18  ;;  %v5433_v61 = vpop.eup %5432  ;;  %v11725_v27 = vld [vmem:[#allocation121_spill] sm:$0xff]  ;;  %v11726_v18 = vld [vmem:[#allocation35_spill] sm:$0xff] }
 0xd4c   :  { %v5435_v2 = vpop.eup %5434  ;;  %v3801_v41 = vadd.f32 1.0, %v5433_v61  ;;  %v11728_v61 = vld [vmem:[#allocation36_spill] sm:$0xff] }
 0xd4d   :  { %5438 = vrcp.f32 %v3800_v28  ;;  %v11727_v28 = vld [vmem:[#allocation122_spill] sm:$0xff] }
 0xd4e   :  { %5440 = vrcp.f32 %v3801_v41  ;;  %v11712_v41 = vld [vmem:[#allocation96_spill] sm:$0xff] }
 0xd58   :  { %v5437_v29 = vpop.eup %5436 }
 0xd59   :  { %v3810_v10 = vmul.f32 %v5437_v29, %v5435_v2  ;;  %v11729_v2 = vld [vmem:[#allocation123_spill] sm:$0xff]  ;;  %v11730_v29 = vld [vmem:[#allocation37_spill] sm:$0xff] }
 0xd5a   :  { %v5439_v31 = vpop.eup %5438 }
 0xd5b   :  { %v3809_v23 = vmul.f32 %v5439_v31, %v8927_v0  ;;  %v5441_v44 = vpop.eup %5440  ;;  %v11723_v0 = vld [vmem:[#allocation120_spill] sm:$0xff]  ;;  %v11732_v31 = vld [vmem:[#allocation38_spill] sm:$0xff] }
 0xd5d   :  { %v9305_v37 = vadd.f32 %v3810_v10, %v3809_v23  ;;  %v11731_v10 = vld [vmem:[#allocation124_spill] sm:$0xff]  ;;  %v11733_v23 = vld [vmem:[#allocation125_spill] sm:$0xff] }
 0xd5f   :  { %5442 = vtanh.f32 %v9305_v37 }
 0xd6c   :  { %v5443_v36 = vpop.eup %5442 }
 0xd6d   :  { %v3813_v20 = vmul.f32 %v5443_v36, %v5441_v44  ;;  %v11734_v44 = vld [vmem:[#allocation39_spill] sm:$0xff]  ;;  %v11735_v36 = vld [vmem:[#allocation126_spill] sm:$0xff] }
 0xd6f   :  { %v3815_v56 = vmul.f32 %v3813_v20, %v11530_v48  ;;  %v3814_v5 = vmul.f32 %v11531_v1, %v3813_v20  ;;  %v11736_v20 = vld [vmem:[#allocation40_spill] sm:$0xff] }
 0xd71   :  { %3880 = vmatprep.mubr.f32.mxu0 %v3815_v56  ;;  %3951 = vmatprep.mubr.f32.mxu1 %v3815_v56  ;;  %v11737_v56 = vld [vmem:[#allocation127_spill] sm:$0xff] }
 0xd72   :  { %3881 = vmatmul.mubr.f32.vlgmr.msra.gmra.mxu0 %v3814_v5  ;;  %3952 = vmatmul.mubr.f32.vlgmr.msra.gmra.mxu1 %v3814_v5  ;;  %v11738_v5 = vld [vmem:[#allocation41_spill] sm:$0xff] }
 0xd73   :  { %3989 = vmatpush1.msra.mxu0 %v8762_v33  ;;  %4060 = vmatpush1.msra.mxu1 %v8765_v50  ;;  %v11713_v33 = vld [vmem:[#allocation97_spill] sm:$0xff]  ;;  %v11714_v50 = vld [vmem:[#allocation100_spill] sm:$0xff] }
 0xd74   :  { %3990 = vmatprep.subr.mxu0 %v8768_v35  ;;  %4061 = vmatprep.subr.mxu1 %v8771_v8  ;;  %v11715_v35 = vld [vmem:[#allocation101_spill] sm:$0xff]  ;;  %v11716_v8 = vld [vmem:[#allocation70_spill] sm:$0xff] }
 0xd75   :  { %3991 = vmatpush1.msra.mxu0 %v8774_v16  ;;  %4062 = vmatpush1.msra.mxu1 %v8777_v21  ;;  %v11717_v16 = vld [vmem:[#allocation71_spill] sm:$0xff]  ;;  %v11718_v21 = vld [vmem:[#allocation72_spill] sm:$0xff] }
 0xd76   :  { %3992 = vmatprep.subr.mxu0 %v8780_v22  ;;  %4063 = vmatprep.subr.mxu1 %v8783_v11  ;;  %v11719_v22 = vld [vmem:[#allocation73_spill] sm:$0xff]  ;;  %v11720_v11 = vld [vmem:[#allocation99_spill] sm:$0xff] }
 0xd77   :  { %3993 = vmatpush1.msra.mxu0 %v8786_v32  ;;  %4064 = vmatpush1.msra.mxu1 %v8789_v63  ;;  %v11721_v32 = vld [vmem:[#allocation98_spill] sm:$0xff]  ;;  %v11722_v63 = vld [vmem:[#allocation33_spill] sm:$0xff] }
 0xd78   :  { %3994 = vmatprep.subr.mxu0 %v8942_v40  ;;  %4065 = vmatprep.subr.mxu1 %v8945_v42 }
 0xd79   :  { %3995 = vmatpush1.msra.mxu0 %v8948_v43  ;;  %4066 = vmatpush1.msra.mxu1 %v8951_v4 }
 0xd7a   :  { %3996 = vmatprep.subr.mxu0 %v8954_v60  ;;  %4067 = vmatprep.subr.mxu1 %v8957_v55 }
 0xd7b   :  { %3997 = vmatpush1.msra.mxu0 %v8960_v52  ;;  %4068 = vmatpush1.msra.mxu1 %v8963_v6 }
 0xd7c   :  { %3998 = vmatprep.subr.mxu0 %v8966_v15  ;;  %4069 = vmatprep.subr.mxu1 %v8969_v3 }
 0xd7d   :  { %3999 = vmatpush1.msra.mxu0 %v8972_v12  ;;  %4070 = vmatpush1.msra.mxu1 %v8975_v17 }
 0xd7e   :  { %4000 = vmatprep.subr.mxu0 %v8978_v58  ;;  %4071 = vmatprep.subr.mxu1 %v8981_v30 }
 0xd7f   :  { %4001 = vmatpush1.msra.mxu0 %v8984_v24  ;;  %4072 = vmatpush1.msra.mxu1 %v8987_v47 }
 0xd80   :  { %4002 = vmatprep.subr.mxu0 %v8990_v62  ;;  %4073 = vmatprep.subr.mxu1 %v8993_v51 }
 0xd81   :  { %4003 = vmatpush1.msra.mxu0 %v8996_v38  ;;  %4074 = vmatpush1.msra.mxu1 %v8999_v39 }
 0xd82   :  { %4004 = vmatprep.subr.mxu0 %v9002_v34  ;;  %4075 = vmatprep.subr.mxu1 %v9005_v57 }
 0xd83   :  { %4005 = vmatpush1.msra.mxu0 %v9008_v19  ;;  %4076 = vmatpush1.msra.mxu1 %v9011_v49 }
 0xd84   :  { %4006 = vmatprep.subr.mxu0 %v9014_v54  ;;  %4077 = vmatprep.subr.mxu1 %v9017_v7 }
 0xd85   :  { %4007 = vmatpush1.msra.mxu0 %v9020_v46  ;;  %4078 = vmatpush1.msra.mxu1 %v9023_v45 }
 0xd86   :  { %4008 = vmatprep.subr.mxu0 %v9026_v25  ;;  %4079 = vmatprep.subr.mxu1 %v9029_v26 }
 0xd87   :  { %4009 = vmatpush1.msra.mxu0 %v9032_v59  ;;  %4080 = vmatpush1.msra.mxu1 %v11712_v41 }
 0xd88   :  { %4010 = vmatprep.subr.mxu0 %v11713_v33  ;;  %4081 = vmatprep.subr.mxu1 %v11714_v50 }
 0xd89   :  { %4011 = vmatpush1.msra.mxu0 %v11715_v35  ;;  %4082 = vmatpush1.msra.mxu1 %v11716_v8 }
 0xd8a   :  { %4012 = vmatprep.subr.mxu0 %v11717_v16  ;;  %4083 = vmatprep.subr.mxu1 %v11718_v21 }
 0xd8b   :  { %4013 = vmatpush1.msra.mxu0 %v11719_v22  ;;  %4084 = vmatpush1.msra.mxu1 %v11720_v11 }
 0xd8c   :  { %4014 = vmatprep.subr.mxu0 %v11721_v32  ;;  %4085 = vmatprep.subr.mxu1 %v11722_v63 }
 0xd8d   :  { %4015 = vmatpush1.msra.mxu0 %v11723_v0  ;;  %4086 = vmatpush1.msra.mxu1 %v11724_v13 }
 0xd8e   :  { %4016 = vmatprep.subr.mxu0 %v11725_v27  ;;  %4087 = vmatprep.subr.mxu1 %v11726_v18 }
 0xd8f   :  { %4017 = vmatpush1.msra.mxu0 %v11727_v28  ;;  %4088 = vmatpush1.msra.mxu1 %v11728_v61  ;;  %v11739_v61 = vld [vmem:[#allocation128_spill] sm:$0xff]  ;;  %v11800_v28 = vld [vmem:[#allocation93_spill] sm:$0xff] }
 0xd90   :  { %4018 = vmatprep.subr.mxu0 %v11729_v2  ;;  %4089 = vmatprep.subr.mxu1 %v11730_v29  ;;  %v11740_v2 = vld [vmem:[#allocation42_spill] sm:$0xff]  ;;  %v11741_v29 = vld [vmem:[#allocation129_spill] sm:$0xff] }
 0xd91   :  { %4019 = vmatpush1.msra.mxu0 %v11731_v10  ;;  %4090 = vmatpush1.msra.mxu1 %v11732_v31  ;;  %v11742_v10 = vld [vmem:[#allocation43_spill] sm:$0xff]  ;;  %v11743_v31 = vld [vmem:[#allocation130_spill] sm:$0xff] }
 0xd92   :  { %4020 = vmatprep.subr.mxu0 %v11733_v23  ;;  %4091 = vmatprep.subr.mxu1 %v11734_v44  ;;  %v11744_v23 = vld [vmem:[#allocation44_spill] sm:$0xff]  ;;  %v11745_v44 = vld [vmem:[#allocation131_spill] sm:$0xff] }
 0xd93   :  { %4021 = vmatpush2.msra.mxu0 %v11735_v36  ;;  %4092 = vmatpush2.msra.mxu1 %v11736_v20  ;;  %v11746_v36 = vld [vmem:[#allocation45_spill] sm:$0xff]  ;;  %v11747_v20 = vld [vmem:[#allocation132_spill] sm:$0xff] }
 0xd94   :  { %4022 = vmatprep.subr.mxu0 %v11737_v56  ;;  %4093 = vmatprep.subr.mxu1 %v11738_v5  ;;  %v11748_v56 = vld [vmem:[#allocation46_spill] sm:$0xff]  ;;  %v11749_v5 = vld [vmem:[#allocation133_spill] sm:$0xff] }
 0xd95   :  { %4023 = vmatpush2.msra.mxu0 %v11739_v61  ;;  %4094 = vmatpush2.msra.mxu1 %v11740_v2  ;;  %v11750_v61 = vld [vmem:[#allocation47_spill] sm:$0xff]  ;;  %v11751_v2 = vld [vmem:[#allocation134_spill] sm:$0xff] }
 0xd96   :  { %4024 = vmatprep.subr.mxu0 %v11741_v29  ;;  %4095 = vmatprep.subr.mxu1 %v11742_v10  ;;  %v11752_v29 = vld [vmem:[#allocation48_spill] sm:$0xff]  ;;  %v11753_v10 = vld [vmem:[#allocation135_spill] sm:$0xff] }
 0xd97   :  { %4025 = vmatpush2.msra.mxu0 %v11743_v31  ;;  %4096 = vmatpush2.msra.mxu1 %v11744_v23  ;;  %v11754_v31 = vld [vmem:[#allocation49_spill] sm:$0xff]  ;;  %v11755_v23 = vld [vmem:[#allocation50_spill] sm:$0xff] }
 0xd98   :  { %4026 = vmatprep.subr.mxu0 %v11745_v44  ;;  %4097 = vmatprep.subr.mxu1 %v11746_v36  ;;  %v11756_v44 = vld [vmem:[#allocation51_spill] sm:$0xff]  ;;  %v11757_v36 = vld [vmem:[#allocation52_spill] sm:$0xff] }
 0xd99   :  { %4027 = vmatpush2.msra.mxu0 %v11747_v20  ;;  %4098 = vmatpush2.msra.mxu1 %v11748_v56  ;;  %v11758_v20 = vld [vmem:[#allocation53_spill] sm:$0xff]  ;;  %v11759_v56 = vld [vmem:[#allocation54_spill] sm:$0xff] }
 0xd9a   :  { %4028 = vmatprep.subr.mxu0 %v11749_v5  ;;  %4099 = vmatprep.subr.mxu1 %v11750_v61  ;;  %v11760_v5 = vld [vmem:[#allocation55_spill] sm:$0xff]  ;;  %v11761_v61 = vld [vmem:[#allocation56_spill] sm:$0xff] }
 0xd9b   :  { %4029 = vmatpush2.msra.mxu0 %v11751_v2  ;;  %4100 = vmatpush2.msra.mxu1 %v11752_v29  ;;  %v11762_v2 = vld [vmem:[#allocation57_spill] sm:$0xff]  ;;  %v11763_v29 = vld [vmem:[#allocation58_spill] sm:$0xff] }
 0xd9c   :  { %4030 = vmatprep.subr.mxu0 %v11753_v10  ;;  %4101 = vmatprep.subr.mxu1 %v11754_v31  ;;  %v11764_v10 = vld [vmem:[#allocation59_spill] sm:$0xff]  ;;  %v11765_v31 = vld [vmem:[#allocation60_spill] sm:$0xff] }
 0xd9d   :  { %4031 = vmatpush2.msra.mxu0 %v11755_v23  ;;  %4102 = vmatpush2.msra.mxu1 %v11756_v44  ;;  %v11766_v23 = vld [vmem:[#allocation61_spill] sm:$0xff]  ;;  %v11767_v44 = vld [vmem:[#allocation62_spill] sm:$0xff] }
 0xd9e   :  { %4032 = vmatprep.subr.mxu0 %v11757_v36  ;;  %4103 = vmatprep.subr.mxu1 %v11758_v20  ;;  %v11768_v36 = vld [vmem:[#allocation63_spill] sm:$0xff]  ;;  %v11769_v20 = vld [vmem:[#allocation64_spill] sm:$0xff] }
 0xd9f   :  { %4033 = vmatpush2.msra.mxu0 %v11759_v56  ;;  %4104 = vmatpush2.msra.mxu1 %v11760_v5  ;;  %v11770_v56 = vld [vmem:[#allocation65_spill] sm:$0xff]  ;;  %v11771_v5 = vld [vmem:[#allocation66_spill] sm:$0xff] }
 0xda0   :  { %4034 = vmatprep.subr.mxu0 %v11761_v61  ;;  %4105 = vmatprep.subr.mxu1 %v11762_v2  ;;  %v11772_v61 = vld [vmem:[#allocation67_spill] sm:$0xff]  ;;  %v11773_v2 = vld [vmem:[#allocation68_spill] sm:$0xff] }
 0xda1   :  { %4035 = vmatpush2.msra.mxu0 %v11763_v29  ;;  %4106 = vmatpush2.msra.mxu1 %v11764_v10  ;;  %v11774_v29 = vld [vmem:[#allocation69_spill] sm:$0xff]  ;;  %v11775_v10 = vld [vmem:[#allocation75_spill] sm:$0xff] }
 0xda2   :  { %4036 = vmatprep.subr.mxu0 %v11765_v31  ;;  %4107 = vmatprep.subr.mxu1 %v11766_v23  ;;  %v11776_v31 = vld [vmem:[#allocation80_spill] sm:$0xff]  ;;  %v11777_v23 = vld [vmem:[#allocation86_spill] sm:$0xff] }
 0xda3   :  { %4037 = vmatpush2.msra.mxu0 %v11767_v44  ;;  %4108 = vmatpush2.msra.mxu1 %v11768_v36  ;;  %v11778_v44 = vld [vmem:[#allocation89_spill] sm:$0xff]  ;;  %v11779_v36 = vld [vmem:[#allocation136_spill] sm:$0xff] }
 0xda4   :  { %4038 = vmatprep.subr.mxu0 %v11769_v20  ;;  %4109 = vmatprep.subr.mxu1 %v11770_v56  ;;  %v11780_v20 = vld [vmem:[#allocation137_spill] sm:$0xff]  ;;  %v11781_v56 = vld [vmem:[#allocation138_spill] sm:$0xff] }
 0xda5   :  { %4039 = vmatpush2.msra.mxu0 %v11771_v5  ;;  %4110 = vmatpush2.msra.mxu1 %v11772_v61  ;;  %v11782_v5 = vld [vmem:[#allocation139_spill] sm:$0xff]  ;;  %v11783_v61 = vld [vmem:[#allocation140_spill] sm:$0xff] }
 0xda6   :  { %4040 = vmatprep.subr.mxu0 %v11773_v2  ;;  %4111 = vmatprep.subr.mxu1 %v11774_v29  ;;  %v11784_v2 = vld [vmem:[#allocation141_spill] sm:$0xff]  ;;  %v11785_v29 = vld [vmem:[#allocation142_spill] sm:$0xff] }
 0xda7   :  { %4041 = vmatpush2.msra.mxu0 %v11775_v10  ;;  %4112 = vmatpush2.msra.mxu1 %v11776_v31  ;;  %v11786_v10 = vld [vmem:[#allocation143_spill] sm:$0xff]  ;;  %v11787_v31 = vld [vmem:[#allocation144_spill] sm:$0xff] }
 0xda8   :  { %4042 = vmatprep.subr.mxu0 %v11777_v23  ;;  %4113 = vmatprep.subr.mxu1 %v11778_v44  ;;  %v11788_v23 = vld [vmem:[#allocation145_spill] sm:$0xff]  ;;  %v11789_v44 = vld [vmem:[#allocation146_spill] sm:$0xff] }
 0xda9   :  { %4043 = vmatpush2.msra.mxu0 %v11779_v36  ;;  %4114 = vmatpush2.msra.mxu1 %v11780_v20  ;;  %v11790_v36 = vld [vmem:[#allocation147_spill] sm:$0xff]  ;;  %v11791_v20 = vld [vmem:[#allocation148_spill] sm:$0xff] }
 0xdaa   :  { %4044 = vmatprep.subr.mxu0 %v11781_v56  ;;  %4115 = vmatprep.subr.mxu1 %v11782_v5  ;;  %v11792_v56 = vld [vmem:[#allocation149_spill] sm:$0xff]  ;;  %v11793_v5 = vld [vmem:[#allocation150_spill] sm:$0xff] }
 0xdab   :  { %4045 = vmatpush2.msra.mxu0 %v11783_v61  ;;  %4116 = vmatpush2.msra.mxu1 %v11784_v2  ;;  %v11794_v61 = vld [vmem:[#allocation151_spill] sm:$0xff]  ;;  %v11795_v2 = vld [vmem:[#allocation152_spill] sm:$0xff] }
 0xdac   :  { %4046 = vmatprep.subr.mxu0 %v11785_v29  ;;  %4117 = vmatprep.subr.mxu1 %v11786_v10  ;;  %v11796_v29 = vld [vmem:[#allocation153_spill] sm:$0xff]  ;;  %v11797_v10 = vld [vmem:[#allocation78_spill] sm:$0xff] }
 0xdad   :  { %4047 = vmatpush2.msra.mxu0 %v11787_v31  ;;  %4118 = vmatpush2.msra.mxu1 %v11788_v23  ;;  %v11798_v31 = vld [vmem:[#allocation82_spill] sm:$0xff]  ;;  %v11799_v23 = vld [vmem:[#allocation77_spill] sm:$0xff] }
 0xdae   :  { %4048 = vmatprep.subr.mxu0 %v11789_v44  ;;  %4119 = vmatprep.subr.mxu1 %v11790_v36  ;;  %v3216_v44 = vrot.slane %v11799_v23, 6  ;;  %v3208_v36 = vrot.slane %v11800_v28, 6  ;;  %v11802_v23 = vld [vmem:[#allocation31_spill] sm:$0xff] }
 0xdaf   :  { %4049 = vmatpush2.msra.mxu0 %v11791_v20  ;;  %4120 = vmatpush2.msra.mxu1 %v11792_v56  ;;  %v3217_v20 = vrot.slane %v8721_v9, 6  ;;  %v3210_v28 = vrot.slane %v11802_v23, 6 }
 0xdb0   :  { %4050 = vmatprep.subr.mxu0 %v11793_v5  ;;  %4121 = vmatprep.subr.mxu1 %v11794_v61  ;;  %v3224_v56 = vsel %vm789_vm3, %v3208_v36, %v3216_v44  ;;  %v11801_v5 = vld [vmem:[#allocation94_spill] sm:$0xff]  ;;  %v3219_v36 = vrot.slane %v8746_v53, 6 }
 0xdb1   :  { %4051 = vmatpush2.msra.mxu0 %v11795_v2  ;;  %4122 = vmatpush2.msra.mxu1 %v11796_v29  ;;  %v3209_v27 = vrot.slane %v11801_v5, 6  ;;  %v11803_v5 = vld [vmem:[#allocation106_spill] sm:$0xff] }
 0xdb2   :  { %4160 = vmatprep.subr.mxu0 %v11797_v10  ;;  %4231 = vmatprep.subr.mxu1 %v11798_v31  ;;  %v3218_v31 = vrot.slane %v8738_v14, 6 }
 0xdb3   :  { %v3225_v2 = vsel %vm789_vm3, %v3209_v27, %v3217_v20 }
 0xdb4   :  { %v3226_v9 = vsel %vm789_vm3, %v3210_v28, %v3218_v31 }
 0xe32   :  { %v3882_v18 = vpop.f32.mrf.mxu0  ;;  %v3953_v63 = vpop.f32.mrf.mxu1 }
 0xe33   :  { %v3958_v61 = vadd.f32 %v3882_v18, %v3224_v56  ;;  %v3960_v44 = vadd.f32 %v3953_v63, %v3226_v9  ;;  %v3211_v18 = vrot.slane %v11803_v5, 6 }
 0xe34   :  { %v3884_v13 = vpop.f32.mrf.mxu0  ;;  %v3955_v56 = vpop.f32.mrf.mxu1 }
 0xe35   :  { %v4889_v29 = vmul.f32 -1.442695, %v3958_v61  ;;  %v3959_v0 = vadd.f32 %v3884_v13, %v3225_v2  ;;  %v4891_v27 = vmul.f32 -1.442695, %v3960_v44  ;;  %v3227_v61 = vsel %vm789_vm3, %v3211_v18, %v3219_v36 }
 0xe36   :  { %v3961_v13 = vadd.f32 %v3955_v56, %v3227_v61  ;;  %v9462_v61 = vld [vmem:[#allocation4 + $0x1c8] sm:$0xff] }
 0xe37   :  { %5444 = vpow2.f32 %v4889_v29  ;;  %v4890_v10 = vmul.f32 -1.442695, %v3959_v0 }
 0xe39   :  { %5446 = vpow2.f32 %v4890_v10 }
 0xe3a   :  { %5448 = vpow2.f32 %v4891_v27  ;;  %v9456_v27 = vld [vmem:[#allocation4 + $0x1e0] sm:$0xff] }
 0xe3b   :  { %5450 = vtanh.f32 %v3961_v13  ;;  %v9465_v13 = vld [vmem:[#allocation4 + $0x1d8] sm:$0xff] }
 0xe44   :  { %v5445_v2 = vpop.eup %5444 }
 0xe45   :  { %v3971_v0 = vadd.f32 1.0, %v5445_v2  ;;  %v9468_v2 = vld [vmem:[#allocation4 + $0x1c0] sm:$0xff] }
 0xe46   :  { %v5447_v14 = vpop.eup %5446 }
 0xe47   :  { %5452 = vrcp.f32 %v3971_v0  ;;  %v3972_v29 = vadd.f32 1.0, %v5447_v14  ;;  %v5449_v20 = vpop.eup %5448  ;;  %v9471_v0 = vld [vmem:[#allocation4 + $0x1d0] sm:$0xff]  ;;  %v9474_v14 = vld [vmem:[#allocation4 + $0x1a8] sm:$0xff] }
 0xe48   :  { %v5451_v10 = vpop.eup %5450  ;;  %v3973_v23 = vadd.f32 1.0, %v5449_v20  ;;  %v9480_v20 = vld [vmem:[#allocation4 + $0x1a0] sm:$0xff] }
 0xe49   :  { %5454 = vrcp.f32 %v3972_v29  ;;  %v9477_v29 = vld [vmem:[#allocation4 + $0x1b8] sm:$0xff] }
 0xe4a   :  { %5456 = vrcp.f32 %v3973_v23  ;;  %v11848_v23 = vld [vmem:[#allocation61_spill] sm:$0xff] }
 0xe54   :  { %v5453_v63 = vpop.eup %5452 }
 0xe55   :  { %v3982_v31 = vmul.f32 %v5453_v63, %v5451_v10  ;;  %v9483_v10 = vld [vmem:[#allocation4 + $0x1b0] sm:$0xff]  ;;  %v11845_v63 = vld [vmem:[#allocation58_spill] sm:$0xff] }
 0xe56   :  { %v5455_v53 = vpop.eup %5454 }
 0xe57   :  { %v3981_v28 = vmul.f32 %v5455_v53, %v9305_v37  ;;  %v5457_v44 = vpop.eup %5456  ;;  %v9459_v37 = vld [vmem:[#allocation4 + $0x1f0] sm:$0xff] }
 0xe58   :  { %v11847_v53 = vld [vmem:[#allocation60_spill] sm:$0xff] }
 0xe59   :  { %v9451_v9 = vadd.f32 %v3982_v31, %v3981_v28  ;;  %v11846_v31 = vld [vmem:[#allocation59_spill] sm:$0xff]  ;;  %v11849_v28 = vld [vmem:[#allocation62_spill] sm:$0xff] }
 0xe5b   :  { %5458 = vtanh.f32 %v9451_v9 }
 0xe68   :  { %v5459_v36 = vpop.eup %5458 }
 0xe69   :  { %v3985_v5 = vmul.f32 %v5459_v36, %v5457_v44  ;;  %v11850_v44 = vld [vmem:[#allocation63_spill] sm:$0xff]  ;;  %v11851_v36 = vld [vmem:[#allocation64_spill] sm:$0xff] }
 0xe6b   :  { %v3987_v18 = vmul.f32 %v3985_v5, %v11530_v48  ;;  %v3986_v56 = vmul.f32 %v11531_v1, %v3985_v5  ;;  %v11852_v5 = vld [vmem:[#allocation65_spill] sm:$0xff] }
 0xe6d   :  { %4052 = vmatprep.mubr.f32.mxu0 %v3987_v18  ;;  %4123 = vmatprep.mubr.f32.mxu1 %v3987_v18  ;;  %v11853_v18 = vld [vmem:[#allocation66_spill] sm:$0xff] }
 0xe6e   :  { %4053 = vmatmul.mubr.f32.vlgmr.msra.gmra.mxu0 %v3986_v56  ;;  %4124 = vmatmul.mubr.f32.vlgmr.msra.gmra.mxu1 %v3986_v56  ;;  %v11854_v56 = vld [vmem:[#allocation67_spill] sm:$0xff] }
 0xe6f   :  { %4161 = vmatpush1.msra.mxu0 %v9456_v27  ;;  %4232 = vmatpush1.msra.mxu1 %v9459_v37 }
 0xe70   :  { %4162 = vmatprep.subr.mxu0 %v9462_v61  ;;  %4233 = vmatprep.subr.mxu1 %v9465_v13 }
 0xe71   :  { %4163 = vmatpush1.msra.mxu0 %v9468_v2  ;;  %4234 = vmatpush1.msra.mxu1 %v9471_v0 }
 0xe72   :  { %4164 = vmatprep.subr.mxu0 %v9474_v14  ;;  %4235 = vmatprep.subr.mxu1 %v9477_v29 }
 0xe73   :  { %4165 = vmatpush1.msra.mxu0 %v9480_v20  ;;  %4236 = vmatpush1.msra.mxu1 %v9483_v10 }
 0xe74   :  { %4166 = vmatprep.subr.mxu0 %v8942_v40  ;;  %4237 = vmatprep.subr.mxu1 %v8945_v42  ;;  %v11805_v40 = vld [vmem:[#allocation120_spill] sm:$0xff]  ;;  %v11806_v42 = vld [vmem:[#allocation34_spill] sm:$0xff] }
 0xe75   :  { %4167 = vmatpush1.msra.mxu0 %v8948_v43  ;;  %4238 = vmatpush1.msra.mxu1 %v8951_v4  ;;  %v11807_v43 = vld [vmem:[#allocation121_spill] sm:$0xff]  ;;  %v11808_v4 = vld [vmem:[#allocation35_spill] sm:$0xff] }
 0xe76   :  { %4168 = vmatprep.subr.mxu0 %v8954_v60  ;;  %4239 = vmatprep.subr.mxu1 %v8957_v55  ;;  %v11809_v60 = vld [vmem:[#allocation122_spill] sm:$0xff]  ;;  %v11810_v55 = vld [vmem:[#allocation36_spill] sm:$0xff] }
 0xe77   :  { %4169 = vmatpush1.msra.mxu0 %v8960_v52  ;;  %4240 = vmatpush1.msra.mxu1 %v8963_v6  ;;  %v11811_v52 = vld [vmem:[#allocation123_spill] sm:$0xff]  ;;  %v11812_v6 = vld [vmem:[#allocation37_spill] sm:$0xff] }
 0xe78   :  { %4170 = vmatprep.subr.mxu0 %v8966_v15  ;;  %4241 = vmatprep.subr.mxu1 %v8969_v3  ;;  %v11813_v15 = vld [vmem:[#allocation124_spill] sm:$0xff]  ;;  %v11814_v3 = vld [vmem:[#allocation38_spill] sm:$0xff] }
 0xe79   :  { %4171 = vmatpush1.msra.mxu0 %v8972_v12  ;;  %4242 = vmatpush1.msra.mxu1 %v8975_v17  ;;  %v11815_v12 = vld [vmem:[#allocation125_spill] sm:$0xff]  ;;  %v11816_v17 = vld [vmem:[#allocation39_spill] sm:$0xff] }
 0xe7a   :  { %4172 = vmatprep.subr.mxu0 %v8978_v58  ;;  %4243 = vmatprep.subr.mxu1 %v8981_v30  ;;  %v11817_v58 = vld [vmem:[#allocation126_spill] sm:$0xff]  ;;  %v11818_v30 = vld [vmem:[#allocation40_spill] sm:$0xff] }
 0xe7b   :  { %4173 = vmatpush1.msra.mxu0 %v8984_v24  ;;  %4244 = vmatpush1.msra.mxu1 %v8987_v47  ;;  %v11819_v24 = vld [vmem:[#allocation127_spill] sm:$0xff]  ;;  %v11820_v47 = vld [vmem:[#allocation41_spill] sm:$0xff] }
 0xe7c   :  { %4174 = vmatprep.subr.mxu0 %v8990_v62  ;;  %4245 = vmatprep.subr.mxu1 %v8993_v51  ;;  %v11821_v62 = vld [vmem:[#allocation128_spill] sm:$0xff]  ;;  %v11822_v51 = vld [vmem:[#allocation42_spill] sm:$0xff] }
 0xe7d   :  { %4175 = vmatpush1.msra.mxu0 %v8996_v38  ;;  %4246 = vmatpush1.msra.mxu1 %v8999_v39  ;;  %v11823_v38 = vld [vmem:[#allocation129_spill] sm:$0xff]  ;;  %v11824_v39 = vld [vmem:[#allocation43_spill] sm:$0xff] }
 0xe7e   :  { %4176 = vmatprep.subr.mxu0 %v9002_v34  ;;  %4247 = vmatprep.subr.mxu1 %v9005_v57  ;;  %v11825_v34 = vld [vmem:[#allocation130_spill] sm:$0xff]  ;;  %v11826_v57 = vld [vmem:[#allocation44_spill] sm:$0xff] }
 0xe7f   :  { %4177 = vmatpush1.msra.mxu0 %v9008_v19  ;;  %4248 = vmatpush1.msra.mxu1 %v9011_v49  ;;  %v11827_v19 = vld [vmem:[#allocation131_spill] sm:$0xff]  ;;  %v11828_v49 = vld [vmem:[#allocation45_spill] sm:$0xff] }
 0xe80   :  { %4178 = vmatprep.subr.mxu0 %v9014_v54  ;;  %4249 = vmatprep.subr.mxu1 %v9017_v7  ;;  %v11829_v54 = vld [vmem:[#allocation132_spill] sm:$0xff]  ;;  %v11830_v7 = vld [vmem:[#allocation46_spill] sm:$0xff] }
 0xe81   :  { %4179 = vmatpush1.msra.mxu0 %v9020_v46  ;;  %4250 = vmatpush1.msra.mxu1 %v9023_v45  ;;  %v11831_v46 = vld [vmem:[#allocation133_spill] sm:$0xff]  ;;  %v11832_v45 = vld [vmem:[#allocation47_spill] sm:$0xff] }
 0xe82   :  { %4180 = vmatprep.subr.mxu0 %v9026_v25  ;;  %4251 = vmatprep.subr.mxu1 %v9029_v26  ;;  %v11833_v25 = vld [vmem:[#allocation134_spill] sm:$0xff]  ;;  %v11834_v26 = vld [vmem:[#allocation48_spill] sm:$0xff] }
 0xe83   :  { %4181 = vmatpush1.msra.mxu0 %v9032_v59  ;;  %4252 = vmatpush1.msra.mxu1 %v11712_v41  ;;  %v11804_v59 = vld [vmem:[#allocation33_spill] sm:$0xff]  ;;  %v11835_v41 = vld [vmem:[#allocation135_spill] sm:$0xff] }
 0xe84   :  { %4182 = vmatprep.subr.mxu0 %v11713_v33  ;;  %4253 = vmatprep.subr.mxu1 %v11714_v50  ;;  %v11836_v33 = vld [vmem:[#allocation49_spill] sm:$0xff]  ;;  %v11837_v50 = vld [vmem:[#allocation50_spill] sm:$0xff] }
 0xe85   :  { %4183 = vmatpush1.msra.mxu0 %v11715_v35  ;;  %4254 = vmatpush1.msra.mxu1 %v11716_v8  ;;  %v11838_v35 = vld [vmem:[#allocation51_spill] sm:$0xff]  ;;  %v11839_v8 = vld [vmem:[#allocation52_spill] sm:$0xff] }
 0xe86   :  { %4184 = vmatprep.subr.mxu0 %v11717_v16  ;;  %4255 = vmatprep.subr.mxu1 %v11718_v21  ;;  %v11840_v16 = vld [vmem:[#allocation53_spill] sm:$0xff]  ;;  %v11841_v21 = vld [vmem:[#allocation54_spill] sm:$0xff] }
 0xe87   :  { %4185 = vmatpush1.msra.mxu0 %v11719_v22  ;;  %4256 = vmatpush1.msra.mxu1 %v11720_v11  ;;  %v11842_v22 = vld [vmem:[#allocation55_spill] sm:$0xff]  ;;  %v11843_v11 = vld [vmem:[#allocation56_spill] sm:$0xff] }
 0xe88   :  { %4186 = vmatprep.subr.mxu0 %v11721_v32  ;;  %4257 = vmatprep.subr.mxu1 %v11804_v59  ;;  %v11844_v32 = vld [vmem:[#allocation57_spill] sm:$0xff]  ;;  %v11855_v59 = vld [vmem:[#allocation68_spill] sm:$0xff] }
 0xe89   :  { %4187 = vmatpush1.msra.mxu0 %v11805_v40  ;;  %4258 = vmatpush1.msra.mxu1 %v11806_v42  ;;  %v11856_v40 = vld [vmem:[#allocation69_spill] sm:$0xff]  ;;  %v11857_v42 = vld [vmem:[#allocation75_spill] sm:$0xff] }
 0xe8a   :  { %4188 = vmatprep.subr.mxu0 %v11807_v43  ;;  %4259 = vmatprep.subr.mxu1 %v11808_v4  ;;  %v11858_v43 = vld [vmem:[#allocation80_spill] sm:$0xff]  ;;  %v11859_v4 = vld [vmem:[#allocation86_spill] sm:$0xff] }
 0xe8b   :  { %4189 = vmatpush1.msra.mxu0 %v11809_v60  ;;  %4260 = vmatpush1.msra.mxu1 %v11810_v55  ;;  %v11860_v60 = vld [vmem:[#allocation89_spill] sm:$0xff]  ;;  %v11861_v55 = vld [vmem:[#allocation136_spill] sm:$0xff] }
 0xe8c   :  { %4190 = vmatprep.subr.mxu0 %v11811_v52  ;;  %4261 = vmatprep.subr.mxu1 %v11812_v6  ;;  %v11862_v52 = vld [vmem:[#allocation137_spill] sm:$0xff]  ;;  %v11863_v6 = vld [vmem:[#allocation138_spill] sm:$0xff] }
 0xe8d   :  { %4191 = vmatpush1.msra.mxu0 %v11813_v15  ;;  %4262 = vmatpush1.msra.mxu1 %v11814_v3  ;;  %v11864_v15 = vld [vmem:[#allocation139_spill] sm:$0xff]  ;;  %v11865_v3 = vld [vmem:[#allocation140_spill] sm:$0xff] }
 0xe8e   :  { %4192 = vmatprep.subr.mxu0 %v11815_v12  ;;  %4263 = vmatprep.subr.mxu1 %v11816_v17  ;;  %v11866_v12 = vld [vmem:[#allocation141_spill] sm:$0xff]  ;;  %v11867_v17 = vld [vmem:[#allocation142_spill] sm:$0xff] }
 0xe8f   :  { %4193 = vmatpush2.msra.mxu0 %v11817_v58  ;;  %4264 = vmatpush2.msra.mxu1 %v11818_v30  ;;  %v11868_v58 = vld [vmem:[#allocation143_spill] sm:$0xff]  ;;  %v11869_v30 = vld [vmem:[#allocation144_spill] sm:$0xff] }
 0xe90   :  { %4194 = vmatprep.subr.mxu0 %v11819_v24  ;;  %4265 = vmatprep.subr.mxu1 %v11820_v47  ;;  %v11870_v24 = vld [vmem:[#allocation145_spill] sm:$0xff]  ;;  %v11871_v47 = vld [vmem:[#allocation146_spill] sm:$0xff] }
 0xe91   :  { %4195 = vmatpush2.msra.mxu0 %v11821_v62  ;;  %4266 = vmatpush2.msra.mxu1 %v11822_v51  ;;  %v11872_v62 = vld [vmem:[#allocation147_spill] sm:$0xff]  ;;  %v11873_v51 = vld [vmem:[#allocation148_spill] sm:$0xff] }
 0xe92   :  { %4196 = vmatprep.subr.mxu0 %v11823_v38  ;;  %4267 = vmatprep.subr.mxu1 %v11824_v39  ;;  %v11874_v38 = vld [vmem:[#allocation149_spill] sm:$0xff]  ;;  %v11875_v39 = vld [vmem:[#allocation150_spill] sm:$0xff] }
 0xe93   :  { %4197 = vmatpush2.msra.mxu0 %v11825_v34  ;;  %4268 = vmatpush2.msra.mxu1 %v11826_v57  ;;  %v11876_v34 = vld [vmem:[#allocation151_spill] sm:$0xff]  ;;  %v11877_v57 = vld [vmem:[#allocation152_spill] sm:$0xff] }
 0xe94   :  { %4198 = vmatprep.subr.mxu0 %v11827_v19  ;;  %4269 = vmatprep.subr.mxu1 %v11828_v49  ;;  %v11878_v19 = vld [vmem:[#allocation153_spill] sm:$0xff]  ;;  %v9602_v49 = vld [vmem:[#allocation4 + $0x1e8] sm:$0xff] }
 0xe95   :  { %4199 = vmatpush2.msra.mxu0 %v11829_v54  ;;  %4270 = vmatpush2.msra.mxu1 %v11830_v7  ;;  %v9605_v54 = vld [vmem:[#allocation4 + $0x1f8] sm:$0xff] }
 0xe96   :  { %4200 = vmatprep.subr.mxu0 %v11831_v46  ;;  %4271 = vmatprep.subr.mxu1 %v11832_v45  ;;  %v11879_v46 = vld [vmem:[#allocation92_spill] sm:$0xff] }
 0xe97   :  { %4201 = vmatpush2.msra.mxu0 %v11833_v25  ;;  %4272 = vmatpush2.msra.mxu1 %v11834_v26 }
 0xe98   :  { %4202 = vmatprep.subr.mxu0 %v11835_v41  ;;  %4273 = vmatprep.subr.mxu1 %v11836_v33  ;;  %v11880_v41 = vld [vmem:[#allocation115_spill] sm:$0xff] }
 0xe99   :  { %4203 = vmatpush2.msra.mxu0 %v11837_v50  ;;  %4274 = vmatpush2.msra.mxu1 %v11838_v35 }
 0xe9a   :  { %4204 = vmatprep.subr.mxu0 %v11839_v8  ;;  %4275 = vmatprep.subr.mxu1 %v11840_v16  ;;  %v11881_v8 = vld [vmem:[#allocation95_spill] sm:$0xff] }
 0xe9b   :  { %4205 = vmatpush2.msra.mxu0 %v11841_v21  ;;  %4276 = vmatpush2.msra.mxu1 %v11842_v22 }
 0xe9c   :  { %4206 = vmatprep.subr.mxu0 %v11843_v11  ;;  %4277 = vmatprep.subr.mxu1 %v11844_v32  ;;  %v11882_v11 = vld [vmem:[#allocation103_spill] sm:$0xff] }
 0xe9d   :  { %4207 = vmatpush2.msra.mxu0 %v11845_v63  ;;  %4278 = vmatpush2.msra.mxu1 %v11846_v31 }
 0xe9e   :  { %4208 = vmatprep.subr.mxu0 %v11847_v53  ;;  %4279 = vmatprep.subr.mxu1 %v11848_v23 }
 0xe9f   :  { %4209 = vmatpush2.msra.mxu0 %v11849_v28  ;;  %4280 = vmatpush2.msra.mxu1 %v11850_v44 }
 0xea0   :  { %4210 = vmatprep.subr.mxu0 %v11851_v36  ;;  %4281 = vmatprep.subr.mxu1 %v11852_v5 }
 0xea1   :  { %4211 = vmatpush2.msra.mxu0 %v11853_v18  ;;  %4282 = vmatpush2.msra.mxu1 %v11854_v56 }
 0xea2   :  { %4212 = vmatprep.subr.mxu0 %v11855_v59  ;;  %4283 = vmatprep.subr.mxu1 %v11856_v40 }
 0xea3   :  { %4213 = vmatpush2.msra.mxu0 %v11857_v42  ;;  %4284 = vmatpush2.msra.mxu1 %v11858_v43 }
 0xea4   :  { %4214 = vmatprep.subr.mxu0 %v11859_v4  ;;  %4285 = vmatprep.subr.mxu1 %v11860_v60 }
 0xea5   :  { %4215 = vmatpush2.msra.mxu0 %v11861_v55  ;;  %4286 = vmatpush2.msra.mxu1 %v11862_v52  ;;  %v9631_v52 = vld [vmem:[#allocation4 + $0x198] sm:$0xff] }
 0xea6   :  { %4216 = vmatprep.subr.mxu0 %v11863_v6  ;;  %4287 = vmatprep.subr.mxu1 %v11864_v15  ;;  %v9634_v6 = vld [vmem:[#allocation4 + $0x180] sm:$0xff]  ;;  %v9637_v15 = vld [vmem:[#allocation4 + $0x190] sm:$0xff] }
 0xea7   :  { %4217 = vmatpush2.msra.mxu0 %v11865_v3  ;;  %4288 = vmatpush2.msra.mxu1 %v11866_v12  ;;  %v9640_v3 = vld [vmem:[#allocation4 + $0x168] sm:$0xff]  ;;  %v9643_v12 = vld [vmem:[#allocation4 + $0x178] sm:$0xff] }
 0xea8   :  { %4218 = vmatprep.subr.mxu0 %v11867_v17  ;;  %4289 = vmatprep.subr.mxu1 %v11868_v58  ;;  %v9646_v17 = vld [vmem:[#allocation4 + $0x160] sm:$0xff]  ;;  %v9649_v58 = vld [vmem:[#allocation4 + $0x170] sm:$0xff] }
 0xea9   :  { %4219 = vmatpush2.msra.mxu0 %v11869_v30  ;;  %4290 = vmatpush2.msra.mxu1 %v11870_v24  ;;  %v9652_v30 = vld [vmem:[#allocation4 + $0x148] sm:$0xff]  ;;  %v9655_v24 = vld [vmem:[#allocation4 + $0x158] sm:$0xff] }
 0xeaa   :  { %4220 = vmatprep.subr.mxu0 %v11871_v47  ;;  %4291 = vmatprep.subr.mxu1 %v11872_v62  ;;  %v9658_v47 = vld [vmem:[#allocation4 + $0x140] sm:$0xff]  ;;  %v9661_v62 = vld [vmem:[#allocation4 + $0x150] sm:$0xff] }
 0xeab   :  { %4221 = vmatpush2.msra.mxu0 %v11873_v51  ;;  %4292 = vmatpush2.msra.mxu1 %v11874_v38  ;;  %v9664_v51 = vld [vmem:[#allocation4 + $0x128] sm:$0xff]  ;;  %v9667_v38 = vld [vmem:[#allocation4 + $0x138] sm:$0xff] }
 0xeac   :  { %4222 = vmatprep.subr.mxu0 %v11875_v39  ;;  %4293 = vmatprep.subr.mxu1 %v11876_v34  ;;  %v9670_v39 = vld [vmem:[#allocation4 + $0x120] sm:$0xff]  ;;  %v9673_v34 = vld [vmem:[#allocation4 + $0x130] sm:$0xff] }
 0xead   :  { %4223 = vmatpush2.msra.mxu0 %v11877_v57  ;;  %4294 = vmatpush2.msra.mxu1 %v11878_v19  ;;  %v9676_v57 = vld [vmem:[#allocation4 + $0x108] sm:$0xff]  ;;  %v9679_v19 = vld [vmem:[#allocation4 + $0x118] sm:$0xff] }
 0xeae   :  { %4332 = vmatprep.subr.mxu0 %v9602_v49  ;;  %4403 = vmatprep.subr.mxu1 %v9605_v54 }
 0xf2e   :  { %v4054_v7 = vpop.f32.mrf.mxu0  ;;  %v4125_v35 = vpop.f32.mrf.mxu1 }
 0xf2f   :  { %v4130_v45 = vadd.f32 %v4054_v7, %v11879_v46  ;;  %v4132_v16 = vadd.f32 %v4125_v35, %v11881_v8  ;;  %v9682_v7 = vld [vmem:[#allocation4 + $0x100] sm:$0xff]  ;;  %v9685_v46 = vld [vmem:[#allocation4 + $0x110] sm:$0xff] }
 0xf30   :  { %v4056_v25 = vpop.f32.mrf.mxu0  ;;  %v4127_v21 = vpop.f32.mrf.mxu1  ;;  %v9706_v35 = vld [vmem:[#allocation4 + $0xc0] sm:$0xff]  ;;  %v9709_v8 = vld [vmem:[#allocation4 + $0xd0] sm:$0xff] }
 0xf31   :  { %v4892_v26 = vmul.f32 -1.442695, %v4130_v45  ;;  %v4131_v33 = vadd.f32 %v4056_v25, %v11880_v41  ;;  %v4894_v22 = vmul.f32 -1.442695, %v4132_v16  ;;  %v4133_v32 = vadd.f32 %v4127_v21, %v11882_v11  ;;  %v9688_v45 = vld [vmem:[#allocation4 + $0xe8] sm:$0xff]  ;;  %v9691_v25 = vld [vmem:[#allocation4 + $0xf8] sm:$0xff] }
 0xf32   :  { %v9697_v41 = vld [vmem:[#allocation4 + $0xf0] sm:$0xff]  ;;  %v9712_v16 = vld [vmem:[#allocation4 + $0xa8] sm:$0xff]  ;;  %v9715_v21 = vld [vmem:[#allocation4 + $0xb8] sm:$0xff] }
 0xf33   :  { %5460 = vpow2.f32 %v4892_v26  ;;  %v4893_v50 = vmul.f32 -1.442695, %v4131_v33  ;;  %v9694_v26 = vld [vmem:[#allocation4 + $0xe0] sm:$0xff]  ;;  %v9700_v33 = vld [vmem:[#allocation4 + $0xc8] sm:$0xff]  ;;  %v9721_v11 = vld [vmem:[#allocation4 + $0xb0] sm:$0xff] }
 0xf35   :  { %5462 = vpow2.f32 %v4893_v50  ;;  %v9703_v50 = vld [vmem:[#allocation4 + $0xd8] sm:$0xff] }
 0xf36   :  { %5464 = vpow2.f32 %v4894_v22  ;;  %v9718_v22 = vld [vmem:[#allocation4 + $0xa0] sm:$0xff] }
 0xf37   :  { %5466 = vtanh.f32 %v4133_v32  ;;  %v9724_v32 = vld [vmem:[#allocation4 + $0x88] sm:$0xff] }
 0xf40   :  { %v5461_v63 = vpop.eup %5460 }
 0xf41   :  { %v4143_v31 = vadd.f32 1.0, %v5461_v63  ;;  %v9727_v63 = vld [vmem:[#allocation4 + $0x98] sm:$0xff] }
 0xf42   :  { %v5463_v53 = vpop.eup %5462  ;;  %11883 = vst [vmem:[#allocation154_spill] sm:$0xff] %v9727_v63 }
 0xf43   :  { %5468 = vrcp.f32 %v4143_v31  ;;  %v4144_v23 = vadd.f32 1.0, %v5463_v53  ;;  %v5465_v28 = vpop.eup %5464  ;;  %v9730_v31 = vld [vmem:[#allocation4 + $0x80] sm:$0xff]  ;;  %v9733_v53 = vld [vmem:[#allocation4 + $0x90] sm:$0xff] }
 0xf44   :  { %v5467_v44 = vpop.eup %5466  ;;  %v4145_v56 = vadd.f32 1.0, %v5465_v28  ;;  %11884 = vst [vmem:[#allocation155_spill] sm:$0xff] %v9730_v31  ;;  %11885 = vst [vmem:[#allocation156_spill] sm:$0xff] %v9733_v53  ;;  %v9739_v28 = vld [vmem:[#allocation4 + $0x78] sm:$0xff] }
 0xf45   :  { %5470 = vrcp.f32 %v4144_v23  ;;  %v9736_v23 = vld [vmem:[#allocation4 + $0x68] sm:$0xff]  ;;  %11887 = vst [vmem:[#allocation81_spill] sm:$0xff] %v9739_v28 }
 0xf46   :  { %5472 = vrcp.f32 %v4145_v56  ;;  %11886 = vst [vmem:[#allocation76_spill] sm:$0xff] %v9736_v23  ;;  %v9754_v56 = vld [vmem:[#allocation4 + $0x40] sm:$0xff] }
 0xf47   :  { %11892 = vst [vmem:[#allocation88_spill] sm:$0xff] %v9754_v56 }
 0xf50   :  { %v5469_v36 = vpop.eup %5468 }
 0xf51   :  { %v4154_v5 = vmul.f32 %v5469_v36, %v5467_v44  ;;  %v9742_v44 = vld [vmem:[#allocation4 + $0x60] sm:$0xff]  ;;  %v9745_v36 = vld [vmem:[#allocation4 + $0x70] sm:$0xff] }
 0xf52   :  { %v5471_v18 = vpop.eup %5470  ;;  %11888 = vst [vmem:[#allocation87_spill] sm:$0xff] %v9742_v44  ;;  %11889 = vst [vmem:[#allocation90_spill] sm:$0xff] %v9745_v36 }
 0xf53   :  { %v4153_v59 = vmul.f32 %v5471_v18, %v9451_v9  ;;  %v5473_v42 = vpop.eup %5472  ;;  %v9628_v9 = vld [vmem:[#allocation4 + $0x188] sm:$0xff]  ;;  %v9751_v18 = vld [vmem:[#allocation4 + $0x58] sm:$0xff] }
 0xf54   :  { %11891 = vst [vmem:[#allocation83_spill] sm:$0xff] %v9751_v18 }
 0xf55   :  { %v9613_v40 = vadd.f32 %v4154_v5, %v4153_v59  ;;  %v9748_v5 = vld [vmem:[#allocation4 + $0x48] sm:$0xff]  ;;  %v9757_v59 = vld [vmem:[#allocation4 + $0x50] sm:$0xff] }
 0xf56   :  { %11890 = vst [vmem:[#allocation79_spill] sm:$0xff] %v9748_v5  ;;  %11893 = vst [vmem:[#allocation91_spill] sm:$0xff] %v9757_v59 }
 0xf57   :  { %5474 = vtanh.f32 %v9613_v40 }
 0xf64   :  { %v5475_v43 = vpop.eup %5474 }
 0xf65   :  { %v4157_v4 = vmul.f32 %v5475_v43, %v5473_v42  ;;  %v9760_v42 = vld [vmem:[#allocation4 + $0x28] sm:$0xff]  ;;  %v9763_v43 = vld [vmem:[#allocation4 + $0x38] sm:$0xff] }
 0xf66   :  { %11894 = vst [vmem:[#allocation107_spill] sm:$0xff] %v9760_v42  ;;  %11895 = vst [vmem:[#allocation108_spill] sm:$0xff] %v9763_v43 }
 0xf67   :  { %v4159_v60 = vmul.f32 %v4157_v4, %v11530_v48  ;;  %v4158_v55 = vmul.f32 %v11531_v1, %v4157_v4  ;;  %v9766_v4 = vld [vmem:[#allocation4 + $0x20] sm:$0xff] }
 0xf68   :  { %11896 = vst [vmem:[#allocation109_spill] sm:$0xff] %v9766_v4 }
 0xf69   :  { %4224 = vmatprep.mubr.f32.mxu0 %v4159_v60  ;;  %4295 = vmatprep.mubr.f32.mxu1 %v4159_v60  ;;  %v9769_v60 = vld [vmem:[#allocation4 + $0x30] sm:$0xff] }
 0xf6a   :  { %4225 = vmatmul.mubr.f32.vlgmr.msra.gmra.mxu0 %v4158_v55  ;;  %4296 = vmatmul.mubr.f32.vlgmr.msra.gmra.mxu1 %v4158_v55  ;;  %11897 = vst [vmem:[#allocation110_spill] sm:$0xff] %v9769_v60  ;;  %v9772_v55 = vld [vmem:[#allocation4 + $0x8] sm:$0xff] }
 0xf6b   :  { %4333 = vmatpush1.msra.mxu0 %v9456_v27  ;;  %4404 = vmatpush1.msra.mxu1 %v9459_v37  ;;  %11898 = vst [vmem:[#allocation111_spill] sm:$0xff] %v9772_v55 }
 0xf6c   :  { %4334 = vmatprep.subr.mxu0 %v9462_v61  ;;  %4405 = vmatprep.subr.mxu1 %v9465_v13 }
 0xf6d   :  { %4335 = vmatpush1.msra.mxu0 %v9468_v2  ;;  %4406 = vmatpush1.msra.mxu1 %v9471_v0 }
 0xf6e   :  { %4336 = vmatprep.subr.mxu0 %v9474_v14  ;;  %4407 = vmatprep.subr.mxu1 %v9477_v29 }
 0xf6f   :  { %4337 = vmatpush1.msra.mxu0 %v9480_v20  ;;  %4408 = vmatpush1.msra.mxu1 %v9483_v10 }
 0xf70   :  { %4338 = vmatprep.subr.mxu0 %v9628_v9  ;;  %4409 = vmatprep.subr.mxu1 %v9631_v52 }
 0xf71   :  { %4339 = vmatpush1.msra.mxu0 %v9634_v6  ;;  %4410 = vmatpush1.msra.mxu1 %v9637_v15 }
 0xf72   :  { %4340 = vmatprep.subr.mxu0 %v9640_v3  ;;  %4411 = vmatprep.subr.mxu1 %v9643_v12 }
 0xf73   :  { %4341 = vmatpush1.msra.mxu0 %v9646_v17  ;;  %4412 = vmatpush1.msra.mxu1 %v9649_v58 }
 0xf74   :  { %4342 = vmatprep.subr.mxu0 %v9652_v30  ;;  %4413 = vmatprep.subr.mxu1 %v9655_v24 }
 0xf75   :  { %4343 = vmatpush1.msra.mxu0 %v9658_v47  ;;  %4414 = vmatpush1.msra.mxu1 %v9661_v62 }
 0xf76   :  { %4344 = vmatprep.subr.mxu0 %v9664_v51  ;;  %4415 = vmatprep.subr.mxu1 %v9667_v38 }
 0xf77   :  { %4345 = vmatpush1.msra.mxu0 %v9670_v39  ;;  %4416 = vmatpush1.msra.mxu1 %v9673_v34 }
 0xf78   :  { %4346 = vmatprep.subr.mxu0 %v9676_v57  ;;  %4417 = vmatprep.subr.mxu1 %v9679_v19 }
 0xf79   :  { %4347 = vmatpush1.msra.mxu0 %v9682_v7  ;;  %4418 = vmatpush1.msra.mxu1 %v9685_v46 }
 0xf7a   :  { %4348 = vmatprep.subr.mxu0 %v9688_v45  ;;  %4419 = vmatprep.subr.mxu1 %v9691_v25 }
 0xf7b   :  { %4349 = vmatpush1.msra.mxu0 %v9694_v26  ;;  %4420 = vmatpush1.msra.mxu1 %v9697_v41 }
 0xf7c   :  { %4350 = vmatprep.subr.mxu0 %v9700_v33  ;;  %4421 = vmatprep.subr.mxu1 %v9703_v50 }
 0xf7d   :  { %4351 = vmatpush1.msra.mxu0 %v9706_v35  ;;  %4422 = vmatpush1.msra.mxu1 %v9709_v8 }
 0xf7e   :  { %4352 = vmatprep.subr.mxu0 %v9712_v16  ;;  %4423 = vmatprep.subr.mxu1 %v9715_v21 }
 0xf7f   :  { %4353 = vmatpush1.msra.mxu0 %v9718_v22  ;;  %4424 = vmatpush1.msra.mxu1 %v9721_v11 }
 0xf80   :  { %4354 = vmatprep.subr.mxu0 %v9724_v32  ;;  %4425 = vmatprep.subr.mxu1 %v9727_v63 }
 0xf81   :  { %4355 = vmatpush1.msra.mxu0 %v9730_v31  ;;  %4426 = vmatpush1.msra.mxu1 %v9733_v53 }
 0xf82   :  { %4356 = vmatprep.subr.mxu0 %v9736_v23  ;;  %4427 = vmatprep.subr.mxu1 %v9739_v28 }
 0xf83   :  { %4357 = vmatpush1.msra.mxu0 %v9742_v44  ;;  %4428 = vmatpush1.msra.mxu1 %v9745_v36 }
 0xf84   :  { %4358 = vmatprep.subr.mxu0 %v9748_v5  ;;  %4429 = vmatprep.subr.mxu1 %v9751_v18  ;;  %v11967_v5 = vld [vmem:[#allocation116_spill] sm:$0xff] }
 0xf85   :  { %4359 = vmatpush1.msra.mxu0 %v9754_v56  ;;  %4430 = vmatpush1.msra.mxu1 %v9757_v59  ;;  %v9775_v59 = vld [vmem:[#allocation4 + $0x18] sm:$0xff] }
 0xf86   :  { %4360 = vmatprep.subr.mxu0 %v9760_v42  ;;  %4431 = vmatprep.subr.mxu1 %v9763_v43  ;;  %11899 = vst [vmem:[#allocation112_spill] sm:$0xff] %v9775_v59  ;;  %v9778_v42 = vld [vmem:[#allocation4] sm:$0xff]  ;;  %v9781_v43 = vld [vmem:[#allocation4 + $0x10] sm:$0xff] }
 0xf87   :  { %4361 = vmatpush1.msra.mxu0 %v9766_v4  ;;  %4432 = vmatpush1.msra.mxu1 %v9769_v60  ;;  %11900 = vst [vmem:[#allocation113_spill] sm:$0xff] %v9778_v42  ;;  %11901 = vst [vmem:[#allocation96_spill] sm:$0xff] %v9781_v43  ;;  %v9784_v4 = vld [vmem:[#allocation4 + $0x3e8] sm:$0xff]  ;;  %v9787_v60 = vld [vmem:[#allocation4 + $0x3f8] sm:$0xff] }
 0xf88   :  { %4362 = vmatprep.subr.mxu0 %v9772_v55  ;;  %4433 = vmatprep.subr.mxu1 %v9775_v59  ;;  %11902 = vst [vmem:[#allocation97_spill] sm:$0xff] %v9784_v4  ;;  %11903 = vst [vmem:[#allocation100_spill] sm:$0xff] %v9787_v60  ;;  %v9790_v55 = vld [vmem:[#allocation4 + $0x3e0] sm:$0xff]  ;;  %v9793_v59 = vld [vmem:[#allocation4 + $0x3f0] sm:$0xff] }
 0xf89   :  { %4363 = vmatpush1.msra.mxu0 %v9778_v42  ;;  %4434 = vmatpush1.msra.mxu1 %v9781_v43  ;;  %11904 = vst [vmem:[#allocation101_spill] sm:$0xff] %v9790_v55  ;;  %11905 = vst [vmem:[#allocation70_spill] sm:$0xff] %v9793_v59  ;;  %v9796_v42 = vld [vmem:[#allocation4 + $0x3c8] sm:$0xff]  ;;  %v9799_v43 = vld [vmem:[#allocation4 + $0x3d8] sm:$0xff] }
 0xf8a   :  { %4364 = vmatprep.subr.mxu0 %v9784_v4  ;;  %4435 = vmatprep.subr.mxu1 %v9787_v60  ;;  %11906 = vst [vmem:[#allocation71_spill] sm:$0xff] %v9796_v42  ;;  %11907 = vst [vmem:[#allocation72_spill] sm:$0xff] %v9799_v43  ;;  %v9802_v4 = vld [vmem:[#allocation4 + $0x3c0] sm:$0xff]  ;;  %v9805_v60 = vld [vmem:[#allocation4 + $0x3d0] sm:$0xff] }
 0xf8b   :  { %4365 = vmatpush2.msra.mxu0 %v9790_v55  ;;  %4436 = vmatpush2.msra.mxu1 %v9793_v59  ;;  %11908 = vst [vmem:[#allocation73_spill] sm:$0xff] %v9802_v4  ;;  %11909 = vst [vmem:[#allocation99_spill] sm:$0xff] %v9805_v60  ;;  %v9808_v55 = vld [vmem:[#allocation4 + $0x3a8] sm:$0xff]  ;;  %v9811_v59 = vld [vmem:[#allocation4 + $0x3b8] sm:$0xff] }
 0xf8c   :  { %4366 = vmatprep.subr.mxu0 %v9796_v42  ;;  %4437 = vmatprep.subr.mxu1 %v9799_v43  ;;  %11910 = vst [vmem:[#allocation98_spill] sm:$0xff] %v9808_v55  ;;  %11911 = vst [vmem:[#allocation78_spill] sm:$0xff] %v9811_v59  ;;  %v9814_v42 = vld [vmem:[#allocation4 + $0x3a0] sm:$0xff]  ;;  %v9817_v43 = vld [vmem:[#allocation4 + $0x3b0] sm:$0xff] }
 0xf8d   :  { %4367 = vmatpush2.msra.mxu0 %v9802_v4  ;;  %4438 = vmatpush2.msra.mxu1 %v9805_v60  ;;  %11912 = vst [vmem:[#allocation82_spill] sm:$0xff] %v9814_v42  ;;  %11913 = vst [vmem:[#allocation77_spill] sm:$0xff] %v9817_v43  ;;  %v9820_v4 = vld [vmem:[#allocation4 + $0x388] sm:$0xff]  ;;  %v9823_v60 = vld [vmem:[#allocation4 + $0x398] sm:$0xff] }
 0xf8e   :  { %4368 = vmatprep.subr.mxu0 %v9808_v55  ;;  %4439 = vmatprep.subr.mxu1 %v9811_v59  ;;  %11914 = vst [vmem:[#allocation93_spill] sm:$0xff] %v9820_v4  ;;  %11915 = vst [vmem:[#allocation94_spill] sm:$0xff] %v9823_v60  ;;  %v9826_v55 = vld [vmem:[#allocation4 + $0x380] sm:$0xff]  ;;  %v9829_v59 = vld [vmem:[#allocation4 + $0x390] sm:$0xff] }
 0xf8f   :  { %4369 = vmatpush2.msra.mxu0 %v9814_v42  ;;  %4440 = vmatpush2.msra.mxu1 %v9817_v43  ;;  %11916 = vst [vmem:[#allocation31_spill] sm:$0xff] %v9826_v55  ;;  %11917 = vst [vmem:[#allocation106_spill] sm:$0xff] %v9829_v59  ;;  %v9832_v42 = vld [vmem:[#allocation4 + $0x368] sm:$0xff]  ;;  %v9835_v43 = vld [vmem:[#allocation4 + $0x378] sm:$0xff] }
 0xf90   :  { %4370 = vmatprep.subr.mxu0 %v9820_v4  ;;  %4441 = vmatprep.subr.mxu1 %v9823_v60  ;;  %11918 = vst [vmem:[#allocation33_spill] sm:$0xff] %v9832_v42  ;;  %11919 = vst [vmem:[#allocation120_spill] sm:$0xff] %v9835_v43  ;;  %v9838_v4 = vld [vmem:[#allocation4 + $0x360] sm:$0xff]  ;;  %v9841_v60 = vld [vmem:[#allocation4 + $0x370] sm:$0xff] }
 0xf91   :  { %4371 = vmatpush2.msra.mxu0 %v9826_v55  ;;  %4442 = vmatpush2.msra.mxu1 %v9829_v59  ;;  %11920 = vst [vmem:[#allocation34_spill] sm:$0xff] %v9838_v4  ;;  %11921 = vst [vmem:[#allocation121_spill] sm:$0xff] %v9841_v60  ;;  %v9844_v55 = vld [vmem:[#allocation4 + $0x348] sm:$0xff]  ;;  %v9847_v59 = vld [vmem:[#allocation4 + $0x358] sm:$0xff] }
 0xf92   :  { %4372 = vmatprep.subr.mxu0 %v9832_v42  ;;  %4443 = vmatprep.subr.mxu1 %v9835_v43  ;;  %11922 = vst [vmem:[#allocation35_spill] sm:$0xff] %v9844_v55  ;;  %11923 = vst [vmem:[#allocation122_spill] sm:$0xff] %v9847_v59  ;;  %v9850_v42 = vld [vmem:[#allocation4 + $0x340] sm:$0xff]  ;;  %v9853_v43 = vld [vmem:[#allocation4 + $0x350] sm:$0xff] }
 0xf93   :  { %4373 = vmatpush2.msra.mxu0 %v9838_v4  ;;  %4444 = vmatpush2.msra.mxu1 %v9841_v60  ;;  %11924 = vst [vmem:[#allocation36_spill] sm:$0xff] %v9850_v42  ;;  %11925 = vst [vmem:[#allocation123_spill] sm:$0xff] %v9853_v43  ;;  %v9856_v4 = vld [vmem:[#allocation4 + $0x328] sm:$0xff]  ;;  %v9859_v60 = vld [vmem:[#allocation4 + $0x338] sm:$0xff] }
 0xf94   :  { %4374 = vmatprep.subr.mxu0 %v9844_v55  ;;  %4445 = vmatprep.subr.mxu1 %v9847_v59  ;;  %11926 = vst [vmem:[#allocation37_spill] sm:$0xff] %v9856_v4  ;;  %11927 = vst [vmem:[#allocation124_spill] sm:$0xff] %v9859_v60  ;;  %v9862_v55 = vld [vmem:[#allocation4 + $0x320] sm:$0xff]  ;;  %v9865_v59 = vld [vmem:[#allocation4 + $0x330] sm:$0xff] }
 0xf95   :  { %4375 = vmatpush2.msra.mxu0 %v9850_v42  ;;  %4446 = vmatpush2.msra.mxu1 %v9853_v43  ;;  %11928 = vst [vmem:[#allocation38_spill] sm:$0xff] %v9862_v55  ;;  %11929 = vst [vmem:[#allocation125_spill] sm:$0xff] %v9865_v59  ;;  %v9868_v42 = vld [vmem:[#allocation4 + $0x308] sm:$0xff]  ;;  %v9871_v43 = vld [vmem:[#allocation4 + $0x318] sm:$0xff] }
 0xf96   :  { %4376 = vmatprep.subr.mxu0 %v9856_v4  ;;  %4447 = vmatprep.subr.mxu1 %v9859_v60  ;;  %11930 = vst [vmem:[#allocation39_spill] sm:$0xff] %v9868_v42  ;;  %11931 = vst [vmem:[#allocation126_spill] sm:$0xff] %v9871_v43  ;;  %v9874_v4 = vld [vmem:[#allocation4 + $0x300] sm:$0xff]  ;;  %v9877_v60 = vld [vmem:[#allocation4 + $0x310] sm:$0xff] }
 0xf97   :  { %4377 = vmatpush2.msra.mxu0 %v9862_v55  ;;  %4448 = vmatpush2.msra.mxu1 %v9865_v59  ;;  %11932 = vst [vmem:[#allocation40_spill] sm:$0xff] %v9874_v4  ;;  %11933 = vst [vmem:[#allocation127_spill] sm:$0xff] %v9877_v60  ;;  %v9880_v55 = vld [vmem:[#allocation4 + $0x2e8] sm:$0xff]  ;;  %v9883_v59 = vld [vmem:[#allocation4 + $0x2f8] sm:$0xff] }
 0xf98   :  { %4378 = vmatprep.subr.mxu0 %v9868_v42  ;;  %4449 = vmatprep.subr.mxu1 %v9871_v43  ;;  %11934 = vst [vmem:[#allocation41_spill] sm:$0xff] %v9880_v55  ;;  %11935 = vst [vmem:[#allocation128_spill] sm:$0xff] %v9883_v59  ;;  %v9886_v42 = vld [vmem:[#allocation4 + $0x2e0] sm:$0xff]  ;;  %v9889_v43 = vld [vmem:[#allocation4 + $0x2f0] sm:$0xff] }
 0xf99   :  { %4379 = vmatpush2.msra.mxu0 %v9874_v4  ;;  %4450 = vmatpush2.msra.mxu1 %v9877_v60  ;;  %11936 = vst [vmem:[#allocation42_spill] sm:$0xff] %v9886_v42  ;;  %11937 = vst [vmem:[#allocation129_spill] sm:$0xff] %v9889_v43  ;;  %v9892_v4 = vld [vmem:[#allocation4 + $0x2c8] sm:$0xff]  ;;  %v9895_v60 = vld [vmem:[#allocation4 + $0x2d8] sm:$0xff] }
 0xf9a   :  { %4380 = vmatprep.subr.mxu0 %v9880_v55  ;;  %4451 = vmatprep.subr.mxu1 %v9883_v59  ;;  %11938 = vst [vmem:[#allocation43_spill] sm:$0xff] %v9892_v4  ;;  %11939 = vst [vmem:[#allocation130_spill] sm:$0xff] %v9895_v60  ;;  %v9898_v55 = vld [vmem:[#allocation4 + $0x2c0] sm:$0xff]  ;;  %v9901_v59 = vld [vmem:[#allocation4 + $0x2d0] sm:$0xff] }
 0xf9b   :  { %4381 = vmatpush2.msra.mxu0 %v9886_v42  ;;  %4452 = vmatpush2.msra.mxu1 %v9889_v43  ;;  %11940 = vst [vmem:[#allocation44_spill] sm:$0xff] %v9898_v55  ;;  %11941 = vst [vmem:[#allocation131_spill] sm:$0xff] %v9901_v59  ;;  %v9904_v42 = vld [vmem:[#allocation4 + $0x2a8] sm:$0xff]  ;;  %v9907_v43 = vld [vmem:[#allocation4 + $0x2b8] sm:$0xff] }
 0xf9c   :  { %4382 = vmatprep.subr.mxu0 %v9892_v4  ;;  %4453 = vmatprep.subr.mxu1 %v9895_v60  ;;  %11942 = vst [vmem:[#allocation45_spill] sm:$0xff] %v9904_v42  ;;  %11943 = vst [vmem:[#allocation132_spill] sm:$0xff] %v9907_v43  ;;  %v9910_v4 = vld [vmem:[#allocation4 + $0x2a0] sm:$0xff]  ;;  %v9913_v60 = vld [vmem:[#allocation4 + $0x2b0] sm:$0xff] }
 0xf9d   :  { %4383 = vmatpush2.msra.mxu0 %v9898_v55  ;;  %4454 = vmatpush2.msra.mxu1 %v9901_v59  ;;  %11944 = vst [vmem:[#allocation46_spill] sm:$0xff] %v9910_v4  ;;  %11945 = vst [vmem:[#allocation133_spill] sm:$0xff] %v9913_v60  ;;  %v9916_v55 = vld [vmem:[#allocation4 + $0x288] sm:$0xff]  ;;  %v9919_v59 = vld [vmem:[#allocation4 + $0x298] sm:$0xff] }
 0xf9e   :  { %4384 = vmatprep.subr.mxu0 %v9904_v42  ;;  %4455 = vmatprep.subr.mxu1 %v9907_v43  ;;  %11946 = vst [vmem:[#allocation47_spill] sm:$0xff] %v9916_v55  ;;  %11947 = vst [vmem:[#allocation134_spill] sm:$0xff] %v9919_v59  ;;  %v9922_v42 = vld [vmem:[#allocation4 + $0x280] sm:$0xff]  ;;  %v9925_v43 = vld [vmem:[#allocation4 + $0x290] sm:$0xff] }
 0xf9f   :  { %4385 = vmatpush2.msra.mxu0 %v9910_v4  ;;  %4456 = vmatpush2.msra.mxu1 %v9913_v60  ;;  %11948 = vst [vmem:[#allocation48_spill] sm:$0xff] %v9922_v42  ;;  %11949 = vst [vmem:[#allocation135_spill] sm:$0xff] %v9925_v43  ;;  %v9928_v4 = vld [vmem:[#allocation4 + $0x268] sm:$0xff]  ;;  %v9931_v60 = vld [vmem:[#allocation4 + $0x278] sm:$0xff] }
 0xfa0   :  { %4386 = vmatprep.subr.mxu0 %v9916_v55  ;;  %4457 = vmatprep.subr.mxu1 %v9919_v59  ;;  %11950 = vst [vmem:[#allocation49_spill] sm:$0xff] %v9928_v4  ;;  %11951 = vst [vmem:[#allocation50_spill] sm:$0xff] %v9931_v60  ;;  %v9934_v55 = vld [vmem:[#allocation4 + $0x260] sm:$0xff]  ;;  %v9937_v59 = vld [vmem:[#allocation4 + $0x270] sm:$0xff] }
 0xfa1   :  { %4387 = vmatpush2.msra.mxu0 %v9922_v42  ;;  %4458 = vmatpush2.msra.mxu1 %v9925_v43  ;;  %11952 = vst [vmem:[#allocation51_spill] sm:$0xff] %v9934_v55  ;;  %11953 = vst [vmem:[#allocation52_spill] sm:$0xff] %v9937_v59  ;;  %v9940_v42 = vld [vmem:[#allocation4 + $0x248] sm:$0xff]  ;;  %v9943_v43 = vld [vmem:[#allocation4 + $0x258] sm:$0xff] }
 0xfa2   :  { %4388 = vmatprep.subr.mxu0 %v9928_v4  ;;  %4459 = vmatprep.subr.mxu1 %v9931_v60  ;;  %11954 = vst [vmem:[#allocation53_spill] sm:$0xff] %v9940_v42  ;;  %11955 = vst [vmem:[#allocation54_spill] sm:$0xff] %v9943_v43  ;;  %v9946_v4 = vld [vmem:[#allocation4 + $0x240] sm:$0xff]  ;;  %v9949_v60 = vld [vmem:[#allocation4 + $0x250] sm:$0xff] }
 0xfa3   :  { %4389 = vmatpush2.msra.mxu0 %v9934_v55  ;;  %4460 = vmatpush2.msra.mxu1 %v9937_v59  ;;  %11956 = vst [vmem:[#allocation55_spill] sm:$0xff] %v9946_v4  ;;  %11957 = vst [vmem:[#allocation56_spill] sm:$0xff] %v9949_v60  ;;  %v9952_v55 = vld [vmem:[#allocation4 + $0x228] sm:$0xff]  ;;  %v9955_v59 = vld [vmem:[#allocation4 + $0x238] sm:$0xff] }
 0xfa4   :  { %4390 = vmatprep.subr.mxu0 %v9940_v42  ;;  %4461 = vmatprep.subr.mxu1 %v9943_v43  ;;  %11958 = vst [vmem:[#allocation57_spill] sm:$0xff] %v9952_v55  ;;  %11959 = vst [vmem:[#allocation58_spill] sm:$0xff] %v9955_v59  ;;  %v9958_v42 = vld [vmem:[#allocation4 + $0x220] sm:$0xff]  ;;  %v9961_v43 = vld [vmem:[#allocation4 + $0x230] sm:$0xff] }
 0xfa5   :  { %4391 = vmatpush2.msra.mxu0 %v9946_v4  ;;  %4462 = vmatpush2.msra.mxu1 %v9949_v60  ;;  %11960 = vst [vmem:[#allocation59_spill] sm:$0xff] %v9958_v42  ;;  %11961 = vst [vmem:[#allocation60_spill] sm:$0xff] %v9961_v43  ;;  %v9964_v4 = vld [vmem:[#allocation4 + $0x208] sm:$0xff]  ;;  %v9967_v60 = vld [vmem:[#allocation4 + $0x218] sm:$0xff] }
 0xfa6   :  { %4392 = vmatprep.subr.mxu0 %v9952_v55  ;;  %4463 = vmatprep.subr.mxu1 %v9955_v59  ;;  %11962 = vst [vmem:[#allocation61_spill] sm:$0xff] %v9964_v4  ;;  %11963 = vst [vmem:[#allocation62_spill] sm:$0xff] %v9967_v60  ;;  %v9970_v55 = vld [vmem:[#allocation4 + $0x200] sm:$0xff]  ;;  %v9973_v59 = vld [vmem:[#allocation4 + $0x210] sm:$0xff] }
 0xfa7   :  { %4393 = vmatpush2.msra.mxu0 %v9958_v42  ;;  %4464 = vmatpush2.msra.mxu1 %v9961_v43  ;;  %11964 = vst [vmem:[#allocation63_spill] sm:$0xff] %v9970_v55  ;;  %11965 = vst [vmem:[#allocation64_spill] sm:$0xff] %v9973_v59  ;;  %v11966_v42 = vld [vmem:[#allocation114_spill] sm:$0xff] }
 0xfa8   :  { %4394 = vmatprep.subr.mxu0 %v9964_v4  ;;  %4465 = vmatprep.subr.mxu1 %v9967_v60 }
 0xfa9   :  { %4395 = vmatpush2.msra.mxu0 %v9970_v55  ;;  %4466 = vmatpush2.msra.mxu1 %v9973_v59  ;;  %v11968_v55 = vld [vmem:[#allocation102_spill] sm:$0xff]  ;;  %v11969_v59 = vld [vmem:[#allocation104_spill] sm:$0xff] }
 0xfaa   :  { %4504 = vmatprep.subr.mxu0 %v9602_v49  ;;  %4575 = vmatprep.subr.mxu1 %v9605_v54 }
0x102a   :  { %v4226_v43 = vpop.f32.mrf.mxu0  ;;  %v4297_v44 = vpop.f32.mrf.mxu1 }
0x102b   :  { %v4302_v56 = vadd.f32 %v4226_v43, %v11966_v42  ;;  %v4304_v28 = vadd.f32 %v4297_v44, %v11968_v55  ;;  %v12015_v55 = vld [vmem:[#allocation38_spill] sm:$0xff] }
0x102c   :  { %v4228_v4 = vpop.f32.mrf.mxu0  ;;  %v4299_v23 = vpop.f32.mrf.mxu1 }
0x102d   :  { %v4895_v18 = vmul.f32 -1.442695, %v4302_v56  ;;  %v4303_v36 = vadd.f32 %v4228_v4, %v11967_v5  ;;  %v4897_v53 = vmul.f32 -1.442695, %v4304_v28  ;;  %v4305_v31 = vadd.f32 %v4299_v23, %v11969_v59  ;;  %v12014_v59 = vld [vmem:[#allocation124_spill] sm:$0xff] }
0x102f   :  { %5476 = vpow2.f32 %v4895_v18  ;;  %v4896_v60 = vmul.f32 -1.442695, %v4303_v36 }
0x1031   :  { %5478 = vpow2.f32 %v4896_v60 }
0x1032   :  { %5480 = vpow2.f32 %v4897_v53 }
0x1033   :  { %5482 = vtanh.f32 %v4305_v31 }
0x103c   :  { %v5477_v49 = vpop.eup %5476 }
0x103d   :  { %v4315_v63 = vadd.f32 1.0, %v5477_v49  ;;  %v12016_v49 = vld [vmem:[#allocation125_spill] sm:$0xff] }
0x103e   :  { %v5479_v54 = vpop.eup %5478 }
0x103f   :  { %5484 = vrcp.f32 %v4315_v63  ;;  %v4316_v42 = vadd.f32 1.0, %v5479_v54  ;;  %v5481_v56 = vpop.eup %5480  ;;  %v12017_v54 = vld [vmem:[#allocation39_spill] sm:$0xff] }
0x1040   :  { %v5483_v5 = vpop.eup %5482  ;;  %v4317_v4 = vadd.f32 1.0, %v5481_v56  ;;  %v12019_v56 = vld [vmem:[#allocation40_spill] sm:$0xff] }
0x1041   :  { %5486 = vrcp.f32 %v4316_v42  ;;  %v12018_v42 = vld [vmem:[#allocation126_spill] sm:$0xff] }
0x1042   :  { %5488 = vrcp.f32 %v4317_v4  ;;  %v12024_v4 = vld [vmem:[#allocation129_spill] sm:$0xff] }
0x104c   :  { %v5485_v18 = vpop.eup %5484 }
0x104d   :  { %v4326_v36 = vmul.f32 %v5485_v18, %v5483_v5  ;;  %v12020_v5 = vld [vmem:[#allocation127_spill] sm:$0xff]  ;;  %v12021_v18 = vld [vmem:[#allocation41_spill] sm:$0xff] }
0x104e   :  { %v5487_v43 = vpop.eup %5486 }
0x104f   :  { %v4325_v44 = vmul.f32 %v5487_v43, %v9613_v40  ;;  %v5489_v23 = vpop.eup %5488  ;;  %v11980_v40 = vld [vmem:[#allocation91_spill] sm:$0xff]  ;;  %v12023_v43 = vld [vmem:[#allocation42_spill] sm:$0xff] }
0x1051   :  { %v9983_v60 = vadd.f32 %v4326_v36, %v4325_v44  ;;  %v12022_v36 = vld [vmem:[#allocation128_spill] sm:$0xff]  ;;  %v12025_v44 = vld [vmem:[#allocation43_spill] sm:$0xff] }
0x1053   :  { %5490 = vtanh.f32 %v9983_v60 }
0x1060   :  { %v5491_v53 = vpop.eup %5490 }
0x1061   :  { %v4329_v28 = vmul.f32 %v5491_v53, %v5489_v23  ;;  %v12026_v23 = vld [vmem:[#allocation130_spill] sm:$0xff]  ;;  %v12027_v53 = vld [vmem:[#allocation44_spill] sm:$0xff] }
0x1063   :  { %v4331_v63 = vmul.f32 %v4329_v28, %v11530_v48  ;;  %v4330_v31 = vmul.f32 %v11531_v1, %v4329_v28  ;;  %v12028_v28 = vld [vmem:[#allocation131_spill] sm:$0xff] }
0x1065   :  { %4396 = vmatprep.mubr.f32.mxu0 %v4331_v63  ;;  %4467 = vmatprep.mubr.f32.mxu1 %v4331_v63  ;;  %v12029_v63 = vld [vmem:[#allocation45_spill] sm:$0xff] }
0x1066   :  { %4397 = vmatmul.mubr.f32.vlgmr.msra.gmra.mxu0 %v4330_v31  ;;  %4468 = vmatmul.mubr.f32.vlgmr.msra.gmra.mxu1 %v4330_v31  ;;  %v12030_v31 = vld [vmem:[#allocation132_spill] sm:$0xff] }
0x1067   :  { %4505 = vmatpush1.msra.mxu0 %v9456_v27  ;;  %4576 = vmatpush1.msra.mxu1 %v9459_v37  ;;  %v11970_v27 = vld [vmem:[#allocation154_spill] sm:$0xff]  ;;  %v11971_v37 = vld [vmem:[#allocation155_spill] sm:$0xff] }
0x1068   :  { %4506 = vmatprep.subr.mxu0 %v9462_v61  ;;  %4577 = vmatprep.subr.mxu1 %v9465_v13  ;;  %v11972_v61 = vld [vmem:[#allocation156_spill] sm:$0xff] }
0x1069   :  { %4507 = vmatpush1.msra.mxu0 %v9468_v2  ;;  %4578 = vmatpush1.msra.mxu1 %v9471_v0  ;;  %v11973_v13 = vld [vmem:[#allocation76_spill] sm:$0xff]  ;;  %v11974_v2 = vld [vmem:[#allocation81_spill] sm:$0xff]  ;;  %v11975_v0 = vld [vmem:[#allocation87_spill] sm:$0xff] }
0x106a   :  { %4508 = vmatprep.subr.mxu0 %v9474_v14  ;;  %4579 = vmatprep.subr.mxu1 %v9477_v29  ;;  %v11976_v14 = vld [vmem:[#allocation90_spill] sm:$0xff]  ;;  %v11977_v29 = vld [vmem:[#allocation79_spill] sm:$0xff] }
0x106b   :  { %4509 = vmatpush1.msra.mxu0 %v9480_v20  ;;  %4580 = vmatpush1.msra.mxu1 %v9483_v10  ;;  %v11978_v20 = vld [vmem:[#allocation83_spill] sm:$0xff]  ;;  %v11979_v10 = vld [vmem:[#allocation88_spill] sm:$0xff] }
0x106c   :  { %4510 = vmatprep.subr.mxu0 %v9628_v9  ;;  %4581 = vmatprep.subr.mxu1 %v9631_v52  ;;  %v11981_v9 = vld [vmem:[#allocation107_spill] sm:$0xff]  ;;  %v11982_v52 = vld [vmem:[#allocation108_spill] sm:$0xff] }
0x106d   :  { %4511 = vmatpush1.msra.mxu0 %v9634_v6  ;;  %4582 = vmatpush1.msra.mxu1 %v9637_v15  ;;  %v11983_v6 = vld [vmem:[#allocation109_spill] sm:$0xff]  ;;  %v11984_v15 = vld [vmem:[#allocation110_spill] sm:$0xff] }
0x106e   :  { %4512 = vmatprep.subr.mxu0 %v9640_v3  ;;  %4583 = vmatprep.subr.mxu1 %v9643_v12  ;;  %v11985_v3 = vld [vmem:[#allocation111_spill] sm:$0xff]  ;;  %v11986_v12 = vld [vmem:[#allocation112_spill] sm:$0xff] }
0x106f   :  { %4513 = vmatpush1.msra.mxu0 %v9646_v17  ;;  %4584 = vmatpush1.msra.mxu1 %v9649_v58  ;;  %v11987_v17 = vld [vmem:[#allocation113_spill] sm:$0xff]  ;;  %v11988_v58 = vld [vmem:[#allocation96_spill] sm:$0xff] }
0x1070   :  { %4514 = vmatprep.subr.mxu0 %v9652_v30  ;;  %4585 = vmatprep.subr.mxu1 %v9655_v24  ;;  %v11989_v30 = vld [vmem:[#allocation97_spill] sm:$0xff]  ;;  %v11990_v24 = vld [vmem:[#allocation100_spill] sm:$0xff] }
0x1071   :  { %4515 = vmatpush1.msra.mxu0 %v9658_v47  ;;  %4586 = vmatpush1.msra.mxu1 %v9661_v62  ;;  %v11991_v47 = vld [vmem:[#allocation101_spill] sm:$0xff]  ;;  %v11992_v62 = vld [vmem:[#allocation70_spill] sm:$0xff] }
0x1072   :  { %4516 = vmatprep.subr.mxu0 %v9664_v51  ;;  %4587 = vmatprep.subr.mxu1 %v9667_v38  ;;  %v11993_v51 = vld [vmem:[#allocation71_spill] sm:$0xff]  ;;  %v11994_v38 = vld [vmem:[#allocation72_spill] sm:$0xff] }
0x1073   :  { %4517 = vmatpush1.msra.mxu0 %v9670_v39  ;;  %4588 = vmatpush1.msra.mxu1 %v9673_v34  ;;  %v11995_v39 = vld [vmem:[#allocation73_spill] sm:$0xff]  ;;  %v11996_v34 = vld [vmem:[#allocation99_spill] sm:$0xff] }
0x1074   :  { %4518 = vmatprep.subr.mxu0 %v9676_v57  ;;  %4589 = vmatprep.subr.mxu1 %v9679_v19  ;;  %v11997_v57 = vld [vmem:[#allocation98_spill] sm:$0xff] }
0x1075   :  { %4519 = vmatpush1.msra.mxu0 %v9682_v7  ;;  %4590 = vmatpush1.msra.mxu1 %v9685_v46  ;;  %v11998_v19 = vld [vmem:[#allocation78_spill] sm:$0xff]  ;;  %v12000_v46 = vld [vmem:[#allocation77_spill] sm:$0xff] }
0x1076   :  { %4520 = vmatprep.subr.mxu0 %v9688_v45  ;;  %4591 = vmatprep.subr.mxu1 %v9691_v25  ;;  %v11999_v7 = vld [vmem:[#allocation82_spill] sm:$0xff]  ;;  %v12001_v45 = vld [vmem:[#allocation93_spill] sm:$0xff] }
0x1077   :  { %4521 = vmatpush1.msra.mxu0 %v9694_v26  ;;  %4592 = vmatpush1.msra.mxu1 %v9697_v41  ;;  %v12002_v25 = vld [vmem:[#allocation94_spill] sm:$0xff]  ;;  %v12003_v26 = vld [vmem:[#allocation31_spill] sm:$0xff] }
0x1078   :  { %4522 = vmatprep.subr.mxu0 %v9700_v33  ;;  %4593 = vmatprep.subr.mxu1 %v9703_v50  ;;  %v12004_v41 = vld [vmem:[#allocation106_spill] sm:$0xff]  ;;  %v12005_v33 = vld [vmem:[#allocation33_spill] sm:$0xff]  ;;  %v12006_v50 = vld [vmem:[#allocation120_spill] sm:$0xff] }
0x1079   :  { %4523 = vmatpush1.msra.mxu0 %v9706_v35  ;;  %4594 = vmatpush1.msra.mxu1 %v9709_v8  ;;  %v12007_v35 = vld [vmem:[#allocation34_spill] sm:$0xff]  ;;  %v12008_v8 = vld [vmem:[#allocation121_spill] sm:$0xff] }
0x107a   :  { %4524 = vmatprep.subr.mxu0 %v9712_v16  ;;  %4595 = vmatprep.subr.mxu1 %v9715_v21  ;;  %v12009_v16 = vld [vmem:[#allocation35_spill] sm:$0xff]  ;;  %v12010_v21 = vld [vmem:[#allocation122_spill] sm:$0xff] }
0x107b   :  { %4525 = vmatpush1.msra.mxu0 %v9718_v22  ;;  %4596 = vmatpush1.msra.mxu1 %v9721_v11  ;;  %v12011_v22 = vld [vmem:[#allocation36_spill] sm:$0xff]  ;;  %v12012_v11 = vld [vmem:[#allocation123_spill] sm:$0xff] }
0x107c   :  { %4526 = vmatprep.subr.mxu0 %v9724_v32  ;;  %4597 = vmatprep.subr.mxu1 %v11970_v27  ;;  %v12013_v32 = vld [vmem:[#allocation37_spill] sm:$0xff]  ;;  %v12031_v27 = vld [vmem:[#allocation46_spill] sm:$0xff] }
0x107d   :  { %4527 = vmatpush1.msra.mxu0 %v11971_v37  ;;  %4598 = vmatpush1.msra.mxu1 %v11972_v61  ;;  %v12032_v37 = vld [vmem:[#allocation133_spill] sm:$0xff]  ;;  %v12033_v61 = vld [vmem:[#allocation47_spill] sm:$0xff] }
0x107e   :  { %4528 = vmatprep.subr.mxu0 %v11973_v13  ;;  %4599 = vmatprep.subr.mxu1 %v11974_v2  ;;  %v12034_v13 = vld [vmem:[#allocation134_spill] sm:$0xff]  ;;  %v12035_v2 = vld [vmem:[#allocation48_spill] sm:$0xff] }
0x107f   :  { %4529 = vmatpush1.msra.mxu0 %v11975_v0  ;;  %4600 = vmatpush1.msra.mxu1 %v11976_v14  ;;  %v12036_v0 = vld [vmem:[#allocation135_spill] sm:$0xff]  ;;  %v12037_v14 = vld [vmem:[#allocation49_spill] sm:$0xff] }
0x1080   :  { %4530 = vmatprep.subr.mxu0 %v11977_v29  ;;  %4601 = vmatprep.subr.mxu1 %v11978_v20  ;;  %v12038_v29 = vld [vmem:[#allocation50_spill] sm:$0xff]  ;;  %v12039_v20 = vld [vmem:[#allocation51_spill] sm:$0xff] }
0x1081   :  { %4531 = vmatpush1.msra.mxu0 %v11979_v10  ;;  %4602 = vmatpush1.msra.mxu1 %v11980_v40  ;;  %v12040_v10 = vld [vmem:[#allocation52_spill] sm:$0xff]  ;;  %v12041_v40 = vld [vmem:[#allocation53_spill] sm:$0xff] }
0x1082   :  { %4532 = vmatprep.subr.mxu0 %v11981_v9  ;;  %4603 = vmatprep.subr.mxu1 %v11982_v52  ;;  %v12042_v9 = vld [vmem:[#allocation54_spill] sm:$0xff]  ;;  %v12043_v52 = vld [vmem:[#allocation55_spill] sm:$0xff] }
0x1083   :  { %4533 = vmatpush1.msra.mxu0 %v11983_v6  ;;  %4604 = vmatpush1.msra.mxu1 %v11984_v15  ;;  %v12044_v6 = vld [vmem:[#allocation56_spill] sm:$0xff]  ;;  %v12045_v15 = vld [vmem:[#allocation57_spill] sm:$0xff] }
0x1084   :  { %4534 = vmatprep.subr.mxu0 %v11985_v3  ;;  %4605 = vmatprep.subr.mxu1 %v11986_v12  ;;  %v12046_v3 = vld [vmem:[#allocation58_spill] sm:$0xff]  ;;  %v12047_v12 = vld [vmem:[#allocation59_spill] sm:$0xff] }
0x1085   :  { %4535 = vmatpush1.msra.mxu0 %v11987_v17  ;;  %4606 = vmatpush1.msra.mxu1 %v11988_v58  ;;  %v12048_v17 = vld [vmem:[#allocation60_spill] sm:$0xff]  ;;  %v12049_v58 = vld [vmem:[#allocation61_spill] sm:$0xff] }
0x1086   :  { %4536 = vmatprep.subr.mxu0 %v11989_v30  ;;  %4607 = vmatprep.subr.mxu1 %v11990_v24  ;;  %v12050_v30 = vld [vmem:[#allocation62_spill] sm:$0xff]  ;;  %v12051_v24 = vld [vmem:[#allocation63_spill] sm:$0xff] }
0x1087   :  { %4537 = vmatpush2.msra.mxu0 %v11991_v47  ;;  %4608 = vmatpush2.msra.mxu1 %v11992_v62  ;;  %v12052_v47 = vld [vmem:[#allocation64_spill] sm:$0xff] }
0x1088   :  { %4538 = vmatprep.subr.mxu0 %v11993_v51  ;;  %4609 = vmatprep.subr.mxu1 %v11994_v38  ;;  %v12053_v51 = vld [vmem:[#allocation84_spill] sm:$0xff] }
0x1089   :  { %4539 = vmatpush2.msra.mxu0 %v11995_v39  ;;  %4610 = vmatpush2.msra.mxu1 %v11996_v34 }
0x108a   :  { %4540 = vmatprep.subr.mxu0 %v11997_v57  ;;  %4611 = vmatprep.subr.mxu1 %v11998_v19  ;;  %v12054_v57 = vld [vmem:[#allocation117_spill] sm:$0xff] }
0x108b   :  { %4541 = vmatpush2.msra.mxu0 %v11999_v7  ;;  %4612 = vmatpush2.msra.mxu1 %v12000_v46 }
0x108c   :  { %4542 = vmatprep.subr.mxu0 %v12001_v45  ;;  %4613 = vmatprep.subr.mxu1 %v12002_v25  ;;  %v12055_v45 = vld [vmem:[#allocation85_spill] sm:$0xff] }
0x108d   :  { %4543 = vmatpush2.msra.mxu0 %v12003_v26  ;;  %4614 = vmatpush2.msra.mxu1 %v12004_v41 }
0x108e   :  { %4544 = vmatprep.subr.mxu0 %v12005_v33  ;;  %4615 = vmatprep.subr.mxu1 %v12006_v50  ;;  %v12056_v33 = vld [vmem:[#allocation105_spill] sm:$0xff] }
0x108f   :  { %4545 = vmatpush2.msra.mxu0 %v12007_v35  ;;  %4616 = vmatpush2.msra.mxu1 %v12008_v8 }
0x1090   :  { %4546 = vmatprep.subr.mxu0 %v12009_v16  ;;  %4617 = vmatprep.subr.mxu1 %v12010_v21 }
0x1091   :  { %4547 = vmatpush2.msra.mxu0 %v12011_v22  ;;  %4618 = vmatpush2.msra.mxu1 %v12012_v11 }
0x1092   :  { %4548 = vmatprep.subr.mxu0 %v12013_v32  ;;  %4619 = vmatprep.subr.mxu1 %v12014_v59 }
0x1093   :  { %4549 = vmatpush2.msra.mxu0 %v12015_v55  ;;  %4620 = vmatpush2.msra.mxu1 %v12016_v49 }
0x1094   :  { %4550 = vmatprep.subr.mxu0 %v12017_v54  ;;  %4621 = vmatprep.subr.mxu1 %v12018_v42 }
0x1095   :  { %4551 = vmatpush2.msra.mxu0 %v12019_v56  ;;  %4622 = vmatpush2.msra.mxu1 %v12020_v5 }
0x1096   :  { %4552 = vmatprep.subr.mxu0 %v12021_v18  ;;  %4623 = vmatprep.subr.mxu1 %v12022_v36 }
0x1097   :  { %4553 = vmatpush2.msra.mxu0 %v12023_v43  ;;  %4624 = vmatpush2.msra.mxu1 %v12024_v4  ;;  %v4715_v4 = vld [vmem:[#allocation14 + $0xf8] sm:$0xff] }
0x1098   :  { %4554 = vmatprep.subr.mxu0 %v12025_v44  ;;  %4625 = vmatprep.subr.mxu1 %v12026_v23  ;;  %v4699_v44 = vld [vmem:[#allocation14 + $0x78] sm:$0xff]  ;;  %v4698_v23 = vld [vmem:[#allocation14 + $0x70] sm:$0xff] }
0x1099   :  { %4555 = vmatpush2.msra.mxu0 %v12027_v53  ;;  %4626 = vmatpush2.msra.mxu1 %v12028_v28  ;;  %v4713_v53 = vld [vmem:[#allocation14 + $0xe8] sm:$0xff] }
0x109a   :  { %4556 = vmatprep.subr.mxu0 %v12029_v63  ;;  %4627 = vmatprep.subr.mxu1 %v12030_v31  ;;  %v4697_v28 = vld [vmem:[#allocation14 + $0x68] sm:$0xff]  ;;  %v4712_v63 = vld [vmem:[#allocation14 + $0xe0] sm:$0xff] }
0x109b   :  { %4557 = vmatpush2.msra.mxu0 %v12031_v27  ;;  %4628 = vmatpush2.msra.mxu1 %v12032_v37  ;;  %v4696_v31 = vld [vmem:[#allocation14 + $0x60] sm:$0xff]  ;;  %v4711_v27 = vld [vmem:[#allocation14 + $0xd8] sm:$0xff] }
0x109c   :  { %4558 = vmatprep.subr.mxu0 %v12033_v61  ;;  %4629 = vmatprep.subr.mxu1 %v12034_v13  ;;  %v4695_v37 = vld [vmem:[#allocation14 + $0x58] sm:$0xff]  ;;  %v4710_v61 = vld [vmem:[#allocation14 + $0xd0] sm:$0xff] }
0x109d   :  { %4559 = vmatpush2.msra.mxu0 %v12035_v2  ;;  %4630 = vmatpush2.msra.mxu1 %v12036_v0  ;;  %v4694_v13 = vld [vmem:[#allocation14 + $0x50] sm:$0xff]  ;;  %v4709_v2 = vld [vmem:[#allocation14 + $0xc8] sm:$0xff] }
0x109e   :  { %4560 = vmatprep.subr.mxu0 %v12037_v14  ;;  %4631 = vmatprep.subr.mxu1 %v12038_v29  ;;  %v4693_v0 = vld [vmem:[#allocation14 + $0x48] sm:$0xff]  ;;  %v4708_v14 = vld [vmem:[#allocation14 + $0xc0] sm:$0xff] }
0x109f   :  { %4561 = vmatpush2.msra.mxu0 %v12039_v20  ;;  %4632 = vmatpush2.msra.mxu1 %v12040_v10  ;;  %v4692_v29 = vld [vmem:[#allocation14 + $0x40] sm:$0xff]  ;;  %v4707_v20 = vld [vmem:[#allocation14 + $0xb8] sm:$0xff] }
0x10a0   :  { %4562 = vmatprep.subr.mxu0 %v12041_v40  ;;  %4633 = vmatprep.subr.mxu1 %v12042_v9  ;;  %v4691_v10 = vld [vmem:[#allocation14 + $0x38] sm:$0xff]  ;;  %v4706_v40 = vld [vmem:[#allocation14 + $0xb0] sm:$0xff] }
0x10a1   :  { %4563 = vmatpush2.msra.mxu0 %v12043_v52  ;;  %4634 = vmatpush2.msra.mxu1 %v12044_v6  ;;  %v4690_v9 = vld [vmem:[#allocation14 + $0x30] sm:$0xff]  ;;  %v4705_v52 = vld [vmem:[#allocation14 + $0xa8] sm:$0xff] }
0x10a2   :  { %4564 = vmatprep.subr.mxu0 %v12045_v15  ;;  %4635 = vmatprep.subr.mxu1 %v12046_v3  ;;  %v4689_v6 = vld [vmem:[#allocation14 + $0x28] sm:$0xff]  ;;  %v4704_v15 = vld [vmem:[#allocation14 + $0xa0] sm:$0xff] }
0x10a3   :  { %4565 = vmatpush2.msra.mxu0 %v12047_v12  ;;  %4636 = vmatpush2.msra.mxu1 %v12048_v17  ;;  %v4688_v3 = vld [vmem:[#allocation14 + $0x20] sm:$0xff]  ;;  %v4703_v12 = vld [vmem:[#allocation14 + $0x98] sm:$0xff] }
0x10a4   :  { %4566 = vmatprep.subr.mxu0 %v12049_v58  ;;  %4637 = vmatprep.subr.mxu1 %v12050_v30  ;;  %v4687_v17 = vld [vmem:[#allocation14 + $0x18] sm:$0xff]  ;;  %v4702_v58 = vld [vmem:[#allocation14 + $0x90] sm:$0xff] }
0x10a5   :  { %4567 = vmatpush2.msra.mxu0 %v12051_v24  ;;  %4638 = vmatpush2.msra.mxu1 %v12052_v47  ;;  %v4686_v30 = vld [vmem:[#allocation14 + $0x10] sm:$0xff]  ;;  %v4701_v24 = vld [vmem:[#allocation14 + $0x88] sm:$0xff] }
0x10a6   :  { %4926 = vmatprep.subr.mxu0 %v4715_v4  ;;  %v4685_v47 = vld [vmem:[#allocation14 + $0x8] sm:$0xff] }
0x1126   :  { %v4398_v62 = vpop.f32.mrf.mxu0  ;;  %v4469_v46 = vpop.f32.mrf.mxu1 }
0x1127   :  { %v4474_v38 = vadd.f32 %v4398_v62, %v12053_v51  ;;  %v4476_v25 = vadd.f32 %v4469_v46, %v12055_v45  ;;  %v4700_v62 = vld [vmem:[#allocation14 + $0x80] sm:$0xff] }
0x1128   :  { %v4400_v39 = vpop.f32.mrf.mxu0  ;;  %v4471_v26 = vpop.f32.mrf.mxu1  ;;  %v4684_v51 = vld [vmem:[#allocation14] sm:$0xff] }
0x1129   :  { %v4898_v34 = vmul.f32 -1.442695, %v4474_v38  ;;  %v4475_v19 = vadd.f32 %v4400_v39, %v12054_v57  ;;  %v4900_v41 = vmul.f32 -1.442695, %v4476_v25  ;;  %v4477_v50 = vadd.f32 %v4471_v26, %v12056_v33  ;;  %v12057_v39 = vld [vmem:[#allocation118_spill] sm:$0xff]  ;;  %v12059_v26 = vld [vmem:[#allocation32_spill] sm:$0xff] }
0x112b   :  { %5492 = vpow2.f32 %v4898_v34  ;;  %v4899_v7 = vmul.f32 -1.442695, %v4475_v19 }
0x112d   :  { %5494 = vpow2.f32 %v4899_v7  ;;  %v12058_v7 = vld [vmem:[#allocation119_spill] sm:$0xff] }
0x112e   :  { %5496 = vpow2.f32 %v4900_v41 }
0x112f   :  { %5498 = vtanh.f32 %v4477_v50 }
0x1138   :  { %v5493_v35 = vpop.eup %5492 }
0x1139   :  { %v4487_v8 = vadd.f32 1.0, %v5493_v35  ;;  %v12060_v35 = vld [vmem:[#allocation74_spill] sm:$0xff] }
0x113a   :  { %v5495_v16 = vpop.eup %5494 }
0x113b   :  { %5500 = vrcp.f32 %v4487_v8  ;;  %v4488_v21 = vadd.f32 1.0, %v5495_v16  ;;  %v5497_v22 = vpop.eup %5496 }
0x113c   :  { %v5499_v11 = vpop.eup %5498  ;;  %v4489_v49 = vadd.f32 1.0, %v5497_v22 }
0x113d   :  { %5502 = vrcp.f32 %v4488_v21 }
0x113e   :  { %5504 = vrcp.f32 %v4489_v49 }
0x1148   :  { %v5501_v32 = vpop.eup %5500 }
0x1149   :  { %v4498_v59 = vmul.f32 %v5501_v32, %v5499_v11 }
0x114a   :  { %v5503_v55 = vpop.eup %5502 }
0x114b   :  { %v4497_v54 = vmul.f32 %v5503_v55, %v9983_v60  ;;  %v5505_v56 = vpop.eup %5504  ;;  %v4714_v60 = vld [vmem:[#allocation14 + $0xf0] sm:$0xff] }
0x114d   :  { %v10119_v42 = vadd.f32 %v4498_v59, %v4497_v54 }
0x114f   :  { %5506 = vtanh.f32 %v10119_v42 }
0x115c   :  { %v5507_v5 = vpop.eup %5506 }
0x115d   :  { %v4501_v18 = vmul.f32 %v5507_v5, %v5505_v56 }
0x115f   :  { %v4503_v36 = vmul.f32 %v4501_v18, %v11530_v48  ;;  %v4502_v43 = vmul.f32 %v11531_v1, %v4501_v18 }
0x1161   :  { %4568 = vmatprep.mubr.f32.mxu0 %v4503_v36  ;;  %4639 = vmatprep.mubr.f32.mxu1 %v4503_v36 }
0x1162   :  { %4569 = vmatmul.mubr.f32.vlgmr.msra.gmra.mxu0 %v4502_v43  ;;  %4640 = vmatmul.mubr.f32.vlgmr.msra.gmra.mxu1 %v4502_v43 }
0x1163   :  { %4927 = vmatpush3.msra.mxu0 %v4699_v44 }
0x1164   :  { %4928 = vmatprep.subr.mxu0 %v4714_v60 }
0x1165   :  { %4929 = vmatpush3.msra.mxu0 %v4698_v23 }
0x1166   :  { %4930 = vmatprep.subr.mxu0 %v4713_v53 }
0x1167   :  { %4931 = vmatpush3.msra.mxu0 %v4697_v28 }
0x1168   :  { %4932 = vmatprep.subr.mxu0 %v4712_v63 }
0x1169   :  { %4933 = vmatpush3.msra.mxu0 %v4696_v31 }
0x116a   :  { %4934 = vmatprep.subr.mxu0 %v4711_v27 }
0x116b   :  { %4935 = vmatpush3.msra.mxu0 %v4695_v37 }
0x116c   :  { %4936 = vmatprep.subr.mxu0 %v4710_v61 }
0x116d   :  { %4937 = vmatpush3.msra.mxu0 %v4694_v13 }
0x116e   :  { %4938 = vmatprep.subr.mxu0 %v4709_v2 }
0x116f   :  { %4939 = vmatpush3.msra.mxu0 %v4693_v0 }
0x1170   :  { %4940 = vmatprep.subr.mxu0 %v4708_v14 }
0x1171   :  { %4941 = vmatpush3.msra.mxu0 %v4692_v29 }
0x1172   :  { %4942 = vmatprep.subr.mxu0 %v4707_v20 }
0x1173   :  { %4943 = vmatpush3.msra.mxu0 %v4691_v10 }
0x1174   :  { %4944 = vmatprep.subr.mxu0 %v4706_v40 }
0x1175   :  { %4945 = vmatpush3.msra.mxu0 %v4690_v9 }
0x1176   :  { %4946 = vmatprep.subr.mxu0 %v4705_v52 }
0x1177   :  { %4947 = vmatpush3.msra.mxu0 %v4689_v6 }
0x1178   :  { %4948 = vmatprep.subr.mxu0 %v4704_v15 }
0x1179   :  { %4949 = vmatpush3.msra.mxu0 %v4688_v3 }
0x117a   :  { %4950 = vmatprep.subr.mxu0 %v4703_v12 }
0x117b   :  { %4951 = vmatpush3.msra.mxu0 %v4687_v17 }
0x117c   :  { %4952 = vmatprep.subr.mxu0 %v4702_v58 }
0x117d   :  { %4953 = vmatpush3.msra.mxu0 %v4686_v30 }
0x117e   :  { %4954 = vmatprep.subr.mxu0 %v4701_v24 }
0x117f   :  { %4955 = vmatpush3.msra.mxu0 %v4685_v47 }
0x1180   :  { %4956 = vmatprep.subr.mxu0 %v4700_v62 }
0x1181   :  { %4957 = vmatpush3.msra.mxu0 %v4684_v51 }
0x1222   :  { %v4570_v38 = vpop.f32.mrf.mxu0  ;;  %v4641_v25 = vpop.f32.mrf.mxu1 }
0x1223   :  { %v4646_v34 = vadd.f32 %v4570_v38, %v12057_v39  ;;  %v4648_v41 = vadd.f32 %v4641_v25, %v12059_v26 }
0x1224   :  { %v4572_v57 = vpop.f32.mrf.mxu0  ;;  %v4643_v33 = vpop.f32.mrf.mxu1 }
0x1225   :  { %v4901_v19 = vmul.f32 -1.442695, %v4646_v34  ;;  %v4647_v46 = vadd.f32 %v4572_v57, %v12058_v7  ;;  %v4903_v50 = vmul.f32 -1.442695, %v4648_v41  ;;  %v4649_v8 = vadd.f32 %v4643_v33, %v12060_v35 }
0x1227   :  { %5508 = vpow2.f32 %v4901_v19  ;;  %v4902_v45 = vmul.f32 -1.442695, %v4647_v46 }
0x1229   :  { %5510 = vpow2.f32 %v4902_v45 }
0x122a   :  { %5512 = vpow2.f32 %v4903_v50 }
0x122b   :  { %5514 = vtanh.f32 %v4649_v8 }
0x1234   :  { %v5509_v16 = vpop.eup %5508 }
0x1235   :  { %v4659_v21 = vadd.f32 1.0, %v5509_v16 }
0x1236   :  { %v5511_v22 = vpop.eup %5510 }
0x1237   :  { %5516 = vrcp.f32 %v4659_v21  ;;  %v4660_v11 = vadd.f32 1.0, %v5511_v22  ;;  %v5513_v32 = vpop.eup %5512 }
0x1238   :  { %v5515_v59 = vpop.eup %5514  ;;  %v4661_v56 = vadd.f32 1.0, %v5513_v32 }
0x1239   :  { %5518 = vrcp.f32 %v4660_v11 }
0x123a   :  { %5520 = vrcp.f32 %v4661_v56 }
0x1244   :  { %v5517_v55 = vpop.eup %5516 }
0x1245   :  { %v4670_v49 = vmul.f32 %v5517_v55, %v5515_v59 }
0x1246   :  { %v5519_v54 = vpop.eup %5518 }
0x1247   :  { %v4669_v5 = vmul.f32 %v5519_v54, %v10119_v42  ;;  %v5521_v36 = vpop.eup %5520  ;;  %v4904_v42 = vld [vmem:[%s10153_s13] ss:$0 sm:$0xff]  ;;  %s5944_s13 = scalar_lea.vmem %s4813_s16, 32 }
0x1248   :  { %p5945_p12 = scmp.ne.s32.totalorder %s4813_s16, %s5944_s13  ;;  %p5950_p0 = scmp.lt.s32.totalorder %s5944_s13, %s5944_s13 }
0x1249   :  { %v4671_v18 = vadd.f32 %v4670_v49, %v4669_v5 }
0x124a   :  { %p5951_p1 = por %p5950_p0, %p5949_p13 }
0x124b   :  { %5522 = vtanh.f32 %v4671_v18 }
0x124c   :  { %p5952_p2 = pnand %p5951_p1, %p5945_p12 }
0x1258   :  { %v5523_v43 = vpop.eup %5522 }
0x1259   :  { %v4673_v4 = vmul.f32 %v5523_v43, %v5521_v36 }
0x125b   :  { %v4675_v44 = vmul.f32 %v4673_v4, %v11530_v48  ;;  %v4674_v60 = vmul.f32 %v11531_v1, %v4673_v4 }
0x125d   :  { %v4679_v23 = vrot.slane %v4675_v44, 2  ;;  %v4678_v53 = vrot.slane %v4674_v60, 2 }
0x125f   :  { %v4683_v28 = vadd.f32 %v4679_v23, %v4675_v44  ;;  %v4682_v63 = vadd.f32 %v4678_v53, %v4674_v60 }
0x1261   :  { %4787 = vmatprep.mubr.f32.mxu0 %v4683_v28 }
0x1262   :  { %4788 = vmatmul.mubr.f32.vlgmr.msra.gmra.mxu0 %v4682_v63 }
0x1322   :  { %v4958_v31 = vpop.f32.mrf.mxu0 }
0x1324   :  { %v4959_v27 = vpop.f32.mrf.mxu0 }
0x1325   :  { %v4960_v37 = vadd.f32 %v4959_v27, %v4958_v31 }
0x1327   :  { %v4790_v61 = vadd.f32 %v4960_v37, %v4904_v42 }
0x1329   :  { %v4794_v13 = vsel %vm4793_vm7, %v4790_v61, -inf }
0x132a   :  { %4795 = vmax.xlane.f32.xlu0 %v4794_v13 }
0x13b3   :  { %v4796_v48 = vpop.xlane.xlu0 %4795 }
0x13b4   :  { %v4797_v1 = vsub.f32 %v4790_v61, %v4796_v48 }
0x13b6   :  { %v4798_v2 = vmul.f32 1.442695, %v4797_v1 }
0x13b8   :  { %5524 = vpow2.f32 %v4798_v2 }
0x13c5   :  { %v5525_v0 = vpop.eup %5524 }
0x13c6   :  { %v4800_v14 = vsel %vm4793_vm7, %v5525_v0, 0.0 }
0x13c7   :  { %4801 = vadd.xlane.f32.xlu0 %v4800_v14 }
0x1450   :  { %v4802_v29 = vpop.xlane.xlu0 %4801 }
0x1451   :  { %5526 = vrcp.f32 %v4802_v29 }
0x145e   :  { %v5527_v20 = vpop.eup %5526 }
0x145f   :  { %v4804_v10 = vmul.f32 %v5527_v20, %v5525_v0 }
0x1461   :  { %4805 = vst.msk [vmem:[#allocation15] sm:$0x3] %vm4793_vm7, %v4804_v10 }
0x1462   :  { %5955 = shalt.err (!%p5952_p2)
}
0x1463   :  { %4815 = dma.vmem_to_hbm [thread:$0]  %s4813_s16, 32, %s10154_s14, [#allocation8]  }
0x1464   :  { %5976 = dma.done.wait [#allocation8], 32  }
0x1465   :  { %5977 = vsyncadd [#allocation8], 4294967264 }
0x1466   :  { %4819 = vsyncpa [#allocation7], 1 }
0x1467   :  { %4820 = vsyncpa [#allocation10], 1 }
0x1468   :  { %4821 = vsyncpa [#allocation13], 1 }
0x1469   :  { %4822 = vsyncpa [#allocation8], 1 }
0x146a   :  { %4823 = vsyncmov [#allocation5] }
0x146d   :  { %s4824_s0 = vpop.sfrf %4823 }
0x146e   :  { %p4905_p3 = scmp.ne.s32.totalorder %s4824_s0, 0 }
0x1470   :  { %4828 = shalt.err (%p4905_p3)  }
0x1471   :  { %4830 = vsyncmov [#allocation5 + $0x1] }
0x1474   :  { %s4831_s25 = vpop.sfrf %4830 }
0x1475   :  { %p4906_p4 = scmp.ne.s32.totalorder %s4831_s25, 0 }
0x1477   :  { %4835 = shalt.err (%p4906_p4)  }
0x1478   :  { %4837 = vsyncmov [#allocation5 + $0x2] }
0x147b   :  { %s4838_s5 = vpop.sfrf %4837 }
0x147c   :  { %p4907_p5 = scmp.ne.s32.totalorder %s4838_s5, 0 }
0x147e   :  { %4842 = shalt.err (%p4907_p5)  }

</bundles_post_ra>
